<compile_context>
chip_gen: v7x
topology: tpu7x:2x2x1
jax: 0.10.0
libtpu: 0.0.40
codegen_flags: <defaults>
</compile_context>

<pallas_src>
import functools

import jax
import jax.numpy as jnp
from jax import lax
from jax.experimental import pallas as pl
from jax.experimental.pallas import tpu as pltpu
import numpy as np

KSIZE, STRIDE, PAD = 4, 2, 1
LRELU_SLOPE = 0.2
BN_EPS = 1e-5
_LANE = 128
_VMEM_LIMIT = 32 * 1024 * 1024   # generous vs ~3 MiB live; safe on v5e/v6e/v7x


def _round_up(v, m):
    return -(-v // m) * m


# ----------------------------------------------------------------------------
# Kernel 1: fused LeakyReLU -> down conv -> ReLU -> up (transposed) conv
#           -> raw y (bf16, lane-packed phases) + per-sample BN partial sums.
# One grid step == one batch sample; all taps built in-kernel from VMEM.
# ----------------------------------------------------------------------------
def _fused_kernel(xpar_ref, wd_ref, wu_ref, y_ref, stats_ref, xlr_ref, hp_ref,
                  *, ho, wo, hop, nip, nfp, slope):
    m1 = ho * wo

    # LeakyReLU once per input element (not per duplicated tap).
    xv = xpar_ref[...]
    xlr_ref[...] = jnp.where(xv >= 0, xv, xv * slope)

    # ---- down conv: 16 taps, kh = 2*dy + py, kw = 2*dx + px ----------------
    # xlr_ref rows are parity-split: row p*hop + i == padded input row 2*i+py,
    # col j == padded input col 2*j+px, with p = py*2 + px.
    acc = jnp.zeros((m1, nip), jnp.float32)
    for dy in range(2):
        for py in range(2):
            for dx in range(2):
                for px in range(2):
                    p = py * 2 + px
                    a = xlr_ref[p * hop + dy:p * hop + dy + ho,
                                dx:dx + wo, :].reshape(m1, -1)
                    acc += jnp.dot(
                        a, wd_ref[(2 * dy + py) * 4 + (2 * dx + px)],
                        preferred_element_type=jnp.float32)

    # ---- ReLU -> zero-bordered hdn tile (bf16) resident in VMEM ------------
    hp_ref[...] = jnp.zeros_like(hp_ref)
    hp_ref[1:1 + ho, 1:1 + wo, :] = (
        jnp.maximum(acc, 0.0).reshape(ho, wo, nip).astype(hp_ref.dtype))

    # ---- up transposed conv: 4 output-parity phases x 2x2 effective taps ---
    s1 = jnp.zeros((1, nfp), jnp.float32)
    s2 = jnp.zeros((1, nfp), jnp.float32)
    for qy in range(2):
        for qx in range(2):
            q = qy * 2 + qx
            acc2 = jnp.zeros((m1, nfp), jnp.float32)
            for dy in range(2):
                for dx in range(2):
                    hs = hp_ref[qy + dy:qy + dy + ho,
                                qx + dx:qx + dx + wo, :].reshape(m1, -1)
                    acc2 += jnp.dot(hs, wu_ref[q * 4 + dy * 2 + dx],
                                    preferred_element_type=jnp.float32)
            # lane-dense bf16 store: phase q lives in lanes [q*nfp,(q+1)*nfp)
            y_ref[:, :, q * nfp:(q + 1) * nfp] = (
                acc2.reshape(ho, wo, nfp).astype(y_ref.dtype))
            # BN partials from the f32 accumulator (pre bf16 cast)
            s1 = s1 + jnp.sum(acc2, axis=0, keepdims=True)
            s2 = s2 + jnp.sum(acc2 * acc2, axis=0, keepdims=True)
    stats_ref[0:1, :] = s1
    stats_ref[1:2, :] = s2


# ----------------------------------------------------------------------------
# Kernel 2: y * scale + shift (scale/shift pre-tiled to the phase-packed lanes)
# ----------------------------------------------------------------------------
def _bn_apply_kernel(y_ref, scale_ref, shift_ref, o_ref):
    y = y_ref[...].astype(jnp.float32)
    o_ref[...] = (y * scale_ref[...] + shift_ref[...]).astype(o_ref.dtype)


# ----------------------------------------------------------------------------
# Full innermost UnetBlock forward
# ----------------------------------------------------------------------------
def unet_innermost_block(x, w_down, w_up, gamma, beta,
                         slope=LRELU_SLOPE, eps=BN_EPS):
    """x: (N, Cin, H, W); w_down: (ni, Cin, 4, 4); w_up: (ni, nf, 4, 4)."""
    n, cin, hh, ww = x.shape
    ni = w_down.shape[0]
    nf = w_up.shape[1]
    assert hh % STRIDE == 0 and ww % STRIDE == 0
    ho, wo = hh // STRIDE, ww // STRIDE
    hop, wop = ho + 1, wo + 1
    cp = _round_up(cin, _LANE)
    nip = _round_up(ni, _LANE)
    nfp = _round_up(nf, _LANE)

    # ---- 1x-volume layout prep (no 16x im2col materialization in HBM) ------
    x_nhwc = jnp.transpose(x, (0, 2, 3, 1))
    xp = jnp.pad(x_nhwc, ((0, 0), (PAD, PAD), (PAD, PAD), (0, cp - cin)))
    # parity split: xpar[b, p*hop + i, j, :] = xp[b, 2*i + py, 2*j + px, :]
    xpar = jnp.stack([xp[:, py::2, px::2, :]
                      for py in range(2) for px in range(2)], axis=1)
    xpar = xpar.reshape(n, 4 * hop, wop, cp).astype(jnp.bfloat16)

    # down-conv tap matrices: index kh*4 + kw -> (cp, nip)
    wd_all = jnp.stack(
        [jnp.pad(w_down[:, :, kh, kw].T, ((0, cp - cin), (0, nip - ni)))
         for kh in range(KSIZE) for kw in range(KSIZE)], axis=0
    ).astype(jnp.bfloat16)                                    # (16, cp, nip)

    # up-conv phase/tap matrices: index q*4 + dy*2 + dx -> (nip, nfp)
    wu_all = jnp.stack(
        [jnp.pad(w_up[:, :, 3 - qy - 2 * dy, 3 - qx - 2 * dx],
                 ((0, nip - ni), (0, nfp - nf)))
         for qy in range(2) for qx in range(2)
         for dy in range(2) for dx in range(2)], axis=0
    ).astype(jnp.bfloat16)                                    # (16, nip, nfp)

    kern = functools.partial(_fused_kernel, ho=ho, wo=wo, hop=hop,
                             nip=nip, nfp=nfp, slope=slope)
    y_raw, stats = pl.pallas_call(
        kern,
        out_shape=(jax.ShapeDtypeStruct((n, ho, wo, 4 * nfp), jnp.bfloat16),
                   jax.ShapeDtypeStruct((n, 2, nfp), jnp.float32)),
        grid=(n,),
        in_specs=[pl.BlockSpec((None, 4 * hop, wop, cp),
                               lambda b: (b, 0, 0, 0)),
                  pl.BlockSpec((16, cp, nip), lambda b: (0, 0, 0)),
                  pl.BlockSpec((16, nip, nfp), lambda b: (0, 0, 0))],
        out_specs=(pl.BlockSpec((None, ho, wo, 4 * nfp),
                                lambda b: (b, 0, 0, 0)),
                   pl.BlockSpec((None, 2, nfp), lambda b: (b, 0, 0))),
        scratch_shapes=[pltpu.VMEM((4 * hop, wop, cp), jnp.bfloat16),
                        pltpu.VMEM((ho + 2, wo + 2, nip), jnp.bfloat16)],
        compiler_params=pltpu.CompilerParams(
            dimension_semantics=("parallel",),
            vmem_limit_bytes=_VMEM_LIMIT),
    )(xpar, wd_all, wu_all)

    # ---- global BatchNorm stats (training mode, biased variance) -----------
    tot = jnp.sum(stats, axis=0)                              # (2, nfp)
    m_total = jnp.float32(n * hh * ww)
    mean = tot[0] / m_total
    var = jnp.maximum(tot[1] / m_total - mean * mean, 0.0)
    gamma_p = jnp.pad(gamma.astype(jnp.float32), (0, nfp - nf))
    beta_p = jnp.pad(beta.astype(jnp.float32), (0, nfp - nf))
    scale = gamma_p * lax.rsqrt(var + eps)
    shift = beta_p - mean * scale
    scale4 = jnp.tile(scale, 4).reshape(1, 4 * nfp)
    shift4 = jnp.tile(shift, 4).reshape(1, 4 * nfp)

    y_bn = pl.pallas_call(
        _bn_apply_kernel,
        out_shape=jax.ShapeDtypeStruct((n, ho, wo, 4 * nfp), jnp.bfloat16),
        grid=(n,),
        in_specs=[pl.BlockSpec((None, ho, wo, 4 * nfp),
                               lambda b: (b, 0, 0, 0)),
                  pl.BlockSpec((1, 4 * nfp), lambda b: (0, 0)),
                  pl.BlockSpec((1, 4 * nfp), lambda b: (0, 0))],
        out_specs=pl.BlockSpec((None, ho, wo, 4 * nfp),
                               lambda b: (b, 0, 0, 0)),
        input_output_aliases={0: 0},    # in-place: no extra HBM allocation
        compiler_params=pltpu.CompilerParams(
            dimension_semantics=("parallel",),
            vmem_limit_bytes=_VMEM_LIMIT),
    )(y_raw, scale4, shift4)

    # ---- phase re-interleave + skip concat (tiny tail at innermost sizes) --
    y = y_bn.reshape(n, ho, wo, 4, nfp)[..., :nf]
    y = y.reshape(n, ho, wo, 2, 2, nf)                  # (b, oy, ox, qy, qx, c)
    y = jnp.transpose(y, (0, 5, 1, 3, 2, 4)).reshape(n, nf, hh, ww)
    return jnp.concatenate([x, y.astype(x.dtype)], axis=1)


# ----------------------------------------------------------------------------
# Pure-JAX reference (mirrors the PyTorch module) for a numerical sanity check
# ----------------------------------------------------------------------------
def _reference(x, w_down, w_up, gamma, beta, slope=LRELU_SLOPE, eps=BN_EPS):
    a = jnp.where(x >= 0, x, slope * x)
    hdn = lax.conv_general_dilated(
        a, w_down, (STRIDE, STRIDE), ((PAD, PAD), (PAD, PAD)),
        dimension_numbers=("NCHW", "OIHW", "NCHW"))
    hdn = jnp.maximum(hdn, 0.0)
    w_up_eq = jnp.transpose(w_up, (1, 0, 2, 3))[:, :, ::-1, ::-1]
    ep = KSIZE - 1 - PAD
    y = lax.conv_general_dilated(
        hdn, w_up_eq, (1, 1), ((ep, ep), (ep, ep)),
        lhs_dilation=(STRIDE, STRIDE),
        dimension_numbers=("NCHW", "OIHW", "NCHW"))
    mean = y.mean(axis=(0, 2, 3), keepdims=True)
    var = ((y - mean) ** 2).mean(axis=(0, 2, 3), keepdims=True)
    yn = (y - mean) / jnp.sqrt(var + eps)
    yn = yn * gamma.reshape(1, -1, 1, 1) + beta.reshape(1, -1, 1, 1)
    return jnp.concatenate([x, yn], axis=1)


if __name__ == "__main__":
    key = jax.random.PRNGKey(0)
    k_x, k_wd, k_wu, k_g, k_b = jax.random.split(key, 5)

    N, NF, NI, H, W = 2, 4, 8, 16, 16        # input_channels defaults to nf
    x = jax.random.normal(k_x, (N, NF, H, W), dtype=jnp.float32)
    w_down = 0.1 * jax.random.normal(k_wd, (NI, NF, KSIZE, KSIZE), dtype=jnp.float32)
    w_up = 0.1 * jax.random.normal(k_wu, (NI, NF, KSIZE, KSIZE), dtype=jnp.float32)
    gamma = 1.0 + 0.1 * jax.random.normal(k_g, (NF,), dtype=jnp.float32)
    beta = 0.1 * jax.random.normal(k_b, (NF,), dtype=jnp.float32)

    out = jax.jit(unet_innermost_block)(x, w_down, w_up, gamma, beta)
    out = jax.block_until_ready(out)

    ref = jax.block_until_ready(_reference(x, w_down, w_up, gamma, beta))
    assert out.shape == (N, 2 * NF, H, W), out.shape
    # bf16 matmul inputs / bf16 y intermediate (f32 accumulation and stats).
    np.testing.assert_allclose(np.asarray(out), np.asarray(ref),
                               rtol=6e-2, atol=6e-2)

    print("KERNEL_OK")
</pallas_src>

<mosaic_0001>
module attributes {stable_mosaic.version = 11 : i64} {
  func.func @_bn_apply_kernel(%arg0: i32, %arg1: memref<1x8x8x512xbf16, #tpu.memory_space<vmem>>, %arg2: memref<1x512xf32, #tpu.memory_space<vmem>>, %arg3: memref<1x512xf32, #tpu.memory_space<vmem>>, %arg4: memref<1x8x8x512xbf16, #tpu.memory_space<vmem>>) attributes {dimension_semantics = [#tpu.dimension_semantics<parallel>], iteration_bounds = array<i64: 2>, scalar_prefetch = 0 : i64, scratch_operands = 0 : i64, tpu.core_type = #tpu.core_type<tc>, window_params = [{transform_indices = @transform_0, window_bounds = array<i64: 1, 8, 8, 512>}, {pipeline_mode = #tpu.pipeline_mode<synchronous>, transform_indices = @transform_1, window_bounds = array<i64: 1, 512>}, {pipeline_mode = #tpu.pipeline_mode<synchronous>, transform_indices = @transform_2, window_bounds = array<i64: 1, 512>}, {transform_indices = @transform_3, window_bounds = array<i64: 1, 8, 8, 512>}]} {
    %c0 = arith.constant 0 : index
    %c0_0 = arith.constant 0 : index
    %c0_1 = arith.constant 0 : index
    %c0_2 = arith.constant 0 : index
    %0 = vector.load %arg1[%c0, %c0_0, %c0_1, %c0_2] : memref<1x8x8x512xbf16, #tpu.memory_space<vmem>>, vector<1x8x8x512xbf16>
    %1 = vector.shape_cast %0 : vector<1x8x8x512xbf16> to vector<8x8x512xbf16>
    %2 = arith.extf %1 : vector<8x8x512xbf16> to vector<8x8x512xf32>
    %c0_3 = arith.constant 0 : index
    %c0_4 = arith.constant 0 : index
    %3 = vector.load %arg2[%c0_3, %c0_4] : memref<1x512xf32, #tpu.memory_space<vmem>>, vector<1x512xf32>
    %4 = vector.shape_cast %3 : vector<1x512xf32> to vector<1x1x512xf32>
    %5 = vector.broadcast %4 : vector<1x1x512xf32> to vector<8x8x512xf32>
    %6 = arith.mulf %2, %5 : vector<8x8x512xf32>
    %c0_5 = arith.constant 0 : index
    %c0_6 = arith.constant 0 : index
    %7 = vector.load %arg3[%c0_5, %c0_6] : memref<1x512xf32, #tpu.memory_space<vmem>>, vector<1x512xf32>
    %8 = vector.shape_cast %7 : vector<1x512xf32> to vector<1x1x512xf32>
    %9 = vector.broadcast %8 : vector<1x1x512xf32> to vector<8x8x512xf32>
    %10 = arith.addf %6, %9 : vector<8x8x512xf32>
    %11 = arith.truncf %10 : vector<8x8x512xf32> to vector<8x8x512xbf16>
    %c0_7 = arith.constant 0 : index
    %c0_8 = arith.constant 0 : index
    %c0_9 = arith.constant 0 : index
    %c0_10 = arith.constant 0 : index
    %12 = vector.load %arg4[%c0_7, %c0_8, %c0_9, %c0_10] : memref<1x8x8x512xbf16, #tpu.memory_space<vmem>>, vector<1x8x8x512xbf16>
    %13 = vector.shape_cast %12 : vector<1x8x8x512xbf16> to vector<8x8x512xbf16>
    %14 = vector.shape_cast %11 : vector<8x8x512xbf16> to vector<1x8x8x512xbf16>
    tpu.vector_store %arg4[%c0_7, %c0_8, %c0_9, %c0_10], %14 {strides = array<i32>} : memref<1x8x8x512xbf16, #tpu.memory_space<vmem>>, vector<1x8x8x512xbf16>,
    return
  }
  func.func @transform_0(%arg0: i32) -> (i32, i32, i32, i32) {
    %c0_i32 = arith.constant 0 : i32
    %c0_i32_0 = arith.constant 0 : i32
    %c0_i32_1 = arith.constant 0 : i32
    %c0_i32_2 = arith.constant 0 : i32
    return %arg0, %c0_i32, %c0_i32_0, %c0_i32_1 : i32, i32, i32, i32
  }
  func.func @transform_1(%arg0: i32) -> (i32, i32) {
    %c0_i32 = arith.constant 0 : i32
    %c0_i32_0 = arith.constant 0 : i32
    %c0_i32_1 = arith.constant 0 : i32
    return %c0_i32, %c0_i32_0 : i32, i32
  }
  func.func @transform_2(%arg0: i32) -> (i32, i32) {
    %c0_i32 = arith.constant 0 : i32
    %c0_i32_0 = arith.constant 0 : i32
    %c0_i32_1 = arith.constant 0 : i32
    return %c0_i32, %c0_i32_0 : i32, i32
  }
  func.func @transform_3(%arg0: i32) -> (i32, i32, i32, i32) {
    %c0_i32 = arith.constant 0 : i32
    %c0_i32_0 = arith.constant 0 : i32
    %c0_i32_1 = arith.constant 0 : i32
    %c0_i32_2 = arith.constant 0 : i32
    return %arg0, %c0_i32, %c0_i32_0, %c0_i32_1 : i32, i32, i32, i32
  }
}

module attributes {stable_mosaic.version = 11 : i64} {
  func.func @_fused_kernel(%arg0: i32, %arg1: memref<1x36x9x128xbf16, #tpu.memory_space<vmem>>, %arg2: memref<16x128x128xbf16, #tpu.memory_space<vmem>>, %arg3: memref<16x128x128xbf16, #tpu.memory_space<vmem>>, %arg4: memref<1x8x8x512xbf16, #tpu.memory_space<vmem>>, %arg5: memref<1x2x128xf32, #tpu.memory_space<vmem>>, %arg6: memref<36x9x128xbf16, #tpu.memory_space<vmem>>, %arg7: memref<10x10x128xbf16, #tpu.memory_space<vmem>>) attributes {dimension_semantics = [#tpu.dimension_semantics<parallel>], iteration_bounds = array<i64: 2>, scalar_prefetch = 0 : i64, scratch_operands = 2 : i64, tpu.core_type = #tpu.core_type<tc>, window_params = [{transform_indices = @transform_0, window_bounds = array<i64: 1, 36, 9, 128>}, {pipeline_mode = #tpu.pipeline_mode<synchronous>, transform_indices = @transform_1, window_bounds = array<i64: 16, 128, 128>}, {pipeline_mode = #tpu.pipeline_mode<synchronous>, transform_indices = @transform_2, window_bounds = array<i64: 16, 128, 128>}, {transform_indices = @transform_3, window_bounds = array<i64: 1, 8, 8, 512>}, {transform_indices = @transform_4, window_bounds = array<i64: 1, 2, 128>}]} {
    %c0 = arith.constant 0 : index
    %c0_0 = arith.constant 0 : index
    %c0_1 = arith.constant 0 : index
    %c0_2 = arith.constant 0 : index
    %0 = vector.load %arg1[%c0, %c0_0, %c0_1, %c0_2] : memref<1x36x9x128xbf16, #tpu.memory_space<vmem>>, vector<1x36x9x128xbf16>
    %1 = vector.shape_cast %0 : vector<1x36x9x128xbf16> to vector<36x9x128xbf16>
    %cst = arith.constant 0.000000e+00 : bf16
    %2 = vector.broadcast %cst : bf16 to vector<36x9x128xbf16>
    %3 = arith.cmpf oge, %1, %2 : vector<36x9x128xbf16>
    %cst_3 = arith.constant 2.001950e-01 : bf16
    %4 = vector.broadcast %cst_3 : bf16 to vector<36x9x128xbf16>
    %5 = arith.mulf %1, %4 : vector<36x9x128xbf16>
    %6 = arith.select %3, %1, %5 : vector<36x9x128xi1>, vector<36x9x128xbf16>
    %c0_4 = arith.constant 0 : index
    %c0_5 = arith.constant 0 : index
    %c0_6 = arith.constant 0 : index
    %7 = vector.load %arg6[%c0_4, %c0_5, %c0_6] : memref<36x9x128xbf16, #tpu.memory_space<vmem>>, vector<36x9x128xbf16>
    tpu.vector_store %arg6[%c0_4, %c0_5, %c0_6], %6 {strides = array<i32>} : memref<36x9x128xbf16, #tpu.memory_space<vmem>>, vector<36x9x128xbf16>,
    %cst_7 = arith.constant 0.000000e+00 : f32
    %8 = vector.broadcast %cst_7 : f32 to vector<64x128xf32>
    %c0_8 = arith.constant 0 : index
    %c0_9 = arith.constant 0 : index
    %c0_10 = arith.constant 0 : index
    %9 = vector.load %arg6[%c0_8, %c0_9, %c0_10] : memref<36x9x128xbf16, #tpu.memory_space<vmem>>, vector<8x8x128xbf16>
    %10 = vector.shape_cast %9 : vector<8x8x128xbf16> to vector<64x128xbf16>
    %c0_11 = arith.constant 0 : index
    %c0_12 = arith.constant 0 : index
    %c0_13 = arith.constant 0 : index
    %11 = vector.load %arg2[%c0_11, %c0_12, %c0_13] : memref<16x128x128xbf16, #tpu.memory_space<vmem>>, vector<1x128x128xbf16>
    %12 = vector.shape_cast %11 : vector<1x128x128xbf16> to vector<128x128xbf16>
    %cst_14 = arith.constant dense<0.000000e+00> : vector<64x128xf32>
    %13 = tpu.matmul %10, %12, %cst_14 {dimension_numbers = #tpu.dot_dimension_numbers<[1], [0], [0], [1], [0, 0, 1, 1], [], []>} : vector<64x128xbf16>, vector<128x128xbf16>, vector<64x128xf32> -> vector<64x128xf32>
    %14 = arith.addf %8, %13 : vector<64x128xf32>
    %c9 = arith.constant 9 : index
    %c0_15 = arith.constant 0 : index
    %c0_16 = arith.constant 0 : index
    %15 = vector.load %arg6[%c9, %c0_15, %c0_16] : memref<36x9x128xbf16, #tpu.memory_space<vmem>>, vector<8x8x128xbf16>
    %16 = vector.shape_cast %15 : vector<8x8x128xbf16> to vector<64x128xbf16>
    %c1 = arith.constant 1 : index
    %c0_17 = arith.constant 0 : index
    %c0_18 = arith.constant 0 : index
    %17 = vector.load %arg2[%c1, %c0_17, %c0_18] : memref<16x128x128xbf16, #tpu.memory_space<vmem>>, vector<1x128x128xbf16>
    %18 = vector.shape_cast %17 : vector<1x128x128xbf16> to vector<128x128xbf16>
    %cst_19 = arith.constant dense<0.000000e+00> : vector<64x128xf32>
    %19 = tpu.matmul %16, %18, %cst_19 {dimension_numbers = #tpu.dot_dimension_numbers<[1], [0], [0], [1], [0, 0, 1, 1], [], []>} : vector<64x128xbf16>, vector<128x128xbf16>, vector<64x128xf32> -> vector<64x128xf32>
    %20 = arith.addf %14, %19 : vector<64x128xf32>
    %c0_20 = arith.constant 0 : index
    %c1_21 = arith.constant 1 : index
    %c0_22 = arith.constant 0 : index
    %21 = vector.load %arg6[%c0_20, %c1_21, %c0_22] : memref<36x9x128xbf16, #tpu.memory_space<vmem>>, vector<8x8x128xbf16>
    %22 = vector.shape_cast %21 : vector<8x8x128xbf16> to vector<64x128xbf16>
    %c2 = arith.constant 2 : index
    %c0_23 = arith.constant 0 : index
    %c0_24 = arith.constant 0 : index
    %23 = vector.load %arg2[%c2, %c0_23, %c0_24] : memref<16x128x128xbf16, #tpu.memory_space<vmem>>, vector<1x128x128xbf16>
    %24 = vector.shape_cast %23 : vector<1x128x128xbf16> to vector<128x128xbf16>
    %cst_25 = arith.constant dense<0.000000e+00> : vector<64x128xf32>
    %25 = tpu.matmul %22, %24, %cst_25 {dimension_numbers = #tpu.dot_dimension_numbers<[1], [0], [0], [1], [0, 0, 1, 1], [], []>} : vector<64x128xbf16>, vector<128x128xbf16>, vector<64x128xf32> -> vector<64x128xf32>
    %26 = arith.addf %20, %25 : vector<64x128xf32>
    %c9_26 = arith.constant 9 : index
    %c1_27 = arith.constant 1 : index
    %c0_28 = arith.constant 0 : index
    %27 = vector.load %arg6[%c9_26, %c1_27, %c0_28] : memref<36x9x128xbf16, #tpu.memory_space<vmem>>, vector<8x8x128xbf16>
    %28 = vector.shape_cast %27 : vector<8x8x128xbf16> to vector<64x128xbf16>
    %c3 = arith.constant 3 : index
    %c0_29 = arith.constant 0 : index
    %c0_30 = arith.constant 0 : index
    %29 = vector.load %arg2[%c3, %c0_29, %c0_30] : memref<16x128x128xbf16, #tpu.memory_space<vmem>>, vector<1x128x128xbf16>
    %30 = vector.shape_cast %29 : vector<1x128x128xbf16> to vector<128x128xbf16>
    %cst_31 = arith.constant dense<0.000000e+00> : vector<64x128xf32>
    %31 = tpu.matmul %28, %30, %cst_31 {dimension_numbers = #tpu.dot_dimension_numbers<[1], [0], [0], [1], [0, 0, 1, 1], [], []>} : vector<64x128xbf16>, vector<128x128xbf16>, vector<64x128xf32> -> vector<64x128xf32>
    %32 = arith.addf %26, %31 : vector<64x128xf32>
    %c18 = arith.constant 18 : index
    %c0_32 = arith.constant 0 : index
    %c0_33 = arith.constant 0 : index
    %33 = vector.load %arg6[%c18, %c0_32, %c0_33] : memref<36x9x128xbf16, #tpu.memory_space<vmem>>, vector<8x8x128xbf16>
    %34 = vector.shape_cast %33 : vector<8x8x128xbf16> to vector<64x128xbf16>
    %c4 = arith.constant 4 : index
    %c0_34 = arith.constant 0 : index
    %c0_35 = arith.constant 0 : index
    %35 = vector.load %arg2[%c4, %c0_34, %c0_35] : memref<16x128x128xbf16, #tpu.memory_space<vmem>>, vector<1x128x128xbf16>
    %36 = vector.shape_cast %35 : vector<1x128x128xbf16> to vector<128x128xbf16>
    %cst_36 = arith.constant dense<0.000000e+00> : vector<64x128xf32>
    %37 = tpu.matmul %34, %36, %cst_36 {dimension_numbers = #tpu.dot_dimension_numbers<[1], [0], [0], [1], [0, 0, 1, 1], [], []>} : vector<64x128xbf16>, vector<128x128xbf16>, vector<64x128xf32> -> vector<64x128xf32>
    %38 = arith.addf %32, %37 : vector<64x128xf32>
    %c27 = arith.constant 27 : index
    %c0_37 = arith.constant 0 : index
    %c0_38 = arith.constant 0 : index
    %39 = vector.load %arg6[%c27, %c0_37, %c0_38] : memref<36x9x128xbf16, #tpu.memory_space<vmem>>, vector<8x8x128xbf16>
    %40 = vector.shape_cast %39 : vector<8x8x128xbf16> to vector<64x128xbf16>
    %c5 = arith.constant 5 : index
    %c0_39 = arith.constant 0 : index
    %c0_40 = arith.constant 0 : index
    %41 = vector.load %arg2[%c5, %c0_39, %c0_40] : memref<16x128x128xbf16, #tpu.memory_space<vmem>>, vector<1x128x128xbf16>
    %42 = vector.shape_cast %41 : vector<1x128x128xbf16> to vector<128x128xbf16>
    %cst_41 = arith.constant dense<0.000000e+00> : vector<64x128xf32>
    %43 = tpu.matmul %40, %42, %cst_41 {dimension_numbers = #tpu.dot_dimension_numbers<[1], [0], [0], [1], [0, 0, 1, 1], [], []>} : vector<64x128xbf16>, vector<128x128xbf16>, vector<64x128xf32> -> vector<64x128xf32>
    %44 = arith.addf %38, %43 : vector<64x128xf32>
    %c18_42 = arith.constant 18 : index
    %c1_43 = arith.constant 1 : index
    %c0_44 = arith.constant 0 : index
    %45 = vector.load %arg6[%c18_42, %c1_43, %c0_44] : memref<36x9x128xbf16, #tpu.memory_space<vmem>>, vector<8x8x128xbf16>
    %46 = vector.shape_cast %45 : vector<8x8x128xbf16> to vector<64x128xbf16>
    %c6 = arith.constant 6 : index
    %c0_45 = arith.constant 0 : index
    %c0_46 = arith.constant 0 : index
    %47 = vector.load %arg2[%c6, %c0_45, %c0_46] : memref<16x128x128xbf16, #tpu.memory_space<vmem>>, vector<1x128x128xbf16>
    %48 = vector.shape_cast %47 : vector<1x128x128xbf16> to vector<128x128xbf16>
    %cst_47 = arith.constant dense<0.000000e+00> : vector<64x128xf32>
    %49 = tpu.matmul %46, %48, %cst_47 {dimension_numbers = #tpu.dot_dimension_numbers<[1], [0], [0], [1], [0, 0, 1, 1], [], []>} : vector<64x128xbf16>, vector<128x128xbf16>, vector<64x128xf32> -> vector<64x128xf32>
    %50 = arith.addf %44, %49 : vector<64x128xf32>
    %c27_48 = arith.constant 27 : index
    %c1_49 = arith.constant 1 : index
    %c0_50 = arith.constant 0 : index
    %51 = vector.load %arg6[%c27_48, %c1_49, %c0_50] : memref<36x9x128xbf16, #tpu.memory_space<vmem>>, vector<8x8x128xbf16>
    %52 = vector.shape_cast %51 : vector<8x8x128xbf16> to vector<64x128xbf16>
    %c7 = arith.constant 7 : index
    %c0_51 = arith.constant 0 : index
    %c0_52 = arith.constant 0 : index
    %53 = vector.load %arg2[%c7, %c0_51, %c0_52] : memref<16x128x128xbf16, #tpu.memory_space<vmem>>, vector<1x128x128xbf16>
    %54 = vector.shape_cast %53 : vector<1x128x128xbf16> to vector<128x128xbf16>
    %cst_53 = arith.constant dense<0.000000e+00> : vector<64x128xf32>
    %55 = tpu.matmul %52, %54, %cst_53 {dimension_numbers = #tpu.dot_dimension_numbers<[1], [0], [0], [1], [0, 0, 1, 1], [], []>} : vector<64x128xbf16>, vector<128x128xbf16>, vector<64x128xf32> -> vector<64x128xf32>
    %56 = arith.addf %50, %55 : vector<64x128xf32>
    %c1_54 = arith.constant 1 : index
    %c0_55 = arith.constant 0 : index
    %c0_56 = arith.constant 0 : index
    %57 = vector.load %arg6[%c1_54, %c0_55, %c0_56] : memref<36x9x128xbf16, #tpu.memory_space<vmem>>, vector<8x8x128xbf16>
    %58 = vector.shape_cast %57 : vector<8x8x128xbf16> to vector<64x128xbf16>
    %c8 = arith.constant 8 : index
    %c0_57 = arith.constant 0 : index
    %c0_58 = arith.constant 0 : index
    %59 = vector.load %arg2[%c8, %c0_57, %c0_58] : memref<16x128x128xbf16, #tpu.memory_space<vmem>>, vector<1x128x128xbf16>
    %60 = vector.shape_cast %59 : vector<1x128x128xbf16> to vector<128x128xbf16>
    %cst_59 = arith.constant dense<0.000000e+00> : vector<64x128xf32>
    %61 = tpu.matmul %58, %60, %cst_59 {dimension_numbers = #tpu.dot_dimension_numbers<[1], [0], [0], [1], [0, 0, 1, 1], [], []>} : vector<64x128xbf16>, vector<128x128xbf16>, vector<64x128xf32> -> vector<64x128xf32>
    %62 = arith.addf %56, %61 : vector<64x128xf32>
    %c10 = arith.constant 10 : index
    %c0_60 = arith.constant 0 : index
    %c0_61 = arith.constant 0 : index
    %63 = vector.load %arg6[%c10, %c0_60, %c0_61] : memref<36x9x128xbf16, #tpu.memory_space<vmem>>, vector<8x8x128xbf16>
    %64 = vector.shape_cast %63 : vector<8x8x128xbf16> to vector<64x128xbf16>
    %c9_62 = arith.constant 9 : index
    %c0_63 = arith.constant 0 : index
    %c0_64 = arith.constant 0 : index
    %65 = vector.load %arg2[%c9_62, %c0_63, %c0_64] : memref<16x128x128xbf16, #tpu.memory_space<vmem>>, vector<1x128x128xbf16>
    %66 = vector.shape_cast %65 : vector<1x128x128xbf16> to vector<128x128xbf16>
    %cst_65 = arith.constant dense<0.000000e+00> : vector<64x128xf32>
    %67 = tpu.matmul %64, %66, %cst_65 {dimension_numbers = #tpu.dot_dimension_numbers<[1], [0], [0], [1], [0, 0, 1, 1], [], []>} : vector<64x128xbf16>, vector<128x128xbf16>, vector<64x128xf32> -> vector<64x128xf32>
    %68 = arith.addf %62, %67 : vector<64x128xf32>
    %c1_66 = arith.constant 1 : index
    %c1_67 = arith.constant 1 : index
    %c0_68 = arith.constant 0 : index
    %69 = vector.load %arg6[%c1_66, %c1_67, %c0_68] : memref<36x9x128xbf16, #tpu.memory_space<vmem>>, vector<8x8x128xbf16>
    %70 = vector.shape_cast %69 : vector<8x8x128xbf16> to vector<64x128xbf16>
    %c10_69 = arith.constant 10 : index
    %c0_70 = arith.constant 0 : index
    %c0_71 = arith.constant 0 : index
    %71 = vector.load %arg2[%c10_69, %c0_70, %c0_71] : memref<16x128x128xbf16, #tpu.memory_space<vmem>>, vector<1x128x128xbf16>
    %72 = vector.shape_cast %71 : vector<1x128x128xbf16> to vector<128x128xbf16>
    %cst_72 = arith.constant dense<0.000000e+00> : vector<64x128xf32>
    %73 = tpu.matmul %70, %72, %cst_72 {dimension_numbers = #tpu.dot_dimension_numbers<[1], [0], [0], [1], [0, 0, 1, 1], [], []>} : vector<64x128xbf16>, vector<128x128xbf16>, vector<64x128xf32> -> vector<64x128xf32>
    %74 = arith.addf %68, %73 : vector<64x128xf32>
    %c10_73 = arith.constant 10 : index
    %c1_74 = arith.constant 1 : index
    %c0_75 = arith.constant 0 : index
    %75 = vector.load %arg6[%c10_73, %c1_74, %c0_75] : memref<36x9x128xbf16, #tpu.memory_space<vmem>>, vector<8x8x128xbf16>
    %76 = vector.shape_cast %75 : vector<8x8x128xbf16> to vector<64x128xbf16>
    %c11 = arith.constant 11 : index
    %c0_76 = arith.constant 0 : index
    %c0_77 = arith.constant 0 : index
    %77 = vector.load %arg2[%c11, %c0_76, %c0_77] : memref<16x128x128xbf16, #tpu.memory_space<vmem>>, vector<1x128x128xbf16>
    %78 = vector.shape_cast %77 : vector<1x128x128xbf16> to vector<128x128xbf16>
    %cst_78 = arith.constant dense<0.000000e+00> : vector<64x128xf32>
    %79 = tpu.matmul %76, %78, %cst_78 {dimension_numbers = #tpu.dot_dimension_numbers<[1], [0], [0], [1], [0, 0, 1, 1], [], []>} : vector<64x128xbf16>, vector<128x128xbf16>, vector<64x128xf32> -> vector<64x128xf32>
    %80 = arith.addf %74, %79 : vector<64x128xf32>
    %c19 = arith.constant 19 : index
    %c0_79 = arith.constant 0 : index
    %c0_80 = arith.constant 0 : index
    %81 = vector.load %arg6[%c19, %c0_79, %c0_80] : memref<36x9x128xbf16, #tpu.memory_space<vmem>>, vector<8x8x128xbf16>
    %82 = vector.shape_cast %81 : vector<8x8x128xbf16> to vector<64x128xbf16>
    %c12 = arith.constant 12 : index
    %c0_81 = arith.constant 0 : index
    %c0_82 = arith.constant 0 : index
    %83 = vector.load %arg2[%c12, %c0_81, %c0_82] : memref<16x128x128xbf16, #tpu.memory_space<vmem>>, vector<1x128x128xbf16>
    %84 = vector.shape_cast %83 : vector<1x128x128xbf16> to vector<128x128xbf16>
    %cst_83 = arith.constant dense<0.000000e+00> : vector<64x128xf32>
    %85 = tpu.matmul %82, %84, %cst_83 {dimension_numbers = #tpu.dot_dimension_numbers<[1], [0], [0], [1], [0, 0, 1, 1], [], []>} : vector<64x128xbf16>, vector<128x128xbf16>, vector<64x128xf32> -> vector<64x128xf32>
    %86 = arith.addf %80, %85 : vector<64x128xf32>
    %c28 = arith.constant 28 : index
    %c0_84 = arith.constant 0 : index
    %c0_85 = arith.constant 0 : index
    %87 = vector.load %arg6[%c28, %c0_84, %c0_85] : memref<36x9x128xbf16, #tpu.memory_space<vmem>>, vector<8x8x128xbf16>
    %88 = vector.shape_cast %87 : vector<8x8x128xbf16> to vector<64x128xbf16>
    %c13 = arith.constant 13 : index
    %c0_86 = arith.constant 0 : index
    %c0_87 = arith.constant 0 : index
    %89 = vector.load %arg2[%c13, %c0_86, %c0_87] : memref<16x128x128xbf16, #tpu.memory_space<vmem>>, vector<1x128x128xbf16>
    %90 = vector.shape_cast %89 : vector<1x128x128xbf16> to vector<128x128xbf16>
    %cst_88 = arith.constant dense<0.000000e+00> : vector<64x128xf32>
    %91 = tpu.matmul %88, %90, %cst_88 {dimension_numbers = #tpu.dot_dimension_numbers<[1], [0], [0], [1], [0, 0, 1, 1], [], []>} : vector<64x128xbf16>, vector<128x128xbf16>, vector<64x128xf32> -> vector<64x128xf32>
    %92 = arith.addf %86, %91 : vector<64x128xf32>
    %c19_89 = arith.constant 19 : index
    %c1_90 = arith.constant 1 : index
    %c0_91 = arith.constant 0 : index
    %93 = vector.load %arg6[%c19_89, %c1_90, %c0_91] : memref<36x9x128xbf16, #tpu.memory_space<vmem>>, vector<8x8x128xbf16>
    %94 = vector.shape_cast %93 : vector<8x8x128xbf16> to vector<64x128xbf16>
    %c14 = arith.constant 14 : index
    %c0_92 = arith.constant 0 : index
    %c0_93 = arith.constant 0 : index
    %95 = vector.load %arg2[%c14, %c0_92, %c0_93] : memref<16x128x128xbf16, #tpu.memory_space<vmem>>, vector<1x128x128xbf16>
    %96 = vector.shape_cast %95 : vector<1x128x128xbf16> to vector<128x128xbf16>
    %cst_94 = arith.constant dense<0.000000e+00> : vector<64x128xf32>
    %97 = tpu.matmul %94, %96, %cst_94 {dimension_numbers = #tpu.dot_dimension_numbers<[1], [0], [0], [1], [0, 0, 1, 1], [], []>} : vector<64x128xbf16>, vector<128x128xbf16>, vector<64x128xf32> -> vector<64x128xf32>
    %98 = arith.addf %92, %97 : vector<64x128xf32>
    %c28_95 = arith.constant 28 : index
    %c1_96 = arith.constant 1 : index
    %c0_97 = arith.constant 0 : index
    %99 = vector.load %arg6[%c28_95, %c1_96, %c0_97] : memref<36x9x128xbf16, #tpu.memory_space<vmem>>, vector<8x8x128xbf16>
    %100 = vector.shape_cast %99 : vector<8x8x128xbf16> to vector<64x128xbf16>
    %c15 = arith.constant 15 : index
    %c0_98 = arith.constant 0 : index
    %c0_99 = arith.constant 0 : index
    %101 = vector.load %arg2[%c15, %c0_98, %c0_99] : memref<16x128x128xbf16, #tpu.memory_space<vmem>>, vector<1x128x128xbf16>
    %102 = vector.shape_cast %101 : vector<1x128x128xbf16> to vector<128x128xbf16>
    %cst_100 = arith.constant dense<0.000000e+00> : vector<64x128xf32>
    %103 = tpu.matmul %100, %102, %cst_100 {dimension_numbers = #tpu.dot_dimension_numbers<[1], [0], [0], [1], [0, 0, 1, 1], [], []>} : vector<64x128xbf16>, vector<128x128xbf16>, vector<64x128xf32> -> vector<64x128xf32>
    %104 = arith.addf %98, %103 : vector<64x128xf32>
    %cst_101 = arith.constant 0.000000e+00 : bf16
    %105 = vector.broadcast %cst_101 : bf16 to vector<10x10x128xbf16>
    %c0_102 = arith.constant 0 : index
    %c0_103 = arith.constant 0 : index
    %c0_104 = arith.constant 0 : index
    %106 = vector.load %arg7[%c0_102, %c0_103, %c0_104] : memref<10x10x128xbf16, #tpu.memory_space<vmem>>, vector<10x10x128xbf16>
    tpu.vector_store %arg7[%c0_102, %c0_103, %c0_104], %105 {strides = array<i32>} : memref<10x10x128xbf16, #tpu.memory_space<vmem>>, vector<10x10x128xbf16>,
    %cst_105 = arith.constant 0.000000e+00 : f32
    %107 = vector.broadcast %cst_105 : f32 to vector<64x128xf32>
    %108 = arith.maximumf %104, %107 : vector<64x128xf32>
    %109 = vector.shape_cast %108 : vector<64x128xf32> to vector<8x8x128xf32>
    %110 = arith.truncf %109 : vector<8x8x128xf32> to vector<8x8x128xbf16>
    %c1_106 = arith.constant 1 : index
    %c1_107 = arith.constant 1 : index
    %c0_108 = arith.constant 0 : index
    %111 = vector.load %arg7[%c1_106, %c1_107, %c0_108] : memref<10x10x128xbf16, #tpu.memory_space<vmem>>, vector<8x8x128xbf16>
    tpu.vector_store %arg7[%c1_106, %c1_107, %c0_108], %110 {strides = array<i32>} : memref<10x10x128xbf16, #tpu.memory_space<vmem>>, vector<8x8x128xbf16>,
    %cst_109 = arith.constant 0.000000e+00 : f32
    %112 = vector.broadcast %cst_109 : f32 to vector<1x128xf32>
    %cst_110 = arith.constant 0.000000e+00 : f32
    %113 = vector.broadcast %cst_110 : f32 to vector<1x128xf32>
    %cst_111 = arith.constant 0.000000e+00 : f32
    %114 = vector.broadcast %cst_111 : f32 to vector<64x128xf32>
    %c0_112 = arith.constant 0 : index
    %c0_113 = arith.constant 0 : index
    %c0_114 = arith.constant 0 : index
    %115 = vector.load %arg7[%c0_112, %c0_113, %c0_114] : memref<10x10x128xbf16, #tpu.memory_space<vmem>>, vector<8x8x128xbf16>
    %116 = vector.shape_cast %115 : vector<8x8x128xbf16> to vector<64x128xbf16>
    %c0_115 = arith.constant 0 : index
    %c0_116 = arith.constant 0 : index
    %c0_117 = arith.constant 0 : index
    %117 = vector.load %arg3[%c0_115, %c0_116, %c0_117] : memref<16x128x128xbf16, #tpu.memory_space<vmem>>, vector<1x128x128xbf16>
    %118 = vector.shape_cast %117 : vector<1x128x128xbf16> to vector<128x128xbf16>
    %cst_118 = arith.constant dense<0.000000e+00> : vector<64x128xf32>
    %119 = tpu.matmul %116, %118, %cst_118 {dimension_numbers = #tpu.dot_dimension_numbers<[1], [0], [0], [1], [0, 0, 1, 1], [], []>} : vector<64x128xbf16>, vector<128x128xbf16>, vector<64x128xf32> -> vector<64x128xf32>
    %120 = arith.addf %114, %119 : vector<64x128xf32>
    %c0_119 = arith.constant 0 : index
    %c1_120 = arith.constant 1 : index
    %c0_121 = arith.constant 0 : index
    %121 = vector.load %arg7[%c0_119, %c1_120, %c0_121] : memref<10x10x128xbf16, #tpu.memory_space<vmem>>, vector<8x8x128xbf16>
    %122 = vector.shape_cast %121 : vector<8x8x128xbf16> to vector<64x128xbf16>
    %c1_122 = arith.constant 1 : index
    %c0_123 = arith.constant 0 : index
    %c0_124 = arith.constant 0 : index
    %123 = vector.load %arg3[%c1_122, %c0_123, %c0_124] : memref<16x128x128xbf16, #tpu.memory_space<vmem>>, vector<1x128x128xbf16>
    %124 = vector.shape_cast %123 : vector<1x128x128xbf16> to vector<128x128xbf16>
    %cst_125 = arith.constant dense<0.000000e+00> : vector<64x128xf32>
    %125 = tpu.matmul %122, %124, %cst_125 {dimension_numbers = #tpu.dot_dimension_numbers<[1], [0], [0], [1], [0, 0, 1, 1], [], []>} : vector<64x128xbf16>, vector<128x128xbf16>, vector<64x128xf32> -> vector<64x128xf32>
    %126 = arith.addf %120, %125 : vector<64x128xf32>
    %c1_126 = arith.constant 1 : index
    %c0_127 = arith.constant 0 : index
    %c0_128 = arith.constant 0 : index
    %127 = vector.load %arg7[%c1_126, %c0_127, %c0_128] : memref<10x10x128xbf16, #tpu.memory_space<vmem>>, vector<8x8x128xbf16>
    %128 = vector.shape_cast %127 : vector<8x8x128xbf16> to vector<64x128xbf16>
    %c2_129 = arith.constant 2 : index
    %c0_130 = arith.constant 0 : index
    %c0_131 = arith.constant 0 : index
    %129 = vector.load %arg3[%c2_129, %c0_130, %c0_131] : memref<16x128x128xbf16, #tpu.memory_space<vmem>>, vector<1x128x128xbf16>
    %130 = vector.shape_cast %129 : vector<1x128x128xbf16> to vector<128x128xbf16>
    %cst_132 = arith.constant dense<0.000000e+00> : vector<64x128xf32>
    %131 = tpu.matmul %128, %130, %cst_132 {dimension_numbers = #tpu.dot_dimension_numbers<[1], [0], [0], [1], [0, 0, 1, 1], [], []>} : vector<64x128xbf16>, vector<128x128xbf16>, vector<64x128xf32> -> vector<64x128xf32>
    %132 = arith.addf %126, %131 : vector<64x128xf32>
    %c1_133 = arith.constant 1 : index
    %c1_134 = arith.constant 1 : index
    %c0_135 = arith.constant 0 : index
    %133 = vector.load %arg7[%c1_133, %c1_134, %c0_135] : memref<10x10x128xbf16, #tpu.memory_space<vmem>>, vector<8x8x128xbf16>
    %134 = vector.shape_cast %133 : vector<8x8x128xbf16> to vector<64x128xbf16>
    %c3_136 = arith.constant 3 : index
    %c0_137 = arith.constant 0 : index
    %c0_138 = arith.constant 0 : index
    %135 = vector.load %arg3[%c3_136, %c0_137, %c0_138] : memref<16x128x128xbf16, #tpu.memory_space<vmem>>, vector<1x128x128xbf16>
    %136 = vector.shape_cast %135 : vector<1x128x128xbf16> to vector<128x128xbf16>
    %cst_139 = arith.constant dense<0.000000e+00> : vector<64x128xf32>
    %137 = tpu.matmul %134, %136, %cst_139 {dimension_numbers = #tpu.dot_dimension_numbers<[1], [0], [0], [1], [0, 0, 1, 1], [], []>} : vector<64x128xbf16>, vector<128x128xbf16>, vector<64x128xf32> -> vector<64x128xf32>
    %138 = arith.addf %132, %137 : vector<64x128xf32>
    %139 = vector.shape_cast %138 : vector<64x128xf32> to vector<8x8x128xf32>
    %140 = arith.truncf %139 : vector<8x8x128xf32> to vector<8x8x128xbf16>
    %c0_140 = arith.constant 0 : index
    %c0_141 = arith.constant 0 : index
    %c0_142 = arith.constant 0 : index
    %c0_143 = arith.constant 0 : index
    %141 = vector.load %arg4[%c0_140, %c0_141, %c0_142, %c0_143] : memref<1x8x8x512xbf16, #tpu.memory_space<vmem>>, vector<1x8x8x128xbf16>
    %142 = vector.shape_cast %141 : vector<1x8x8x128xbf16> to vector<8x8x128xbf16>
    %143 = vector.shape_cast %140 : vector<8x8x128xbf16> to vector<1x8x8x128xbf16>
    tpu.vector_store %arg4[%c0_140, %c0_141, %c0_142, %c0_143], %143 {strides = array<i32>} : memref<1x8x8x512xbf16, #tpu.memory_space<vmem>>, vector<1x8x8x128xbf16>,
    %cst_144 = arith.constant dense<0.000000e+00> : vector<128xf32>
    %144 = vector.multi_reduction <add>, %138, %cst_144 [0] : vector<64x128xf32> to vector<128xf32>
    %145 = vector.shape_cast %144 : vector<128xf32> to vector<1x128xf32>
    %146 = arith.addf %112, %145 : vector<1x128xf32>
    %147 = arith.mulf %138, %138 : vector<64x128xf32>
    %cst_145 = arith.constant dense<0.000000e+00> : vector<128xf32>
    %148 = vector.multi_reduction <add>, %147, %cst_145 [0] : vector<64x128xf32> to vector<128xf32>
    %149 = vector.shape_cast %148 : vector<128xf32> to vector<1x128xf32>
    %150 = arith.addf %113, %149 : vector<1x128xf32>
    %cst_146 = arith.constant 0.000000e+00 : f32
    %151 = vector.broadcast %cst_146 : f32 to vector<64x128xf32>
    %c0_147 = arith.constant 0 : index
    %c1_148 = arith.constant 1 : index
    %c0_149 = arith.constant 0 : index
    %152 = vector.load %arg7[%c0_147, %c1_148, %c0_149] : memref<10x10x128xbf16, #tpu.memory_space<vmem>>, vector<8x8x128xbf16>
    %153 = vector.shape_cast %152 : vector<8x8x128xbf16> to vector<64x128xbf16>
    %c4_150 = arith.constant 4 : index
    %c0_151 = arith.constant 0 : index
    %c0_152 = arith.constant 0 : index
    %154 = vector.load %arg3[%c4_150, %c0_151, %c0_152] : memref<16x128x128xbf16, #tpu.memory_space<vmem>>, vector<1x128x128xbf16>
    %155 = vector.shape_cast %154 : vector<1x128x128xbf16> to vector<128x128xbf16>
    %cst_153 = arith.constant dense<0.000000e+00> : vector<64x128xf32>
    %156 = tpu.matmul %153, %155, %cst_153 {dimension_numbers = #tpu.dot_dimension_numbers<[1], [0], [0], [1], [0, 0, 1, 1], [], []>} : vector<64x128xbf16>, vector<128x128xbf16>, vector<64x128xf32> -> vector<64x128xf32>
    %157 = arith.addf %151, %156 : vector<64x128xf32>
    %c0_154 = arith.constant 0 : index
    %c2_155 = arith.constant 2 : index
    %c0_156 = arith.constant 0 : index
    %158 = vector.load %arg7[%c0_154, %c2_155, %c0_156] : memref<10x10x128xbf16, #tpu.memory_space<vmem>>, vector<8x8x128xbf16>
    %159 = vector.shape_cast %158 : vector<8x8x128xbf16> to vector<64x128xbf16>
    %c5_157 = arith.constant 5 : index
    %c0_158 = arith.constant 0 : index
    %c0_159 = arith.constant 0 : index
    %160 = vector.load %arg3[%c5_157, %c0_158, %c0_159] : memref<16x128x128xbf16, #tpu.memory_space<vmem>>, vector<1x128x128xbf16>
    %161 = vector.shape_cast %160 : vector<1x128x128xbf16> to vector<128x128xbf16>
    %cst_160 = arith.constant dense<0.000000e+00> : vector<64x128xf32>
    %162 = tpu.matmul %159, %161, %cst_160 {dimension_numbers = #tpu.dot_dimension_numbers<[1], [0], [0], [1], [0, 0, 1, 1], [], []>} : vector<64x128xbf16>, vector<128x128xbf16>, vector<64x128xf32> -> vector<64x128xf32>
    %163 = arith.addf %157, %162 : vector<64x128xf32>
    %c1_161 = arith.constant 1 : index
    %c1_162 = arith.constant 1 : index
    %c0_163 = arith.constant 0 : index
    %164 = vector.load %arg7[%c1_161, %c1_162, %c0_163] : memref<10x10x128xbf16, #tpu.memory_space<vmem>>, vector<8x8x128xbf16>
    %165 = vector.shape_cast %164 : vector<8x8x128xbf16> to vector<64x128xbf16>
    %c6_164 = arith.constant 6 : index
    %c0_165 = arith.constant 0 : index
    %c0_166 = arith.constant 0 : index
    %166 = vector.load %arg3[%c6_164, %c0_165, %c0_166] : memref<16x128x128xbf16, #tpu.memory_space<vmem>>, vector<1x128x128xbf16>
    %167 = vector.shape_cast %166 : vector<1x128x128xbf16> to vector<128x128xbf16>
    %cst_167 = arith.constant dense<0.000000e+00> : vector<64x128xf32>
    %168 = tpu.matmul %165, %167, %cst_167 {dimension_numbers = #tpu.dot_dimension_numbers<[1], [0], [0], [1], [0, 0, 1, 1], [], []>} : vector<64x128xbf16>, vector<128x128xbf16>, vector<64x128xf32> -> vector<64x128xf32>
    %169 = arith.addf %163, %168 : vector<64x128xf32>
    %c1_168 = arith.constant 1 : index
    %c2_169 = arith.constant 2 : index
    %c0_170 = arith.constant 0 : index
    %170 = vector.load %arg7[%c1_168, %c2_169, %c0_170] : memref<10x10x128xbf16, #tpu.memory_space<vmem>>, vector<8x8x128xbf16>
    %171 = vector.shape_cast %170 : vector<8x8x128xbf16> to vector<64x128xbf16>
    %c7_171 = arith.constant 7 : index
    %c0_172 = arith.constant 0 : index
    %c0_173 = arith.constant 0 : index
    %172 = vector.load %arg3[%c7_171, %c0_172, %c0_173] : memref<16x128x128xbf16, #tpu.memory_space<vmem>>, vector<1x128x128xbf16>
    %173 = vector.shape_cast %172 : vector<1x128x128xbf16> to vector<128x128xbf16>
    %cst_174 = arith.constant dense<0.000000e+00> : vector<64x128xf32>
    %174 = tpu.matmul %171, %173, %cst_174 {dimension_numbers = #tpu.dot_dimension_numbers<[1], [0], [0], [1], [0, 0, 1, 1], [], []>} : vector<64x128xbf16>, vector<128x128xbf16>, vector<64x128xf32> -> vector<64x128xf32>
    %175 = arith.addf %169, %174 : vector<64x128xf32>
    %176 = vector.shape_cast %175 : vector<64x128xf32> to vector<8x8x128xf32>
    %177 = arith.truncf %176 : vector<8x8x128xf32> to vector<8x8x128xbf16>
    %c0_175 = arith.constant 0 : index
    %c0_176 = arith.constant 0 : index
    %c0_177 = arith.constant 0 : index
    %c128 = arith.constant 128 : index
    %178 = vector.load %arg4[%c0_175, %c0_176, %c0_177, %c128] : memref<1x8x8x512xbf16, #tpu.memory_space<vmem>>, vector<1x8x8x128xbf16>
    %179 = vector.shape_cast %178 : vector<1x8x8x128xbf16> to vector<8x8x128xbf16>
    %180 = vector.shape_cast %177 : vector<8x8x128xbf16> to vector<1x8x8x128xbf16>
    tpu.vector_store %arg4[%c0_175, %c0_176, %c0_177, %c128], %180 {strides = array<i32>} : memref<1x8x8x512xbf16, #tpu.memory_space<vmem>>, vector<1x8x8x128xbf16>,
    %cst_178 = arith.constant dense<0.000000e+00> : vector<128xf32>
    %181 = vector.multi_reduction <add>, %175, %cst_178 [0] : vector<64x128xf32> to vector<128xf32>
    %182 = vector.shape_cast %181 : vector<128xf32> to vector<1x128xf32>
    %183 = arith.addf %146, %182 : vector<1x128xf32>
    %184 = arith.mulf %175, %175 : vector<64x128xf32>
    %cst_179 = arith.constant dense<0.000000e+00> : vector<128xf32>
    %185 = vector.multi_reduction <add>, %184, %cst_179 [0] : vector<64x128xf32> to vector<128xf32>
    %186 = vector.shape_cast %185 : vector<128xf32> to vector<1x128xf32>
    %187 = arith.addf %150, %186 : vector<1x128xf32>
    %cst_180 = arith.constant 0.000000e+00 : f32
    %188 = vector.broadcast %cst_180 : f32 to vector<64x128xf32>
    %c1_181 = arith.constant 1 : index
    %c0_182 = arith.constant 0 : index
    %c0_183 = arith.constant 0 : index
    %189 = vector.load %arg7[%c1_181, %c0_182, %c0_183] : memref<10x10x128xbf16, #tpu.memory_space<vmem>>, vector<8x8x128xbf16>
    %190 = vector.shape_cast %189 : vector<8x8x128xbf16> to vector<64x128xbf16>
    %c8_184 = arith.constant 8 : index
    %c0_185 = arith.constant 0 : index
    %c0_186 = arith.constant 0 : index
    %191 = vector.load %arg3[%c8_184, %c0_185, %c0_186] : memref<16x128x128xbf16, #tpu.memory_space<vmem>>, vector<1x128x128xbf16>
    %192 = vector.shape_cast %191 : vector<1x128x128xbf16> to vector<128x128xbf16>
    %cst_187 = arith.constant dense<0.000000e+00> : vector<64x128xf32>
    %193 = tpu.matmul %190, %192, %cst_187 {dimension_numbers = #tpu.dot_dimension_numbers<[1], [0], [0], [1], [0, 0, 1, 1], [], []>} : vector<64x128xbf16>, vector<128x128xbf16>, vector<64x128xf32> -> vector<64x128xf32>
    %194 = arith.addf %188, %193 : vector<64x128xf32>
    %c1_188 = arith.constant 1 : index
    %c1_189 = arith.constant 1 : index
    %c0_190 = arith.constant 0 : index
    %195 = vector.load %arg7[%c1_188, %c1_189, %c0_190] : memref<10x10x128xbf16, #tpu.memory_space<vmem>>, vector<8x8x128xbf16>
    %196 = vector.shape_cast %195 : vector<8x8x128xbf16> to vector<64x128xbf16>
    %c9_191 = arith.constant 9 : index
    %c0_192 = arith.constant 0 : index
    %c0_193 = arith.constant 0 : index
    %197 = vector.load %arg3[%c9_191, %c0_192, %c0_193] : memref<16x128x128xbf16, #tpu.memory_space<vmem>>, vector<1x128x128xbf16>
    %198 = vector.shape_cast %197 : vector<1x128x128xbf16> to vector<128x128xbf16>
    %cst_194 = arith.constant dense<0.000000e+00> : vector<64x128xf32>
    %199 = tpu.matmul %196, %198, %cst_194 {dimension_numbers = #tpu.dot_dimension_numbers<[1], [0], [0], [1], [0, 0, 1, 1], [], []>} : vector<64x128xbf16>, vector<128x128xbf16>, vector<64x128xf32> -> vector<64x128xf32>
    %200 = arith.addf %194, %199 : vector<64x128xf32>
    %c2_195 = arith.constant 2 : index
    %c0_196 = arith.constant 0 : index
    %c0_197 = arith.constant 0 : index
    %201 = vector.load %arg7[%c2_195, %c0_196, %c0_197] : memref<10x10x128xbf16, #tpu.memory_space<vmem>>, vector<8x8x128xbf16>
    %202 = vector.shape_cast %201 : vector<8x8x128xbf16> to vector<64x128xbf16>
    %c10_198 = arith.constant 10 : index
    %c0_199 = arith.constant 0 : index
    %c0_200 = arith.constant 0 : index
    %203 = vector.load %arg3[%c10_198, %c0_199, %c0_200] : memref<16x128x128xbf16, #tpu.memory_space<vmem>>, vector<1x128x128xbf16>
    %204 = vector.shape_cast %203 : vector<1x128x128xbf16> to vector<128x128xbf16>
    %cst_201 = arith.constant dense<0.000000e+00> : vector<64x128xf32>
    %205 = tpu.matmul %202, %204, %cst_201 {dimension_numbers = #tpu.dot_dimension_numbers<[1], [0], [0], [1], [0, 0, 1, 1], [], []>} : vector<64x128xbf16>, vector<128x128xbf16>, vector<64x128xf32> -> vector<64x128xf32>
    %206 = arith.addf %200, %205 : vector<64x128xf32>
    %c2_202 = arith.constant 2 : index
    %c1_203 = arith.constant 1 : index
    %c0_204 = arith.constant 0 : index
    %207 = vector.load %arg7[%c2_202, %c1_203, %c0_204] : memref<10x10x128xbf16, #tpu.memory_space<vmem>>, vector<8x8x128xbf16>
    %208 = vector.shape_cast %207 : vector<8x8x128xbf16> to vector<64x128xbf16>
    %c11_205 = arith.constant 11 : index
    %c0_206 = arith.constant 0 : index
    %c0_207 = arith.constant 0 : index
    %209 = vector.load %arg3[%c11_205, %c0_206, %c0_207] : memref<16x128x128xbf16, #tpu.memory_space<vmem>>, vector<1x128x128xbf16>
    %210 = vector.shape_cast %209 : vector<1x128x128xbf16> to vector<128x128xbf16>
    %cst_208 = arith.constant dense<0.000000e+00> : vector<64x128xf32>
    %211 = tpu.matmul %208, %210, %cst_208 {dimension_numbers = #tpu.dot_dimension_numbers<[1], [0], [0], [1], [0, 0, 1, 1], [], []>} : vector<64x128xbf16>, vector<128x128xbf16>, vector<64x128xf32> -> vector<64x128xf32>
    %212 = arith.addf %206, %211 : vector<64x128xf32>
    %213 = vector.shape_cast %212 : vector<64x128xf32> to vector<8x8x128xf32>
    %214 = arith.truncf %213 : vector<8x8x128xf32> to vector<8x8x128xbf16>
    %c0_209 = arith.constant 0 : index
    %c0_210 = arith.constant 0 : index
    %c0_211 = arith.constant 0 : index
    %c256 = arith.constant 256 : index
    %215 = vector.load %arg4[%c0_209, %c0_210, %c0_211, %c256] : memref<1x8x8x512xbf16, #tpu.memory_space<vmem>>, vector<1x8x8x128xbf16>
    %216 = vector.shape_cast %215 : vector<1x8x8x128xbf16> to vector<8x8x128xbf16>
    %217 = vector.shape_cast %214 : vector<8x8x128xbf16> to vector<1x8x8x128xbf16>
    tpu.vector_store %arg4[%c0_209, %c0_210, %c0_211, %c256], %217 {strides = array<i32>} : memref<1x8x8x512xbf16, #tpu.memory_space<vmem>>, vector<1x8x8x128xbf16>,
    %cst_212 = arith.constant dense<0.000000e+00> : vector<128xf32>
    %218 = vector.multi_reduction <add>, %212, %cst_212 [0] : vector<64x128xf32> to vector<128xf32>
    %219 = vector.shape_cast %218 : vector<128xf32> to vector<1x128xf32>
    %220 = arith.addf %183, %219 : vector<1x128xf32>
    %221 = arith.mulf %212, %212 : vector<64x128xf32>
    %cst_213 = arith.constant dense<0.000000e+00> : vector<128xf32>
    %222 = vector.multi_reduction <add>, %221, %cst_213 [0] : vector<64x128xf32> to vector<128xf32>
    %223 = vector.shape_cast %222 : vector<128xf32> to vector<1x128xf32>
    %224 = arith.addf %187, %223 : vector<1x128xf32>
    %cst_214 = arith.constant 0.000000e+00 : f32
    %225 = vector.broadcast %cst_214 : f32 to vector<64x128xf32>
    %c1_215 = arith.constant 1 : index
    %c1_216 = arith.constant 1 : index
    %c0_217 = arith.constant 0 : index
    %226 = vector.load %arg7[%c1_215, %c1_216, %c0_217] : memref<10x10x128xbf16, #tpu.memory_space<vmem>>, vector<8x8x128xbf16>
    %227 = vector.shape_cast %226 : vector<8x8x128xbf16> to vector<64x128xbf16>
    %c12_218 = arith.constant 12 : index
    %c0_219 = arith.constant 0 : index
    %c0_220 = arith.constant 0 : index
    %228 = vector.load %arg3[%c12_218, %c0_219, %c0_220] : memref<16x128x128xbf16, #tpu.memory_space<vmem>>, vector<1x128x128xbf16>
    %229 = vector.shape_cast %228 : vector<1x128x128xbf16> to vector<128x128xbf16>
    %cst_221 = arith.constant dense<0.000000e+00> : vector<64x128xf32>
    %230 = tpu.matmul %227, %229, %cst_221 {dimension_numbers = #tpu.dot_dimension_numbers<[1], [0], [0], [1], [0, 0, 1, 1], [], []>} : vector<64x128xbf16>, vector<128x128xbf16>, vector<64x128xf32> -> vector<64x128xf32>
    %231 = arith.addf %225, %230 : vector<64x128xf32>
    %c1_222 = arith.constant 1 : index
    %c2_223 = arith.constant 2 : index
    %c0_224 = arith.constant 0 : index
    %232 = vector.load %arg7[%c1_222, %c2_223, %c0_224] : memref<10x10x128xbf16, #tpu.memory_space<vmem>>, vector<8x8x128xbf16>
    %233 = vector.shape_cast %232 : vector<8x8x128xbf16> to vector<64x128xbf16>
    %c13_225 = arith.constant 13 : index
    %c0_226 = arith.constant 0 : index
    %c0_227 = arith.constant 0 : index
    %234 = vector.load %arg3[%c13_225, %c0_226, %c0_227] : memref<16x128x128xbf16, #tpu.memory_space<vmem>>, vector<1x128x128xbf16>
    %235 = vector.shape_cast %234 : vector<1x128x128xbf16> to vector<128x128xbf16>
    %cst_228 = arith.constant dense<0.000000e+00> : vector<64x128xf32>
    %236 = tpu.matmul %233, %235, %cst_228 {dimension_numbers = #tpu.dot_dimension_numbers<[1], [0], [0], [1], [0, 0, 1, 1], [], []>} : vector<64x128xbf16>, vector<128x128xbf16>, vector<64x128xf32> -> vector<64x128xf32>
    %237 = arith.addf %231, %236 : vector<64x128xf32>
    %c2_229 = arith.constant 2 : index
    %c1_230 = arith.constant 1 : index
    %c0_231 = arith.constant 0 : index
    %238 = vector.load %arg7[%c2_229, %c1_230, %c0_231] : memref<10x10x128xbf16, #tpu.memory_space<vmem>>, vector<8x8x128xbf16>
    %239 = vector.shape_cast %238 : vector<8x8x128xbf16> to vector<64x128xbf16>
    %c14_232 = arith.constant 14 : index
    %c0_233 = arith.constant 0 : index
    %c0_234 = arith.constant 0 : index
    %240 = vector.load %arg3[%c14_232, %c0_233, %c0_234] : memref<16x128x128xbf16, #tpu.memory_space<vmem>>, vector<1x128x128xbf16>
    %241 = vector.shape_cast %240 : vector<1x128x128xbf16> to vector<128x128xbf16>
    %cst_235 = arith.constant dense<0.000000e+00> : vector<64x128xf32>
    %242 = tpu.matmul %239, %241, %cst_235 {dimension_numbers = #tpu.dot_dimension_numbers<[1], [0], [0], [1], [0, 0, 1, 1], [], []>} : vector<64x128xbf16>, vector<128x128xbf16>, vector<64x128xf32> -> vector<64x128xf32>
    %243 = arith.addf %237, %242 : vector<64x128xf32>
    %c2_236 = arith.constant 2 : index
    %c2_237 = arith.constant 2 : index
    %c0_238 = arith.constant 0 : index
    %244 = vector.load %arg7[%c2_236, %c2_237, %c0_238] : memref<10x10x128xbf16, #tpu.memory_space<vmem>>, vector<8x8x128xbf16>
    %245 = vector.shape_cast %244 : vector<8x8x128xbf16> to vector<64x128xbf16>
    %c15_239 = arith.constant 15 : index
    %c0_240 = arith.constant 0 : index
    %c0_241 = arith.constant 0 : index
    %246 = vector.load %arg3[%c15_239, %c0_240, %c0_241] : memref<16x128x128xbf16, #tpu.memory_space<vmem>>, vector<1x128x128xbf16>
    %247 = vector.shape_cast %246 : vector<1x128x128xbf16> to vector<128x128xbf16>
    %cst_242 = arith.constant dense<0.000000e+00> : vector<64x128xf32>
    %248 = tpu.matmul %245, %247, %cst_242 {dimension_numbers = #tpu.dot_dimension_numbers<[1], [0], [0], [1], [0, 0, 1, 1], [], []>} : vector<64x128xbf16>, vector<128x128xbf16>, vector<64x128xf32> -> vector<64x128xf32>
    %249 = arith.addf %243, %248 : vector<64x128xf32>
    %250 = vector.shape_cast %249 : vector<64x128xf32> to vector<8x8x128xf32>
    %251 = arith.truncf %250 : vector<8x8x128xf32> to vector<8x8x128xbf16>
    %c0_243 = arith.constant 0 : index
    %c0_244 = arith.constant 0 : index
    %c0_245 = arith.constant 0 : index
    %c384 = arith.constant 384 : index
    %252 = vector.load %arg4[%c0_243, %c0_244, %c0_245, %c384] : memref<1x8x8x512xbf16, #tpu.memory_space<vmem>>, vector<1x8x8x128xbf16>
    %253 = vector.shape_cast %252 : vector<1x8x8x128xbf16> to vector<8x8x128xbf16>
    %254 = vector.shape_cast %251 : vector<8x8x128xbf16> to vector<1x8x8x128xbf16>
    tpu.vector_store %arg4[%c0_243, %c0_244, %c0_245, %c384], %254 {strides = array<i32>} : memref<1x8x8x512xbf16, #tpu.memory_space<vmem>>, vector<1x8x8x128xbf16>,
    %cst_246 = arith.constant dense<0.000000e+00> : vector<128xf32>
    %255 = vector.multi_reduction <add>, %249, %cst_246 [0] : vector<64x128xf32> to vector<128xf32>
    %256 = vector.shape_cast %255 : vector<128xf32> to vector<1x128xf32>
    %257 = arith.addf %220, %256 : vector<1x128xf32>
    %258 = arith.mulf %249, %249 : vector<64x128xf32>
    %cst_247 = arith.constant dense<0.000000e+00> : vector<128xf32>
    %259 = vector.multi_reduction <add>, %258, %cst_247 [0] : vector<64x128xf32> to vector<128xf32>
    %260 = vector.shape_cast %259 : vector<128xf32> to vector<1x128xf32>
    %261 = arith.addf %224, %260 : vector<1x128xf32>
    %c0_248 = arith.constant 0 : index
    %c0_249 = arith.constant 0 : index
    %c0_250 = arith.constant 0 : index
    %262 = vector.load %arg5[%c0_248, %c0_249, %c0_250] : memref<1x2x128xf32, #tpu.memory_space<vmem>>, vector<1x1x128xf32>
    %263 = vector.shape_cast %262 : vector<1x1x128xf32> to vector<1x128xf32>
    %264 = vector.shape_cast %257 : vector<1x128xf32> to vector<1x1x128xf32>
    tpu.vector_store %arg5[%c0_248, %c0_249, %c0_250], %264 {strides = array<i32>} : memref<1x2x128xf32, #tpu.memory_space<vmem>>, vector<1x1x128xf32>,
    %c0_251 = arith.constant 0 : index
    %c1_252 = arith.constant 1 : index
    %c0_253 = arith.constant 0 : index
    %265 = vector.load %arg5[%c0_251, %c1_252, %c0_253] : memref<1x2x128xf32, #tpu.memory_space<vmem>>, vector<1x1x128xf32>
    %266 = vector.shape_cast %265 : vector<1x1x128xf32> to vector<1x128xf32>
    %267 = vector.shape_cast %261 : vector<1x128xf32> to vector<1x1x128xf32>
    tpu.vector_store %arg5[%c0_251, %c1_252, %c0_253], %267 {strides = array<i32>} : memref<1x2x128xf32, #tpu.memory_space<vmem>>, vector<1x1x128xf32>,
    return
  }
  func.func @transform_0(%arg0: i32) -> (i32, i32, i32, i32) {
    %c0_i32 = arith.constant 0 : i32
    %c0_i32_0 = arith.constant 0 : i32
    %c0_i32_1 = arith.constant 0 : i32
    %c0_i32_2 = arith.constant 0 : i32
    return %arg0, %c0_i32, %c0_i32_0, %c0_i32_1 : i32, i32, i32, i32
  }
  func.func @transform_1(%arg0: i32) -> (i32, i32, i32) {
    %c0_i32 = arith.constant 0 : i32
    %c0_i32_0 = arith.constant 0 : i32
    %c0_i32_1 = arith.constant 0 : i32
    %c0_i32_2 = arith.constant 0 : i32
    return %c0_i32, %c0_i32_0, %c0_i32_1 : i32, i32, i32
  }
  func.func @transform_2(%arg0: i32) -> (i32, i32, i32) {
    %c0_i32 = arith.constant 0 : i32
    %c0_i32_0 = arith.constant 0 : i32
    %c0_i32_1 = arith.constant 0 : i32
    %c0_i32_2 = arith.constant 0 : i32
    return %c0_i32, %c0_i32_0, %c0_i32_1 : i32, i32, i32
  }
  func.func @transform_3(%arg0: i32) -> (i32, i32, i32, i32) {
    %c0_i32 = arith.constant 0 : i32
    %c0_i32_0 = arith.constant 0 : i32
    %c0_i32_1 = arith.constant 0 : i32
    %c0_i32_2 = arith.constant 0 : i32
    return %arg0, %c0_i32, %c0_i32_0, %c0_i32_1 : i32, i32, i32, i32
  }
  func.func @transform_4(%arg0: i32) -> (i32, i32, i32) {
    %c0_i32 = arith.constant 0 : i32
    %c0_i32_0 = arith.constant 0 : i32
    %c0_i32_1 = arith.constant 0 : i32
    return %arg0, %c0_i32, %c0_i32_0 : i32, i32, i32
  }
}

</mosaic_0001>

<bundles_post_ra>
// kernel: tile.13
= control target key start
LH: loop header
LB: loop body
LE: loop exit
PB: predicated region body
PF: predicated region fallthrough
CT: control target
= control target key end

     0   :  { %s22_s0 = inlined_call_operand.vmem [shape: f32[128], index: 0, kind: input, shape index: {}]   ;;  %s23_s1 = inlined_call_operand.vmem [shape: f32[4,128], index: 1, kind: output, shape index: {}]  }
   0x1   :  { %v4_v0 = vld [vmem:[%s22_s0] ss:$0 sm:$0xff] }
   0x2   :  { %5 = vst [vmem:[%s23_s1] sm:$0xf] %v4_v0 }

// kernel: unet_innermost_block.3
= control target key start
LH: loop header
LB: loop body
LE: loop exit
PB: predicated region body
PF: predicated region fallthrough
CT: control target
= control target key end

     0   :  { %s607_s12 = smov 0   ;;  %s735_s0 = inlined_call_operand.vmem [shape: bf16[2,8,8,512], index: 0, kind: input, shape index: {}, may-alias: {0,3}]   ;;  %s736_s1 = inlined_call_operand.vmem [shape: f32[1,512], index: 1, kind: input, shape index: {}]   ;;  %s737_s2 = inlined_call_operand.vmem [shape: f32[1,512], index: 2, kind: input, shape index: {}]   ;;  %s738_s3 = inlined_call_operand.vmem [shape: bf16[2,8,8,512], index: 3, kind: output, shape index: {}, may-alias: {0,3}]  }
   0x1 LB: > { %s526_s13 = sadd.s32 4294967295, %s585_s12   ;;  %p530_p0 = scmp.ge.s32.totalorder %s585_s12, 1  ;;  %s585_s12 = sphi %s607_s12, %s13_s12  }
   0x2   : > { %p137_p1 = scmp.lt.s32.totalorder %s585_s12, 3 }
   0x4   : > { %p138_p2 = pnand %p530_p0, %p137_p1 }
   0x5   : > { %p161_p3 = scmp.lt.s32.totalorder (!%p138_p2), %s526_s13, 1  ;;  %v221_v0 = vlaneseq (!%p138_p2)  ;;  %v219_v2 = vld [vmem:[%s736_s1] sm:$0xf] (!%p138_p2) }
   0x6   : > { %141 = sbr.rel (%p138_p2) target bundleno = 50 (0x32), region = 32 }
   0x7   : > { %v617_v1 = vshrl.u32 (!%p138_p2), %v221_v0, 7 }
   0x9   : > { %v223_v3 = vsub.s32 (!%p138_p2), 0, %v617_v1  ;;  %v227_v4 = vsub.s32 (!%p138_p2), 1, %v617_v1  ;;  %v231_v5 = vsub.s32 (!%p138_p2), 2, %v617_v1  ;;  %v235_v6 = vsub.s32 (!%p138_p2), 3, %v617_v1 }
   0xb   : > { %v642_v13 = vrot.slane (!%p138_p2), %v219_v2, %v223_v3  ;;  %v646_v14 = vrot.slane (!%p138_p2), %v219_v2, %v227_v4  ;;  %v650_v15 = vrot.slane (!%p138_p2), %v219_v2, %v231_v5  ;;  %v654_v16 = vrot.slane (!%p138_p2), %v219_v2, %v235_v6 }
   0xd   : > { %s740_s13 = smov (!%p161_p3, %s526_s13), 1 }
   0xe   : > { %s553_s16 = sshll.u32 %s740_s13, 7 }
   0xf   : > { %s632_s19 = scalar_lea.vmem %s735_s0, %s553_s16  ;;  %s714_s24 = scalar_lea.vmem %s738_s3, %s553_s16 }
  0x10   : > { %v171_v7 = vld [vmem:[%s632_s19] sm:$0xff]  ;;  %v172_v8 = vld [vmem:[%s632_s19 + $0x8] sm:$0xff]  ;;  %v173_v9 = vld [vmem:[%s632_s19 + $0x10] sm:$0xff] }
  0x11   : > { %v174_v10 = vld [vmem:[%s632_s19 + $0x18] sm:$0xff]  ;;  %v175_v11 = vld [vmem:[%s632_s19 + $0x20] sm:$0xff]  ;;  %v176_v12 = vld [vmem:[%s632_s19 + $0x28] sm:$0xff]  ;;  %v187_v19 = vunpack.c.l.bf16 %v171_v7  ;;  %v188_v20 = vunpack.c.h.bf16 %v171_v7  ;;  %v189_v21 = vunpack.c.l.bf16 %v172_v8  ;;  %v190_v22 = vunpack.c.h.bf16 %v172_v8 }
  0x12   : > { %v177_v17 = vld [vmem:[%s632_s19 + $0x30] sm:$0xff]  ;;  %v178_v18 = vld [vmem:[%s632_s19 + $0x38] sm:$0xff]  ;;  %v179_v23 = vld [vmem:[%s632_s19 + $0x40] sm:$0xff]  ;;  %v191_v25 = vunpack.c.l.bf16 %v173_v9  ;;  %v192_v26 = vunpack.c.h.bf16 %v173_v9  ;;  %v193_v27 = vunpack.c.l.bf16 %v174_v10  ;;  %v194_v28 = vunpack.c.h.bf16 %v174_v10 }
  0x13   : > { %v180_v24 = vld [vmem:[%s632_s19 + $0x48] sm:$0xff]  ;;  %v181_v29 = vld [vmem:[%s632_s19 + $0x50] sm:$0xff]  ;;  %v182_v30 = vld [vmem:[%s632_s19 + $0x58] sm:$0xff]  ;;  %v195_v31 = vunpack.c.l.bf16 %v175_v11  ;;  %v196_v32 = vunpack.c.h.bf16 %v175_v11  ;;  %v197_v33 = vunpack.c.l.bf16 %v176_v12  ;;  %v198_v34 = vunpack.c.h.bf16 %v176_v12 }
  0x14   : > { %v183_v35 = vld [vmem:[%s632_s19 + $0x60] sm:$0xff]  ;;  %v184_v36 = vld [vmem:[%s632_s19 + $0x68] sm:$0xff]  ;;  %v199_v37 = vunpack.c.l.bf16 %v177_v17  ;;  %v200_v38 = vunpack.c.h.bf16 %v177_v17  ;;  %v201_v39 = vunpack.c.l.bf16 %v178_v18  ;;  %v202_v40 = vunpack.c.h.bf16 %v178_v18  ;;  %v185_v41 = vld [vmem:[%s632_s19 + $0x70] sm:$0xff] }
  0x15   : > { %v186_v42 = vld [vmem:[%s632_s19 + $0x78] sm:$0xff]  ;;  %v203_v43 = vunpack.c.l.bf16 %v179_v23  ;;  %v204_v44 = vunpack.c.h.bf16 %v179_v23  ;;  %v205_v45 = vunpack.c.l.bf16 %v180_v24  ;;  %v206_v46 = vunpack.c.h.bf16 %v180_v24  ;;  %v273_v24 = vld [vmem:[%s737_s2] sm:$0xf] }
  0x16   : > { %v207_v47 = vunpack.c.l.bf16 %v181_v29  ;;  %v208_v48 = vunpack.c.h.bf16 %v181_v29  ;;  %v209_v49 = vunpack.c.l.bf16 %v182_v30  ;;  %v210_v50 = vunpack.c.h.bf16 %v182_v30 }
  0x17   : > { %v211_v51 = vunpack.c.l.bf16 %v183_v35  ;;  %v212_v52 = vunpack.c.h.bf16 %v183_v35  ;;  %v213_v53 = vunpack.c.l.bf16 %v184_v36  ;;  %v214_v54 = vunpack.c.h.bf16 %v184_v36 }
  0x18   : > { %v215_v55 = vunpack.c.l.bf16 %v185_v41  ;;  %v216_v56 = vunpack.c.h.bf16 %v185_v41  ;;  %v217_v57 = vunpack.c.l.bf16 %v186_v42  ;;  %v218_v58 = vunpack.c.h.bf16 %v186_v42 }
  0x19   : > { %v241_v59 = vmul.f32 %v642_v13, %v187_v19  ;;  %v242_v60 = vmul.f32 %v646_v14, %v188_v20  ;;  %v243_v61 = vmul.f32 %v650_v15, %v189_v21  ;;  %v244_v62 = vmul.f32 %v654_v16, %v190_v22 }
  0x1a   : > { %v245_v63 = vmul.f32 %v642_v13, %v191_v25  ;;  %v246_v0 = vmul.f32 %v646_v14, %v192_v26  ;;  %v247_v2 = vmul.f32 %v650_v15, %v193_v27  ;;  %v248_v7 = vmul.f32 %v654_v16, %v194_v28 }
  0x1b   : > { %v249_v8 = vmul.f32 %v642_v13, %v195_v31  ;;  %v250_v9 = vmul.f32 %v646_v14, %v196_v32  ;;  %v251_v10 = vmul.f32 %v650_v15, %v197_v33  ;;  %v252_v11 = vmul.f32 %v654_v16, %v198_v34 }
  0x1c   : > { %v253_v12 = vmul.f32 %v642_v13, %v199_v37  ;;  %v254_v17 = vmul.f32 %v646_v14, %v200_v38  ;;  %v255_v18 = vmul.f32 %v650_v15, %v201_v39  ;;  %v256_v19 = vmul.f32 %v654_v16, %v202_v40 }
  0x1d   : > { %v257_v20 = vmul.f32 %v642_v13, %v203_v43  ;;  %v258_v21 = vmul.f32 %v646_v14, %v204_v44  ;;  %v259_v22 = vmul.f32 %v650_v15, %v205_v45  ;;  %v260_v23 = vmul.f32 %v654_v16, %v206_v46 }
  0x1e   : > { %v261_v25 = vmul.f32 %v642_v13, %v207_v47  ;;  %v262_v26 = vmul.f32 %v646_v14, %v208_v48  ;;  %v263_v27 = vmul.f32 %v650_v15, %v209_v49  ;;  %v264_v28 = vmul.f32 %v654_v16, %v210_v50 }
  0x1f   : > { %v265_v29 = vmul.f32 %v642_v13, %v211_v51  ;;  %v266_v30 = vmul.f32 %v646_v14, %v212_v52  ;;  %v267_v31 = vmul.f32 %v650_v15, %v213_v53  ;;  %v268_v32 = vmul.f32 %v654_v16, %v214_v54 }
  0x20   : > { %v278_v33 = vrot.slane %v273_v24, %v223_v3  ;;  %v282_v34 = vrot.slane %v273_v24, %v227_v4  ;;  %v286_v35 = vrot.slane %v273_v24, %v231_v5  ;;  %v290_v36 = vrot.slane %v273_v24, %v235_v6 }
  0x21   : > { %v269_v37 = vmul.f32 %v642_v13, %v215_v55  ;;  %v270_v38 = vmul.f32 %v646_v14, %v216_v56  ;;  %v271_v39 = vmul.f32 %v650_v15, %v217_v57  ;;  %v272_v40 = vmul.f32 %v654_v16, %v218_v58 }
  0x22   : > { %v295_v41 = vadd.f32 %v278_v33, %v241_v59  ;;  %v296_v42 = vadd.f32 %v282_v34, %v242_v60  ;;  %v297_v3 = vadd.f32 %v286_v35, %v243_v61  ;;  %v298_v43 = vadd.f32 %v290_v36, %v244_v62 }
  0x23   : > { %v299_v1 = vadd.f32 %v278_v33, %v245_v63  ;;  %v300_v4 = vadd.f32 %v282_v34, %v246_v0  ;;  %v301_v5 = vadd.f32 %v286_v35, %v247_v2  ;;  %v302_v6 = vadd.f32 %v290_v36, %v248_v7 }
  0x24   : > { %v555_v13 = vpack.c.bf16 %v296_v42, %v295_v41  ;;  %v556_v14 = vpack.c.bf16 %v298_v43, %v297_v3  ;;  %v303_v15 = vadd.f32 %v278_v33, %v249_v8  ;;  %v304_v16 = vadd.f32 %v282_v34, %v250_v9 }
  0x25   : > { %v557_v44 = vpack.c.bf16 %v300_v4, %v299_v1  ;;  %v558_v45 = vpack.c.bf16 %v302_v6, %v301_v5  ;;  %v305_v46 = vadd.f32 %v286_v35, %v251_v10  ;;  %v306_v47 = vadd.f32 %v290_v36, %v252_v11 }
  0x26   : > { %455 = vst [vmem:[%s714_s24] sm:$0xff] %v555_v13  ;;  %456 = vst [vmem:[%s714_s24 + $0x8] sm:$0xff] %v556_v14  ;;  %v559_v48 = vpack.c.bf16 %v304_v16, %v303_v15  ;;  %v307_v49 = vadd.f32 %v278_v33, %v253_v12  ;;  %v308_v50 = vadd.f32 %v282_v34, %v254_v17 }
  0x27   : > { %v309_v51 = vadd.f32 %v286_v35, %v255_v18  ;;  %457 = vst [vmem:[%s714_s24 + $0x10] sm:$0xff] %v557_v44  ;;  %458 = vst [vmem:[%s714_s24 + $0x18] sm:$0xff] %v558_v45  ;;  %v560_v52 = vpack.c.bf16 %v306_v47, %v305_v46  ;;  %v310_v53 = vadd.f32 %v290_v36, %v256_v19 }
  0x28   : > { %v311_v54 = vadd.f32 %v278_v33, %v257_v20  ;;  %v312_v55 = vadd.f32 %v282_v34, %v258_v21  ;;  %459 = vst [vmem:[%s714_s24 + $0x20] sm:$0xff] %v559_v48  ;;  %v561_v56 = vpack.c.bf16 %v308_v50, %v307_v49  ;;  %v313_v57 = vadd.f32 %v286_v35, %v259_v22 }
  0x29   : > { %v314_v58 = vadd.f32 %v290_v36, %v260_v23  ;;  %v315_v59 = vadd.f32 %v278_v33, %v261_v25  ;;  %460 = vst [vmem:[%s714_s24 + $0x28] sm:$0xff] %v560_v52  ;;  %v562_v60 = vpack.c.bf16 %v310_v53, %v309_v51  ;;  %v316_v62 = vadd.f32 %v282_v34, %v262_v26 }
  0x2a   : > { %v563_v61 = vpack.c.bf16 %v312_v55, %v311_v54  ;;  %v317_v63 = vadd.f32 %v286_v35, %v263_v27  ;;  %461 = vst [vmem:[%s714_s24 + $0x30] sm:$0xff] %v561_v56  ;;  %v318_v2 = vadd.f32 %v290_v36, %v264_v28  ;;  %v319_v7 = vadd.f32 %v278_v33, %v265_v29 }
  0x2b   : > { %v564_v0 = vpack.c.bf16 %v314_v58, %v313_v57  ;;  %v320_v8 = vadd.f32 %v282_v34, %v266_v30  ;;  %462 = vst [vmem:[%s714_s24 + $0x38] sm:$0xff] %v562_v60  ;;  %v565_v9 = vpack.c.bf16 %v316_v62, %v315_v59  ;;  %v321_v10 = vadd.f32 %v286_v35, %v267_v31 }
  0x2c   : > { %463 = vst [vmem:[%s714_s24 + $0x40] sm:$0xff] %v563_v61  ;;  %v322_v11 = vadd.f32 %v290_v36, %v268_v32  ;;  %v323_v12 = vadd.f32 %v278_v33, %v269_v37  ;;  %v566_v17 = vpack.c.bf16 %v318_v2, %v317_v63  ;;  %v324_v19 = vadd.f32 %v282_v34, %v270_v38 }
  0x2d   : > { %464 = vst [vmem:[%s714_s24 + $0x48] sm:$0xff] %v564_v0  ;;  %v567_v18 = vpack.c.bf16 %v320_v8, %v319_v7  ;;  %v325_v20 = vadd.f32 %v286_v35, %v271_v39  ;;  %465 = vst [vmem:[%s714_s24 + $0x50] sm:$0xff] %v565_v9  ;;  %v326_v22 = vadd.f32 %v290_v36, %v272_v40 }
  0x2e   : > { %v568_v21 = vpack.c.bf16 %v322_v11, %v321_v10  ;;  %466 = vst [vmem:[%s714_s24 + $0x58] sm:$0xff] %v566_v17  ;;  %v569_v23 = vpack.c.bf16 %v324_v19, %v323_v12 }
  0x2f   : > { %467 = vst [vmem:[%s714_s24 + $0x60] sm:$0xff] %v567_v18  ;;  %v570_v24 = vpack.c.bf16 %v326_v22, %v325_v20 }
  0x30   : > { %468 = vst [vmem:[%s714_s24 + $0x68] sm:$0xff] %v568_v21  ;;  %469 = vst [vmem:[%s714_s24 + $0x70] sm:$0xff] %v569_v23 }
  0x31   : > { %470 = vst [vmem:[%s714_s24 + $0x78] sm:$0xff] %v570_v24 }
  0x32 PF: > { %s13_s12 = sadd.s32 1, %s585_s12  }
  0x33   : > { %p10_p4 = scmp.ge.s32.totalorder %s13_s12, 4  }
  0x35   :  { %12 = sbr.rel (!%p10_p4) target bundleno = 1 (0x1), region = 62 }

// kernel: unet_innermost_block.2
= control target key start
LH: loop header
LB: loop body
LE: loop exit
PB: predicated region body
PF: predicated region fallthrough
CT: control target
= control target key end

     0   :  { %s11082_s15 = smov 0   ;;  %s12782_s0 = inlined_call_operand.vmem [shape: bf16[2,36,9,128], index: 0, kind: input, shape index: {}]   ;;  %s12783_s1 = inlined_call_operand.vmem [shape: bf16[16,128,128], index: 1, kind: input, shape index: {}]   ;;  %s12784_s2 = inlined_call_operand.vmem [shape: bf16[16,128,128], index: 2, kind: input, shape index: {}]   ;;  %s12785_s3 = inlined_call_operand.vmem [shape: bf16[2,8,8,512], index: 3, kind: output, shape index: {0}]   ;;  %s12786_s4 = inlined_call_operand.vmem [shape: f32[2,2,128], index: 4, kind: output, shape index: {1}]  }
   0x1 LB: > { %s8442_s16 = sadd.s32 4294967295, %s11054_s15   ;;  %p8446_p0 = scmp.ge.s32.totalorder %s11054_s15, 1  ;;  %s11054_s15 = sphi %s11082_s15, %s15_s15  }
   0x2   : > { %p165_p1 = scmp.lt.s32.totalorder %s11054_s15, 3 }
   0x4   : > { %p166_p2 = pnand %p8446_p0, %p165_p1 }
   0x5   : > { %v10744_v0 = vld [vmem:[%s12783_s1 + $0x40] sm:$0xff] (!%p166_p2)   ;;  %p195_p3 = scmp.lt.s32.totalorder (!%p166_p2), %s8442_s16, 1  ;;  %v10745_v1 = vld [vmem:[%s12783_s1 + $0x48] sm:$0xff] (!%p166_p2)   ;;  %v10746_v2 = vld [vmem:[%s12783_s1 + $0x50] sm:$0xff] (!%p166_p2)  }
   0x6   : > { %169 = sbr.rel (%p166_p2) target bundleno = 1493 (0x5d5), region = 32  ;;  %9750 = vmatprep.subr.bf16.mxu0 (!%p166_p2), %v10744_v0  ;;  %v10747_v3 = vld [vmem:[%s12783_s1 + $0x58] sm:$0xff] (!%p166_p2)   ;;  %v10748_v13 = vld [vmem:[%s12783_s1 + $0x60] sm:$0xff] (!%p166_p2)   ;;  %v10749_v17 = vld [vmem:[%s12783_s1 + $0x68] sm:$0xff] (!%p166_p2)  }
   0x7   : > { %9751 = vmatpush3.bf16.msra.mxu0 (!%p166_p2), %v10744_v0  ;;  %v10750_v23 = vld [vmem:[%s12783_s1 + $0x70] sm:$0xff] (!%p166_p2)   ;;  %v10751_v28 = vld [vmem:[%s12783_s1 + $0x78] sm:$0xff] (!%p166_p2)   ;;  %v10753_v38 = vld [vmem:[%s12783_s1] sm:$0xff] (!%p166_p2)  }
   0x8   : > { %9752 = vmatprep.subr.bf16.mxu0 (!%p166_p2), %v10745_v1  ;;  %v10755_v48 = vld [vmem:[%s12783_s1 + $0x8] sm:$0xff] (!%p166_p2)   ;;  %v10756_v51 = vld [vmem:[%s12783_s1 + $0x10] sm:$0xff] (!%p166_p2)   ;;  %v10757_v58 = vld [vmem:[%s12783_s1 + $0x18] sm:$0xff] (!%p166_p2)  }
   0x9   : > { %v10758_v63 = vld [vmem:[%s12783_s1 + $0x20] sm:$0xff] (!%p166_p2)  }
   0xb   : > { %9753 = vmatpush3.bf16.msra.mxu0 (!%p166_p2), %v10745_v1 }
   0xc   : > { %9754 = vmatprep.subr.bf16.mxu0 (!%p166_p2), %v10746_v2 }
   0xd   : > { %s12796_s16 = smov (!%p195_p3, %s8442_s16), 1 }
   0xe   : > { %s10734_s23 = smul.u32 288, %s12796_s16  ;;  %s9357_s24 = sshll.u32 %s12796_s16, 7 }
   0xf   : > { %9755 = vmatpush3.bf16.msra.mxu0 %v10746_v2  ;;  %s12460_s30 = scalar_lea.vmem %s12785_s3, %s9357_s24  ;;  %s8450_s19 = sshll.u32 %s12796_s16, 1 }
  0x10   : > { %s11105_s26 = scalar_lea.vmem %s12782_s0, %s10734_s23  ;;  %9756 = vmatprep.subr.bf16.mxu0 %v10747_v3  ;;  %s208_s21 = scalar_lea.vmem %s12786_s4, %s8450_s19 }
  0x11   : > { %v229_v4 = vld [vmem:[%s11105_s26 + $0x48] sm:$0xf]  ;;  %v231_v5 = vld [vmem:[%s11105_s26 + $0x50] sm:$0xf]  ;;  %v233_v8 = vld [vmem:[%s11105_s26 + $0x58] sm:$0xf] }
  0x12   : > { %vm301_vm0 = vcmp.ge.bf16.partialorder %v229_v4, 0  ;;  %vm303_vm1 = vcmp.ge.bf16.partialorder %v231_v5, 0  ;;  %v373_v6 = vmul.bf16 1045249613, %v229_v4  ;;  %v375_v7 = vmul.bf16 1045249613, %v231_v5 }
  0x13   : > { %v235_v11 = vld [vmem:[%s11105_s26 + $0x60] sm:$0xf]  ;;  %vm305_vm2 = vcmp.ge.bf16.partialorder %v233_v8, 0  ;;  %v377_v12 = vmul.bf16 1045249613, %v233_v8  ;;  %9757 = vmatpush3.bf16.msra.mxu0 %v10747_v3 }
  0x14   : > { %v445_v9 = vsel %vm301_vm0, %v229_v4, %v373_v6  ;;  %v447_v10 = vsel %vm303_vm1, %v231_v5, %v375_v7  ;;  %vm307_vm3 = vcmp.ge.bf16.partialorder %v235_v11, 0  ;;  %v379_v14 = vmul.bf16 1045249613, %v235_v11  ;;  %9758 = vmatprep.subr.bf16.mxu0 %v10748_v13  ;;  %v237_v18 = vld [vmem:[%s11105_s26 + $0x68] sm:$0xf] }
  0x15   : > { %538 = vst [vmem:[#allocation2 + $0x48] sm:$0xf] %v445_v9  ;;  %542 = vst [vmem:[#allocation2 + $0x50] sm:$0xf] %v447_v10  ;;  %v449_v15 = vsel %vm305_vm2, %v233_v8, %v377_v12  ;;  %v239_v19 = vld [vmem:[%s11105_s26 + $0x70] sm:$0xf] }
  0x16   : > { %v451_v16 = vsel %vm307_vm3, %v235_v11, %v379_v14  ;;  %546 = vst [vmem:[#allocation2 + $0x58] sm:$0xf] %v449_v15  ;;  %vm309_vm4 = vcmp.ge.bf16.partialorder %v237_v18, 0  ;;  %vm311_vm5 = vcmp.ge.bf16.partialorder %v239_v19, 0  ;;  %v381_v20 = vmul.bf16 1045249613, %v237_v18 }
  0x17   : > { %550 = vst [vmem:[#allocation2 + $0x60] sm:$0xf] %v451_v16  ;;  %v383_v21 = vmul.bf16 1045249613, %v239_v19  ;;  %9759 = vmatpush3.bf16.msra.mxu0 %v10748_v13  ;;  %v241_v26 = vld [vmem:[%s11105_s26 + $0x78] sm:$0xf] }
  0x18   : > { %9760 = vmatprep.subr.bf16.mxu0 %v10749_v17  ;;  %v453_v24 = vsel %vm309_vm4, %v237_v18, %v381_v20  ;;  %v243_v27 = vld [vmem:[%s11105_s26 + $0x80] sm:$0xf]  ;;  %vm313_vm6 = vcmp.ge.bf16.partialorder %v241_v26, 0  ;;  %v385_v29 = vmul.bf16 1045249613, %v241_v26  ;;  %vm500_vm0 = vcmask 1040384  }
  0x19   : > { %v455_v25 = vsel %vm311_vm5, %v239_v19, %v383_v21  ;;  %554 = vst [vmem:[#allocation2 + $0x68] sm:$0xf] %v453_v24  ;;  %vm315_vm7 = vcmp.ge.bf16.partialorder %v243_v27, 0  ;;  %v387_v30 = vmul.bf16 1045249613, %v243_v27  ;;  %v10761_v20 = vld [vmem:[%s12783_s1 + $0x30] sm:$0xff]  }
  0x1a   : > { %558 = vst [vmem:[#allocation2 + $0x70] sm:$0xf] %v455_v25  ;;  %v211_v31 = vld [vmem:[%s11105_s26] sm:$0xf]  ;;  %v213_v32 = vld [vmem:[%s11105_s26 + $0x8] sm:$0xf]  ;;  %v457_v33 = vsel %vm313_vm6, %v241_v26, %v385_v29 }
  0x1b   : > { %9761 = vmatpush3.bf16.msra.mxu0 %v10749_v17  ;;  %v459_v34 = vsel %vm315_vm7, %v243_v27, %v387_v30  ;;  %vm283_vm8 = vcmp.ge.bf16.partialorder %v211_v31, 0  ;;  %vm285_vm9 = vcmp.ge.bf16.partialorder %v213_v32, 0  ;;  %562 = vst [vmem:[#allocation2 + $0x78] sm:$0xf] %v457_v33  ;;  %v355_v35 = vmul.bf16 1045249613, %v211_v31 }
  0x1c   : > { %v10752_v22 = vld [vmem:[#allocation2 + $0x48] ss:$8 sps:$4 sm:$0xff]   ;;  %9762 = vmatprep.subr.bf16.mxu0 %v10750_v23  ;;  %566 = vst [vmem:[#allocation2 + $0x80] sm:$0xf] %v459_v34  ;;  %v357_v36 = vmul.bf16 1045249613, %v213_v32 }
  0x1d   : > { %9766 = vmatprep.mubr.bf16.mxu0 %v10752_v22  ;;  %v215_v37 = vld [vmem:[%s11105_s26 + $0x10] sm:$0xf]  ;;  %v217_v39 = vld [vmem:[%s11105_s26 + $0x18] sm:$0xf]  ;;  %v427_v42 = vsel %vm283_vm8, %v211_v31, %v355_v35  ;;  %v219_v49 = vld [vmem:[%s11105_s26 + $0x20] sm:$0xf] }
  0x1e   : > { %vm287_vm10 = vcmp.ge.bf16.partialorder %v215_v37, 0  ;;  %v359_v40 = vmul.bf16 1045249613, %v215_v37  ;;  %v10754_v41 = vld [vmem:[#allocation2 + $0x58] ss:$8 sps:$4 sm:$0xff]   ;;  %v429_v43 = vsel %vm285_vm9, %v213_v32, %v357_v36  ;;  %vm289_vm11 = vcmp.ge.bf16.partialorder %v217_v39, 0 }
  0x1f   : > { %9763 = vmatpush3.bf16.msra.mxu0 %v10750_v23  ;;  %499 = vst [vmem:[#allocation2] sm:$0xf] %v427_v42  ;;  %506 = vst [vmem:[#allocation2 + $0x8] sm:$0xf] %v429_v43  ;;  %v361_v44 = vmul.bf16 1045249613, %v217_v39 }
  0x20   : > { %9764 = vmatprep.subr.bf16.mxu0 %v10751_v28  ;;  %v431_v45 = vsel %vm287_vm10, %v215_v37, %v359_v40  ;;  %v221_v50 = vld [vmem:[%s11105_s26 + $0x28] sm:$0xf]  ;;  %vm291_vm12 = vcmp.ge.bf16.partialorder %v219_v49, 0  ;;  %v363_v52 = vmul.bf16 1045249613, %v219_v49  ;;  %v10763_v30 = vld [vmem:[%s12783_s1 + $0x38] sm:$0xff]  }
  0x21   : > { %510 = vst [vmem:[#allocation2 + $0x10] sm:$0xf] %v431_v45  ;;  %v10760_v46 = vld [vmem:[#allocation2 + $0x68] ss:$8 sps:$4 sm:$0xff]   ;;  %v433_v47 = vsel %vm289_vm11, %v217_v39, %v361_v44  ;;  %vm293_vm13 = vcmp.ge.bf16.partialorder %v221_v50, 0  ;;  %v10765_v45 = vld [vmem:[%s12783_s1 + $0x80] sm:$0xff]  }
  0x22   : > { %514 = vst [vmem:[#allocation2 + $0x18] sm:$0xf] %v433_v47  ;;  %v365_v54 = vmul.bf16 1045249613, %v221_v50  ;;  %v435_v56 = vsel %vm291_vm12, %v219_v49, %v363_v52  ;;  %v223_v57 = vld [vmem:[%s11105_s26 + $0x30] sm:$0xf] }
  0x23   : > { %9765 = vmatpush3.bf16.msra.mxu0 %v10751_v28  ;;  %v10762_v53 = vld [vmem:[#allocation2 + $0x78] ss:$8 sps:$4 sm:$0xff]   ;;  %518 = vst [vmem:[#allocation2 + $0x20] sm:$0xf] %v435_v56  ;;  %vm295_vm14 = vcmp.ge.bf16.partialorder %v223_v57, 0  ;;  %v10759_v17 = vld [vmem:[%s12783_s1 + $0x28] sm:$0xff]  }
  0x24   : > { %9774 = vmatprep.subr.bf16.mxu0 %v10753_v38  ;;  %v437_v59 = vsel %vm293_vm13, %v221_v50, %v365_v54  ;;  %v225_v60 = vld [vmem:[%s11105_s26 + $0x38] sm:$0xf]  ;;  %v367_v61 = vmul.bf16 1045249613, %v223_v57  ;;  %v212_v1 = vld [vmem:[%s11105_s26 + $0x4] sm:$0x1] }
  0x25   : > { %522 = vst [vmem:[#allocation2 + $0x28] sm:$0xf] %v437_v59  ;;  %vm297_vm15 = vcmp.ge.bf16.partialorder %v225_v60, 0  ;;  %v369_v62 = vmul.bf16 1045249613, %v225_v60  ;;  %vm284_vm1 = vcmp.ge.bf16.partialorder %v212_v1, 0 }
  0x26   : > { %9767 = vmatmul.mubr.bf16.vlgmr.msra.gmra.mrb[0].mxu0 %v10754_v41  ;;  %v10764_v55 = vld [vmem:[#allocation2] ss:$8 sps:$4 sm:$0xff]   ;;  %v439_v0 = vsel %vm295_vm14, %v223_v57, %v367_v61  ;;  %v214_v2 = vld [vmem:[%s11105_s26 + $0xc] sm:$0x1]  ;;  %v356_v4 = vmul.bf16 1045249613, %v212_v1 }
  0x27   : > { %9775 = vmatpush3.bf16.msra.mxu0 %v10753_v38  ;;  %9770 = vmatprep.mubr.bf16.mxu0 %v10760_v46  ;;  %v441_v3 = vsel %vm297_vm15, %v225_v60, %v369_v62  ;;  %526 = vst [vmem:[#allocation2 + $0x30] sm:$0xf] %v439_v0  ;;  %vm286_vm2 = vcmp.ge.bf16.partialorder %v214_v2, 0  ;;  %v503_v5 = vld [vmem:[#allocation2 + $0x4] sm:$0x1] }
  0x28   : > { %9776 = vmatprep.subr.bf16.mxu0 %v10755_v48  ;;  %530 = vst [vmem:[#allocation2 + $0x38] sm:$0xf] %v441_v3  ;;  %v358_v6 = vmul.bf16 1045249613, %v214_v2  ;;  %vm501_vm3 = vsmask.f32 256  ;;  %v428_v8 = vsel %vm284_vm1, %v212_v1, %v356_v4 }
  0x29   : > { %v507_v7 = vld [vmem:[#allocation2 + $0xc] sm:$0x1]  ;;  %vm11156_vm4 = vmand %vm500_vm0, %vm501_vm3  ;;  %v970_v10 = vld [vmem:[#allocation2] sm:$0xf]  ;;  %vm986_vm7 = vsmask.f32 3328 }
  0x2a   : > { %v430_v11 = vsel %vm286_vm2, %v214_v2, %v358_v6  ;;  %v504_v12 = vsel %vm11156_vm4, %v428_v8, %v503_v5  ;;  %v972_v13 = vld [vmem:[#allocation2 + $0x8] sm:$0xf]  ;;  %v990_v15 = vshrl.u32 %v970_v10, 16  ;;  %v993_v16 = vshll.u32 %v970_v10, 16  ;;  %v216_v21 = vld [vmem:[%s11105_s26 + $0x14] sm:$0x1] }
  0x2b   : > { %9777 = vmatpush3.bf16.msra.mxu0 %v10755_v48  ;;  %505 = vst [vmem:[#allocation2 + $0x4] sm:$0x1] %v504_v12  ;;  %v508_v14 = vsel %vm11156_vm4, %v430_v11, %v507_v7  ;;  %v1004_v18 = vshrl.u32 %v972_v13, 16  ;;  %v1007_v19 = vshll.u32 %v972_v13, 16  ;;  %v218_v22 = vld [vmem:[%s11105_s26 + $0x1c] sm:$0x1] }
  0x2c   : > { %9778 = vmatprep.subr.bf16.mxu0 %v10756_v51  ;;  %509 = vst [vmem:[#allocation2 + $0xc] sm:$0x1] %v508_v14  ;;  %v992_v23 = vrot.slane %v990_v15, 4  ;;  %v995_v24 = vrot.slane %v993_v16, 5  ;;  %vm288_vm5 = vcmp.ge.bf16.partialorder %v216_v21, 0  ;;  %vm290_vm6 = vcmp.ge.bf16.partialorder %v218_v22, 0 }
  0x2d   : > { %v360_v25 = vmul.bf16 1045249613, %v216_v21  ;;  %v362_v26 = vmul.bf16 1045249613, %v218_v22  ;;  %v511_v27 = vld [vmem:[#allocation2 + $0x14] sm:$0x1] }
  0x2e   : > { %9771 = vmatmul.mubr.bf16.gmra.mrb[4].mxu0 %v10762_v53  ;;  %v515_v28 = vld [vmem:[#allocation2 + $0x1c] sm:$0x1]  ;;  %v974_v29 = vld [vmem:[#allocation2 + $0x10] sm:$0xf]  ;;  %v1006_v37 = vrot.slane %v1004_v18, 4  ;;  %v1009_v38 = vrot.slane %v1007_v19, 5  ;;  %v996_v41 = vor.u32 %v995_v24, %v992_v23 }
  0x2f   : > { %9779 = vmatpush3.bf16.msra.mxu0 %v10756_v51  ;;  %9790 = vmatprep.mubr.bf16.mxu0 %v10764_v55  ;;  %v432_v32 = vsel %vm288_vm5, %v216_v21, %v360_v25  ;;  %v434_v33 = vsel %vm290_vm6, %v218_v22, %v362_v26  ;;  %v1018_v34 = vshrl.u32 %v974_v29, 16  ;;  %v1021_v35 = vshll.u32 %v974_v29, 16  ;;  %v976_v42 = vld [vmem:[#allocation2 + $0x18] sm:$0xf]  ;;  %v220_v52 = vld [vmem:[%s11105_s26 + $0x24] sm:$0x1] }
  0x30   : > { %9780 = vmatprep.subr.bf16.mxu0 %v10757_v58  ;;  %v512_v39 = vsel %vm11156_vm4, %v432_v32, %v511_v27  ;;  %v516_v40 = vsel %vm11156_vm4, %v434_v33, %v515_v28  ;;  %vm987_vm8 = vsmask.f32 7440  ;;  %v1010_v48 = vor.u32 %v1009_v38, %v1006_v37  ;;  %v10766_v49 = vld [vmem:[#allocation2 + $0x10] ss:$8 sps:$4 sm:$0xff]   ;;  %v222_v54 = vld [vmem:[%s11105_s26 + $0x2c] sm:$0x1] }
  0x31   : > { %513 = vst [vmem:[#allocation2 + $0x14] sm:$0x1] %v512_v39  ;;  %517 = vst [vmem:[#allocation2 + $0x1c] sm:$0x1] %v516_v40  ;;  %v1020_v46 = vrot.slane %v1018_v34, 4  ;;  %v1023_v47 = vrot.slane %v1021_v35, 5 }
  0x32   : > { %v971_v31 = vld [vmem:[#allocation2 + $0x4] sm:$0x1]  ;;  %v997_v50 = vrot.slane %v996_v41, 4  ;;  %v1032_v51 = vshrl.u32 %v976_v42, 16  ;;  %v1035_v53 = vshll.u32 %v976_v42, 16  ;;  %vm292_vm9 = vcmp.ge.bf16.partialorder %v220_v52, 0  ;;  %vm11186_vm11 = vmor %vm986_vm7, %vm987_vm8 }
  0x33   : > { %9781 = vmatpush3.bf16.msra.mxu0 %v10757_v58  ;;  %v973_v36 = vld [vmem:[#allocation2 + $0xc] sm:$0x1]  ;;  %v999_v43 = vshll.u32 %v971_v31, 16  ;;  %v364_v55 = vmul.bf16 1045249613, %v220_v52  ;;  %vm294_vm10 = vcmp.ge.bf16.partialorder %v222_v54, 0 }
  0x34   : > { %9782 = vmatprep.subr.bf16.mxu0 %v10758_v63  ;;  %v1013_v44 = vshll.u32 %v973_v36, 16  ;;  %v366_v57 = vmul.bf16 1045249613, %v222_v54  ;;  %v519_v58 = vld [vmem:[#allocation2 + $0x24] sm:$0x1]  ;;  %v1011_v61 = vrot.slane %v1010_v48, 4 }
  0x35   : > { %v1001_v56 = vrot.slane %v999_v43, 5  ;;  %v10772_v59 = vld [vmem:[#allocation2 + $0x20] ss:$8 sps:$4 sm:$0xff]   ;;  %v436_v0 = vsel %vm292_vm9, %v220_v52, %v364_v55  ;;  %v523_v1 = vld [vmem:[#allocation2 + $0x2c] sm:$0x1]  ;;  %v1034_v3 = vrot.slane %v1032_v51, 4 }
  0x36   : > { %v1015_v62 = vrot.slane %v1013_v44, 5  ;;  %v10767_v2 = vld [vmem:[%s12783_s1 + $0x88] sm:$0xff]   ;;  %v438_v4 = vsel %vm294_vm10, %v222_v54, %v366_v57  ;;  %v520_v5 = vsel %vm11156_vm4, %v436_v0, %v519_v58  ;;  %v978_v6 = vld [vmem:[#allocation2 + $0x20] sm:$0xf]  ;;  %v1037_v8 = vrot.slane %v1035_v53, 5  ;;  %v10768_v14 = vld [vmem:[%s12783_s1 + $0x90] sm:$0xff]  }
  0x37   : > { %9783 = vmatpush3.bf16.msra.mxu0 %v10758_v63  ;;  %v1024_v63 = vor.u32 %v1023_v47, %v1020_v46  ;;  %v980_v7 = vld [vmem:[#allocation2 + $0x28] sm:$0xf]  ;;  %521 = vst [vmem:[#allocation2 + $0x24] sm:$0x1] %v520_v5  ;;  %v524_v10 = vsel %vm11156_vm4, %v438_v4, %v523_v1  ;;  %v1046_v11 = vshrl.u32 %v978_v6, 16  ;;  %v1049_v12 = vshll.u32 %v978_v6, 16 }
  0x38   : > { %9784 = vmatprep.subr.bf16.mxu0 %v10759_v17  ;;  %v1002_v13 = vsel %vm11186_vm11, %v997_v50, %v1001_v56  ;;  %525 = vst [vmem:[#allocation2 + $0x2c] sm:$0x1] %v524_v10  ;;  %v1016_v15 = vsel %vm11186_vm11, %v1011_v61, %v1015_v62  ;;  %v1063_v18 = vshll.u32 %v980_v7, 16  ;;  %v224_v19 = vld [vmem:[%s11105_s26 + $0x34] sm:$0x1]  ;;  %v1038_v25 = vor.u32 %v1037_v8, %v1034_v3  ;;  %v10769_v33 = vld [vmem:[%s12783_s1 + $0x98] sm:$0xff]  }
  0x39   : > { %v11204_v16 = vrot.slane %v1024_v63, 4  ;;  %v11207_v21 = vld [vmem:[#allocation2 + $0x14] sm:$0x1]  ;;  %v11209_v22 = vrot.slane %v1046_v11, 4  ;;  %v226_v23 = vld [vmem:[%s11105_s26 + $0x3c] sm:$0x1]  ;;  %v8507_v29 = vcombine.low %v1002_v13, %v1016_v15 }
  0x3a   : > { %vm296_vm12 = vcmp.ge.bf16.partialorder %v224_v19, 0  ;;  %v527_v24 = vld [vmem:[#allocation2 + $0x34] sm:$0x1]  ;;  %v11212_v26 = vrot.slane %v1049_v12, 5  ;;  %vm298_vm13 = vcmp.ge.bf16.partialorder %v226_v23, 0  ;;  %v1065_v39 = vrot.slane %v1063_v18, 5 }
  0x3b   : > { %9785 = vmatpush3.bf16.msra.mxu0 %v10759_v17  ;;  %v1060_v17 = vshrl.u32 %v980_v7, 16  ;;  %v368_v27 = vmul.bf16 1045249613, %v224_v19  ;;  %v531_v28 = vld [vmem:[#allocation2 + $0x3c] sm:$0x1]  ;;  %v1027_v43 = vshll.u32 %v11207_v21, 16 }
  0x3c   : > { %9786 = vmatprep.subr.bf16.mxu0 %v10761_v20  ;;  %v982_v31 = vld [vmem:[#allocation2 + $0x30] sm:$0xf]  ;;  %v984_v32 = vld [vmem:[#allocation2 + $0x38] sm:$0xf]  ;;  %v977_v38 = vld [vmem:[#allocation2 + $0x1c] sm:$0x1]  ;;  %v1052_v54 = vor.u32 %v11212_v26, %v11209_v22 }
  0x3d   : > { %v1062_v34 = vrot.slane %v1060_v17, 4  ;;  %v440_v35 = vsel %vm296_vm12, %v224_v19, %v368_v27  ;;  %v1074_v36 = vshrl.u32 %v982_v31, 16  ;;  %v1077_v37 = vshll.u32 %v982_v31, 16  ;;  %v230_v52 = vld [vmem:[%s11105_s26 + $0x4c] sm:$0x1]  ;;  %v10770_v57 = vld [vmem:[%s12783_s1 + $0xa0] sm:$0xff]  }
  0x3e   : > { %v528_v41 = vsel %vm11156_vm4, %v440_v35, %v527_v24  ;;  %v1088_v42 = vshrl.u32 %v984_v32, 16  ;;  %v11221_v44 = vrot.slane %v1038_v25, 4  ;;  %v1091_v51 = vshll.u32 %v984_v32, 16  ;;  %v232_v55 = vld [vmem:[%s11105_s26 + $0x54] sm:$0x1]  ;;  %v10771_v12 = vld [vmem:[%s12783_s1 + $0xa8] sm:$0xff]  }
  0x3f   : > { %9787 = vmatpush3.bf16.msra.mxu0 %v10761_v20  ;;  %v10774_v20 = vld [vmem:[#allocation2 + $0x30] ss:$8 sps:$4 sm:$0xff]   ;;  %v981_v46 = vld [vmem:[#allocation2 + $0x2c] sm:$0x1]  ;;  %529 = vst [vmem:[#allocation2 + $0x34] sm:$0x1] %v528_v41  ;;  %v1066_v58 = vor.u32 %v1065_v39, %v1062_v34 }
  0x40   : > { %9788 = vmatprep.subr.bf16.mxu0 %v10763_v30  ;;  %v1076_v48 = vrot.slane %v1074_v36, 4  ;;  %v1090_v50 = vrot.slane %v1088_v42, 4  ;;  %v1041_v53 = vshll.u32 %v977_v38, 16  ;;  %vm302_vm14 = vcmp.ge.bf16.partialorder %v230_v52, 0  ;;  %v539_v1 = vld [vmem:[#allocation2 + $0x4c] sm:$0x1] }
  0x41   : > { %v374_v56 = vmul.bf16 1045249613, %v230_v52  ;;  %vm304_vm15 = vcmp.ge.bf16.partialorder %v232_v55, 0  ;;  %v376_v61 = vmul.bf16 1045249613, %v232_v55  ;;  %v1069_v63 = vshll.u32 %v981_v46, 16 }
  0x42   : > { %v1255_v7 = vld [vmem:[#allocation2 + $0x48] sm:$0xf]  ;;  %v1257_v10 = vld [vmem:[#allocation2 + $0x50] sm:$0xf]  ;;  %v234_v11 = vld [vmem:[%s11105_s26 + $0x5c] sm:$0x1] }
  0x43   : > { %9789 = vmatpush3.bf16.msra.mxu0 %v10763_v30  ;;  %v370_v30 = vmul.bf16 1045249613, %v226_v23  ;;  %v446_v0 = vsel %vm302_vm14, %v230_v52, %v374_v56  ;;  %v448_v5 = vsel %vm304_vm15, %v232_v55, %v376_v61  ;;  %v11240_v13 = vrot.slane %v1027_v43, 5  ;;  %v236_v27 = vld [vmem:[%s11105_s26 + $0x64] sm:$0x1]  ;;  %v10775_v41 = vld [vmem:[%s12783_s1 + $0xb8] sm:$0xff]  }
  0x44   : > { %9798 = vmatprep.subr.bf16.mxu0 %v10765_v45  ;;  %v540_v6 = vsel %vm11156_vm4, %v446_v0, %v539_v1  ;;  %v11244_v15 = vrot.slane %v1052_v54, 4  ;;  %v11246_v17 = vrot.slane %v1066_v58, 4  ;;  %v1071_v19 = vrot.slane %v1069_v63, 5  ;;  %v551_v34 = vld [vmem:[#allocation2 + $0x64] sm:$0x1] }
  0x45   : > { %v442_v40 = vsel %vm298_vm13, %v226_v23, %v370_v30  ;;  %541 = vst [vmem:[#allocation2 + $0x4c] sm:$0x1] %v540_v6  ;;  %v1272_v21 = vshrl.u32 %v1255_v7, 16  ;;  %v1275_v22 = vshll.u32 %v1255_v7, 16  ;;  %v10773_v23 = vld [vmem:[%s12783_s1 + $0xb0] sm:$0xff]   ;;  %v1286_v26 = vshrl.u32 %v1257_v10, 16 }
  0x46   : > { %9791 = vmatmul.mubr.bf16.vlgmr.msra.gmra.mrb[0].mxu0 %v10766_v49  ;;  %v532_v47 = vsel %vm11156_vm4, %v442_v40, %v531_v28  ;;  %v1079_v49 = vrot.slane %v1077_v37, 5  ;;  %vm306_vm0 = vcmp.ge.bf16.partialorder %v234_v11, 0  ;;  %v1289_v28 = vshll.u32 %v1257_v10, 16  ;;  %v547_v30 = vld [vmem:[#allocation2 + $0x5c] sm:$0x1] }
  0x47   : > { %9799 = vmatpush3.bf16.msra.mxu0 %v10765_v45  ;;  %9794 = vmatprep.mubr.bf16.mxu0 %v10772_v59  ;;  %v979_v45 = vld [vmem:[#allocation2 + $0x24] sm:$0x1]  ;;  %533 = vst [vmem:[#allocation2 + $0x3c] sm:$0x1] %v532_v47  ;;  %v1093_v59 = vrot.slane %v1091_v51, 5  ;;  %vm308_vm1 = vcmp.ge.bf16.partialorder %v236_v27, 0  ;;  %v1030_v31 = vsel %vm11186_vm11, %v11204_v16, %v11240_v13  ;;  %v1072_v55 = vsel %vm11186_vm11, %v11246_v17, %v1071_v19 }
  0x48   : > { %9800 = vmatprep.subr.bf16.mxu0 %v10767_v2  ;;  %v1055_v62 = vshll.u32 %v979_v45, 16  ;;  %v1080_v3 = vor.u32 %v1079_v49, %v1076_v48  ;;  %v1274_v36 = vrot.slane %v1272_v21, 4  ;;  %v1277_v37 = vrot.slane %v1275_v22, 5  ;;  %v1259_v39 = vld [vmem:[#allocation2 + $0x58] sm:$0xf]  ;;  %v10777_v19 = vld [vmem:[%s12783_s1 + $0xc8] sm:$0xff]  }
  0x49   : > { %v1094_v4 = vor.u32 %v1093_v59, %v1090_v50  ;;  %v1261_v40 = vld [vmem:[#allocation2 + $0x60] sm:$0xf]  ;;  %v1288_v43 = vrot.slane %v1286_v26, 4  ;;  %v1291_v48 = vrot.slane %v1289_v28, 5  ;;  %v1300_v50 = vshrl.u32 %v1259_v39, 16 }
  0x4a   : > { %v1057_v18 = vrot.slane %v1055_v62, 5  ;;  %v11253_v24 = vrot.slane %v1080_v3, 4  ;;  %v1303_v52 = vshll.u32 %v1259_v39, 16  ;;  %v1317_v54 = vshll.u32 %v1261_v40, 16  ;;  %v10776_v59 = vld [vmem:[%s12783_s1 + $0xc0] sm:$0xff]  }
  0x4b   : > { %9801 = vmatpush3.bf16.msra.mxu0 %v10767_v2  ;;  %v543_v2 = vld [vmem:[#allocation2 + $0x54] sm:$0x1]  ;;  %v11255_v25 = vrot.slane %v1094_v4, 4  ;;  %v1278_v56 = vor.u32 %v1277_v37, %v1274_v36  ;;  %v1302_v61 = vrot.slane %v1300_v50, 4  ;;  %v1292_v1 = vor.u32 %v1291_v48, %v1288_v43  ;;  %v238_v3 = vld [vmem:[%s11105_s26 + $0x6c] sm:$0x1] }
  0x4c   : > { %9802 = vmatprep.subr.bf16.mxu0 %v10768_v14  ;;  %v544_v8 = vsel %vm11156_vm4, %v448_v5, %v543_v2  ;;  %v1256_v16 = vld [vmem:[#allocation2 + $0x4c] sm:$0x1]  ;;  %v1305_v62 = vrot.slane %v1303_v52, 5  ;;  %v1319_v0 = vrot.slane %v1317_v54, 5  ;;  %v240_v4 = vld [vmem:[%s11105_s26 + $0x74] sm:$0x1] }
  0x4d   : > { %545 = vst [vmem:[#allocation2 + $0x54] sm:$0x1] %v544_v8  ;;  %vm310_vm2 = vcmp.ge.bf16.partialorder %v238_v3, 0  ;;  %vm312_vm3 = vcmp.ge.bf16.partialorder %v240_v4, 0  ;;  %v382_v6 = vmul.bf16 1045249613, %v238_v3 }
  0x4e   : > { %9795 = vmatmul.mubr.bf16.gmra.mrb[4].mxu0 %v10774_v20  ;;  %v11248_v20 = vld [vmem:[#allocation2 + $0x34] sm:$0x1]  ;;  %v985_v32 = vld [vmem:[#allocation2 + $0x3c] sm:$0x1]  ;;  %v555_v7 = vld [vmem:[#allocation2 + $0x6c] sm:$0x1] }
  0x4f   : > { %9803 = vmatpush3.bf16.msra.mxu0 %v10768_v14  ;;  %9814 = vmatprep.mubr.bf16.mxu0 %v8507_v29  ;;  %v11242_v14 = vrot.slane %v1041_v53, 5  ;;  %v378_v29 = vmul.bf16 1045249613, %v234_v11  ;;  %v1083_v42 = vshll.u32 %v11248_v20, 16  ;;  %v1097_v51 = vshll.u32 %v985_v32, 16  ;;  %v10779_v43 = vld [vmem:[%s12783_s1 + $0xd8] sm:$0xff]  }
  0x50   : > { %9804 = vmatprep.subr.bf16.mxu0 %v10769_v33  ;;  %v1314_v53 = vshrl.u32 %v1261_v40, 16  ;;  %v454_v17 = vsel %vm310_vm2, %v238_v3, %v382_v6  ;;  %v1306_v20 = vor.u32 %v1305_v62, %v1302_v61  ;;  %v1263_v26 = vld [vmem:[#allocation2 + $0x68] sm:$0xf]  ;;  %v1265_v28 = vld [vmem:[#allocation2 + $0x70] sm:$0xf] }
  0x51   : > { %v1044_v35 = vsel %vm11186_vm11, %v11221_v44, %v11242_v14  ;;  %v450_v38 = vsel %vm306_vm0, %v234_v11, %v378_v29  ;;  %v1058_v44 = vsel %vm11186_vm11, %v11244_v15, %v1057_v18  ;;  %v1085_v8 = vrot.slane %v1083_v42, 5  ;;  %v559_v18 = vld [vmem:[#allocation2 + $0x74] sm:$0x1]  ;;  %v242_v36 = vld [vmem:[%s11105_s26 + $0x7c] sm:$0x1] }
  0x52   : > { %v548_v46 = vsel %vm11156_vm4, %v450_v38, %v547_v30  ;;  %v1316_v63 = vrot.slane %v1314_v53, 4  ;;  %v8508_v2 = vcombine.low %v1030_v31, %v1044_v35  ;;  %v8509_v5 = vcombine.low %v1058_v44, %v1072_v55  ;;  %v10778_v29 = vld [vmem:[%s12783_s1 + $0xd0] sm:$0xff]   ;;  %v244_v37 = vld [vmem:[%s11105_s26 + $0x84] sm:$0x1]  ;;  %v1269_v52 = vld [vmem:[#allocation2 + $0x80] sm:$0xf] }
  0x53   : > { %9805 = vmatpush3.bf16.msra.mxu0 %v10769_v33  ;;  %v380_v33 = vmul.bf16 1045249613, %v236_v27  ;;  %549 = vst [vmem:[#allocation2 + $0x5c] sm:$0x1] %v548_v46  ;;  %v1099_v10 = vrot.slane %v1097_v51, 5  ;;  %v1279_v11 = vrot.slane %v1278_v56, 4  ;;  %v1086_v30 = vsel %vm11186_vm11, %v11253_v24, %v1085_v8 }
  0x54   : > { %9806 = vmatprep.subr.bf16.mxu0 %v10770_v57  ;;  %v1258_v47 = vld [vmem:[#allocation2 + $0x54] sm:$0x1]  ;;  %v1293_v14 = vrot.slane %v1292_v1, 4  ;;  %v1320_v21 = vor.u32 %v1319_v0, %v1316_v63  ;;  %v1331_v35 = vshll.u32 %v1263_v26, 16  ;;  %v11311_v24 = vrot.slane %v1306_v20, 4 }
  0x55   : > { %v452_v45 = vsel %vm308_vm1, %v236_v27, %v380_v33  ;;  %v1295_v58 = vshll.u32 %v1258_v47, 16  ;;  %v1100_v31 = vsel %vm11186_vm11, %v11255_v25, %v1099_v10  ;;  %v1342_v25 = vshrl.u32 %v1265_v28, 16  ;;  %v567_v44 = vld [vmem:[#allocation2 + $0x84] sm:$0x1]  ;;  %v1267_v47 = vld [vmem:[#allocation2 + $0x78] sm:$0xf] }
  0x56   : > { %v552_v49 = vsel %vm11156_vm4, %v452_v45, %v551_v34  ;;  %v1328_v34 = vshrl.u32 %v1263_v26, 16  ;;  %v11313_v39 = vrot.slane %v1320_v21, 4  ;;  %vm314_vm5 = vcmp.ge.bf16.partialorder %v242_v36, 0  ;;  %v10781_v21 = vld [vmem:[%s12783_s1 + $0xe8] sm:$0xff]  }
  0x57   : > { %9807 = vmatpush3.bf16.msra.mxu0 %v10770_v57  ;;  %553 = vst [vmem:[#allocation2 + $0x64] sm:$0x1] %v552_v49  ;;  %v1281_v57 = vshll.u32 %v1256_v16, 16  ;;  %v1297_v15 = vrot.slane %v1295_v58, 5  ;;  %vm316_vm6 = vcmp.ge.bf16.partialorder %v244_v37, 0  ;;  %v8510_v45 = vcombine.low %v1086_v30, %v1100_v31 }
  0x58   : > { %9808 = vmatprep.subr.bf16.mxu0 %v10771_v12  ;;  %v386_v42 = vmul.bf16 1045249613, %v242_v36  ;;  %v563_v16 = vld [vmem:[#allocation2 + $0x7c] sm:$0x1]  ;;  %v388_v46 = vmul.bf16 1045249613, %v244_v37 }
  0x59   : > { %v1283_v13 = vrot.slane %v1281_v57, 5  ;;  %v1298_v33 = vsel %vm11186_vm11, %v1293_v14, %v1297_v15  ;;  %v1330_v49 = vrot.slane %v1328_v34, 4  ;;  %v1333_v50 = vrot.slane %v1331_v35, 5 }
  0x5a   : > { %v11309_v38 = vld [vmem:[#allocation2 + $0x5c] sm:$0x1]  ;;  %v458_v51 = vsel %vm314_vm5, %v242_v36, %v386_v42  ;;  %v460_v54 = vsel %vm316_vm6, %v244_v37, %v388_v46  ;;  %v1356_v56 = vshrl.u32 %v1267_v47, 16  ;;  %v1359_v57 = vshll.u32 %v1267_v47, 16 }
  0x5b   : > { %9809 = vmatpush3.bf16.msra.mxu0 %v10771_v12  ;;  %v384_v12 = vmul.bf16 1045249613, %v240_v4  ;;  %v1284_v32 = vsel %vm11186_vm11, %v1279_v11, %v1283_v13  ;;  %v564_v55 = vsel %vm11156_vm4, %v458_v51, %v563_v16  ;;  %v1309_v58 = vshll.u32 %v11309_v38, 16  ;;  %v10784_v51 = vld [vmem:[%s12783_s1 + $0x100] sm:$0xff]  }
  0x5c   : > { %9810 = vmatprep.subr.bf16.mxu0 %v10773_v23  ;;  %v8535_v48 = vcombine.low %v1284_v32, %v1298_v33  ;;  %565 = vst [vmem:[#allocation2 + $0x7c] sm:$0x1] %v564_v55  ;;  %v568_v62 = vsel %vm11156_vm4, %v460_v54, %v567_v44  ;;  %v1370_v1 = vshrl.u32 %v1269_v52, 16  ;;  %v1334_v3 = vor.u32 %v1333_v50, %v1330_v49  ;;  %v10782_v32 = vld [vmem:[%s12783_s1 + $0xf0] sm:$0xff]   ;;  %v259_v44 = vld [vmem:[%s11105_s26 + $0xc0] sm:$0xf] }
  0x5d   : > { %v456_v22 = vsel %vm312_vm3, %v240_v4, %v384_v12  ;;  %569 = vst [vmem:[#allocation2 + $0x84] sm:$0x1] %v568_v62  ;;  %v1358_v8 = vrot.slane %v1356_v56, 4  ;;  %v1361_v10 = vrot.slane %v1359_v57, 5  ;;  %v1373_v14 = vshll.u32 %v1269_v52, 16 }
  0x5e   : > { %v560_v27 = vsel %vm11156_vm4, %v456_v22, %v559_v18  ;;  %v1262_v40 = vld [vmem:[#allocation2 + $0x64] sm:$0x1]  ;;  %v251_v18 = vld [vmem:[%s11105_s26 + $0xa0] sm:$0xf]  ;;  %v1311_v22 = vrot.slane %v1309_v58, 5  ;;  %v11334_v26 = vrot.slane %v1334_v3, 4 }
  0x5f   : > { %9811 = vmatpush3.bf16.msra.mxu0 %v10773_v23  ;;  %v556_v23 = vsel %vm11156_vm4, %v454_v17, %v555_v7  ;;  %561 = vst [vmem:[#allocation2 + $0x74] sm:$0x1] %v560_v27  ;;  %v1323_v63 = vshll.u32 %v1262_v40, 16  ;;  %v10780_v7 = vld [vmem:[%s12783_s1 + $0xe0] sm:$0xff]   ;;  %vm323_vm9 = vcmp.ge.bf16.partialorder %v251_v18, 0  ;;  %v1375_v30 = vrot.slane %v1373_v14, 5 }
  0x60   : > { %9812 = vmatprep.subr.bf16.mxu0 %v10775_v41  ;;  %557 = vst [vmem:[#allocation2 + $0x6c] sm:$0x1] %v556_v23  ;;  %v395_v20 = vmul.bf16 1045249613, %v251_v18  ;;  %v1362_v35 = vor.u32 %v1361_v10, %v1358_v8  ;;  %v255_v40 = vld [vmem:[%s11105_s26 + $0xb0] sm:$0xf]  ;;  %v1312_v54 = vsel %vm11186_vm11, %v11311_v24, %v1311_v22 }
  0x61   : > { %v1325_v23 = vrot.slane %v1323_v63, 5  ;;  %vm327_vm12 = vcmp.ge.bf16.partialorder %v255_v40, 0  ;;  %v261_v50 = vld [vmem:[%s11105_s26 + $0xc8] sm:$0xf]  ;;  %vm331_vm14 = vcmp.ge.bf16.partialorder %v259_v44, 0 }
  0x62   : > { %v467_v31 = vsel %vm323_vm9, %v251_v18, %v395_v20  ;;  %v11344_v42 = vrot.slane %v1362_v35, 4  ;;  %vm333_vm15 = vcmp.ge.bf16.partialorder %v261_v50, 0  ;;  %v403_v56 = vmul.bf16 1045249613, %v259_v44  ;;  %v267_v62 = vld [vmem:[%s11105_s26 + $0xe0] sm:$0xf] }
  0x63   : > { %9813 = vmatpush3.bf16.msra.mxu0 %v10775_v41  ;;  %v1345_v41 = vshll.u32 %v1265_v28, 16  ;;  %582 = vst [vmem:[#allocation2 + $0xa0] sm:$0xf] %v467_v31  ;;  %v1268_v37 = vld [vmem:[#allocation2 + $0x7c] sm:$0x1]  ;;  %v1326_v55 = vsel %vm11186_vm11, %v11313_v39, %v1325_v23  ;;  %vm339_vm1 = vcmp.ge.bf16.partialorder %v267_v62, 0 }
  0x64   : > { %9822 = vmatprep.subr.bf16.mxu0 %v10776_v59  ;;  %v1270_v38 = vld [vmem:[#allocation2 + $0x84] sm:$0x1]  ;;  %v1365_v16 = vshll.u32 %v1268_v37, 16  ;;  %v405_v57 = vmul.bf16 1045249613, %v261_v50  ;;  %v475_v24 = vsel %vm331_vm14, %v259_v44, %v403_v56  ;;  %v8536_v39 = vcombine.low %v1312_v54, %v1326_v55  ;;  %v10791_v55 = vld [vmem:[%s12783_s1 + $0x138] sm:$0xff]  }
  0x65   : > { %v1347_v61 = vrot.slane %v1345_v41, 5  ;;  %v10783_v41 = vld [vmem:[%s12783_s1 + $0xf8] sm:$0xff]   ;;  %598 = vst [vmem:[#allocation2 + $0xc0] sm:$0xf] %v475_v24  ;;  %v279_v31 = vld [vmem:[%s11105_s26 + $0x110] sm:$0xf] }
  0x66   : > { %9815 = vmatmul.mubr.bf16.vlgmr.msra.gmra.mrb[0].mxu0 %v8508_v2  ;;  %v1266_v0 = vld [vmem:[#allocation2 + $0x74] sm:$0x1]  ;;  %v247_v2 = vld [vmem:[%s11105_s26 + $0x90] sm:$0xf]  ;;  %v1367_v52 = vrot.slane %v1365_v16, 5  ;;  %v477_v63 = vsel %vm333_vm15, %v261_v50, %v405_v57  ;;  %v10789_v16 = vld [vmem:[%s12783_s1 + $0x128] sm:$0xff]  }
  0x67   : > { %9823 = vmatpush3.bf16.msra.mxu0 %v10776_v59  ;;  %9818 = vmatprep.mubr.bf16.mxu0 %v8509_v5  ;;  %v1264_v53 = vld [vmem:[#allocation2 + $0x6c] sm:$0x1]  ;;  %v1344_v59 = vrot.slane %v1342_v25, 4  ;;  %v249_v5 = vld [vmem:[%s11105_s26 + $0x98] sm:$0xf]  ;;  %vm319_vm7 = vcmp.ge.bf16.partialorder %v247_v2, 0 }
  0x68   : > { %9824 = vmatprep.subr.bf16.mxu0 %v10777_v19  ;;  %v1337_v4 = vshll.u32 %v1264_v53, 16  ;;  %v391_v6 = vmul.bf16 1045249613, %v247_v2  ;;  %vm321_vm8 = vcmp.ge.bf16.partialorder %v249_v5, 0  ;;  %v393_v11 = vmul.bf16 1045249613, %v249_v5 }
  0x69   : > { %v1348_v12 = vor.u32 %v1347_v61, %v1344_v59  ;;  %v1351_v13 = vshll.u32 %v1266_v0, 16  ;;  %v265_v61 = vld [vmem:[%s11105_s26 + $0xd8] sm:$0xf]  ;;  %602 = vst [vmem:[#allocation2 + $0xc8] sm:$0xf] %v477_v63  ;;  %v10795_v24 = vld [vmem:[%s12783_s1 + $0x148] sm:$0xff]  }
  0x6a   : > { %v463_v15 = vsel %vm319_vm7, %v247_v2, %v391_v6  ;;  %v465_v17 = vsel %vm321_vm8, %v249_v5, %v393_v11  ;;  %v1339_v33 = vrot.slane %v1337_v4, 5  ;;  %vm337_vm0 = vcmp.ge.bf16.partialorder %v265_v61, 0  ;;  %v269_v2 = vld [vmem:[%s11105_s26 + $0xe8] sm:$0xf]  ;;  %v271_v5 = vld [vmem:[%s11105_s26 + $0xf0] sm:$0xf] }
  0x6b   : > { %9825 = vmatpush3.bf16.msra.mxu0 %v10777_v19  ;;  %574 = vst [vmem:[#allocation2 + $0x90] sm:$0xf] %v463_v15  ;;  %v253_v19 = vld [vmem:[%s11105_s26 + $0xa8] sm:$0xf]  ;;  %578 = vst [vmem:[#allocation2 + $0x98] sm:$0xf] %v465_v17  ;;  %v1368_v15 = vsel %vm11186_vm11, %v11344_v42, %v1367_v52 }
  0x6c   : > { %9826 = vmatprep.subr.bf16.mxu0 %v10778_v29  ;;  %vm325_vm10 = vcmp.ge.bf16.partialorder %v253_v19, 0  ;;  %v397_v27 = vmul.bf16 1045249613, %v253_v19  ;;  %v1349_v28 = vrot.slane %v1348_v12, 4  ;;  %v1353_v34 = vrot.slane %v1351_v13, 5  ;;  %v10786_v13 = vld [vmem:[%s12783_s1 + $0x110] sm:$0xff]  }
  0x6d   : > { %v1340_v58 = vsel %vm11186_vm11, %v11334_v26, %v1339_v33  ;;  %v409_v0 = vmul.bf16 1045249613, %v265_v61  ;;  %vm341_vm2 = vcmp.ge.bf16.partialorder %v269_v2, 0  ;;  %v413_v6 = vmul.bf16 1045249613, %v269_v2  ;;  %v10787_v26 = vld [vmem:[%s12783_s1 + $0x118] sm:$0xff]  }
  0x6e   : > { %9819 = vmatmul.mubr.bf16.gmra.mrb[4].mxu0 %v8510_v45  ;;  %v469_v36 = vsel %vm325_vm10, %v253_v19, %v397_v27  ;;  %v399_v45 = vmul.bf16 1045249613, %v255_v40  ;;  %v1354_v59 = vsel %vm11186_vm11, %v1349_v28, %v1353_v34  ;;  %vm343_vm3 = vcmp.ge.bf16.partialorder %v271_v5, 0  ;;  %v273_v20 = vld [vmem:[%s11105_s26 + $0xf8] sm:$0xf] }
  0x6f   : > { %9827 = vmatpush3.bf16.msra.mxu0 %v10778_v29  ;;  %9838 = vmatprep.mubr.bf16.mxu0 %v8535_v48  ;;  %v1372_v29 = vrot.slane %v1370_v1, 4  ;;  %586 = vst [vmem:[#allocation2 + $0xa8] sm:$0xf] %v469_v36  ;;  %v1379_v48 = vshll.u32 %v1270_v38, 16  ;;  %v411_v1 = vmul.bf16 1045249613, %v267_v62  ;;  %v8537_v3 = vcombine.low %v1340_v58, %v1354_v59 }
  0x70   : > { %9828 = vmatprep.subr.bf16.mxu0 %v10779_v43  ;;  %v471_v49 = vsel %vm327_vm12, %v255_v40, %v399_v45  ;;  %v481_v8 = vsel %vm337_vm0, %v265_v61, %v409_v0  ;;  %v415_v11 = vmul.bf16 1045249613, %v271_v5  ;;  %v485_v12 = vsel %vm341_vm2, %v269_v2, %v413_v6  ;;  %v248_v34 = vld [vmem:[%s11105_s26 + $0x94] sm:$0x1]  ;;  %v250_v37 = vld [vmem:[%s11105_s26 + $0x9c] sm:$0x1] }
  0x71   : > { %v1376_v25 = vor.u32 %v1375_v30, %v1372_v29  ;;  %590 = vst [vmem:[#allocation2 + $0xb0] sm:$0xf] %v471_v49  ;;  %v1381_v4 = vrot.slane %v1379_v48, 5  ;;  %v483_v10 = vsel %vm339_vm1, %v267_v62, %v411_v1  ;;  %610 = vst [vmem:[#allocation2 + $0xd8] sm:$0xf] %v481_v8  ;;  %vm345_vm5 = vcmp.ge.bf16.partialorder %v273_v20, 0 }
  0x72   : > { %614 = vst [vmem:[#allocation2 + $0xe0] sm:$0xf] %v483_v10  ;;  %v487_v14 = vsel %vm343_vm3, %v271_v5, %v415_v11  ;;  %618 = vst [vmem:[#allocation2 + $0xe8] sm:$0xf] %v485_v12  ;;  %v10792_v18 = vld [vmem:[#allocation2 + $0x90] ss:$8 sps:$4 sm:$0xff]  }
  0x73   : > { %9829 = vmatpush3.bf16.msra.mxu0 %v10779_v43  ;;  %v257_v43 = vld [vmem:[%s11105_s26 + $0xb8] sm:$0xf]  ;;  %v1377_v47 = vrot.slane %v1376_v25, 4  ;;  %622 = vst [vmem:[#allocation2 + $0xf0] sm:$0xf] %v487_v14  ;;  %v10788_v30 = vld [vmem:[%s12783_s1 + $0x120] sm:$0xff]  }
  0x74   : > { %9830 = vmatprep.subr.bf16.mxu0 %v10780_v7  ;;  %vm329_vm13 = vcmp.ge.bf16.partialorder %v257_v43, 0  ;;  %v401_v46 = vmul.bf16 1045249613, %v257_v43  ;;  %v417_v22 = vmul.bf16 1045249613, %v273_v20  ;;  %vm351_vm8 = vcmp.ge.bf16.partialorder %v279_v31, 0 }
  0x75   : > { %v1382_v17 = vsel %vm11186_vm11, %v1377_v47, %v1381_v4  ;;  %v277_v29 = vld [vmem:[%s11105_s26 + $0x108] sm:$0xf]  ;;  %v423_v33 = vmul.bf16 1045249613, %v279_v31  ;;  %vm320_vm9 = vcmp.ge.bf16.partialorder %v248_v34, 0  ;;  %vm322_vm10 = vcmp.ge.bf16.partialorder %v250_v37, 0 }
  0x76   : > { %v473_v53 = vsel %vm329_vm13, %v257_v43, %v401_v46  ;;  %v8538_v19 = vcombine.low %v1368_v15, %v1382_v17  ;;  %v489_v27 = vsel %vm345_vm5, %v273_v20, %v417_v22  ;;  %vm349_vm7 = vcmp.ge.bf16.partialorder %v277_v29, 0  ;;  %v575_v40 = vld [vmem:[#allocation2 + $0x94] sm:$0x1]  ;;  %v579_v42 = vld [vmem:[#allocation2 + $0x9c] sm:$0x1]  ;;  %v10793_v58 = vld [vmem:[%s12783_s1 + $0x140] sm:$0xff]  }
  0x77   : > { %9831 = vmatpush3.bf16.msra.mxu0 %v10780_v7  ;;  %594 = vst [vmem:[#allocation2 + $0xb8] sm:$0xf] %v473_v53  ;;  %v10785_v7 = vld [vmem:[%s12783_s1 + $0x108] sm:$0xff]   ;;  %626 = vst [vmem:[#allocation2 + $0xf8] sm:$0xf] %v489_v27  ;;  %v495_v36 = vsel %vm351_vm8, %v279_v31, %v423_v33  ;;  %v10790_v49 = vld [vmem:[%s12783_s1 + $0x130] sm:$0xff]  }
  0x78   : > { %9832 = vmatprep.subr.bf16.mxu0 %v10781_v21  ;;  %v392_v38 = vmul.bf16 1045249613, %v248_v34  ;;  %638 = vst [vmem:[#allocation2 + $0x110] sm:$0xf] %v495_v36  ;;  %v394_v25 = vmul.bf16 1045249613, %v250_v37 }
  0x79   : > { %v252_v44 = vld [vmem:[%s11105_s26 + $0xa4] sm:$0x1]  ;;  %v254_v47 = vld [vmem:[%s11105_s26 + $0xac] sm:$0x1]  ;;  %v10794_v59 = vld [vmem:[#allocation2 + $0xa0] ss:$8 sps:$4 sm:$0xff]  }
  0x7a   : > { %v466_v43 = vsel %vm322_vm10, %v250_v37, %v394_v25  ;;  %vm324_vm12 = vcmp.ge.bf16.partialorder %v252_v44, 0  ;;  %v396_v48 = vmul.bf16 1045249613, %v252_v44  ;;  %v583_v50 = vld [vmem:[#allocation2 + $0xa4] sm:$0x1]  ;;  %vm326_vm13 = vcmp.ge.bf16.partialorder %v254_v47, 0 }
  0x7b   : > { %9833 = vmatpush3.bf16.msra.mxu0 %v10781_v21  ;;  %v275_v21 = vld [vmem:[%s11105_s26 + $0x100] sm:$0xf]  ;;  %v580_v46 = vsel %vm11156_vm4, %v466_v43, %v579_v42  ;;  %v398_v52 = vmul.bf16 1045249613, %v254_v47  ;;  %v587_v54 = vld [vmem:[#allocation2 + $0xac] sm:$0x1] }
  0x7c   : > { %9834 = vmatprep.subr.bf16.mxu0 %v10782_v32  ;;  %vm347_vm6 = vcmp.ge.bf16.partialorder %v275_v21, 0  ;;  %v419_v23 = vmul.bf16 1045249613, %v275_v21  ;;  %581 = vst [vmem:[#allocation2 + $0x9c] sm:$0x1] %v580_v46  ;;  %v10796_v6 = vld [vmem:[%s12783_s1 + $0x150] sm:$0xff]  }
  0x7d   : > { %v470_v56 = vsel %vm326_vm13, %v254_v47, %v398_v52  ;;  %v256_v62 = vld [vmem:[%s11105_s26 + $0xb4] sm:$0x1]  ;;  %v258_v63 = vld [vmem:[%s11105_s26 + $0xbc] sm:$0x1]  ;;  %v260_v8 = vld [vmem:[%s11105_s26 + $0xc4] sm:$0x1] }
  0x7e   : > { %v491_v28 = vsel %vm347_vm6, %v275_v21, %v419_v23  ;;  %v588_v57 = vsel %vm11156_vm4, %v470_v56, %v587_v54  ;;  %v10800_v61 = vld [vmem:[#allocation2 + $0xb0] ss:$8 sps:$4 sm:$0xff]   ;;  %vm328_vm14 = vcmp.ge.bf16.partialorder %v256_v62, 0  ;;  %vm330_vm15 = vcmp.ge.bf16.partialorder %v258_v63, 0  ;;  %v591_v2 = vld [vmem:[#allocation2 + $0xb4] sm:$0x1] }
  0x7f   : > { %9835 = vmatpush3.bf16.msra.mxu0 %v10782_v32  ;;  %630 = vst [vmem:[#allocation2 + $0x100] sm:$0xf] %v491_v28  ;;  %v421_v32 = vmul.bf16 1045249613, %v277_v29  ;;  %589 = vst [vmem:[#allocation2 + $0xac] sm:$0x1] %v588_v57 }
  0x80   : > { %9836 = vmatprep.subr.bf16.mxu0 %v10783_v41  ;;  %v402_v0 = vmul.bf16 1045249613, %v258_v63  ;;  %v262_v10 = vld [vmem:[%s11105_s26 + $0xcc] sm:$0x1]  ;;  %v10797_v11 = vld [vmem:[%s12783_s1 + $0x158] sm:$0xff]   ;;  %vm332_vm0 = vcmp.ge.bf16.partialorder %v260_v8, 0 }
  0x81   : > { %v493_v35 = vsel %vm349_vm7, %v277_v29, %v421_v32  ;;  %v10802_v12 = vld [vmem:[#allocation2 + $0xc0] ss:$8 sps:$4 sm:$0xff]   ;;  %vm334_vm1 = vcmp.ge.bf16.partialorder %v262_v10, 0  ;;  %v599_v14 = vld [vmem:[#allocation2 + $0xc4] sm:$0x1] }
  0x82   : > { %634 = vst [vmem:[#allocation2 + $0x108] sm:$0xf] %v493_v35  ;;  %v474_v4 = vsel %vm330_vm15, %v258_v63, %v402_v0  ;;  %v404_v15 = vmul.bf16 1045249613, %v260_v8  ;;  %v406_v17 = vmul.bf16 1045249613, %v262_v10 }
  0x83   : > { %9837 = vmatpush3.bf16.msra.mxu0 %v10783_v41  ;;  %v464_v41 = vsel %vm320_vm9, %v248_v34, %v392_v38  ;;  %v266_v22 = vld [vmem:[%s11105_s26 + $0xdc] sm:$0x1]  ;;  %v1881_v23 = vld [vmem:[#allocation2 + $0x98] sm:$0xf]  ;;  %v268_v28 = vld [vmem:[%s11105_s26 + $0xe4] sm:$0x1] }
  0x84   : > { %9846 = vmatprep.subr.bf16.mxu0 %v10784_v51  ;;  %v576_v45 = vsel %vm11156_vm4, %v464_v41, %v575_v40  ;;  %v476_v20 = vsel %vm332_vm0, %v260_v8, %v404_v15  ;;  %v478_v21 = vsel %vm334_vm1, %v262_v10, %v406_v17  ;;  %v10798_v29 = vld [vmem:[%s12783_s1 + $0x160] sm:$0xff]   ;;  %vm338_vm2 = vcmp.ge.bf16.partialorder %v266_v22, 0  ;;  %v611_v36 = vld [vmem:[#allocation2 + $0xdc] sm:$0x1]  ;;  %v10799_v25 = vld [vmem:[%s12783_s1 + $0x168] sm:$0xff]  }
  0x85   : > { %577 = vst [vmem:[#allocation2 + $0x94] sm:$0x1] %v576_v45  ;;  %vm340_vm3 = vcmp.ge.bf16.partialorder %v268_v28, 0  ;;  %v410_v32 = vmul.bf16 1045249613, %v266_v22  ;;  %v1910_v33 = vshrl.u32 %v1881_v23, 16 }
  0x86   : > { %9839 = vmatmul.mubr.bf16.vlgmr.msra.gmra.mrb[0].mxu0 %v8536_v39  ;;  %v400_v39 = vmul.bf16 1045249613, %v256_v62  ;;  %v1913_v34 = vshll.u32 %v1881_v23, 16  ;;  %v412_v35 = vmul.bf16 1045249613, %v268_v28 }
  0x87   : > { %9847 = vmatpush3.bf16.msra.mxu0 %v10784_v51  ;;  %9842 = vmatprep.mubr.bf16.mxu0 %v8537_v3  ;;  %v468_v51 = vsel %vm324_vm12, %v252_v44, %v396_v48  ;;  %v595_v3 = vld [vmem:[#allocation2 + $0xbc] sm:$0x1]  ;;  %v482_v37 = vsel %vm338_vm2, %v266_v22, %v410_v32  ;;  %v615_v38 = vld [vmem:[#allocation2 + $0xe4] sm:$0x1]  ;;  %v1912_v46 = vrot.slane %v1910_v33, 4 }
  0x88   : > { %9848 = vmatprep.subr.bf16.mxu0 %v10785_v7  ;;  %v584_v53 = vsel %vm11156_vm4, %v468_v51, %v583_v50  ;;  %v472_v1 = vsel %vm328_vm14, %v256_v62, %v400_v39  ;;  %v484_v40 = vsel %vm340_vm3, %v268_v28, %v412_v35  ;;  %v612_v43 = vsel %vm11156_vm4, %v482_v37, %v611_v36  ;;  %v270_v47 = vld [vmem:[%s11105_s26 + $0xec] sm:$0x1]  ;;  %v272_v48 = vld [vmem:[%s11105_s26 + $0xf4] sm:$0x1]  ;;  %v1885_v51 = vld [vmem:[#allocation2 + $0xa8] sm:$0xf] }
  0x89   : > { %585 = vst [vmem:[#allocation2 + $0xa4] sm:$0x1] %v584_v53  ;;  %v592_v5 = vsel %vm11156_vm4, %v472_v1, %v591_v2  ;;  %v616_v45 = vsel %vm11156_vm4, %v484_v40, %v615_v38  ;;  %v1915_v44 = vrot.slane %v1913_v34, 5  ;;  %613 = vst [vmem:[#allocation2 + $0xdc] sm:$0x1] %v612_v43  ;;  %vm342_vm5 = vcmp.ge.bf16.partialorder %v270_v47, 0 }
  0x8a   : > { %593 = vst [vmem:[#allocation2 + $0xb4] sm:$0x1] %v592_v5  ;;  %617 = vst [vmem:[#allocation2 + $0xe4] sm:$0x1] %v616_v45  ;;  %v1882_v53 = vld [vmem:[#allocation2 + $0x9c] sm:$0x1] }
  0x8b   : > { %9849 = vmatpush3.bf16.msra.mxu0 %v10785_v7  ;;  %v596_v7 = vsel %vm11156_vm4, %v474_v4, %v595_v3  ;;  %vm344_vm6 = vcmp.ge.bf16.partialorder %v272_v48, 0  ;;  %v414_v54 = vmul.bf16 1045249613, %v270_v47  ;;  %v1916_v56 = vor.u32 %v1915_v44, %v1912_v46  ;;  %v10805_v5 = vld [vmem:[%s12783_s1 + $0x180] sm:$0xff]   ;;  %v1889_v22 = vld [vmem:[#allocation2 + $0xb8] sm:$0xf] }
  0x8c   : > { %9850 = vmatprep.subr.bf16.mxu0 %v10786_v13  ;;  %597 = vst [vmem:[#allocation2 + $0xbc] sm:$0x1] %v596_v7  ;;  %v1880_v50 = vld [vmem:[#allocation2 + $0x94] sm:$0x1]  ;;  %v416_v57 = vmul.bf16 1045249613, %v272_v48 }
  0x8d   : > { %v1905_v62 = vshll.u32 %v1880_v50, 16  ;;  %v1938_v63 = vshrl.u32 %v1885_v51, 16  ;;  %v486_v39 = vsel %vm342_vm5, %v270_v47, %v414_v54  ;;  %v1919_v0 = vshll.u32 %v1882_v53, 16  ;;  %v10812_v17 = vld [vmem:[#allocation2 + $0xf8] ss:$8 sps:$4 sm:$0xff]   ;;  %v10808_v40 = vld [vmem:[%s12783_s1 + $0x190] sm:$0xff]  }
  0x8e   : > { %9843 = vmatmul.mubr.bf16.gmra.mrb[4].mxu0 %v8538_v19  ;;  %v1879_v19 = vld [vmem:[#allocation2 + $0x90] sm:$0xf]  ;;  %v1941_v1 = vshll.u32 %v1885_v51, 16  ;;  %v488_v2 = vsel %vm344_vm6, %v272_v48, %v416_v57  ;;  %v1917_v7 = vrot.slane %v1916_v56, 4  ;;  %v627_v23 = vld [vmem:[#allocation2 + $0xfc] sm:$0x1] }
  0x8f   : > { %9851 = vmatpush3.bf16.msra.mxu0 %v10786_v13  ;;  %9862 = vmatprep.mubr.bf16.mxu0 %v10792_v18  ;;  %v10804_v13 = vld [vmem:[#allocation2 + $0xd8] ss:$8 sps:$4 sm:$0xff]   ;;  %v603_v18 = vld [vmem:[#allocation2 + $0xcc] sm:$0x1]  ;;  %v1899_v31 = vshll.u32 %v1879_v19, 16  ;;  %v1966_v34 = vshrl.u32 %v1889_v22, 16 }
  0x90   : > { %9852 = vmatprep.subr.bf16.mxu0 %v10787_v26  ;;  %v604_v27 = vsel %vm11156_vm4, %v478_v21, %v603_v18  ;;  %v1943_v15 = vrot.slane %v1941_v1, 5  ;;  %v1887_v18 = vld [vmem:[#allocation2 + $0xb0] sm:$0xf]  ;;  %v276_v21 = vld [vmem:[%s11105_s26 + $0x104] sm:$0x1]  ;;  %v1969_v48 = vshll.u32 %v1889_v22, 16 }
  0x91   : > { %605 = vst [vmem:[#allocation2 + $0xcc] sm:$0x1] %v604_v27  ;;  %v1901_v42 = vrot.slane %v1899_v31, 5  ;;  %vm348_vm8 = vcmp.ge.bf16.partialorder %v276_v21, 0  ;;  %v420_v28 = vmul.bf16 1045249613, %v276_v21 }
  0x92   : > { %v1952_v31 = vshrl.u32 %v1887_v18, 16  ;;  %v11470_v32 = vld [vmem:[#allocation2 + $0xa4] sm:$0x1]  ;;  %v1955_v33 = vshll.u32 %v1887_v18, 16  ;;  %v1891_v37 = vld [vmem:[#allocation2 + $0xc0] sm:$0xf] }
  0x93   : > { %9853 = vmatpush3.bf16.msra.mxu0 %v10787_v26  ;;  %v600_v26 = vsel %vm11156_vm4, %v476_v20, %v599_v14  ;;  %v1940_v14 = vrot.slane %v1938_v63, 4  ;;  %v274_v20 = vld [vmem:[%s11105_s26 + $0xfc] sm:$0x1]  ;;  %v492_v36 = vsel %vm348_vm8, %v276_v21, %v420_v28  ;;  %v278_v45 = vld [vmem:[%s11105_s26 + $0x10c] sm:$0x1]  ;;  %v1933_v46 = vshll.u32 %v11470_v32, 16 }
  0x94   : > { %9854 = vmatprep.subr.bf16.mxu0 %v10788_v30  ;;  %601 = vst [vmem:[#allocation2 + $0xc4] sm:$0x1] %v600_v26  ;;  %vm346_vm7 = vcmp.ge.bf16.partialorder %v274_v20, 0  ;;  %v418_v27 = vmul.bf16 1045249613, %v274_v20  ;;  %v11490_v47 = vrot.slane %v1952_v31, 4 }
  0x95   : > { %v10809_v50 = vld [vmem:[%s12783_s1 + $0x198] sm:$0xff]   ;;  %v1957_v51 = vrot.slane %v1955_v33, 5  ;;  %v1893_v53 = vld [vmem:[#allocation2 + $0xc8] sm:$0xf]  ;;  %v1980_v54 = vshrl.u32 %v1891_v37, 16  ;;  %vm350_vm9 = vcmp.ge.bf16.partialorder %v278_v45, 0 }
  0x96   : > { %v490_v35 = vsel %vm346_vm7, %v274_v20, %v418_v27  ;;  %v1983_v56 = vshll.u32 %v1891_v37, 16  ;;  %v422_v57 = vmul.bf16 1045249613, %v278_v45  ;;  %v1888_v63 = vld [vmem:[#allocation2 + $0xb4] sm:$0x1]  ;;  %v10811_v20 = vld [vmem:[%s12783_s1 + $0x1a8] sm:$0xff]  }
  0x97   : > { %9855 = vmatpush3.bf16.msra.mxu0 %v10788_v30  ;;  %v1896_v30 = vshrl.u32 %v1879_v19, 16  ;;  %v10807_v19 = vld [vmem:[%s12783_s1 + $0x188] sm:$0xff]   ;;  %v628_v38 = vsel %vm11156_vm4, %v490_v35, %v627_v23  ;;  %v2163_v1 = vld [vmem:[#allocation2 + $0xe0] sm:$0xf]  ;;  %v1958_v22 = vor.u32 %v1957_v51, %v11490_v47  ;;  %v1961_v23 = vshll.u32 %v1888_v63, 16  ;;  %v10813_v37 = vld [vmem:[%s12783_s1 + $0x1b0] sm:$0xff]  }
  0x98   : > { %9856 = vmatprep.subr.bf16.mxu0 %v10789_v16  ;;  %629 = vst [vmem:[#allocation2 + $0xfc] sm:$0x1] %v628_v38  ;;  %v1894_v28 = vld [vmem:[#allocation2 + $0xcc] sm:$0x1]  ;;  %v1935_v38 = vrot.slane %v1933_v46, 5  ;;  %vm4396_vm5 = vcmask 1043456  }
  0x99   : > { %v1898_v41 = vrot.slane %v1896_v30, 4  ;;  %v1944_v30 = vor.u32 %v1943_v15, %v1940_v14  ;;  %v2192_v15 = vshrl.u32 %v2163_v1, 16  ;;  %v2003_v47 = vshll.u32 %v1894_v28, 16  ;;  %v2162_v32 = vld [vmem:[#allocation2 + $0xdc] sm:$0x1] }
  0x9a   : > { %v2164_v46 = vld [vmem:[#allocation2 + $0xe4] sm:$0x1]  ;;  %vm4397_vm6 = vsmask.f32 7938  ;;  %vm5548_vm8 = vcmask 1046532  }
  0x9b   : > { %9857 = vmatpush3.bf16.msra.mxu0 %v10789_v16  ;;  %v1883_v16 = vld [vmem:[#allocation2 + $0xa0] sm:$0xf]  ;;  %v11488_v44 = vrot.slane %v1944_v30, 4  ;;  %v1892_v14 = vld [vmem:[#allocation2 + $0xc4] sm:$0x1]  ;;  %v2201_v63 = vshll.u32 %v2164_v46, 16  ;;  %vm11922_vm7 = vmand %vm4396_vm5, %vm4397_vm6 }
  0x9c   : > { %9858 = vmatprep.subr.bf16.mxu0 %v10790_v49  ;;  %v1924_v52 = vshrl.u32 %v1883_v16, 16 }
  0x9e   : > { %v1926_v8 = vrot.slane %v1924_v52, 4  ;;  %v11496_v52 = vrot.slane %v1966_v34, 4  ;;  %v2194_v34 = vrot.slane %v2192_v15, 4 }
  0x9f   : > { %9859 = vmatpush3.bf16.msra.mxu0 %v10790_v49  ;;  %v10801_v49 = vld [vmem:[%s12783_s1 + $0x170] sm:$0xff]  }
  0xa0   : > { %9860 = vmatprep.subr.bf16.mxu0 %v10791_v55 }
  0xa3   : > { %9861 = vmatpush3.bf16.msra.mxu0 %v10791_v55  ;;  %v1902_v55 = vor.u32 %v1901_v42, %v1898_v41  ;;  %v10814_v41 = vld [vmem:[#allocation2 + $0x108] ss:$8 sps:$4 sm:$0xff]  }
  0xa4   : > { %9870 = vmatprep.subr.bf16.mxu0 %v10793_v58 }
  0xa6   : > { %9863 = vmatmul.mubr.bf16.vlgmr.msra.gmra.mrb[0].mxu0 %v10794_v59  ;;  %v623_v59 = vld [vmem:[#allocation2 + $0xf4] sm:$0x1] }
  0xa7   : > { %9871 = vmatpush3.bf16.msra.mxu0 %v10793_v58  ;;  %9866 = vmatprep.mubr.bf16.mxu0 %v10800_v61  ;;  %v619_v58 = vld [vmem:[#allocation2 + $0xec] sm:$0x1]  ;;  %v10803_v61 = vld [vmem:[%s12783_s1 + $0x178] sm:$0xff]   ;;  %v624_v4 = vsel %vm11156_vm4, %v488_v2, %v623_v59  ;;  %v494_v2 = vsel %vm350_vm9, %v278_v45, %v422_v57 }
  0xa8   : > { %9872 = vmatprep.subr.bf16.mxu0 %v10795_v24  ;;  %v620_v3 = vsel %vm11156_vm4, %v486_v39, %v619_v58  ;;  %625 = vst [vmem:[#allocation2 + $0xf4] sm:$0x1] %v624_v4  ;;  %v635_v58 = vld [vmem:[#allocation2 + $0x10c] sm:$0x1]  ;;  %v2161_v59 = vld [vmem:[#allocation2 + $0xd8] sm:$0xf] }
  0xa9   : > { %621 = vst [vmem:[#allocation2 + $0xec] sm:$0x1] %v620_v3  ;;  %v1994_v39 = vshrl.u32 %v1893_v53, 16  ;;  %v1971_v3 = vrot.slane %v1969_v48, 5  ;;  %v1982_v4 = vrot.slane %v1980_v54, 4  ;;  %v2005_v54 = vrot.slane %v2003_v47, 5 }
  0xaa   : > { %v2175_v47 = vld [vmem:[#allocation2 + $0x110] sm:$0xf] }
  0xab   : > { %9873 = vmatpush3.bf16.msra.mxu0 %v10795_v24  ;;  %v1927_v24 = vshll.u32 %v1883_v16, 16  ;;  %v1996_v18 = vrot.slane %v1994_v39, 4 }
  0xac   : > { %9874 = vmatprep.subr.bf16.mxu0 %v10796_v6 }
  0xad   : > { %v1929_v10 = vrot.slane %v1927_v24, 5  ;;  %v1886_v24 = vld [vmem:[#allocation2 + $0xac] sm:$0x1] }
  0xae   : > { %9867 = vmatmul.mubr.bf16.gmra.mrb[4].mxu0 %v10802_v12  ;;  %v1907_v12 = vrot.slane %v1905_v62, 5  ;;  %v639_v62 = vld [vmem:[#allocation2 + $0x114] sm:$0x1]  ;;  %v1947_v21 = vshll.u32 %v1886_v24, 16  ;;  %v2187_v24 = vshll.u32 %v2162_v32, 16 }
  0xaf   : > { %9875 = vmatpush3.bf16.msra.mxu0 %v10796_v6  ;;  %9886 = vmatprep.mubr.bf16.mxu0 %v10804_v13  ;;  %v11463_v6 = vrot.slane %v1902_v55, 4  ;;  %v1921_v13 = vrot.slane %v1919_v0, 5  ;;  %v1930_v26 = vor.u32 %v1929_v10, %v1926_v8  ;;  %v1997_v0 = vshll.u32 %v1893_v53, 16  ;;  %v1890_v8 = vld [vmem:[#allocation2 + $0xbc] sm:$0x1] }
  0xb0   : > { %9876 = vmatprep.subr.bf16.mxu0 %v10797_v11  ;;  %v1985_v10 = vrot.slane %v1983_v56, 5  ;;  %v1975_v27 = vshll.u32 %v1890_v8, 16  ;;  %v227_v53 = vld [vmem:[%s11105_s26 + $0x40] sm:$0xf]  ;;  %v2165_v8 = vld [vmem:[#allocation2 + $0xe8] sm:$0xf] }
  0xb1   : > { %v1908_v42 = vsel %vm11186_vm11, %v11463_v6, %v1907_v12  ;;  %v1922_v16 = vsel %vm11186_vm11, %v1917_v7, %v1921_v13  ;;  %v11484_v43 = vrot.slane %v1930_v26, 4  ;;  %v636_v6 = vsel %vm11156_vm4, %v494_v2, %v635_v58  ;;  %v10810_v7 = vld [vmem:[%s12783_s1 + $0x1a0] sm:$0xff]   ;;  %v10817_v2 = vld [vmem:[%s12783_s1 + $0x1c8] sm:$0xff]  }
  0xb2   : > { %v8619_v55 = vcombine.low %v1908_v42, %v1922_v16  ;;  %v2181_v12 = vshll.u32 %v2161_v59, 16  ;;  %637 = vst [vmem:[#allocation2 + $0x10c] sm:$0x1] %v636_v6  ;;  %v1972_v26 = vor.u32 %v1971_v3, %v11496_v52  ;;  %v1986_v33 = vor.u32 %v1985_v10, %v1982_v4  ;;  %v10815_v52 = vld [vmem:[%s12783_s1 + $0x1b8] sm:$0xff]   ;;  %v10816_v58 = vld [vmem:[%s12783_s1 + $0x1c0] sm:$0xff]  }
  0xb3   : > { %9877 = vmatpush3.bf16.msra.mxu0 %v10797_v11  ;;  %v10806_v11 = vld [vmem:[#allocation2 + $0xe8] ss:$8 sps:$4 sm:$0xff]   ;;  %v1977_v16 = vrot.slane %v1975_v27, 5  ;;  %vm299_vm12 = vcmp.ge.bf16.partialorder %v227_v53, 0  ;;  %v2189_v3 = vrot.slane %v2187_v24, 5  ;;  %v2203_v4 = vrot.slane %v2201_v63, 5 }
  0xb4   : > { %9878 = vmatprep.subr.bf16.mxu0 %v10798_v29  ;;  %v2183_v31 = vrot.slane %v2181_v12, 5  ;;  %v1973_v42 = vrot.slane %v1972_v26, 4  ;;  %v1987_v45 = vrot.slane %v1986_v33, 4  ;;  %v2167_v10 = vld [vmem:[#allocation2 + $0xf0] sm:$0xf]  ;;  %v10819_v26 = vld [vmem:[%s12783_s1 + $0x1d8] sm:$0xff]  }
  0xb5   : > { %v10818_v12 = vld [vmem:[%s12783_s1 + $0x1d0] sm:$0xff]  }
  0xb7   : > { %9879 = vmatpush3.bf16.msra.mxu0 %v10798_v29  ;;  %v631_v29 = vld [vmem:[#allocation2 + $0x104] sm:$0x1] }
  0xb8   : > { %9880 = vmatprep.subr.bf16.mxu0 %v10799_v25 }
  0xbb   : > { %9881 = vmatpush3.bf16.msra.mxu0 %v10799_v25  ;;  %v632_v25 = vsel %vm11156_vm4, %v492_v36, %v631_v29  ;;  %v1989_v29 = vshll.u32 %v1892_v14, 16 }
  0xbc   : > { %9882 = vmatprep.subr.bf16.mxu0 %v10801_v49  ;;  %633 = vst [vmem:[#allocation2 + $0x104] sm:$0x1] %v632_v25  ;;  %v1949_v25 = vrot.slane %v1947_v21, 5  ;;  %v2220_v21 = vshrl.u32 %v2167_v10, 16 }
  0xbd   : > { %v1991_v48 = vrot.slane %v1989_v29, 5 }
  0xbf   : > { %9883 = vmatpush3.bf16.msra.mxu0 %v10801_v49  ;;  %v280_v49 = vld [vmem:[%s11105_s26 + $0x114] sm:$0x1]  ;;  %v1992_v6 = vsel %vm11186_vm11, %v1987_v45, %v1991_v48  ;;  %v10821_v45 = vld [vmem:[%s12783_s1 + $0x1e8] sm:$0xff]  }
  0xc0   : > { %9884 = vmatprep.subr.bf16.mxu0 %v10803_v61  ;;  %vm352_vm10 = vcmp.ge.bf16.partialorder %v280_v49, 0 }
  0xc3   : > { %9885 = vmatpush3.bf16.msra.mxu0 %v10803_v61  ;;  %v424_v61 = vmul.bf16 1045249613, %v280_v49  ;;  %v2172_v32 = vld [vmem:[#allocation2 + $0x104] sm:$0x1] }
  0xc4   : > { %9894 = vmatprep.subr.bf16.mxu0 %v10805_v5 }
  0xc6   : > { %9887 = vmatmul.mubr.bf16.vlgmr.msra.gmra.mrb[0].mxu0 %v10806_v11  ;;  %v2178_v11 = vshrl.u32 %v2161_v59, 16 }
  0xc7   : > { %9895 = vmatpush3.bf16.msra.mxu0 %v10805_v5  ;;  %9890 = vmatprep.mubr.bf16.mxu0 %v10812_v17  ;;  %v496_v5 = vsel %vm352_vm10, %v280_v49, %v424_v61  ;;  %v2195_v17 = vshll.u32 %v2163_v1, 16  ;;  %v1936_v61 = vsel %vm11186_vm11, %v11484_v43, %v1935_v38  ;;  %v2168_v38 = vld [vmem:[#allocation2 + $0xf4] sm:$0x1] }
  0xc8   : > { %9896 = vmatprep.subr.bf16.mxu0 %v10807_v19  ;;  %v640_v13 = vsel %vm11156_vm4, %v496_v5, %v639_v62  ;;  %v2180_v30 = vrot.slane %v2178_v11, 4  ;;  %v1950_v62 = vsel %vm11186_vm11, %v11488_v44, %v1949_v25  ;;  %v245_v44 = vld [vmem:[%s11105_s26 + $0x88] sm:$0xf] }
  0xc9   : > { %641 = vst [vmem:[#allocation2 + $0x114] sm:$0x1] %v640_v13  ;;  %v2197_v35 = vrot.slane %v2195_v17, 5  ;;  %v8620_v1 = vcombine.low %v1936_v61, %v1950_v62  ;;  %vm317_vm13 = vcmp.ge.bf16.partialorder %v245_v44, 0  ;;  %v389_v5 = vmul.bf16 1045249613, %v245_v44 }
  0xca   : > { %v2169_v17 = vld [vmem:[#allocation2 + $0xf8] sm:$0xf]  ;;  %v2279_v61 = vshll.u32 %v2175_v47, 16 }
  0xcb   : > { %9897 = vmatpush3.bf16.msra.mxu0 %v10807_v19  ;;  %v1999_v19 = vrot.slane %v1997_v0, 5  ;;  %v2198_v51 = vor.u32 %v2197_v35, %v2194_v34  ;;  %v1978_v0 = vsel %vm11186_vm11, %v1973_v42, %v1977_v16  ;;  %v461_v11 = vsel %vm317_vm13, %v245_v44, %v389_v5  ;;  %v2173_v16 = vld [vmem:[#allocation2 + $0x108] sm:$0xf] }
  0xcc   : > { %9898 = vmatprep.subr.bf16.mxu0 %v10808_v40  ;;  %570 = vst [vmem:[#allocation2 + $0x88] sm:$0xf] %v461_v11  ;;  %v2234_v27 = vshrl.u32 %v2169_v17, 16  ;;  %v2237_v28 = vshll.u32 %v2169_v17, 16  ;;  %v2222_v35 = vrot.slane %v2220_v21, 4 }
  0xcd   : > { %v2000_v36 = vor.u32 %v1999_v19, %v1996_v18  ;;  %v2199_v57 = vrot.slane %v2198_v51, 4  ;;  %v2171_v18 = vld [vmem:[#allocation2 + $0x100] sm:$0xf]  ;;  %v2206_v19 = vshrl.u32 %v2165_v8, 16  ;;  %v2229_v51 = vshll.u32 %v2168_v38, 16 }
  0xce   : > { %9891 = vmatmul.mubr.bf16.gmra.mrb[4].mxu0 %v10814_v41  ;;  %v1963_v41 = vrot.slane %v1961_v23, 5  ;;  %v2248_v29 = vshrl.u32 %v2171_v18, 16  ;;  %v2236_v25 = vrot.slane %v2234_v27, 4 }
  0xcf   : > { %9899 = vmatpush3.bf16.msra.mxu0 %v10808_v40  ;;  %9910 = vmatprep.mubr.bf16.mxu0 %v8619_v55  ;;  %v1959_v40 = vrot.slane %v1958_v22, 4  ;;  %v2001_v49 = vrot.slane %v2000_v36, 4  ;;  %v371_v55 = vmul.bf16 1045249613, %v227_v53  ;;  %v2204_v14 = vsel %vm11186_vm11, %v2199_v57, %v2203_v4  ;;  %v10822_v57 = vld [vmem:[%s12783_s1 + $0x1f0] sm:$0xff]  }
  0xd0   : > { %9900 = vmatprep.subr.bf16.mxu0 %v10809_v50  ;;  %v2223_v22 = vshll.u32 %v2167_v10, 16  ;;  %v2208_v33 = vrot.slane %v2206_v19, 4  ;;  %v2281_v10 = vrot.slane %v2279_v61, 5 }
  0xd1   : > { %v443_v59 = vsel %vm299_vm12, %v227_v53, %v371_v55  ;;  %v1964_v39 = vsel %vm11186_vm11, %v1959_v40, %v1963_v41  ;;  %v2239_v40 = vrot.slane %v2237_v28, 5  ;;  %v2250_v41 = vrot.slane %v2248_v29, 4 }
  0xd2   : > { %534 = vst [vmem:[#allocation2 + $0x40] sm:$0xf] %v443_v59  ;;  %v8621_v43 = vcombine.low %v1964_v39, %v1978_v0  ;;  %v2225_v36 = vrot.slane %v2223_v22, 5  ;;  %v2265_v55 = vshll.u32 %v2173_v16, 16  ;;  %v2257_v59 = vshll.u32 %v2172_v32, 16  ;;  %v10824_v22 = vld [vmem:[%s12783_s1 + $0x200] sm:$0xff]  }
  0xd3   : > { %9901 = vmatpush3.bf16.msra.mxu0 %v10809_v50  ;;  %v2184_v50 = vor.u32 %v2183_v31, %v2180_v30  ;;  %v2251_v30 = vshll.u32 %v2171_v18, 16  ;;  %v10820_v31 = vld [vmem:[%s12783_s1 + $0x1e0] sm:$0xff]   ;;  %v2240_v46 = vor.u32 %v2239_v40, %v2236_v25  ;;  %v2231_v39 = vrot.slane %v2229_v51, 5  ;;  %v10832_v25 = vld [vmem:[#allocation2 + $0x8] ss:$8 sps:$4 sm:$0xff]   ;;  %v10827_v40 = vld [vmem:[%s12783_s1 + $0x218] sm:$0xff]  }
  0xd4   : > { %9902 = vmatprep.subr.bf16.mxu0 %v10810_v7  ;;  %v228_v0 = vld [vmem:[%s11105_s26 + $0x44] sm:$0x1]  ;;  %v2267_v44 = vrot.slane %v2265_v55, 5  ;;  %v2786_v51 = vld [vmem:[#allocation2 + $0xc] sm:$0x1] }
  0xd5   : > { %v2185_v56 = vrot.slane %v2184_v50, 4  ;;  %v2253_v42 = vrot.slane %v2251_v30, 5  ;;  %v2226_v50 = vor.u32 %v2225_v36, %v2222_v35  ;;  %vm300_vm14 = vcmp.ge.bf16.partialorder %v228_v0, 0  ;;  %v2788_v32 = vld [vmem:[#allocation2 + $0x14] sm:$0x1] }
  0xd7   : > { %9903 = vmatpush3.bf16.msra.mxu0 %v10810_v7  ;;  %v2006_v7 = vsel %vm11186_vm11, %v2001_v49, %v2005_v54  ;;  %v2190_v13 = vsel %vm11186_vm11, %v2185_v56, %v2189_v3  ;;  %v2254_v53 = vor.u32 %v2253_v42, %v2250_v41  ;;  %v2262_v54 = vshrl.u32 %v2173_v16, 16  ;;  %v246_v41 = vld [vmem:[%s11105_s26 + $0x8c] sm:$0x1]  ;;  %v10828_v42 = vld [vmem:[%s12783_s1 + $0x220] sm:$0xff]  }
  0xd8   : > { %9904 = vmatprep.subr.bf16.mxu0 %v10811_v20  ;;  %v8622_v15 = vcombine.low %v1992_v6, %v2006_v7  ;;  %v8647_v23 = vcombine.low %v2190_v13, %v2204_v14  ;;  %v2276_v56 = vshrl.u32 %v2175_v47, 16  ;;  %v2227_v63 = vrot.slane %v2226_v50, 4  ;;  %v10823_v6 = vld [vmem:[%s12783_s1 + $0x1f8] sm:$0xff]   ;;  %v2176_v13 = vld [vmem:[#allocation2 + $0x114] sm:$0x1]  ;;  %v10829_v50 = vld [vmem:[%s12783_s1 + $0x228] sm:$0xff]  }
  0xd9   : > { %v2255_v3 = vrot.slane %v2254_v53, 4  ;;  %v2264_v4 = vrot.slane %v2262_v54, 4  ;;  %v2285_v21 = vshll.u32 %v2176_v13, 16  ;;  %vm318_vm15 = vcmp.ge.bf16.partialorder %v246_v41, 0  ;;  %v2785_v47 = vld [vmem:[#allocation2 + $0x8] sm:$0xf] }
  0xda   : > { %v2278_v5 = vrot.slane %v2276_v56, 4  ;;  %v2232_v18 = vsel %vm11186_vm11, %v2227_v63, %v2231_v39  ;;  %v390_v16 = vmul.bf16 1045249613, %v246_v41  ;;  %v2805_v53 = vshll.u32 %v2785_v47, 16  ;;  %v10835_v13 = vld [vmem:[%s12783_s1 + $0x248] sm:$0xff]  }
  0xdb   : > { %9905 = vmatpush3.bf16.msra.mxu0 %v10811_v20  ;;  %v2209_v20 = vshll.u32 %v2165_v8, 16  ;;  %v2259_v8 = vrot.slane %v2257_v59, 5  ;;  %v2268_v17 = vor.u32 %v2267_v44, %v2264_v4  ;;  %v2811_v54 = vshll.u32 %v2786_v51, 16  ;;  %v2791_v4 = vld [vmem:[#allocation2 + $0x20] sm:$0xf]  ;;  %v10843_v51 = vld [vmem:[%s12783_s1 + $0x278] sm:$0xff]  }
  0xdc   : > { %9906 = vmatprep.subr.bf16.mxu0 %v10813_v37  ;;  %v2807_v61 = vrot.slane %v2805_v53, 5  ;;  %v2792_v44 = vld [vmem:[#allocation2 + $0x24] sm:$0x1] }
  0xdd   : > { %v2211_v34 = vrot.slane %v2209_v20, 5  ;;  %v2282_v20 = vor.u32 %v2281_v10, %v2278_v5  ;;  %v2269_v28 = vrot.slane %v2268_v17, 4  ;;  %v2847_v17 = vshll.u32 %v2791_v4, 16 }
  0xdf   : > { %9907 = vmatpush3.bf16.msra.mxu0 %v10813_v37  ;;  %v2166_v37 = vld [vmem:[#allocation2 + $0xec] sm:$0x1]  ;;  %v2212_v48 = vor.u32 %v2211_v34, %v2208_v33  ;;  %v2287_v33 = vrot.slane %v2285_v21, 5  ;;  %v10836_v21 = vld [vmem:[%s12783_s1 + $0x250] sm:$0xff]  }
  0xe0   : > { %9908 = vmatprep.subr.bf16.mxu0 %v10815_v52  ;;  %v2215_v49 = vshll.u32 %v2166_v37, 16  ;;  %v10825_v34 = vld [vmem:[%s12783_s1 + $0x208] sm:$0xff]   ;;  %v10826_v37 = vld [vmem:[%s12783_s1 + $0x210] sm:$0xff]  }
  0xe1   : > { %v2213_v62 = vrot.slane %v2212_v48, 4  ;;  %v462_v48 = vsel %vm318_vm15, %v246_v41, %v390_v16 }
  0xe2   : > { %v2217_v24 = vrot.slane %v2215_v49, 5 }
  0xe3   : > { %9909 = vmatpush3.bf16.msra.mxu0 %v10815_v52  ;;  %v2170_v52 = vld [vmem:[#allocation2 + $0xfc] sm:$0x1] }
  0xe4   : > { %9918 = vmatprep.subr.bf16.mxu0 %v10816_v58 }
  0xe6   : > { %9911 = vmatmul.mubr.bf16.vlgmr.msra.gmra.mrb[0].mxu0 %v8620_v1  ;;  %v2241_v1 = vrot.slane %v2240_v46, 4  ;;  %v2802_v46 = vshrl.u32 %v2785_v47, 16 }
  0xe7   : > { %9919 = vmatpush3.bf16.msra.mxu0 %v10816_v58  ;;  %9914 = vmatprep.mubr.bf16.mxu0 %v8621_v43  ;;  %v2243_v58 = vshll.u32 %v2170_v52, 16  ;;  %v535_v43 = vld [vmem:[#allocation2 + $0x44] sm:$0x1]  ;;  %v2787_v52 = vld [vmem:[#allocation2 + $0x10] sm:$0xf] }
  0xe8   : > { %9920 = vmatprep.subr.bf16.mxu0 %v10817_v2  ;;  %v2816_v55 = vshrl.u32 %v2787_v52, 16  ;;  %v2819_v56 = vshll.u32 %v2787_v52, 16  ;;  %v2804_v59 = vrot.slane %v2802_v46, 4 }
  0xe9   : > { %v2245_v7 = vrot.slane %v2243_v58, 5  ;;  %v10830_v58 = vld [vmem:[%s12783_s1 + $0x230] sm:$0xff]  }
  0xea   : > { %v2818_v63 = vrot.slane %v2816_v55, 4  ;;  %v2821_v39 = vrot.slane %v2819_v56, 5  ;;  %v10845_v56 = vld [vmem:[%s12783_s1 + $0x280] sm:$0xff]  }
  0xeb   : > { %9921 = vmatpush3.bf16.msra.mxu0 %v10817_v2  ;;  %v372_v2 = vmul.bf16 1045249613, %v228_v0 }
  0xec   : > { %9922 = vmatprep.subr.bf16.mxu0 %v10818_v12  ;;  %v2822_v5 = vor.u32 %v2821_v39, %v2818_v63  ;;  %v2799_v39 = vld [vmem:[#allocation2 + $0x40] sm:$0xf] }
  0xed   : > { %v444_v11 = vsel %vm300_vm14, %v228_v0, %v372_v2  ;;  %v2789_v2 = vld [vmem:[#allocation2 + $0x18] sm:$0xf] }
  0xee   : > { %9915 = vmatmul.mubr.bf16.gmra.mrb[4].mxu0 %v8622_v15  ;;  %v536_v14 = vsel %vm11156_vm4, %v444_v11, %v535_v43  ;;  %v2218_v15 = vsel %vm11186_vm11, %v2213_v62, %v2217_v24  ;;  %v10831_v62 = vld [vmem:[%s12783_s1 + $0x238] sm:$0xff]   ;;  %v11606_v24 = vrot.slane %v2811_v54, 5 }
  0xef   : > { %9923 = vmatpush3.bf16.msra.mxu0 %v10818_v12  ;;  %9934 = vmatprep.mubr.bf16.mxu0 %v8647_v23  ;;  %v2174_v12 = vld [vmem:[#allocation2 + $0x10c] sm:$0x1]  ;;  %537 = vst [vmem:[#allocation2 + $0x44] sm:$0x1] %v536_v14  ;;  %v2246_v23 = vsel %vm11186_vm11, %v2241_v1, %v2245_v7  ;;  %v8648_v27 = vcombine.low %v2218_v15, %v2232_v18  ;;  %v2790_v43 = vld [vmem:[#allocation2 + $0x1c] sm:$0x1] }
  0xf0   : > { %9924 = vmatprep.subr.bf16.mxu0 %v10819_v26  ;;  %v2271_v19 = vshll.u32 %v2174_v12, 16  ;;  %v2808_v1 = vor.u32 %v2807_v61, %v2804_v59  ;;  %v2833_v7 = vshll.u32 %v2789_v2, 16  ;;  %v2839_v11 = vshll.u32 %v2790_v43, 16  ;;  %v10840_v12 = vld [vmem:[#allocation2 + $0x28] ss:$8 sps:$4 sm:$0xff]  }
  0xf1   : > { %v11618_v14 = vrot.slane %v2822_v5, 4  ;;  %v2844_v15 = vshrl.u32 %v2791_v4, 16  ;;  %v2853_v18 = vshll.u32 %v2792_v44, 16  ;;  %v10852_v59 = vld [vmem:[#allocation2 + $0x70] ss:$8 sps:$4 sm:$0xff]   ;;  %v10847_v61 = vld [vmem:[%s12783_s1 + $0x288] sm:$0xff]  }
  0xf2   : > { %v2273_v30 = vrot.slane %v2271_v19, 5  ;;  %v11613_v10 = vrot.slane %v2808_v1, 4  ;;  %v10848_v43 = vld [vmem:[%s12783_s1 + $0x290] sm:$0xff]   ;;  %v2900_v4 = vshrl.u32 %v2799_v39, 16  ;;  %v10854_v44 = vld [vmem:[#allocation2 + $0x80] ss:$8 sps:$4 sm:$0xff]  }
  0xf3   : > { %9925 = vmatpush3.bf16.msra.mxu0 %v10819_v26  ;;  %v2260_v26 = vsel %vm11186_vm11, %v2255_v3, %v2259_v8  ;;  %v10833_v3 = vld [vmem:[%s12783_s1 + $0x240] sm:$0xff]  }
  0xf4   : > { %9926 = vmatprep.subr.bf16.mxu0 %v10820_v31  ;;  %v8649_v29 = vcombine.low %v2246_v23, %v2260_v26  ;;  %v2274_v35 = vsel %vm11186_vm11, %v2269_v28, %v2273_v30  ;;  %v10834_v8 = vld [vmem:[#allocation2 + $0x18] ss:$8 sps:$4 sm:$0xff]   ;;  %v2849_v23 = vrot.slane %v2847_v17, 5  ;;  %v11626_v30 = vrot.slane %v2839_v11, 5 }
  0xf5   : > { %v10842_v26 = vld [vmem:[#allocation2 + $0x38] ss:$8 sps:$4 sm:$0xff]   ;;  %v2814_v5 = vsel %vm11186_vm11, %v11613_v10, %v11606_v24  ;;  %v3067_v24 = vld [vmem:[#allocation2 + $0x50] sm:$0xf] }
  0xf6   : > { %v10837_v28 = vld [vmem:[%s12783_s1 + $0x258] sm:$0xff]   ;;  %v3084_v17 = vshrl.u32 %v3067_v24, 16 }
  0xf7   : > { %9927 = vmatpush3.bf16.msra.mxu0 %v10820_v31  ;;  %v2283_v31 = vrot.slane %v2282_v20, 4  ;;  %v2835_v20 = vrot.slane %v2833_v7, 5  ;;  %v10849_v7 = vld [vmem:[%s12783_s1 + $0x298] sm:$0xff]  }
  0xf8   : > { %9928 = vmatprep.subr.bf16.mxu0 %v10821_v45  ;;  %v3069_v10 = vld [vmem:[#allocation2 + $0x58] sm:$0xf] }
  0xf9   : > { %v2288_v36 = vsel %vm11186_vm11, %v2283_v31, %v2287_v33  ;;  %v11628_v33 = vrot.slane %v2853_v18, 5 }
  0xfa   : > { %v8650_v38 = vcombine.low %v2274_v35, %v2288_v36  ;;  %v2793_v35 = vld [vmem:[#allocation2 + $0x28] sm:$0xf] }
  0xfb   : > { %9929 = vmatpush3.bf16.msra.mxu0 %v10821_v45  ;;  %v571_v45 = vld [vmem:[#allocation2 + $0x8c] sm:$0x1]  ;;  %v2858_v41 = vshrl.u32 %v2793_v35, 16 }
  0xfc   : > { %9930 = vmatprep.subr.bf16.mxu0 %v10822_v57  ;;  %v572_v49 = vsel %vm11156_vm4, %v462_v48, %v571_v45  ;;  %v10841_v48 = vld [vmem:[%s12783_s1 + $0x270] sm:$0xff]  }
  0xfd   : > { %573 = vst [vmem:[#allocation2 + $0x8c] sm:$0x1] %v572_v49  ;;  %v2794_v49 = vld [vmem:[#allocation2 + $0x2c] sm:$0x1]  ;;  %v11647_v52 = vrot.slane %v2858_v41, 4 }
  0xfe   : > { %v2867_v46 = vshll.u32 %v2794_v49, 16 }
  0xff   : > { %9931 = vmatpush3.bf16.msra.mxu0 %v10822_v57  ;;  %v2825_v57 = vshll.u32 %v2788_v32, 16 }
 0x100   : > { %9932 = vmatprep.subr.bf16.mxu0 %v10823_v6 }
 0x101   : > { %v11608_v0 = vrot.slane %v2825_v57, 5  ;;  %v2797_v57 = vld [vmem:[#allocation2 + $0x38] sm:$0xf] }
 0x103   : > { %9933 = vmatpush3.bf16.msra.mxu0 %v10823_v6  ;;  %v2830_v6 = vshrl.u32 %v2789_v2, 16  ;;  %v2886_v2 = vshrl.u32 %v2797_v57, 16 }
 0x104   : > { %9942 = vmatprep.subr.bf16.mxu0 %v10824_v22 }
 0x105   : > { %v2832_v19 = vrot.slane %v2830_v6, 4  ;;  %v2828_v6 = vsel %vm11186_vm11, %v11618_v14, %v11608_v0  ;;  %v2888_v11 = vrot.slane %v2886_v2, 4  ;;  %v10851_v0 = vld [vmem:[%s12783_s1 + $0x2a8] sm:$0xff]   ;;  %v281_v14 = vld [vmem:[%s11105_s26 + $0x118] sm:$0xf] }
 0x106   : > { %9935 = vmatmul.mubr.bf16.vlgmr.msra.gmra.mrb[0].mxu0 %v8648_v27  ;;  %v10844_v27 = vld [vmem:[#allocation2 + $0x50] ss:$8 sps:$4 sm:$0xff]   ;;  %v425_v18 = vmul.bf16 1045249613, %v281_v14  ;;  %vm353_vm1 = vcmp.ge.bf16.partialorder %v281_v14, 0 }
 0x107   : > { %9943 = vmatpush3.bf16.msra.mxu0 %v10824_v22  ;;  %9938 = vmatprep.mubr.bf16.mxu0 %v8649_v29  ;;  %v2846_v22 = vrot.slane %v2844_v15, 4  ;;  %v2836_v29 = vor.u32 %v2835_v20, %v2832_v19  ;;  %v2903_v15 = vshll.u32 %v2799_v39, 16  ;;  %v3087_v19 = vshll.u32 %v3067_v24, 16  ;;  %v10859_v24 = vld [vmem:[%s12783_s1 + $0x2d8] sm:$0xff]  }
 0x108   : > { %9944 = vmatprep.subr.bf16.mxu0 %v10825_v34  ;;  %v497_v20 = vsel %vm353_vm1, %v281_v14, %v425_v18  ;;  %v264_v14 = vld [vmem:[%s11105_s26 + $0xd4] sm:$0x1] }
 0x109   : > { %v2850_v31 = vor.u32 %v2849_v23, %v2846_v22  ;;  %v11633_v36 = vrot.slane %v2836_v29, 4  ;;  %642 = vst [vmem:[#allocation2 + $0x118] sm:$0xf] %v497_v20  ;;  %vm336_vm2 = vcmp.ge.bf16.partialorder %v264_v14, 0 }
 0x10b   : > { %9945 = vmatpush3.bf16.msra.mxu0 %v10825_v34  ;;  %v10838_v34 = vld [vmem:[%s12783_s1 + $0x260] sm:$0xff]  }
 0x10c   : > { %9946 = vmatprep.subr.bf16.mxu0 %v10826_v37 }
 0x10e   : > { %9939 = vmatmul.mubr.bf16.gmra.mrb[4].mxu0 %v8650_v38  ;;  %v2795_v38 = vld [vmem:[#allocation2 + $0x30] sm:$0xf] }
 0x10f   : > { %9947 = vmatpush3.bf16.msra.mxu0 %v10826_v37  ;;  %9958 = vmatprep.mubr.bf16.mxu0 %v10832_v25  ;;  %v11635_v37 = vrot.slane %v2850_v31, 4  ;;  %v10839_v25 = vld [vmem:[%s12783_s1 + $0x268] sm:$0xff]   ;;  %v2872_v45 = vshrl.u32 %v2795_v38, 16  ;;  %v2875_v53 = vshll.u32 %v2795_v38, 16  ;;  %v3068_v38 = vld [vmem:[#allocation2 + $0x54] sm:$0x1] }
 0x110   : > { %9948 = vmatprep.subr.bf16.mxu0 %v10827_v40 }
 0x111   : > { %v2874_v54 = vrot.slane %v2872_v45, 4  ;;  %v2877_v63 = vrot.slane %v2875_v53, 5  ;;  %v2800_v45 = vld [vmem:[#allocation2 + $0x44] sm:$0x1]  ;;  %v2856_v49 = vsel %vm11186_vm11, %v11635_v37, %v11628_v33  ;;  %v3093_v53 = vshll.u32 %v3068_v38, 16 }
 0x112   : > { %v10856_v33 = vld [vmem:[%s12783_s1 + $0x2c0] sm:$0xff]   ;;  %v3074_v38 = vld [vmem:[#allocation2 + $0x6c] sm:$0x1] }
 0x113   : > { %9949 = vmatpush3.bf16.msra.mxu0 %v10827_v40  ;;  %v263_v40 = vld [vmem:[%s11105_s26 + $0xd0] sm:$0xf]  ;;  %v2878_v23 = vor.u32 %v2877_v63, %v2874_v54  ;;  %v2909_v54 = vshll.u32 %v2800_v45, 16  ;;  %v3071_v63 = vld [vmem:[#allocation2 + $0x60] sm:$0xf] }
 0x114   : > { %9950 = vmatprep.subr.bf16.mxu0 %v10828_v42  ;;  %v407_v16 = vmul.bf16 1045249613, %v263_v40  ;;  %vm335_vm0 = vcmp.ge.bf16.partialorder %v263_v40, 0  ;;  %v3081_v45 = vld [vmem:[#allocation2 + $0x88] sm:$0xf] }
 0x115   : > { %v2879_v31 = vrot.slane %v2878_v23, 4  ;;  %v2911_v39 = vrot.slane %v2909_v54, 5  ;;  %v10860_v23 = vld [vmem:[%s12783_s1 + $0x2e0] sm:$0xff]  }
 0x116   : > { %v479_v47 = vsel %vm335_vm0, %v263_v40, %v407_v16  ;;  %v3089_v40 = vrot.slane %v3087_v19, 5  ;;  %v10855_v16 = vld [vmem:[%s12783_s1 + $0x2b8] sm:$0xff]   ;;  %v408_v19 = vmul.bf16 1045249613, %v264_v14 }
 0x117   : > { %9951 = vmatpush3.bf16.msra.mxu0 %v10828_v42  ;;  %v2861_v42 = vshll.u32 %v2793_v35, 16  ;;  %606 = vst [vmem:[#allocation2 + $0xd0] sm:$0xf] %v479_v47  ;;  %v2905_v35 = vrot.slane %v2903_v15, 5  ;;  %v3070_v47 = vld [vmem:[#allocation2 + $0x5c] sm:$0x1] }
 0x118   : > { %9952 = vmatprep.subr.bf16.mxu0 %v10829_v50 }
 0x119   : > { %v2863_v32 = vrot.slane %v2861_v42, 5 }
 0x11b   : > { %9953 = vmatpush3.bf16.msra.mxu0 %v10829_v50  ;;  %v2796_v50 = vld [vmem:[#allocation2 + $0x34] sm:$0x1]  ;;  %v2864_v22 = vor.u32 %v2863_v32, %v11647_v52 }
 0x11c   : > { %9954 = vmatprep.subr.bf16.mxu0 %v10830_v58  ;;  %v2881_v55 = vshll.u32 %v2796_v50, 16 }
 0x11d   : > { %v2865_v29 = vrot.slane %v2864_v22, 4  ;;  %v607_v22 = vld [vmem:[#allocation2 + $0xd4] sm:$0x1] }
 0x11e   : > { %v11657_v1 = vrot.slane %v2881_v55, 5  ;;  %v3107_v55 = vshll.u32 %v3070_v47, 16  ;;  %v3076_v47 = vld [vmem:[#allocation2 + $0x74] sm:$0x1] }
 0x11f   : > { %9955 = vmatpush3.bf16.msra.mxu0 %v10830_v58  ;;  %v10846_v58 = vld [vmem:[#allocation2 + $0x60] ss:$8 sps:$4 sm:$0xff]  }
 0x120   : > { %9956 = vmatprep.subr.bf16.mxu0 %v10831_v62  ;;  %v2884_v32 = vsel %vm11186_vm11, %v2879_v31, %v11657_v1 }
 0x123   : > { %9957 = vmatpush3.bf16.msra.mxu0 %v10831_v62  ;;  %v11655_v62 = vrot.slane %v2867_v46, 5 }
 0x124   : > { %9966 = vmatprep.subr.bf16.mxu0 %v10833_v3 }
 0x125   : > { %v2870_v52 = vsel %vm11186_vm11, %v2865_v29, %v11655_v62  ;;  %v3095_v62 = vrot.slane %v3093_v53, 5 }
 0x126   : > { %9959 = vmatmul.mubr.bf16.vlgmr.msra.gmra.mrb[0].mxu0 %v10834_v8  ;;  %v8731_v8 = vcombine.low %v2814_v5, %v2828_v6 }
 0x127   : > { %9967 = vmatpush3.bf16.msra.mxu0 %v10833_v3  ;;  %9962 = vmatprep.mubr.bf16.mxu0 %v10840_v12  ;;  %v2889_v3 = vshll.u32 %v2797_v57, 16 }
 0x128   : > { %9968 = vmatprep.subr.bf16.mxu0 %v10835_v13 }
 0x129   : > { %v2891_v12 = vrot.slane %v2889_v3, 5  ;;  %v3073_v3 = vld [vmem:[#allocation2 + $0x68] sm:$0xf] }
 0x12b   : > { %9969 = vmatpush3.bf16.msra.mxu0 %v10835_v13  ;;  %v10850_v13 = vld [vmem:[%s12783_s1 + $0x2a0] sm:$0xff]   ;;  %v2892_v50 = vor.u32 %v2891_v12, %v2888_v11  ;;  %v3115_v12 = vshll.u32 %v3071_v63, 16 }
 0x12c   : > { %9970 = vmatprep.subr.bf16.mxu0 %v10836_v21 }
 0x12d   : > { %v2893_v37 = vrot.slane %v2892_v50, 4  ;;  %v3117_v31 = vrot.slane %v3115_v12, 5 }
 0x12e   : > { %9963 = vmatmul.mubr.bf16.gmra.mrb[4].mxu0 %v10842_v26  ;;  %v3098_v26 = vshrl.u32 %v3069_v10, 16 }
 0x12f   : > { %9971 = vmatpush3.bf16.msra.mxu0 %v10836_v21  ;;  %9982 = vmatprep.mubr.bf16.mxu0 %v10844_v27  ;;  %v10853_v21 = vld [vmem:[%s12783_s1 + $0x2b0] sm:$0xff]   ;;  %v3101_v27 = vshll.u32 %v3069_v10, 16  ;;  %v3077_v10 = vld [vmem:[#allocation2 + $0x78] sm:$0xf] }
 0x130   : > { %9972 = vmatprep.subr.bf16.mxu0 %v10837_v28  ;;  %v3100_v41 = vrot.slane %v3098_v26, 4 }
 0x131   : > { %v3103_v42 = vrot.slane %v3101_v27, 5  ;;  %v3154_v27 = vshrl.u32 %v3077_v10, 16 }
 0x133   : > { %9973 = vmatpush3.bf16.msra.mxu0 %v10837_v28  ;;  %v2798_v28 = vld [vmem:[#allocation2 + $0x3c] sm:$0x1] }
 0x134   : > { %9974 = vmatprep.subr.bf16.mxu0 %v10838_v34 }
 0x137   : > { %9975 = vmatpush3.bf16.msra.mxu0 %v10838_v34  ;;  %v2902_v34 = vrot.slane %v2900_v4, 4  ;;  %v10858_v4 = vld [vmem:[%s12783_s1 + $0x2d0] sm:$0xff]  }
 0x138   : > { %9976 = vmatprep.subr.bf16.mxu0 %v10839_v25 }
 0x139   : > { %v2906_v46 = vor.u32 %v2905_v35, %v2902_v34  ;;  %v10861_v34 = vld [vmem:[%s12783_s1 + $0x2e8] sm:$0xff]   ;;  %v3072_v35 = vld [vmem:[#allocation2 + $0x64] sm:$0x1] }
 0x13b   : > { %9977 = vmatpush3.bf16.msra.mxu0 %v10839_v25  ;;  %v3086_v25 = vrot.slane %v3084_v17, 4  ;;  %v3129_v17 = vshll.u32 %v3073_v3, 16 }
 0x13c   : > { %9978 = vmatprep.subr.bf16.mxu0 %v10841_v48 }
 0x13f   : > { %9979 = vmatpush3.bf16.msra.mxu0 %v10841_v48  ;;  %v2842_v48 = vsel %vm11186_vm11, %v11633_v36, %v11626_v30  ;;  %v3090_v30 = vor.u32 %v3089_v40, %v3086_v25  ;;  %v3104_v36 = vor.u32 %v3103_v42, %v3100_v41  ;;  %v3131_v40 = vrot.slane %v3129_v17, 5 }
 0x140   : > { %9980 = vmatprep.subr.bf16.mxu0 %v10843_v51  ;;  %v8732_v57 = vcombine.low %v2842_v48, %v2856_v49  ;;  %v3156_v48 = vrot.slane %v3154_v27, 4 }
 0x141   : > { %v3091_v1 = vrot.slane %v3090_v30, 4  ;;  %v3105_v2 = vrot.slane %v3104_v36, 4  ;;  %v3149_v36 = vshll.u32 %v3076_v47, 16  ;;  %v10871_v47 = vld [vmem:[%s12783_s1 + $0x338] sm:$0xff]  }
 0x143   : > { %9981 = vmatpush3.bf16.msra.mxu0 %v10843_v51  ;;  %v2895_v51 = vshll.u32 %v2798_v28, 16  ;;  %v3157_v28 = vshll.u32 %v3077_v10, 16  ;;  %v10864_v10 = vld [vmem:[%s12783_s1 + $0x300] sm:$0xff]  }
 0x144   : > { %9990 = vmatprep.subr.bf16.mxu0 %v10845_v56 }
 0x145   : > { %v3159_v49 = vrot.slane %v3157_v28, 5 }
 0x146   : > { %9983 = vmatmul.mubr.bf16.vlgmr.msra.gmra.mrb[0].mxu0 %v10846_v58  ;;  %v10857_v58 = vld [vmem:[%s12783_s1 + $0x2c8] sm:$0xff]  }
 0x147   : > { %9991 = vmatpush3.bf16.msra.mxu0 %v10845_v56  ;;  %9986 = vmatprep.mubr.bf16.mxu0 %v10852_v59  ;;  %v2897_v56 = vrot.slane %v2895_v51, 5  ;;  %v8733_v59 = vcombine.low %v2870_v52, %v2884_v32  ;;  %v3121_v51 = vshll.u32 %v3072_v35, 16  ;;  %v3078_v52 = vld [vmem:[#allocation2 + $0x7c] sm:$0x1] }
 0x148   : > { %9992 = vmatprep.subr.bf16.mxu0 %v10847_v61 }
 0x149   : > { %v2898_v5 = vsel %vm11186_vm11, %v2893_v37, %v2897_v56  ;;  %v10862_v37 = vld [vmem:[%s12783_s1 + $0x2f0] sm:$0xff]   ;;  %v3160_v56 = vor.u32 %v3159_v49, %v3156_v48  ;;  %v10873_v48 = vld [vmem:[%s12783_s1 + $0x340] sm:$0xff]  }
 0x14a   : > { %v10874_v49 = vld [vmem:[#allocation2 + $0xa8] ss:$8 sps:$4 sm:$0xff]  }
 0x14b   : > { %9993 = vmatpush3.bf16.msra.mxu0 %v10847_v61  ;;  %v2907_v61 = vrot.slane %v2906_v46, 4  ;;  %v3135_v46 = vshll.u32 %v3074_v38, 16  ;;  %v10872_v38 = vld [vmem:[#allocation2 + $0x98] ss:$8 sps:$4 sm:$0xff]  }
 0x14c   : > { %9994 = vmatprep.subr.bf16.mxu0 %v10848_v43 }
 0x14d   : > { %v2912_v6 = vsel %vm11186_vm11, %v2907_v61, %v2911_v39  ;;  %v10863_v61 = vld [vmem:[%s12783_s1 + $0x2f8] sm:$0xff]  }
 0x14e   : > { %9987 = vmatmul.mubr.bf16.gmra.mrb[4].mxu0 %v10854_v44  ;;  %v3112_v44 = vshrl.u32 %v3071_v63, 16  ;;  %v3137_v63 = vrot.slane %v3135_v46, 5  ;;  %v10884_v46 = vld [vmem:[#allocation2 + $0xe0] ss:$8 sps:$4 sm:$0xff]  }
 0x14f   : > { %9995 = vmatpush3.bf16.msra.mxu0 %v10848_v43  ;;  %10006 = vmatprep.mubr.bf16.mxu0 %v8731_v8  ;;  %v3109_v43 = vrot.slane %v3107_v55, 5  ;;  %v3096_v8 = vsel %vm11186_vm11, %v3091_v1, %v3095_v62  ;;  %v3182_v55 = vshrl.u32 %v3081_v45, 16 }
 0x150   : > { %9996 = vmatprep.subr.bf16.mxu0 %v10849_v7  ;;  %v3114_v29 = vrot.slane %v3112_v44, 4 }
 0x151   : > { %v3110_v11 = vsel %vm11186_vm11, %v3105_v2, %v3109_v43  ;;  %v3151_v43 = vrot.slane %v3149_v36, 5  ;;  %v3691_v36 = vld [vmem:[#allocation2 + $0x98] sm:$0xf] }
 0x152   : > { %v8759_v15 = vcombine.low %v3096_v8, %v3110_v11  ;;  %v3118_v50 = vor.u32 %v3117_v31, %v3114_v29  ;;  %v10866_v29 = vld [vmem:[%s12783_s1 + $0x310] sm:$0xff]  }
 0x153   : > { %9997 = vmatpush3.bf16.msra.mxu0 %v10849_v7  ;;  %v3075_v7 = vld [vmem:[#allocation2 + $0x70] sm:$0xf] }
 0x154   : > { %9998 = vmatprep.subr.bf16.mxu0 %v10850_v13  ;;  %v3140_v18 = vshrl.u32 %v3075_v7, 16  ;;  %v3143_v20 = vshll.u32 %v3075_v7, 16  ;;  %v3082_v7 = vld [vmem:[#allocation2 + $0x8c] sm:$0x1] }
 0x156   : > { %v3142_v41 = vrot.slane %v3140_v18, 4  ;;  %v3145_v42 = vrot.slane %v3143_v20, 5 }
 0x157   : > { %9999 = vmatpush3.bf16.msra.mxu0 %v10850_v13  ;;  %v3126_v13 = vshrl.u32 %v3073_v3, 16  ;;  %v3080_v3 = vld [vmem:[#allocation2 + $0x84] sm:$0x1] }
 0x158   : > { %10000 = vmatprep.subr.bf16.mxu0 %v10851_v0  ;;  %v3146_v30 = vor.u32 %v3145_v42, %v3142_v41  ;;  %v3177_v11 = vshll.u32 %v3080_v3, 16  ;;  %v10868_v42 = vld [vmem:[%s12783_s1 + $0x320] sm:$0xff]  }
 0x159   : > { %v3128_v25 = vrot.slane %v3126_v13, 4 }
 0x15a   : > { %v3147_v2 = vrot.slane %v3146_v30, 4  ;;  %v3179_v18 = vrot.slane %v3177_v11, 5  ;;  %v10879_v30 = vld [vmem:[%s12783_s1 + $0x368] sm:$0xff]  }
 0x15b   : > { %10001 = vmatpush3.bf16.msra.mxu0 %v10851_v0  ;;  %v8734_v0 = vcombine.low %v2898_v5, %v2912_v6  ;;  %v3132_v32 = vor.u32 %v3131_v40, %v3128_v25  ;;  %v3161_v5 = vrot.slane %v3160_v56, 4  ;;  %v10867_v40 = vld [vmem:[%s12783_s1 + $0x318] sm:$0xff]   ;;  %v3711_v56 = vshll.u32 %v3691_v36, 16 }
 0x15c   : > { %10002 = vmatprep.subr.bf16.mxu0 %v10853_v21 }
 0x15d   : > { %v3133_v62 = vrot.slane %v3132_v32, 4  ;;  %v10882_v32 = vld [vmem:[#allocation2 + $0xc8] ss:$8 sps:$4 sm:$0xff]  }
 0x15f   : > { %10003 = vmatpush3.bf16.msra.mxu0 %v10853_v21  ;;  %v480_v21 = vsel %vm336_vm2, %v264_v14, %v408_v19  ;;  %v3138_v12 = vsel %vm11186_vm11, %v3133_v62, %v3137_v63  ;;  %v3152_v14 = vsel %vm11186_vm11, %v3147_v2, %v3151_v43  ;;  %v3713_v62 = vrot.slane %v3711_v56, 5  ;;  %v3694_v2 = vld [vmem:[#allocation2 + $0xa4] sm:$0x1] }
 0x160   : > { %10004 = vmatprep.subr.bf16.mxu0 %v10855_v16  ;;  %v608_v26 = vsel %vm11156_vm4, %v480_v21, %v607_v22  ;;  %v10885_v43 = vld [vmem:[%s12783_s1 + $0x380] sm:$0xff]  }
 0x161   : > { %609 = vst [vmem:[#allocation2 + $0xd4] sm:$0x1] %v608_v26  ;;  %v282_v26 = vld [vmem:[%s11105_s26 + $0x11c] sm:$0x1] }
 0x162   : > { %vm354_vm3 = vcmp.ge.bf16.partialorder %v282_v26, 0  ;;  %v426_v31 = vmul.bf16 1045249613, %v282_v26 }
 0x163   : > { %10005 = vmatpush3.bf16.msra.mxu0 %v10855_v16  ;;  %v3079_v16 = vld [vmem:[#allocation2 + $0x80] sm:$0xf] }
 0x164   : > { %10014 = vmatprep.subr.bf16.mxu0 %v10856_v33  ;;  %v3168_v53 = vshrl.u32 %v3079_v16, 16  ;;  %v3171_v54 = vshll.u32 %v3079_v16, 16  ;;  %v498_v25 = vsel %vm354_vm3, %v282_v26, %v426_v31  ;;  %v10869_v16 = vld [vmem:[%s12783_s1 + $0x328] sm:$0xff]  }
 0x166   : > { %10007 = vmatmul.mubr.bf16.vlgmr.msra.gmra.mrb[0].mxu0 %v8732_v57  ;;  %v3163_v57 = vshll.u32 %v3078_v52, 16  ;;  %v3170_v39 = vrot.slane %v3168_v53, 4  ;;  %v3173_v1 = vrot.slane %v3171_v54, 5  ;;  %v10876_v52 = vld [vmem:[%s12783_s1 + $0x350] sm:$0xff]   ;;  %v10877_v53 = vld [vmem:[%s12783_s1 + $0x358] sm:$0xff]   ;;  %v10878_v54 = vld [vmem:[%s12783_s1 + $0x360] sm:$0xff]  }
 0x167   : > { %10015 = vmatpush3.bf16.msra.mxu0 %v10856_v33  ;;  %10010 = vmatprep.mubr.bf16.mxu0 %v8733_v59  ;;  %v3185_v33 = vshll.u32 %v3081_v45, 16  ;;  %v3123_v59 = vrot.slane %v3121_v51, 5  ;;  %v10870_v45 = vld [vmem:[%s12783_s1 + $0x330] sm:$0xff]   ;;  %v10875_v51 = vld [vmem:[%s12783_s1 + $0x348] sm:$0xff]  }
 0x168   : > { %10016 = vmatprep.subr.bf16.mxu0 %v10857_v58  ;;  %v3165_v6 = vrot.slane %v3163_v57, 5  ;;  %v3174_v13 = vor.u32 %v3173_v1, %v3170_v39  ;;  %v3692_v1 = vld [vmem:[#allocation2 + $0x9c] sm:$0x1] }
 0x169   : > { %v3187_v44 = vrot.slane %v3185_v33, 5  ;;  %v10881_v33 = vld [vmem:[%s12783_s1 + $0x370] sm:$0xff]  }
 0x16a   : > { %v3175_v20 = vrot.slane %v3174_v13, 4 }
 0x16b   : > { %10017 = vmatpush3.bf16.msra.mxu0 %v10857_v58  ;;  %v3119_v58 = vrot.slane %v3118_v50, 4  ;;  %v10880_v50 = vld [vmem:[#allocation2 + $0xb8] ss:$8 sps:$4 sm:$0xff]  }
 0x16c   : > { %10018 = vmatprep.subr.bf16.mxu0 %v10858_v4  ;;  %v3180_v27 = vsel %vm11186_vm11, %v3175_v20, %v3179_v18  ;;  %v3697_v18 = vld [vmem:[#allocation2 + $0xb0] sm:$0xf]  ;;  %v3699_v20 = vld [vmem:[#allocation2 + $0xb8] sm:$0xf] }
 0x16d   : > { %v3124_v8 = vsel %vm11186_vm11, %v3119_v58, %v3123_v59  ;;  %v10883_v59 = vld [vmem:[%s12783_s1 + $0x378] sm:$0xff]   ;;  %v3767_v31 = vshll.u32 %v3699_v20, 16 }
 0x16e   : > { %10011 = vmatmul.mubr.bf16.gmra.mrb[4].mxu0 %v8734_v0  ;;  %v3191_v0 = vshll.u32 %v3082_v7, 16  ;;  %v8760_v17 = vcombine.low %v3124_v8, %v3138_v12  ;;  %v10892_v7 = vld [vmem:[#allocation2 + $0x100] ss:$8 sps:$4 sm:$0xff]  }
 0x16f   : > { %10019 = vmatpush3.bf16.msra.mxu0 %v10858_v4  ;;  %10030 = vmatprep.mubr.bf16.mxu0 %v8759_v15  ;;  %v3184_v4 = vrot.slane %v3182_v55, 4  ;;  %v3166_v15 = vsel %vm11186_vm11, %v3161_v5, %v3165_v6  ;;  %v3693_v55 = vld [vmem:[#allocation2 + $0xa0] sm:$0xf]  ;;  %v3731_v5 = vshll.u32 %v3694_v2, 16  ;;  %v10886_v6 = vld [vmem:[#allocation2 + $0xf0] ss:$8 sps:$4 sm:$0xff]  }
 0x170   : > { %10020 = vmatprep.subr.bf16.mxu0 %v10859_v24  ;;  %v8761_v19 = vcombine.low %v3152_v14, %v3166_v15  ;;  %v3193_v22 = vrot.slane %v3191_v0, 5  ;;  %v3722_v57 = vshrl.u32 %v3693_v55, 16  ;;  %v3725_v58 = vshll.u32 %v3693_v55, 16  ;;  %v10887_v8 = vld [vmem:[%s12783_s1 + $0x388] sm:$0xff]   ;;  %v10888_v0 = vld [vmem:[%s12783_s1 + $0x390] sm:$0xff]  }
 0x171   : > { %v10894_v15 = vld [vmem:[#allocation2 + $0x110] ss:$8 sps:$4 sm:$0xff]  }
 0x172   : > { %v3724_v63 = vrot.slane %v3722_v57, 4  ;;  %v3727_v39 = vrot.slane %v3725_v58, 5 }
 0x173   : > { %10021 = vmatpush3.bf16.msra.mxu0 %v10859_v24  ;;  %v3188_v24 = vor.u32 %v3187_v44, %v3184_v4  ;;  %v3717_v4 = vshll.u32 %v3692_v1, 16  ;;  %v10893_v1 = vld [vmem:[%s12783_s1 + $0x3b0] sm:$0xff]  }
 0x174   : > { %10022 = vmatprep.subr.bf16.mxu0 %v10860_v23  ;;  %v3728_v44 = vor.u32 %v3727_v39, %v3724_v63 }
 0x175   : > { %v3189_v21 = vrot.slane %v3188_v24, 4  ;;  %v3719_v12 = vrot.slane %v3717_v4, 5  ;;  %v3733_v24 = vrot.slane %v3731_v5, 5 }
 0x176   : > { %v3729_v13 = vrot.slane %v3728_v44, 4 }
 0x177   : > { %10023 = vmatpush3.bf16.msra.mxu0 %v10860_v23  ;;  %v10865_v23 = vld [vmem:[%s12783_s1 + $0x308] sm:$0xff]   ;;  %v3194_v28 = vsel %vm11186_vm11, %v3189_v21, %v3193_v22  ;;  %v10889_v21 = vld [vmem:[%s12783_s1 + $0x398] sm:$0xff]   ;;  %v3701_v22 = vld [vmem:[#allocation2 + $0xc0] sm:$0xf] }
 0x178   : > { %10024 = vmatprep.subr.bf16.mxu0 %v10861_v34  ;;  %v8762_v35 = vcombine.low %v3180_v27, %v3194_v28  ;;  %v3734_v14 = vsel %vm11186_vm11, %v3729_v13, %v3733_v24  ;;  %v3750_v27 = vshrl.u32 %v3697_v18, 16  ;;  %v3753_v28 = vshll.u32 %v3697_v18, 16  ;;  %v3706_v18 = vld [vmem:[#allocation2 + $0xd4] sm:$0x1] }
 0x17b   : > { %10025 = vmatpush3.bf16.msra.mxu0 %v10861_v34  ;;  %v643_v34 = vld [vmem:[#allocation2 + $0x11c] sm:$0x1] }
 0x17c   : > { %10026 = vmatprep.subr.bf16.mxu0 %v10862_v37  ;;  %v644_v41 = vsel %vm11156_vm4, %v498_v25, %v643_v34  ;;  %v3778_v34 = vshrl.u32 %v3701_v22, 16 }
 0x17d   : > { %645 = vst [vmem:[#allocation2 + $0x11c] sm:$0x1] %v644_v41  ;;  %v3752_v41 = vrot.slane %v3750_v27, 4 }
 0x17f   : > { %10027 = vmatpush3.bf16.msra.mxu0 %v10862_v37  ;;  %v3708_v37 = vshrl.u32 %v3691_v36, 16 }
 0x180   : > { %10028 = vmatprep.subr.bf16.mxu0 %v10863_v61 }
 0x183   : > { %10029 = vmatpush3.bf16.msra.mxu0 %v10863_v61  ;;  %v3710_v61 = vrot.slane %v3708_v37, 4  ;;  %v3975_v37 = vld [vmem:[#allocation2 + $0xe8] sm:$0xf] }
 0x184   : > { %10038 = vmatprep.subr.bf16.mxu0 %v10864_v10  ;;  %v4007_v4 = vshll.u32 %v3975_v37, 16 }
 0x185   : > { %v3714_v3 = vor.u32 %v3713_v62, %v3710_v61 }
 0x186   : > { %10031 = vmatmul.mubr.bf16.vlgmr.msra.gmra.mrb[0].mxu0 %v8760_v17  ;;  %v3695_v17 = vld [vmem:[#allocation2 + $0xa8] sm:$0xf] }
 0x187   : > { %10039 = vmatpush3.bf16.msra.mxu0 %v10864_v10  ;;  %10034 = vmatprep.mubr.bf16.mxu0 %v8761_v19  ;;  %v3715_v11 = vrot.slane %v3714_v3, 4  ;;  %v3739_v26 = vshll.u32 %v3695_v17, 16  ;;  %v4004_v3 = vshrl.u32 %v3975_v37, 16 }
 0x188   : > { %10040 = vmatprep.subr.bf16.mxu0 %v10865_v23 }
 0x189   : > { %v3720_v10 = vsel %vm11186_vm11, %v3715_v11, %v3719_v12 }
 0x18a   : > { %v8843_v19 = vcombine.low %v3720_v10, %v3734_v14  ;;  %v3704_v14 = vld [vmem:[#allocation2 + $0xcc] sm:$0x1] }
 0x18b   : > { %10041 = vmatpush3.bf16.msra.mxu0 %v10865_v23  ;;  %v3736_v23 = vshrl.u32 %v3695_v17, 16 }
 0x18c   : > { %10042 = vmatprep.subr.bf16.mxu0 %v10866_v29 }
 0x18d   : > { %v3738_v25 = vrot.slane %v3736_v23, 4  ;;  %v3974_v23 = vld [vmem:[#allocation2 + $0xe4] sm:$0x1] }
 0x18e   : > { %10035 = vmatmul.mubr.bf16.gmra.mrb[4].mxu0 %v8762_v35  ;;  %v3781_v35 = vshll.u32 %v3701_v22, 16  ;;  %v4009_v22 = vrot.slane %v4007_v4, 5  ;;  %v10900_v4 = vld [vmem:[%s12783_s1 + $0x3e0] sm:$0xff]  }
 0x18f   : > { %10043 = vmatpush3.bf16.msra.mxu0 %v10866_v29  ;;  %10054 = vmatprep.mubr.bf16.mxu0 %v10872_v38  ;;  %v3764_v29 = vshrl.u32 %v3699_v20, 16  ;;  %v10890_v38 = vld [vmem:[%s12783_s1 + $0x3a0] sm:$0xff]  }
 0x190   : > { %10044 = vmatprep.subr.bf16.mxu0 %v10867_v40 }
 0x193   : > { %10045 = vmatpush3.bf16.msra.mxu0 %v10867_v40  ;;  %v3741_v40 = vrot.slane %v3739_v26, 5  ;;  %v3976_v26 = vld [vmem:[#allocation2 + $0xec] sm:$0x1] }
 0x194   : > { %10046 = vmatprep.subr.bf16.mxu0 %v10868_v42 }
 0x197   : > { %10047 = vmatpush3.bf16.msra.mxu0 %v10868_v42  ;;  %v3755_v42 = vrot.slane %v3753_v28, 5 }
 0x198   : > { %10048 = vmatprep.subr.bf16.mxu0 %v10869_v16 }
 0x199   : > { %v3756_v36 = vor.u32 %v3755_v42, %v3752_v41  ;;  %v3999_v42 = vshll.u32 %v3974_v23, 16 }
 0x19b   : > { %10049 = vmatpush3.bf16.msra.mxu0 %v10869_v16  ;;  %v3696_v16 = vld [vmem:[#allocation2 + $0xac] sm:$0x1] }
 0x19c   : > { %10050 = vmatprep.subr.bf16.mxu0 %v10870_v45 }
 0x19f   : > { %10051 = vmatpush3.bf16.msra.mxu0 %v10870_v45  ;;  %v3698_v45 = vld [vmem:[#allocation2 + $0xb4] sm:$0x1] }
 0x1a0   : > { %10052 = vmatprep.subr.bf16.mxu0 %v10871_v47  ;;  %v3759_v55 = vshll.u32 %v3698_v45, 16  ;;  %v4013_v45 = vshll.u32 %v3976_v26, 16 }
 0x1a3   : > { %10053 = vmatpush3.bf16.msra.mxu0 %v10871_v47  ;;  %v3766_v47 = vrot.slane %v3764_v29, 4 }
 0x1a4   : > { %10062 = vmatprep.subr.bf16.mxu0 %v10873_v48 }
 0x1a6   : > { %10055 = vmatmul.mubr.bf16.vlgmr.msra.gmra.mrb[0].mxu0 %v10874_v49  ;;  %v3700_v49 = vld [vmem:[#allocation2 + $0xbc] sm:$0x1] }
 0x1a7   : > { %10063 = vmatpush3.bf16.msra.mxu0 %v10873_v48  ;;  %10058 = vmatprep.mubr.bf16.mxu0 %v10880_v50  ;;  %v3769_v48 = vrot.slane %v3767_v31, 5  ;;  %v3780_v50 = vrot.slane %v3778_v34, 4  ;;  %v3773_v57 = vshll.u32 %v3700_v49, 16  ;;  %v3801_v31 = vshll.u32 %v3704_v14, 16  ;;  %v3985_v14 = vld [vmem:[#allocation2 + $0x110] sm:$0xf] }
 0x1a8   : > { %10064 = vmatprep.subr.bf16.mxu0 %v10875_v51 }
 0x1a9   : > { %v3770_v56 = vor.u32 %v3769_v48, %v3766_v47  ;;  %v3775_v12 = vrot.slane %v3773_v57, 5 }
 0x1ab   : > { %10065 = vmatpush3.bf16.msra.mxu0 %v10875_v51  ;;  %v3783_v51 = vrot.slane %v3781_v35, 5  ;;  %v3771_v11 = vrot.slane %v3770_v56, 4 }
 0x1ac   : > { %10066 = vmatprep.subr.bf16.mxu0 %v10876_v52 }
 0x1ad   : > { %v3784_v61 = vor.u32 %v3783_v51, %v3780_v50  ;;  %v3776_v34 = vsel %vm11186_vm11, %v3771_v11, %v3775_v12  ;;  %v3803_v50 = vrot.slane %v3801_v31, 5  ;;  %v4077_v31 = vshll.u32 %v3985_v14, 16 }
 0x1ae   : > { %10059 = vmatmul.mubr.bf16.gmra.mrb[4].mxu0 %v10882_v32  ;;  %v10891_v32 = vld [vmem:[%s12783_s1 + $0x3a8] sm:$0xff]  }
 0x1af   : > { %10067 = vmatpush3.bf16.msra.mxu0 %v10876_v52  ;;  %10078 = vmatprep.mubr.bf16.mxu0 %v10884_v46  ;;  %v3703_v52 = vld [vmem:[#allocation2 + $0xc8] sm:$0xf]  ;;  %v3702_v46 = vld [vmem:[#allocation2 + $0xc4] sm:$0x1] }
 0x1b0   : > { %10068 = vmatprep.subr.bf16.mxu0 %v10877_v53  ;;  %v3792_v58 = vshrl.u32 %v3703_v52, 16  ;;  %v3787_v62 = vshll.u32 %v3702_v46, 16 }
 0x1b2   : > { %v3794_v13 = vrot.slane %v3792_v58, 4  ;;  %v3789_v10 = vrot.slane %v3787_v62, 5  ;;  %v10899_v62 = vld [vmem:[%s12783_s1 + $0x3d8] sm:$0xff]  }
 0x1b3   : > { %10069 = vmatpush3.bf16.msra.mxu0 %v10877_v53  ;;  %v3705_v53 = vld [vmem:[#allocation2 + $0xd0] sm:$0xf] }
 0x1b4   : > { %10070 = vmatprep.subr.bf16.mxu0 %v10878_v54  ;;  %v3806_v63 = vshrl.u32 %v3705_v53, 16  ;;  %v3809_v39 = vshll.u32 %v3705_v53, 16  ;;  %v4001_v53 = vrot.slane %v3999_v42, 5 }
 0x1b6   : > { %v3811_v17 = vrot.slane %v3809_v39, 5  ;;  %v3983_v39 = vld [vmem:[#allocation2 + $0x108] sm:$0xf] }
 0x1b7   : > { %10071 = vmatpush3.bf16.msra.mxu0 %v10878_v54  ;;  %v3742_v54 = vor.u32 %v3741_v40, %v3738_v25  ;;  %v3815_v25 = vshll.u32 %v3706_v18, 16  ;;  %v10896_v40 = vld [vmem:[%s12783_s1 + $0x3c0] sm:$0xff]  }
 0x1b8   : > { %10072 = vmatprep.subr.bf16.mxu0 %v10879_v30 }
 0x1b9   : > { %v3743_v44 = vrot.slane %v3742_v54, 4 }
 0x1bb   : > { %10073 = vmatpush3.bf16.msra.mxu0 %v10879_v30  ;;  %v3745_v30 = vshll.u32 %v3696_v16, 16 }
 0x1bc   : > { %10074 = vmatprep.subr.bf16.mxu0 %v10881_v33 }
 0x1bd   : > { %v3747_v5 = vrot.slane %v3745_v30, 5  ;;  %v4015_v30 = vrot.slane %v4013_v45, 5 }
 0x1bf   : > { %10075 = vmatpush3.bf16.msra.mxu0 %v10881_v33  ;;  %v3973_v33 = vld [vmem:[#allocation2 + $0xe0] sm:$0xf]  ;;  %v3748_v27 = vsel %vm11186_vm11, %v3743_v44, %v3747_v5 }
 0x1c0   : > { %10076 = vmatprep.subr.bf16.mxu0 %v10883_v59  ;;  %v3990_v2 = vshrl.u32 %v3973_v33, 16 }
 0x1c3   : > { %10077 = vmatpush3.bf16.msra.mxu0 %v10883_v59  ;;  %v3795_v59 = vshll.u32 %v3703_v52, 16  ;;  %v3817_v52 = vrot.slane %v3815_v25, 5 }
 0x1c4   : > { %10086 = vmatprep.subr.bf16.mxu0 %v10885_v43 }
 0x1c5   : > { %v3797_v24 = vrot.slane %v3795_v59, 5  ;;  %v3977_v59 = vld [vmem:[#allocation2 + $0xf0] sm:$0xf] }
 0x1c6   : > { %10079 = vmatmul.mubr.bf16.vlgmr.msra.gmra.mrb[0].mxu0 %v10886_v6  ;;  %v3757_v6 = vrot.slane %v3756_v36, 4 }
 0x1c7   : > { %10087 = vmatpush3.bf16.msra.mxu0 %v10885_v43  ;;  %10082 = vmatprep.mubr.bf16.mxu0 %v10892_v7  ;;  %v3993_v43 = vshll.u32 %v3973_v33, 16  ;;  %v3761_v7 = vrot.slane %v3759_v55, 5  ;;  %v3798_v29 = vor.u32 %v3797_v24, %v3794_v13  ;;  %v10898_v33 = vld [vmem:[%s12783_s1 + $0x3d0] sm:$0xff]  }
 0x1c8   : > { %10088 = vmatprep.subr.bf16.mxu0 %v10887_v8 }
 0x1c9   : > { %v3995_v20 = vrot.slane %v3993_v43, 5  ;;  %v3762_v28 = vsel %vm11186_vm11, %v3757_v6, %v3761_v7  ;;  %v3799_v48 = vrot.slane %v3798_v29, 4  ;;  %v4060_v6 = vshrl.u32 %v3983_v39, 16 }
 0x1ca   : > { %v8844_v47 = vcombine.low %v3748_v27, %v3762_v28  ;;  %v4063_v7 = vshll.u32 %v3983_v39, 16  ;;  %v4074_v29 = vshrl.u32 %v3985_v14, 16  ;;  %v11906_v14 = vld [vmem:[%s12784_s2] sm:$0xff]  }
 0x1cb   : > { %10089 = vmatpush3.bf16.msra.mxu0 %v10887_v8  ;;  %v10895_v8 = vld [vmem:[%s12783_s1 + $0x3b8] sm:$0xff]   ;;  %v3804_v36 = vsel %vm11186_vm11, %v3799_v48, %v3803_v50  ;;  %v4062_v18 = vrot.slane %v4060_v6, 4  ;;  %v3986_v50 = vld [vmem:[#allocation2 + $0x114] sm:$0x1]  ;;  %v10904_v6 = vld [vmem:[%s12784_s2 + $0x40] sm:$0xff]  }
 0x1cc   : > { %10090 = vmatprep.subr.bf16.mxu0 %v10888_v0  ;;  %10134 = vmatprep.subr.bf16.mxu1 %v10904_v6 }
 0x1cd   : > { %10135 = vmatpush3.bf16.msra.mxu1 %v10904_v6 }
 0x1ce   : > { %10083 = vmatmul.mubr.bf16.gmra.mrb[4].mxu0 %v10894_v15  ;;  %v3808_v15 = vrot.slane %v3806_v63, 4  ;;  %v3981_v63 = vld [vmem:[#allocation2 + $0x100] sm:$0xf] }
 0x1cf   : > { %10091 = vmatpush3.bf16.msra.mxu0 %v10888_v0  ;;  %10102 = vmatprep.mubr.bf16.mxu0 %v8843_v19  ;;  %v3785_v0 = vrot.slane %v3784_v61, 4  ;;  %v3992_v19 = vrot.slane %v3990_v2, 4  ;;  %v3979_v61 = vld [vmem:[#allocation2 + $0xf8] sm:$0xf]  ;;  %v4021_v2 = vshll.u32 %v3977_v59, 16  ;;  %v4046_v44 = vshrl.u32 %v3981_v63, 16 }
 0x1d0   : > { %10092 = vmatprep.subr.bf16.mxu0 %v10889_v21  ;;  %v4032_v43 = vshrl.u32 %v3979_v61, 16  ;;  %v4049_v5 = vshll.u32 %v3981_v63, 16 }
 0x1d1   : > { %v3790_v35 = vsel %vm11186_vm11, %v3785_v0, %v3789_v10  ;;  %v3996_v41 = vor.u32 %v3995_v20, %v3992_v19  ;;  %v4023_v12 = vrot.slane %v4021_v2, 5  ;;  %v3978_v0 = vld [vmem:[#allocation2 + $0xf4] sm:$0x1]  ;;  %v3980_v10 = vld [vmem:[#allocation2 + $0xfc] sm:$0x1]  ;;  %v4065_v19 = vrot.slane %v4063_v7, 5 }
 0x1d2   : > { %v8845_v49 = vcombine.low %v3776_v34, %v3790_v35  ;;  %v4034_v13 = vrot.slane %v4032_v43, 4  ;;  %v3987_v20 = vld [vmem:[#allocation2 + $0x118] sm:$0xf]  ;;  %v4027_v26 = vshll.u32 %v3978_v0, 16  ;;  %v4041_v28 = vshll.u32 %v3980_v10, 16  ;;  %v10910_v0 = vld [vmem:[%s12784_s2 + $0x70] sm:$0xff]  }
 0x1d3   : > { %10093 = vmatpush3.bf16.msra.mxu0 %v10889_v21  ;;  %v4006_v21 = vrot.slane %v4004_v3, 4  ;;  %v3997_v46 = vrot.slane %v3996_v41, 4  ;;  %v4035_v3 = vshll.u32 %v3979_v61, 16  ;;  %v4088_v34 = vshrl.u32 %v3987_v20, 16  ;;  %v10911_v10 = vld [vmem:[%s12784_s2 + $0x78] sm:$0xff]  }
 0x1d4   : > { %10094 = vmatprep.subr.bf16.mxu0 %v10890_v38  ;;  %v4091_v35 = vshll.u32 %v3987_v20, 16  ;;  %v4066_v41 = vor.u32 %v4065_v19, %v4062_v18  ;;  %v11056_v7 = vmov 0  }
 0x1d5   : > { %v4010_v16 = vor.u32 %v4009_v22, %v4006_v21  ;;  %v4002_v37 = vsel %vm11186_vm11, %v3997_v46, %v4001_v53  ;;  %v4037_v24 = vrot.slane %v4035_v3, 5  ;;  %v3982_v21 = vld [vmem:[#allocation2 + $0x104] sm:$0x1]  ;;  %v3984_v22 = vld [vmem:[#allocation2 + $0x10c] sm:$0x1] }
 0x1d6   : > { %v4069_v42 = vshll.u32 %v3984_v22, 16  ;;  %v4093_v46 = vrot.slane %v4091_v35, 5  ;;  %4261 = vst [vmem:[#allocation3 + $0x18] sm:$0xf] %v11056_v7  ;;  %4262 = vst [vmem:[#allocation3 + $0x1c] sm:$0x1] %v11056_v7 }
 0x1d7   : > { %10095 = vmatpush3.bf16.msra.mxu0 %v10890_v38  ;;  %v3812_v38 = vor.u32 %v3811_v17, %v3808_v15  ;;  %v4011_v54 = vrot.slane %v4010_v16, 4  ;;  %v4048_v15 = vrot.slane %v4046_v44, 4  ;;  %v4051_v17 = vrot.slane %v4049_v5, 5  ;;  %v10903_v16 = vld [vmem:[%s12783_s1 + $0x3f8] sm:$0xff]   ;;  %4255 = vst [vmem:[#allocation3] sm:$0xf] %v11056_v7 }
 0x1d8   : > { %10096 = vmatprep.subr.bf16.mxu0 %v10891_v32  ;;  %v4038_v27 = vor.u32 %v4037_v24, %v4034_v13  ;;  %4256 = vst [vmem:[#allocation3 + $0x4] sm:$0x1] %v11056_v7  ;;  %4257 = vst [vmem:[#allocation3 + $0x8] sm:$0xf] %v11056_v7  ;;  %v10908_v13 = vld [vmem:[%s12784_s2 + $0x60] sm:$0xff]   ;;  %v10909_v24 = vld [vmem:[%s12784_s2 + $0x68] sm:$0xff]  }
 0x1d9   : > { %v3813_v51 = vrot.slane %v3812_v38, 4  ;;  %v4016_v56 = vsel %vm11186_vm11, %v4011_v54, %v4015_v30  ;;  %v10902_v38 = vld [vmem:[%s12783_s1 + $0x3f0] sm:$0xff]   ;;  %v4052_v25 = vor.u32 %v4051_v17, %v4048_v15  ;;  %v4067_v30 = vrot.slane %v4066_v41, 4  ;;  %4258 = vst [vmem:[#allocation3 + $0xc] sm:$0x1] %v11056_v7 }
 0x1da   : > { %v8871_v58 = vcombine.low %v4002_v37, %v4016_v56  ;;  %v4039_v48 = vrot.slane %v4038_v27, 4  ;;  %v4083_v37 = vshll.u32 %v3986_v50, 16  ;;  %4259 = vst [vmem:[#allocation3 + $0x10] sm:$0xf] %v11056_v7  ;;  %4260 = vst [vmem:[#allocation3 + $0x14] sm:$0x1] %v11056_v7 }
 0x1db   : > { %10097 = vmatpush3.bf16.msra.mxu0 %v10891_v32  ;;  %v10897_v32 = vld [vmem:[%s12783_s1 + $0x3c8] sm:$0xff]   ;;  %v3818_v55 = vsel %vm11186_vm11, %v3813_v51, %v3817_v52  ;;  %v4076_v51 = vrot.slane %v4074_v29, 4  ;;  %v4079_v52 = vrot.slane %v4077_v31, 5  ;;  %v4053_v53 = vrot.slane %v4052_v25, 4  ;;  %4263 = vst [vmem:[#allocation3 + $0x20] sm:$0xf] %v11056_v7 }
 0x1dc   : > { %10098 = vmatprep.subr.bf16.mxu0 %v10893_v1  ;;  %v8846_v57 = vcombine.low %v3804_v36, %v3818_v55  ;;  %v4071_v36 = vrot.slane %v4069_v42, 5  ;;  %v3988_v55 = vld [vmem:[#allocation2 + $0x11c] sm:$0x1]  ;;  %v4085_v39 = vrot.slane %v4083_v37, 5  ;;  %4264 = vst [vmem:[#allocation3 + $0x24] sm:$0x1] %v11056_v7 }
 0x1dd   : > { %4265 = vst [vmem:[#allocation3 + $0x28] sm:$0xf] %v11056_v7  ;;  %4266 = vst [vmem:[#allocation3 + $0x2c] sm:$0x1] %v11056_v7  ;;  %v4414_v41 = vld [vmem:[#allocation3 + $0x1c] sm:$0x1] }
 0x1de   : > { %4267 = vst [vmem:[#allocation3 + $0x30] sm:$0xf] %v11056_v7  ;;  %4268 = vst [vmem:[#allocation3 + $0x34] sm:$0x1] %v11056_v7  ;;  %v11909_v15 = vld [vmem:[#allocation3] sm:$0xf] }
 0x1df   : > { %10099 = vmatpush3.bf16.msra.mxu0 %v10893_v1  ;;  %v4018_v1 = vshrl.u32 %v3977_v59, 16  ;;  %v4097_v59 = vshll.u32 %v3988_v55, 16  ;;  %4269 = vst [vmem:[#allocation3 + $0x38] sm:$0xf] %v11056_v7  ;;  %4270 = vst [vmem:[#allocation3 + $0x3c] sm:$0x1] %v11056_v7 }
 0x1e0   : > { %10100 = vmatprep.subr.bf16.mxu0 %v10895_v8  ;;  %4271 = vst [vmem:[#allocation3 + $0x40] sm:$0xf] %v11056_v7  ;;  %4272 = vst [vmem:[#allocation3 + $0x44] sm:$0x1] %v11056_v7  ;;  %v4480_v20 = vshrl.u32 %v11909_v15, 16 }
 0x1e1   : > { %v4020_v11 = vrot.slane %v4018_v1, 4  ;;  %v4099_v3 = vrot.slane %v4097_v59, 5  ;;  %4273 = vst [vmem:[#allocation3 + $0x48] sm:$0xf] %v11056_v7  ;;  %4274 = vst [vmem:[#allocation3 + $0x4c] sm:$0x1] %v11056_v7 }
 0x1e2   : > { %v11913_v29 = vld [vmem:[#allocation3 + $0x4] sm:$0x1]  ;;  %v11915_v25 = vrot.slane %v4480_v20, 4  ;;  %v4408_v6 = vld [vmem:[#allocation3 + $0x14] sm:$0x1] }
 0x1e3   : > { %10101 = vmatpush3.bf16.msra.mxu0 %v10895_v8  ;;  %v10901_v8 = vld [vmem:[%s12783_s1 + $0x3e8] sm:$0xff]   ;;  %v4024_v23 = vor.u32 %v4023_v12, %v4020_v11  ;;  %v10906_v11 = vld [vmem:[%s12784_s2 + $0x50] sm:$0xff]   ;;  %v10907_v12 = vld [vmem:[%s12784_s2 + $0x58] sm:$0xff]  }
 0x1e4   : > { %10110 = vmatprep.subr.bf16.mxu0 %v10896_v40 }
 0x1e5   : > { %v4025_v45 = vrot.slane %v4024_v23, 4  ;;  %v4483_v23 = vshll.u32 %v11909_v15, 16 }
 0x1e6   : > { %10103 = vmatmul.mubr.bf16.vlgmr.msra.gmra.mrb[0].mxu0 %v8844_v47  ;;  %v4029_v47 = vrot.slane %v4027_v26, 5 }
 0x1e7   : > { %10111 = vmatpush3.bf16.msra.mxu0 %v10896_v40  ;;  %10106 = vmatprep.mubr.bf16.mxu0 %v8845_v49  ;;  %v4055_v40 = vshll.u32 %v3982_v21, 16  ;;  %v4043_v49 = vrot.slane %v4041_v28, 5 }
 0x1e8   : > { %10112 = vmatprep.subr.bf16.mxu0 %v10897_v32 }
 0x1e9   : > { %v4057_v54 = vrot.slane %v4055_v40, 5  ;;  %v4044_v56 = vsel %vm11186_vm11, %v4039_v48, %v4043_v49  ;;  %v4411_v40 = vld [vmem:[#allocation3 + $0x18] sm:$0xf] }
 0x1eb   : > { %10113 = vmatpush3.bf16.msra.mxu0 %v10897_v32  ;;  %v4090_v32 = vrot.slane %v4088_v34, 4  ;;  %v4058_v61 = vsel %vm11186_vm11, %v4053_v53, %v4057_v54 }
 0x1ec   : > { %10114 = vmatprep.subr.bf16.mxu0 %v10898_v33 }
 0x1ee   : > { %10107 = vmatmul.mubr.bf16.gmra.mrb[4].mxu0 %v8846_v57  ;;  %v4080_v57 = vor.u32 %v4079_v52, %v4076_v51  ;;  %v4399_v51 = vld [vmem:[#allocation3 + $0x8] sm:$0xf]  ;;  %v4402_v52 = vld [vmem:[#allocation3 + $0xc] sm:$0x1] }
 0x1ef   : > { %10115 = vmatpush3.bf16.msra.mxu0 %v10898_v33  ;;  %10126 = vmatprep.mubr.bf16.mxu0 %v8871_v58  ;;  %v4030_v33 = vsel %vm11186_vm11, %v4025_v45, %v4029_v47  ;;  %v4094_v58 = vor.u32 %v4093_v46, %v4090_v32  ;;  %v11917_v45 = vrot.slane %v4483_v23, 5  ;;  %v4489_v47 = vshll.u32 %v11913_v29, 16 }
 0x1f0   : > { %10116 = vmatprep.subr.bf16.mxu0 %v10899_v62  ;;  %v8872_v63 = vcombine.low %v4030_v33, %v4044_v56  ;;  %v4081_v2 = vrot.slane %v4080_v57, 4  ;;  %v4417_v57 = vld [vmem:[#allocation3 + $0x20] sm:$0xf] }
 0x1f1   : > { %v4095_v43 = vrot.slane %v4094_v58, 4 }
 0x1f3   : > { %10117 = vmatpush3.bf16.msra.mxu0 %v10899_v62  ;;  %v4072_v62 = vsel %vm11186_vm11, %v4067_v30, %v4071_v36  ;;  %v4100_v44 = vsel %vm11186_vm11, %v4095_v43, %v4099_v3 }
 0x1f4   : > { %10118 = vmatprep.subr.bf16.mxu0 %v10900_v4  ;;  %v8873_v1 = vcombine.low %v4058_v61, %v4072_v62 }
 0x1f7   : > { %10119 = vmatpush3.bf16.msra.mxu0 %v10900_v4  ;;  %v4086_v4 = vsel %vm11186_vm11, %v4081_v2, %v4085_v39 }
 0x1f8   : > { %10120 = vmatprep.subr.bf16.mxu0 %v10901_v8  ;;  %v8874_v5 = vcombine.low %v4086_v4, %v4100_v44 }
 0x1fb   : > { %10121 = vmatpush3.bf16.msra.mxu0 %v10901_v8  ;;  %v10905_v8 = vld [vmem:[%s12784_s2 + $0x48] sm:$0xff]  }
 0x1fc   : > { %10122 = vmatprep.subr.bf16.mxu0 %v10902_v38  ;;  %10136 = vmatprep.subr.bf16.mxu1 %v10905_v8 }
 0x1fd   : > { %10137 = vmatpush3.bf16.msra.mxu1 %v10905_v8 }
 0x1fe   : > { %10138 = vmatprep.subr.bf16.mxu1 %v10906_v11 }
 0x1ff   : > { %10123 = vmatpush3.bf16.msra.mxu0 %v10902_v38 }
 0x200   : > { %10124 = vmatprep.subr.bf16.mxu0 %v10903_v16 }
 0x201   : > { %10139 = vmatpush3.bf16.msra.mxu1 %v10906_v11 }
 0x202   : > { %10140 = vmatprep.subr.bf16.mxu1 %v10907_v12 }
 0x203   : > { %10125 = vmatpush3.bf16.msra.mxu0 %v10903_v16 }
 0x205   : > { %10141 = vmatpush3.bf16.msra.mxu1 %v10907_v12 }
 0x206   : > { %10127 = vmatmul.mubr.bf16.vlgmr.msra.gmra.mrb[0].mxu0 %v8872_v63  ;;  %10142 = vmatprep.subr.bf16.mxu1 %v10908_v13  ;;  %v4420_v63 = vld [vmem:[#allocation3 + $0x24] sm:$0x1] }
 0x207   : > { %10130 = vmatprep.mubr.bf16.mxu0 %v8873_v1 }
 0x209   : > { %10143 = vmatpush3.bf16.msra.mxu1 %v10908_v13 }
 0x20a   : > { %10144 = vmatprep.subr.bf16.mxu1 %v10909_v24 }
 0x20d   : > { %10145 = vmatpush3.bf16.msra.mxu1 %v10909_v24 }
 0x20e   : > { %10131 = vmatmul.mubr.bf16.gmra.mrb[4].mxu0 %v8874_v5  ;;  %10146 = vmatprep.subr.bf16.mxu1 %v10910_v0  ;;  %v4405_v5 = vld [vmem:[#allocation3 + $0x10] sm:$0xf] }
 0x211   : > { %10147 = vmatpush3.bf16.msra.mxu1 %v10910_v0 }
 0x212   : > { %10148 = vmatprep.subr.bf16.mxu1 %v10911_v10 }
 0x215   : > { %10149 = vmatpush3.bf16.msra.mxu1 %v10911_v10 }
 0x216   : > { %10158 = vmatprep.subr.bf16.mxu1 %v11906_v14 }
 0x2d9   : > { %v10128_v17 = vpop.f32.mrb[0].mxu0 }
 0x2da   : > { %v4277_v18 = vmax.f32 %v10128_v17, 0.0  ;;  %v4216_v19 = vpop.f32.mrb[1].mxu0 }
 0x2db   : > { %v4275_v21 = vmax.f32 %v4216_v19, 0.0  ;;  %v10129_v22 = vpop.f32.mrb[2].mxu0 }
 0x2dc   : > { %v9360_v26 = vpack.c.bf16 %v4277_v18, %v4277_v18  ;;  %v4278_v27 = vmax.f32 %v10129_v22, 0.0  ;;  %v4219_v28 = vpop.f32.mrb[3].mxu0 }
 0x2dd   : > { %v9358_v31 = vpack.c.bf16 %v4275_v21, %v4275_v21  ;;  %v4276_v34 = vmax.f32 %v4219_v28, 0.0 }
 0x2de   : > { %v4332_v35 = vshrl.u32 %v9360_v26, 16  ;;  %v9361_v38 = vpack.c.bf16 %v4278_v27, %v4278_v27  ;;  %v4335_v49 = vshll.u32 %v9360_v26, 16  ;;  %v4435_v26 = vld [vmem:[#allocation3 + $0x38] sm:$0xf]  ;;  %v4438_v27 = vld [vmem:[#allocation3 + $0x3c] sm:$0x1] }
 0x2df   : > { %v4316_v42 = vshrl.u32 %v9358_v31, 16  ;;  %v9359_v16 = vpack.c.bf16 %v4276_v34, %v4276_v34  ;;  %v4319_v50 = vshll.u32 %v9358_v31, 16 }
 0x2e0   : > { %v4334_v48 = vrot.slane %v4332_v35, 7  ;;  %v4340_v32 = vshrl.u32 %v9361_v38, 16  ;;  %v4343_v54 = vshll.u32 %v9361_v38, 16 }
 0x2e1   : > { %v4318_v53 = vrot.slane %v4316_v42, 7  ;;  %v4324_v30 = vshrl.u32 %v9359_v16, 16  ;;  %v4327_v36 = vshll.u32 %v9359_v16, 16  ;;  %v10132_v55 = vpop.f32.mrb[4].mxu0  ;;  %v4426_v42 = vld [vmem:[#allocation3 + $0x2c] sm:$0x1] }
 0x2e2   : > { %v4337_v33 = vor.u32 %v4335_v49, %v4334_v48  ;;  %v4338_v37 = vrot.slane %v4334_v48, 4  ;;  %v4342_v56 = vrot.slane %v4340_v32, 7  ;;  %v4281_v58 = vmax.f32 %v10132_v55, 0.0  ;;  %v4232_v59 = vpop.f32.mrb[5].mxu0  ;;  %v4432_v55 = vld [vmem:[#allocation3 + $0x34] sm:$0x1] }
 0x2e3   : > { %v4321_v61 = vor.u32 %v4319_v50, %v4318_v53  ;;  %v4322_v62 = vrot.slane %v4318_v53, 4  ;;  %v4326_v39 = vrot.slane %v4324_v30, 7  ;;  %v4279_v1 = vmax.f32 %v4232_v59, 0.0  ;;  %v10133_v2 = vpop.f32.mrb[6].mxu0  ;;  %v4444_v30 = vld [vmem:[#allocation3 + $0x44] sm:$0x1] }
 0x2e4   : > { %v4412_v43 = vsel %vm11922_vm7, %v4337_v33, %v4411_v40  ;;  %v4415_v3 = vsel %vm11156_vm4, %v4338_v37, %v4414_v41  ;;  %v4345_v4 = vor.u32 %v4343_v54, %v4342_v56  ;;  %v4346_v44 = vrot.slane %v4342_v56, 4  ;;  %v4235_v7 = vpop.f32.mrb[7].mxu0  ;;  %v4423_v41 = vld [vmem:[#allocation3 + $0x28] sm:$0xf]  ;;  %v4441_v54 = vld [vmem:[#allocation3 + $0x40] sm:$0xf] }
 0x2e5   : > { %4413 = vst [vmem:[#allocation3 + $0x18] sm:$0xf] %v4412_v43  ;;  %4416 = vst [vmem:[#allocation3 + $0x1c] sm:$0x1] %v4415_v3  ;;  %v4400_v8 = vsel %vm11922_vm7, %v4321_v61, %v4399_v51  ;;  %v4403_v11 = vsel %vm11156_vm4, %v4322_v62, %v4402_v52  ;;  %v4329_v12 = vor.u32 %v4327_v36, %v4326_v39  ;;  %v4330_v13 = vrot.slane %v4326_v39, 4 }
 0x2e6   : > { %4401 = vst [vmem:[#allocation3 + $0x8] sm:$0xf] %v4400_v8  ;;  %4404 = vst [vmem:[#allocation3 + $0xc] sm:$0x1] %v4403_v11  ;;  %v4418_v24 = vsel %vm11922_vm7, %v4345_v4, %v4417_v57  ;;  %v4421_v0 = vsel %vm11156_vm4, %v4346_v44, %v4420_v63  ;;  %v9364_v10 = vpack.c.bf16 %v4281_v58, %v4281_v58  ;;  %v4282_v20 = vmax.f32 %v10133_v2, 0.0 }
 0x2e7   : > { %v9362_v17 = vpack.c.bf16 %v4279_v1, %v4279_v1  ;;  %4419 = vst [vmem:[#allocation3 + $0x20] sm:$0xf] %v4418_v24  ;;  %4422 = vst [vmem:[#allocation3 + $0x24] sm:$0x1] %v4421_v0  ;;  %v4406_v18 = vsel %vm11922_vm7, %v4329_v12, %v4405_v5  ;;  %v4409_v19 = vsel %vm11156_vm4, %v4330_v13, %v4408_v6  ;;  %v4280_v21 = vmax.f32 %v4235_v7, 0.0 }
 0x2e8   : > { %4407 = vst [vmem:[#allocation3 + $0x10] sm:$0xf] %v4406_v18  ;;  %4410 = vst [vmem:[#allocation3 + $0x14] sm:$0x1] %v4409_v19  ;;  %v4364_v22 = vshrl.u32 %v9364_v10, 16  ;;  %v9365_v28 = vpack.c.bf16 %v4282_v20, %v4282_v20  ;;  %v4367_v35 = vshll.u32 %v9364_v10, 16  ;;  %v4486_v49 = vor.u32 %v11917_v45, %v11915_v25 }
 0x2e9   : > { %v4348_v23 = vshrl.u32 %v9362_v17, 16  ;;  %v9363_v31 = vpack.c.bf16 %v4280_v21, %v4280_v21  ;;  %v4351_v40 = vshll.u32 %v9362_v17, 16  ;;  %v11946_v50 = vrot.slane %v4489_v47, 5  ;;  %v4429_v36 = vld [vmem:[#allocation3 + $0x30] sm:$0xf] }
 0x2ea   : > { %v4366_v34 = vrot.slane %v4364_v22, 7  ;;  %v4372_v16 = vshrl.u32 %v9365_v28, 16  ;;  %v4375_v37 = vshll.u32 %v9365_v28, 16  ;;  %v4487_v4 = vrot.slane %v4486_v49, 4 }
 0x2eb   : > { %v4350_v38 = vrot.slane %v4348_v23, 7  ;;  %v4356_v48 = vshrl.u32 %v9363_v31, 16  ;;  %v4359_v57 = vshll.u32 %v9363_v31, 16 }
 0x2ec   : > { %v4369_v51 = vor.u32 %v4367_v35, %v4366_v34  ;;  %v4370_v52 = vrot.slane %v4366_v34, 4  ;;  %v4374_v33 = vrot.slane %v4372_v16, 7  ;;  %v11958_v61 = vld [vmem:[#allocation3 + $0x18] sm:$0xf]  ;;  %v4474_v3 = vld [vmem:[#allocation3 + $0x1c] sm:$0x1] }
 0x2ed   : > { %v4353_v32 = vor.u32 %v4351_v40, %v4350_v38  ;;  %v4354_v53 = vrot.slane %v4350_v38, 4  ;;  %v4358_v56 = vrot.slane %v4356_v48, 7  ;;  %v11948_v58 = vld [vmem:[#allocation3 + $0x8] sm:$0xf]  ;;  %v4472_v59 = vld [vmem:[#allocation3 + $0xc] sm:$0x1] }
 0x2ee   : > { %v4436_v25 = vsel %vm11922_vm7, %v4369_v51, %v4435_v26  ;;  %v4439_v29 = vsel %vm11156_vm4, %v4370_v52, %v4438_v27  ;;  %v4377_v62 = vor.u32 %v4375_v37, %v4374_v33  ;;  %v4378_v63 = vrot.slane %v4374_v33, 4  ;;  %v11973_v13 = vld [vmem:[#allocation3 + $0x20] sm:$0xf]  ;;  %v4475_v34 = vld [vmem:[#allocation3 + $0x24] sm:$0x1] }
 0x2ef   : > { %v4424_v45 = vsel %vm11922_vm7, %v4353_v32, %v4423_v41  ;;  %v4427_v47 = vsel %vm11156_vm4, %v4354_v53, %v4426_v42  ;;  %4437 = vst [vmem:[#allocation3 + $0x38] sm:$0xf] %v4436_v25  ;;  %4440 = vst [vmem:[#allocation3 + $0x3c] sm:$0x1] %v4439_v29  ;;  %v4361_v39 = vor.u32 %v4359_v57, %v4358_v56  ;;  %v4362_v1 = vrot.slane %v4358_v56, 4 }
 0x2f0   : > { %4425 = vst [vmem:[#allocation3 + $0x28] sm:$0xf] %v4424_v45  ;;  %4428 = vst [vmem:[#allocation3 + $0x2c] sm:$0x1] %v4427_v47  ;;  %v11960_v2 = vld [vmem:[#allocation3 + $0x10] sm:$0xf]  ;;  %v4442_v7 = vsel %vm11922_vm7, %v4377_v62, %v4441_v54  ;;  %v4445_v8 = vsel %vm11156_vm4, %v4378_v63, %v4444_v30  ;;  %v4492_v26 = vsel %vm11186_vm11, %v4487_v4, %v11946_v50 }
 0x2f1   : > { %v4473_v43 = vld [vmem:[#allocation3 + $0x14] sm:$0x1]  ;;  %v4494_v44 = vshrl.u32 %v11948_v58, 16  ;;  %v4497_v5 = vshll.u32 %v11948_v58, 16  ;;  %v4508_v6 = vshrl.u32 %v11960_v2, 16  ;;  %v4430_v11 = vsel %vm11922_vm7, %v4361_v39, %v4429_v36 }
 0x2f2   : > { %v4433_v12 = vsel %vm11156_vm4, %v4362_v1, %v4432_v55  ;;  %4443 = vst [vmem:[#allocation3 + $0x40] sm:$0xf] %v4442_v7  ;;  %4446 = vst [vmem:[#allocation3 + $0x44] sm:$0x1] %v4445_v8  ;;  %v4503_v10 = vshll.u32 %v4472_v59, 16  ;;  %v4511_v18 = vshll.u32 %v11960_v2, 16 }
 0x2f3   : > { %4431 = vst [vmem:[#allocation3 + $0x30] sm:$0xf] %v4430_v11  ;;  %4434 = vst [vmem:[#allocation3 + $0x34] sm:$0x1] %v4433_v12  ;;  %v4496_v24 = vrot.slane %v4494_v44, 4  ;;  %v4499_v0 = vrot.slane %v4497_v5, 5 }
 0x2f4   : > { %v4510_v17 = vrot.slane %v4508_v6, 4  ;;  %v4517_v19 = vshll.u32 %v4473_v43, 16  ;;  %v4522_v20 = vshrl.u32 %v11958_v61, 16  ;;  %v4525_v46 = vshll.u32 %v11958_v61, 16  ;;  %v10913_v1 = vld [vmem:[%s12784_s2 + $0x8] sm:$0xff]  }
 0x2f5   : > { %v4500_v21 = vor.u32 %v4499_v0, %v4496_v24  ;;  %v4531_v9 = vshll.u32 %v4474_v3, 16  ;;  %v4536_v22 = vshrl.u32 %v11973_v13, 16  ;;  %v4539_v23 = vshll.u32 %v11973_v13, 16 }
 0x2f6   : > { %v4513_v27 = vrot.slane %v4511_v18, 5  ;;  %v4524_v28 = vrot.slane %v4522_v20, 4  ;;  %v4527_v31 = vrot.slane %v4525_v46, 5  ;;  %v4505_v38 = vrot.slane %v4503_v10, 5  ;;  %v11991_v56 = vld [vmem:[#allocation3 + $0x38] sm:$0xf] }
 0x2f7   : > { %v4501_v35 = vrot.slane %v4500_v21, 4  ;;  %v4519_v40 = vrot.slane %v4517_v19, 5  ;;  %v4533_v41 = vrot.slane %v4531_v9, 5  ;;  %v11983_v42 = vld [vmem:[#allocation3 + $0x28] sm:$0xf]  ;;  %v4538_v51 = vrot.slane %v4536_v22, 4 }
 0x2f8   : > { %v4514_v16 = vor.u32 %v4513_v27, %v4510_v17  ;;  %v4528_v48 = vor.u32 %v4527_v31, %v4524_v28  ;;  %v4476_v49 = vld [vmem:[#allocation3 + $0x2c] sm:$0x1]  ;;  %v4541_v52 = vrot.slane %v4539_v23, 5  ;;  %v4545_v53 = vshll.u32 %v4475_v34, 16  ;;  %v4478_v5 = vld [vmem:[#allocation3 + $0x3c] sm:$0x1] }
 0x2f9   : > { %v4506_v32 = vsel %vm11186_vm11, %v4501_v35, %v4505_v38  ;;  %v4550_v50 = vshrl.u32 %v11983_v42, 16  ;;  %v4553_v54 = vshll.u32 %v11983_v42, 16  ;;  %v4559_v29 = vshll.u32 %v4476_v49, 16  ;;  %v10914_v18 = vld [vmem:[%s12784_s2 + $0x10] sm:$0xff]   ;;  %v10916_v28 = vld [vmem:[%s12784_s2 + $0x18] sm:$0xff]   ;;  %v10917_v38 = vld [vmem:[%s12784_s2 + $0x20] sm:$0xff]  }
 0x2fa   : > { %v8907_v30 = vcombine.low %v4492_v26, %v4506_v32  ;;  %v4515_v36 = vrot.slane %v4514_v16, 4  ;;  %v4529_v55 = vrot.slane %v4528_v48, 4  ;;  %v4542_v33 = vor.u32 %v4541_v52, %v4538_v51  ;;  %v11989_v37 = vld [vmem:[#allocation3 + $0x30] sm:$0xf]  ;;  %v4477_v62 = vld [vmem:[#allocation3 + $0x34] sm:$0x1] }
 0x2fb   : > { %v4552_v57 = vrot.slane %v4550_v50, 4  ;;  %v4555_v25 = vrot.slane %v4553_v54, 5  ;;  %v4564_v63 = vshrl.u32 %v11989_v37, 16  ;;  %v4567_v3 = vshll.u32 %v11989_v37, 16  ;;  %v10924_v48 = vld [vmem:[%s12784_s2 + $0x88] sm:$0xff]   ;;  %v10926_v51 = vld [vmem:[%s12784_s2 + $0x90] sm:$0xff]  }
 0x2fc   : > { %10150 = vmatprep.mubr.bf16.mxu1 %v8907_v30  ;;  %v4520_v45 = vsel %vm11186_vm11, %v4515_v36, %v4519_v40  ;;  %v4534_v47 = vsel %vm11186_vm11, %v4529_v55, %v4533_v41  ;;  %v4543_v59 = vrot.slane %v4542_v33, 4  ;;  %v4547_v4 = vrot.slane %v4545_v53, 5  ;;  %v10918_v40 = vld [vmem:[%s12784_s2 + $0x28] sm:$0xff]   ;;  %v10919_v41 = vld [vmem:[%s12784_s2 + $0x30] sm:$0xff]   ;;  %v10932_v36 = vld [vmem:[%s12784_s2 + $0xb8] sm:$0xff]  }
 0x2fd   : > { %v8908_v39 = vcombine.low %v4520_v45, %v4534_v47  ;;  %v4556_v43 = vor.u32 %v4555_v25, %v4552_v57  ;;  %v4561_v44 = vrot.slane %v4559_v29, 5  ;;  %v4566_v6 = vrot.slane %v4564_v63, 4  ;;  %v10927_v52 = vld [vmem:[#allocation3 + $0x8] ss:$8 sps:$4 sm:$0xff]   ;;  %v10934_v57 = vld [vmem:[%s12784_s2 + $0xc0] sm:$0xff]  }
 0x2fe   : > { %v4578_v7 = vshrl.u32 %v11991_v56, 16  ;;  %v4569_v11 = vrot.slane %v4567_v3, 5  ;;  %v4573_v12 = vshll.u32 %v4477_v62, 16  ;;  %v4581_v24 = vshll.u32 %v11991_v56, 16  ;;  %v5046_v32 = vld [vmem:[#allocation3 + $0x10] sm:$0xf] }
 0x2ff   : > { %10151 = vmatmul.mubr.bf16.vlgmr.msra.gmra.mrb[0].mxu1 %v8908_v39  ;;  %v4557_v8 = vrot.slane %v4556_v43, 4  ;;  %v4548_v0 = vsel %vm11186_vm11, %v4543_v59, %v4547_v4  ;;  %v4587_v46 = vshll.u32 %v4478_v5, 16  ;;  %v8919_v35 = vcombine.low %v11909_v15, %v11948_v58  ;;  %v10920_v15 = vld [vmem:[%s12784_s2 + $0x38] sm:$0xff]   ;;  %v10922_v58 = vld [vmem:[%s12784_s2 + $0x80] sm:$0xff]   ;;  %v10931_v53 = vld [vmem:[%s12784_s2 + $0xb0] sm:$0xff]  }
 0x300   : > { %10159 = vmatpush3.bf16.msra.mxu1 %v11906_v14  ;;  %v4580_v10 = vrot.slane %v4578_v7, 4  ;;  %v4570_v19 = vor.u32 %v4569_v11, %v4566_v6  ;;  %v4583_v20 = vrot.slane %v4581_v24, 5  ;;  %v4575_v22 = vrot.slane %v4573_v12, 5  ;;  %v5044_v50 = vld [vmem:[#allocation3 + $0x8] sm:$0xf]  ;;  %v10939_v24 = vld [vmem:[%s12784_s2 + $0xd8] sm:$0xff]  }
 0x301   : > { %10160 = vmatprep.subr.bf16.mxu1 %v10913_v1  ;;  %v4562_v17 = vsel %vm11186_vm11, %v4557_v8, %v4561_v44  ;;  %v4589_v27 = vrot.slane %v4587_v46, 5  ;;  %v8920_v16 = vcombine.low %v11960_v2, %v11958_v61  ;;  %v8921_v49 = vcombine.low %v11973_v13, %v11983_v42  ;;  %v10928_v2 = vld [vmem:[%s12784_s2 + $0x98] sm:$0xff]   ;;  %v10929_v13 = vld [vmem:[%s12784_s2 + $0xa0] sm:$0xff]   ;;  %v10930_v42 = vld [vmem:[%s12784_s2 + $0xa8] sm:$0xff]  }
 0x302   : > { %v8909_v21 = vcombine.low %v4548_v0, %v4562_v17  ;;  %v4571_v9 = vrot.slane %v4570_v19, 4  ;;  %v4584_v23 = vor.u32 %v4583_v20, %v4580_v10  ;;  %v8922_v61 = vcombine.low %v11989_v37, %v11991_v56  ;;  %v5047_v45 = vld [vmem:[#allocation3 + $0x14] sm:$0x1]  ;;  %v5045_v59 = vld [vmem:[#allocation3 + $0xc] sm:$0x1] }
 0x303   : > { %v5075_v54 = vshrl.u32 %v5046_v32, 16  ;;  %v5078_v30 = vshll.u32 %v5046_v32, 16  ;;  %v5061_v55 = vshrl.u32 %v5044_v50, 16  ;;  %v5064_v33 = vshll.u32 %v5044_v50, 16  ;;  %v10933_v62 = vld [vmem:[#allocation3 + $0x18] ss:$8 sps:$4 sm:$0xff]  }
 0x304   : > { %10161 = vmatpush3.bf16.msra.mxu1 %v10913_v1  ;;  %10154 = vmatprep.mubr.bf16.mxu1 %v8909_v21  ;;  %v4576_v14 = vsel %vm11186_vm11, %v4571_v9, %v4575_v22  ;;  %v4585_v26 = vrot.slane %v4584_v23, 4  ;;  %v10936_v63 = vld [vmem:[%s12784_s2 + $0xc8] sm:$0xff]   ;;  %v5084_v1 = vshll.u32 %v5047_v45, 16  ;;  %v5070_v3 = vshll.u32 %v5045_v59, 16  ;;  %v10938_v44 = vld [vmem:[%s12784_s2 + $0xd0] sm:$0xff]  }
 0x305   : > { %10162 = vmatprep.subr.bf16.mxu1 %v10914_v18  ;;  %v5077_v37 = vrot.slane %v5075_v54, 4  ;;  %v5080_v56 = vrot.slane %v5078_v30, 5  ;;  %v5063_v25 = vrot.slane %v5061_v55, 4  ;;  %v5066_v29 = vrot.slane %v5064_v33, 5  ;;  %v10935_v43 = vld [vmem:[#allocation3 + $0x28] ss:$8 sps:$4 sm:$0xff]  }
 0x306   : > { %v4590_v31 = vsel %vm11186_vm11, %v4585_v26, %v4589_v27  ;;  %v5086_v6 = vrot.slane %v5084_v1, 5  ;;  %v5072_v7 = vrot.slane %v5070_v3, 5  ;;  %v10937_v11 = vld [vmem:[#allocation3 + $0x38] ss:$8 sps:$4 sm:$0xff]   ;;  %v5054_v17 = vld [vmem:[#allocation3 + $0x30] sm:$0xf] }
 0x307   : > { %v8910_v34 = vcombine.low %v4576_v14, %v4590_v31  ;;  %v5081_v47 = vor.u32 %v5080_v56, %v5077_v37  ;;  %v5067_v39 = vor.u32 %v5066_v29, %v5063_v25  ;;  %v5050_v10 = vld [vmem:[#allocation3 + $0x20] sm:$0xf]  ;;  %v5048_v19 = vld [vmem:[#allocation3 + $0x18] sm:$0xf]  ;;  %v5052_v21 = vld [vmem:[#allocation3 + $0x28] sm:$0xf] }
 0x308   : > { %10163 = vmatpush3.bf16.msra.mxu1 %v10914_v18  ;;  %v10940_v18 = vld [vmem:[%s12784_s2 + $0xe0] sm:$0xff]   ;;  %v5103_v20 = vshrl.u32 %v5050_v10, 16  ;;  %v5106_v46 = vshll.u32 %v5050_v10, 16  ;;  %v5131_v9 = vshrl.u32 %v5054_v17, 16  ;;  %v5134_v22 = vshll.u32 %v5054_v17, 16  ;;  %v10941_v26 = vld [vmem:[%s12784_s2 + $0xe8] sm:$0xff]  }
 0x309   : > { %10164 = vmatprep.subr.bf16.mxu1 %v10916_v28  ;;  %10155 = vmatmul.mubr.bf16.gmra.mrb[4].mxu1 %v8910_v34  ;;  %v5082_v4 = vrot.slane %v5081_v47, 4  ;;  %v5068_v5 = vrot.slane %v5067_v39, 4  ;;  %v5089_v23 = vshrl.u32 %v5048_v19, 16  ;;  %v5092_v14 = vshll.u32 %v5048_v19, 16  ;;  %v5053_v54 = vld [vmem:[#allocation3 + $0x2c] sm:$0x1] }
 0x30a   : > { %10174 = vmatprep.mubr.bf16.mxu1 %v8919_v35  ;;  %v5117_v27 = vshrl.u32 %v5052_v21, 16  ;;  %v5105_v31 = vrot.slane %v5103_v20, 4  ;;  %v5108_v34 = vrot.slane %v5106_v46, 5  ;;  %v5133_v35 = vrot.slane %v5131_v9, 4  ;;  %v10943_v55 = vld [vmem:[%s12784_s2 + $0xf8] sm:$0xff]   ;;  %v10944_v1 = vld [vmem:[%s12784_s2 + $0x140] sm:$0xff]  }
 0x30b   : > { %v5087_v8 = vsel %vm11186_vm11, %v5082_v4, %v5086_v6  ;;  %v5073_v12 = vsel %vm11186_vm11, %v5068_v5, %v5072_v7  ;;  %v5126_v45 = vshll.u32 %v5053_v54, 16  ;;  %v5059_v4 = vld [vmem:[#allocation3 + $0x44] sm:$0x1]  ;;  %v5524_v19 = vld [vmem:[#allocation3 + $0x8] sm:$0xe]  ;;  %vm5547_vm4 = vcmask 1042432  }
 0x30c   : > { %10165 = vmatpush3.bf16.msra.mxu1 %v10916_v28  ;;  %v8975_v0 = vcombine.low %v5073_v12, %v5087_v8  ;;  %v5120_v28 = vshll.u32 %v5052_v21, 16  ;;  %v12096_v7 = vld [vmem:[#allocation3 + $0x4] sm:$0x1]  ;;  %v5057_v12 = vld [vmem:[#allocation3 + $0x3c] sm:$0x1]  ;;  %v5168_v17 = vshll.u32 %v5059_v4, 16  ;;  %vm12111_vm9 = vmor %vm5547_vm4, %vm5548_vm8 }
 0x30d   : > { %10166 = vmatprep.subr.bf16.mxu1 %v10917_v38  ;;  %v5128_v8 = vrot.slane %v5126_v45, 5  ;;  %v10945_v21 = vld [vmem:[%s12784_s2 + $0x148] sm:$0xff]   ;;  %v5525_v54 = vld [vmem:[#allocation3 + $0x10] sm:$0xe] }
 0x30e   : > { %v9005_v45 = vrot.slane %v5525_v54, 9 }
 0x310   : > { %10167 = vmatpush3.bf16.msra.mxu1 %v10917_v38  ;;  %v5136_v38 = vrot.slane %v5134_v22, 5  ;;  %v5154_v22 = vshll.u32 %v5057_v12, 16  ;;  %v12160_v12 = vld [vmem:[#allocation3 + $0x34] sm:$0x1] }
 0x311   : > { %10168 = vmatprep.subr.bf16.mxu1 %v10918_v40 }
 0x312   : > { %v5137_v32 = vor.u32 %v5136_v38, %v5133_v35  ;;  %v10946_v38 = vld [vmem:[%s12784_s2 + $0x150] sm:$0xff]  }
 0x314   : > { %10169 = vmatpush3.bf16.msra.mxu1 %v10918_v40  ;;  %v5058_v40 = vld [vmem:[#allocation3 + $0x40] sm:$0xf]  ;;  %v5138_v47 = vrot.slane %v5137_v32, 4  ;;  %v10950_v32 = vld [vmem:[%s12784_s2 + $0x170] sm:$0xff]  }
 0x315   : > { %10170 = vmatprep.subr.bf16.mxu1 %v10919_v41 }
 0x318   : > { %10171 = vmatpush3.bf16.msra.mxu1 %v10919_v41  ;;  %v10942_v41 = vld [vmem:[%s12784_s2 + $0xf0] sm:$0xff]  }
 0x319   : > { %10172 = vmatprep.subr.bf16.mxu1 %v10920_v15 }
 0x31c   : > { %10173 = vmatpush3.bf16.msra.mxu1 %v10920_v15  ;;  %v5091_v15 = vrot.slane %v5089_v23, 4 }
 0x31d   : > { %10182 = vmatprep.subr.bf16.mxu1 %v10922_v58 }
 0x31f   : > { %10175 = vmatmul.mubr.bf16.vlgmr.msra.gmra.mrb[0].mxu1 %v8920_v16  ;;  %v5051_v16 = vld [vmem:[#allocation3 + $0x24] sm:$0x1] }
 0x320   : > { %10178 = vmatprep.mubr.bf16.mxu1 %v8921_v49  ;;  %10183 = vmatpush3.bf16.msra.mxu1 %v10922_v58  ;;  %v5094_v58 = vrot.slane %v5092_v14, 5  ;;  %v5122_v49 = vrot.slane %v5120_v28, 5  ;;  %v5112_v50 = vshll.u32 %v5051_v16, 16 }
 0x321   : > { %10184 = vmatprep.subr.bf16.mxu1 %v10924_v48 }
 0x324   : > { %10185 = vmatpush3.bf16.msra.mxu1 %v10924_v48  ;;  %v5119_v48 = vrot.slane %v5117_v27, 4  ;;  %v9004_v27 = vrot.slane %v5524_v19, 9 }
 0x325   : > { %10186 = vmatprep.subr.bf16.mxu1 %v10926_v51 }
 0x326   : > { %v5123_v33 = vor.u32 %v5122_v49, %v5119_v48  ;;  %v10947_v49 = vld [vmem:[%s12784_s2 + $0x158] sm:$0xff]  }
 0x327   : > { %10179 = vmatmul.mubr.bf16.gmra.mrb[4].mxu1 %v8922_v61  ;;  %v5109_v61 = vor.u32 %v5108_v34, %v5105_v31  ;;  %v5170_v34 = vrot.slane %v5168_v17, 5 }
 0x328   : > { %10187 = vmatpush3.bf16.msra.mxu1 %v10926_v51  ;;  %10198 = vmatprep.mubr.bf16.mxu1 %v10927_v52  ;;  %v5056_v51 = vld [vmem:[#allocation3 + $0x38] sm:$0xf]  ;;  %v5159_v52 = vshrl.u32 %v5058_v40, 16 }
 0x329   : > { %10188 = vmatprep.subr.bf16.mxu1 %v10928_v2  ;;  %v5145_v30 = vshrl.u32 %v5056_v51, 16 }
 0x32a   : > { %v5161_v25 = vrot.slane %v5159_v52, 4  ;;  %v5378_v52 = vld [vmem:[#allocation3] sm:$0xf] }
 0x32c   : > { %10189 = vmatpush3.bf16.msra.mxu1 %v10928_v2  ;;  %v5055_v2 = vld [vmem:[#allocation3 + $0x34] sm:$0x1] }
 0x32d   : > { %10190 = vmatprep.subr.bf16.mxu1 %v10929_v13  ;;  %v5140_v37 = vshll.u32 %v5055_v2, 16  ;;  %v10949_v2 = vld [vmem:[%s12784_s2 + $0x168] sm:$0xff]  }
 0x32f   : > { %v5142_v3 = vrot.slane %v5140_v37, 5 }
 0x330   : > { %10191 = vmatpush3.bf16.msra.mxu1 %v10929_v13  ;;  %v5162_v13 = vshll.u32 %v5058_v40, 16  ;;  %v5156_v40 = vrot.slane %v5154_v22, 5  ;;  %v5530_v22 = vld [vmem:[#allocation3 + $0x38] sm:$0xe] }
 0x331   : > { %10192 = vmatprep.subr.bf16.mxu1 %v10930_v42 }
 0x332   : > { %v5164_v29 = vrot.slane %v5162_v13, 5  ;;  %v5380_v13 = vld [vmem:[#allocation3 + $0x8] sm:$0xf] }
 0x334   : > { %10193 = vmatpush3.bf16.msra.mxu1 %v10930_v42  ;;  %v5049_v42 = vld [vmem:[#allocation3 + $0x1c] sm:$0x1]  ;;  %v5165_v6 = vor.u32 %v5164_v29, %v5161_v25  ;;  %v5526_v25 = vld [vmem:[#allocation3 + $0x18] sm:$0xe] }
 0x335   : > { %10194 = vmatprep.subr.bf16.mxu1 %v10931_v53  ;;  %v5098_v56 = vshll.u32 %v5049_v42, 16  ;;  %v5395_v42 = vshrl.u32 %v5378_v52, 16 }
 0x336   : > { %v5166_v23 = vrot.slane %v5165_v6, 4 }
 0x337   : > { %v5397_v37 = vrot.slane %v5395_v42, 4 }
 0x338   : > { %10195 = vmatpush3.bf16.msra.mxu1 %v10931_v53  ;;  %v5095_v53 = vor.u32 %v5094_v58, %v5091_v15 }
 0x339   : > { %10196 = vmatprep.subr.bf16.mxu1 %v10932_v36 }
 0x33a   : > { %v5096_v59 = vrot.slane %v5095_v53, 4  ;;  %v5398_v53 = vshll.u32 %v5378_v52, 16  ;;  %v10956_v52 = vld [vmem:[%s12784_s2 + $0x120] sm:$0xff]  }
 0x33c   : > { %10197 = vmatpush3.bf16.msra.mxu1 %v10932_v36  ;;  %v5148_v36 = vshll.u32 %v5056_v51, 16  ;;  %v5400_v29 = vrot.slane %v5398_v53, 5  ;;  %v5386_v53 = vld [vmem:[#allocation3 + $0x20] sm:$0xf] }
 0x33d   : > { %10206 = vmatprep.subr.bf16.mxu1 %v10934_v57 }
 0x33e   : > { %v5150_v39 = vrot.slane %v5148_v36, 5  ;;  %v5412_v36 = vshll.u32 %v5380_v13, 16 }
 0x33f   : > { %10199 = vmatmul.mubr.bf16.vlgmr.msra.gmra.mrb[0].mxu1 %v10933_v62  ;;  %v5114_v62 = vrot.slane %v5112_v50, 5  ;;  %v12138_v50 = vld [vmem:[#allocation3 + $0x14] sm:$0x1] }
 0x340   : > { %10202 = vmatprep.mubr.bf16.mxu1 %v10935_v43  ;;  %10207 = vmatpush3.bf16.msra.mxu1 %v10934_v57  ;;  %v5110_v57 = vrot.slane %v5109_v61, 4  ;;  %v5124_v43 = vrot.slane %v5123_v33, 4  ;;  %v10948_v61 = vld [vmem:[%s12784_s2 + $0x160] sm:$0xff]   ;;  %v5528_v33 = vld [vmem:[#allocation3 + $0x28] sm:$0xe] }
 0x341   : > { %10208 = vmatprep.subr.bf16.mxu1 %v10936_v63 }
 0x342   : > { %v5115_v5 = vsel %vm11186_vm11, %v5110_v57, %v5114_v62  ;;  %v5129_v46 = vsel %vm11186_vm11, %v5124_v43, %v5128_v8  ;;  %v12145_v57 = vld [vmem:[#allocation3 + $0x1c] sm:$0x1]  ;;  %v5527_v62 = vld [vmem:[#allocation3 + $0x20] sm:$0xe]  ;;  %v5414_v43 = vrot.slane %v5412_v36, 5 }
 0x343   : > { %v5564_v4 = vrot.slane %v12145_v57, 5 }
 0x344   : > { %10209 = vmatpush3.bf16.msra.mxu1 %v10936_v63  ;;  %v5147_v63 = vrot.slane %v5145_v30, 4  ;;  %v5409_v30 = vshrl.u32 %v5380_v13, 16  ;;  %v5384_v13 = vld [vmem:[#allocation3 + $0x18] sm:$0xf] }
 0x345   : > { %10210 = vmatprep.subr.bf16.mxu1 %v10938_v44  ;;  %v5437_v36 = vshrl.u32 %v5384_v13, 16 }
 0x346   : > { %v5151_v10 = vor.u32 %v5150_v39, %v5147_v63  ;;  %v9008_v63 = vrot.slane %v5528_v33, 9  ;;  %v5440_v33 = vshll.u32 %v5384_v13, 16 }
 0x347   : > { %10203 = vmatmul.mubr.bf16.gmra.mrb[4].mxu1 %v10937_v11  ;;  %v5143_v11 = vsel %vm11186_vm11, %v5138_v47, %v5142_v3  ;;  %v5560_v47 = vrot.slane %v12138_v50, 5  ;;  %v9006_v3 = vrot.slane %v5526_v25, 9  ;;  %v5454_v25 = vshll.u32 %v5386_v53, 16 }
 0x348   : > { %10211 = vmatpush3.bf16.msra.mxu1 %v10938_v44  ;;  %10222 = vmatprep.mubr.bf16.mxu1 %v8975_v0  ;;  %v5100_v44 = vrot.slane %v5098_v56, 5  ;;  %v8977_v9 = vcombine.low %v5129_v46, %v5143_v11  ;;  %v5152_v31 = vrot.slane %v5151_v10, 4  ;;  %v10951_v56 = vld [vmem:[%s12784_s2 + $0x178] sm:$0xff]   ;;  %v5404_v10 = vshll.u32 %v12096_v7, 16 }
 0x349   : > { %10212 = vmatprep.subr.bf16.mxu1 %v10939_v24  ;;  %v5561_v8 = vsel %vm12111_vm9, %v9005_v45, %v5560_v47  ;;  %v5565_v19 = vsel %vm12111_vm9, %v9006_v3, %v5564_v4  ;;  %v10958_v3 = vld [vmem:[%s12784_s2 + $0x130] sm:$0xff]  }
 0x34a   : > { %v5101_v0 = vsel %vm11186_vm11, %v5096_v59, %v5100_v44  ;;  %v5157_v16 = vsel %vm11186_vm11, %v5152_v31, %v5156_v40  ;;  %v12148_v59 = vld [vmem:[#allocation3 + $0x24] sm:$0x1]  ;;  %v10954_v40 = vld [vmem:[%s12784_s2 + $0x110] sm:$0xff]  }
 0x34b   : > { %v8976_v20 = vcombine.low %v5101_v0, %v5115_v5  ;;  %v10952_v44 = vld [vmem:[%s12784_s2 + $0x100] sm:$0xff]   ;;  %v9007_v5 = vrot.slane %v5527_v62, 9  ;;  %v5568_v6 = vrot.slane %v12148_v59, 5  ;;  %v5401_v0 = vor.u32 %v5400_v29, %v5397_v37  ;;  %v10957_v37 = vld [vmem:[%s12784_s2 + $0x128] sm:$0xff]  }
 0x34c   : > { %10213 = vmatpush3.bf16.msra.mxu1 %v10939_v24  ;;  %v5523_v24 = vld [vmem:[#allocation3] sm:$0xe] }
 0x34d   : > { %10214 = vmatprep.subr.bf16.mxu1 %v10940_v18  ;;  %v9003_v14 = vrot.slane %v5523_v24, 9  ;;  %v5529_v24 = vld [vmem:[#allocation3 + $0x30] sm:$0xe]  ;;  %v5569_v46 = vsel %vm12111_vm9, %v9007_v5, %v5568_v6  ;;  %v5392_v5 = vld [vmem:[#allocation3 + $0x38] sm:$0xf] }
 0x350   : > { %10215 = vmatpush3.bf16.msra.mxu1 %v10940_v18  ;;  %v12102_v18 = vld [vmem:[#allocation3 + $0xc] sm:$0x1] }
 0x351   : > { %10216 = vmatprep.subr.bf16.mxu1 %v10941_v26  ;;  %v5556_v28 = vrot.slane %v12102_v18, 5 }
 0x353   : > { %v5557_v58 = vsel %vm12111_vm9, %v9004_v27, %v5556_v28  ;;  %v5402_v27 = vrot.slane %v5401_v0, 4  ;;  %v5406_v28 = vrot.slane %v5404_v10, 5 }
 0x354   : > { %10217 = vmatpush3.bf16.msra.mxu1 %v10941_v26  ;;  %v5552_v26 = vrot.slane %v12096_v7, 5 }
 0x355   : > { %10218 = vmatprep.subr.bf16.mxu1 %v10942_v41 }
 0x356   : > { %v5553_v15 = vsel %vm12111_vm9, %v9003_v14, %v5552_v26  ;;  %v9009_v14 = vrot.slane %v5529_v24, 9  ;;  %v5576_v26 = vrot.slane %v12160_v12, 5  ;;  %v5857_v24 = vld [vmem:[#allocation3 + $0x8] sm:$0xf] }
 0x357   : > { %v9027_v51 = vcombine.low %v5553_v15, %v5557_v58  ;;  %v5407_v15 = vsel %vm11186_vm11, %v5402_v27, %v5406_v28  ;;  %v5446_v28 = vshll.u32 %v12145_v57, 16 }
 0x358   : > { %10219 = vmatpush3.bf16.msra.mxu1 %v10942_v41  ;;  %v5171_v41 = vsel %vm11186_vm11, %v5166_v23, %v5170_v34  ;;  %v5418_v23 = vshll.u32 %v12102_v18, 16  ;;  %v9010_v34 = vrot.slane %v5530_v22, 9  ;;  %v5577_v18 = vsel %vm12111_vm9, %v9009_v14, %v5576_v26  ;;  %v10959_v22 = vld [vmem:[%s12784_s2 + $0x138] sm:$0xff]  }
 0x359   : > { %10220 = vmatprep.subr.bf16.mxu1 %v10943_v55  ;;  %v8978_v48 = vcombine.low %v5157_v16, %v5171_v41  ;;  %v5874_v14 = vshrl.u32 %v5857_v24, 16  ;;  %v5877_v26 = vshll.u32 %v5857_v24, 16 }
 0x35a   : > { %v5420_v41 = vrot.slane %v5418_v23, 5 }
 0x35b   : > { %v5876_v57 = vrot.slane %v5874_v14, 4 }
 0x35c   : > { %10221 = vmatpush3.bf16.msra.mxu1 %v10943_v55  ;;  %v12140_v55 = vld [vmem:[#allocation3 + $0x2c] sm:$0x1] }
 0x35d   : > { %10230 = vmatprep.subr.bf16.mxu1 %v10944_v1  ;;  %v5572_v39 = vrot.slane %v12140_v55, 5 }
 0x35f   : > { %10223 = vmatmul.mubr.bf16.vlgmr.msra.gmra.mrb[0].mxu1 %v8976_v20  ;;  %v5573_v11 = vsel %vm12111_vm9, %v9008_v63, %v5572_v39  ;;  %v9028_v20 = vcombine.low %v5561_v8, %v5565_v19  ;;  %v5390_v63 = vld [vmem:[#allocation3 + $0x30] sm:$0xf]  ;;  %v5439_v39 = vrot.slane %v5437_v36, 4  ;;  %v5432_v19 = vshll.u32 %v12138_v50, 16  ;;  %v12217_v36 = vld [vmem:[#allocation3 + $0xc] sm:$0x1] }
 0x360   : > { %10226 = vmatprep.mubr.bf16.mxu1 %v8977_v9  ;;  %10231 = vmatpush3.bf16.msra.mxu1 %v10944_v1  ;;  %v5411_v1 = vrot.slane %v5409_v30, 4  ;;  %v12170_v9 = vld [vmem:[#allocation3 + $0x3c] sm:$0x1]  ;;  %v9029_v7 = vcombine.low %v5569_v46, %v5573_v11  ;;  %v5479_v8 = vshrl.u32 %v5390_v63, 16  ;;  %v5482_v11 = vshll.u32 %v5390_v63, 16 }
 0x361   : > { %10232 = vmatprep.subr.bf16.mxu1 %v10945_v21  ;;  %v5493_v46 = vshrl.u32 %v5392_v5, 16  ;;  %v5460_v50 = vshll.u32 %v12148_v59, 16 }
 0x362   : > { %v5415_v17 = vor.u32 %v5414_v43, %v5411_v1  ;;  %v5442_v1 = vrot.slane %v5440_v33, 5  ;;  %v5859_v43 = vld [vmem:[#allocation3 + $0x10] sm:$0xf] }
 0x363   : > { %v5888_v10 = vshrl.u32 %v5859_v43, 16  ;;  %v5462_v13 = vrot.slane %v5460_v50, 5 }
 0x364   : > { %10233 = vmatpush3.bf16.msra.mxu1 %v10945_v21  ;;  %v10953_v21 = vld [vmem:[%s12784_s2 + $0x108] sm:$0xff]   ;;  %v5416_v31 = vrot.slane %v5415_v17, 4  ;;  %v5891_v17 = vshll.u32 %v5859_v43, 16  ;;  %v10962_v43 = vld [vmem:[%s12784_s2 + $0x190] sm:$0xff]  }
 0x365   : > { %10234 = vmatprep.subr.bf16.mxu1 %v10946_v38 }
 0x366   : > { %v5421_v58 = vsel %vm11186_vm11, %v5416_v31, %v5420_v41  ;;  %v5481_v31 = vrot.slane %v5479_v8, 4  ;;  %v5893_v41 = vrot.slane %v5891_v17, 5  ;;  %v5863_v17 = vld [vmem:[#allocation3 + $0x20] sm:$0xf] }
 0x367   : > { %10227 = vmatmul.mubr.bf16.gmra.mrb[4].mxu1 %v8978_v48 }
 0x368   : > { %10235 = vmatpush3.bf16.msra.mxu1 %v10946_v38  ;;  %10246 = vmatprep.mubr.bf16.mxu1 %v9027_v51  ;;  %v5580_v38 = vrot.slane %v12170_v9, 5  ;;  %v9039_v51 = vcombine.low %v5407_v15, %v5421_v58  ;;  %v5495_v58 = vrot.slane %v5493_v46, 4  ;;  %v5861_v46 = vld [vmem:[#allocation3 + $0x18] sm:$0xf] }
 0x369   : > { %10236 = vmatprep.subr.bf16.mxu1 %v10947_v49 }
 0x36a   : > { %v5581_v16 = vsel %vm12111_vm9, %v9010_v34, %v5580_v38  ;;  %v5484_v34 = vrot.slane %v5482_v11, 5 }
 0x36b   : > { %v9030_v48 = vcombine.low %v5577_v18, %v5581_v16  ;;  %v5434_v18 = vrot.slane %v5432_v19, 5  ;;  %v5867_v19 = vld [vmem:[#allocation3 + $0x30] sm:$0xf] }
 0x36c   : > { %10237 = vmatpush3.bf16.msra.mxu1 %v10947_v49  ;;  %v10955_v49 = vld [vmem:[%s12784_s2 + $0x118] sm:$0xff]   ;;  %v5947_v14 = vshll.u32 %v5867_v19, 16 }
 0x36d   : > { %10238 = vmatprep.subr.bf16.mxu1 %v10948_v61 }
 0x370   : > { %10239 = vmatpush3.bf16.msra.mxu1 %v10948_v61  ;;  %v5382_v61 = vld [vmem:[#allocation3 + $0x10] sm:$0xf] }
 0x371   : > { %10240 = vmatprep.subr.bf16.mxu1 %v10949_v2  ;;  %v5423_v42 = vshrl.u32 %v5382_v61, 16 }
 0x373   : > { %v5425_v29 = vrot.slane %v5423_v42, 4 }
 0x374   : > { %10241 = vmatpush3.bf16.msra.mxu1 %v10949_v2  ;;  %v5388_v2 = vld [vmem:[#allocation3 + $0x28] sm:$0xf] }
 0x375   : > { %10242 = vmatprep.subr.bf16.mxu1 %v10950_v32  ;;  %v5465_v54 = vshrl.u32 %v5388_v2, 16  ;;  %v5468_v30 = vshll.u32 %v5388_v2, 16  ;;  %v5485_v2 = vor.u32 %v5484_v34, %v5481_v31 }
 0x377   : > { %v5467_v47 = vrot.slane %v5465_v54, 4  ;;  %v5470_v62 = vrot.slane %v5468_v30, 5  ;;  %v5488_v54 = vshll.u32 %v12160_v12, 16  ;;  %v5883_v12 = vshll.u32 %v12217_v36, 16 }
 0x378   : > { %10243 = vmatpush3.bf16.msra.mxu1 %v10950_v32  ;;  %v5426_v32 = vshll.u32 %v5382_v61, 16  ;;  %v5448_v61 = vrot.slane %v5446_v28, 5  ;;  %v10965_v28 = vld [vmem:[%s12784_s2 + $0x1a8] sm:$0xff]  }
 0x379   : > { %10244 = vmatprep.subr.bf16.mxu1 %v10951_v56  ;;  %v5471_v0 = vor.u32 %v5470_v62, %v5467_v47  ;;  %v5486_v47 = vrot.slane %v5485_v2, 4  ;;  %v5502_v62 = vshll.u32 %v12170_v9, 16  ;;  %v5885_v9 = vrot.slane %v5883_v12, 5 }
 0x37a   : > { %v5428_v45 = vrot.slane %v5426_v32, 5 }
 0x37b   : > { %v5472_v38 = vrot.slane %v5471_v0, 4  ;;  %v10963_v0 = vld [vmem:[%s12784_s2 + $0x198] sm:$0xff]  }
 0x37c   : > { %10245 = vmatpush3.bf16.msra.mxu1 %v10951_v56  ;;  %v5451_v56 = vshrl.u32 %v5386_v53, 16  ;;  %v5429_v6 = vor.u32 %v5428_v45, %v5425_v29 }
 0x37d   : > { %10254 = vmatprep.subr.bf16.mxu1 %v10952_v44 }
 0x37e   : > { %v5453_v4 = vrot.slane %v5451_v56, 4  ;;  %v5430_v27 = vrot.slane %v5429_v6, 4  ;;  %v10961_v56 = vld [vmem:[%s12784_s2 + $0x188] sm:$0xff]  }
 0x37f   : > { %10247 = vmatmul.mubr.bf16.vlgmr.msra.gmra.mrb[8].mxu1 %v9028_v20  ;;  %v5443_v20 = vor.u32 %v5442_v1, %v5439_v39  ;;  %v5490_v39 = vrot.slane %v5488_v54, 5  ;;  %v12257_v54 = vld [vmem:[#allocation3 + $0x2c] sm:$0x1] }
 0x380   : > { %10250 = vmatprep.mubr.bf16.mxu1 %v9029_v7  ;;  %10255 = vmatpush3.bf16.msra.mxu1 %v10952_v44  ;;  %v5456_v44 = vrot.slane %v5454_v25, 5  ;;  %v5474_v7 = vshll.u32 %v12140_v55, 16  ;;  %v10960_v55 = vld [vmem:[%s12784_s2 + $0x180] sm:$0xff]   ;;  %v5435_v59 = vsel %vm11186_vm11, %v5430_v27, %v5434_v18  ;;  %v5905_v27 = vshll.u32 %v5861_v46, 16 }
 0x381   : > { %10256 = vmatprep.subr.bf16.mxu1 %v10953_v21  ;;  %v5444_v15 = vrot.slane %v5443_v20, 4  ;;  %v10964_v20 = vld [vmem:[%s12784_s2 + $0x1a0] sm:$0xff]   ;;  %v5939_v12 = vshll.u32 %v12257_v54, 16 }
 0x382   : > { %v5457_v23 = vor.u32 %v5456_v44, %v5453_v4  ;;  %v5491_v44 = vsel %vm11186_vm11, %v5486_v47, %v5490_v39  ;;  %v5871_v18 = vld [vmem:[#allocation3 + $0x40] sm:$0xf] }
 0x383   : > { %v5449_v53 = vsel %vm11186_vm11, %v5444_v15, %v5448_v61  ;;  %v12247_v15 = vld [vmem:[#allocation3 + $0x24] sm:$0x1]  ;;  %v5972_v61 = vshrl.u32 %v5871_v18, 16  ;;  %v5975_v2 = vshll.u32 %v5871_v18, 16 }
 0x384   : > { %10257 = vmatpush3.bf16.msra.mxu1 %v10953_v21  ;;  %v5496_v21 = vshll.u32 %v5392_v5, 16  ;;  %v9040_v33 = vcombine.low %v5435_v59, %v5449_v53  ;;  %v5504_v5 = vrot.slane %v5502_v62, 5  ;;  %v12252_v59 = vld [vmem:[#allocation3 + $0x34] sm:$0x1]  ;;  %v5925_v53 = vshll.u32 %v12247_v15, 16 }
 0x385   : > { %10258 = vmatprep.subr.bf16.mxu1 %v10954_v40  ;;  %v5974_v47 = vrot.slane %v5972_v61, 4  ;;  %v5977_v62 = vrot.slane %v5975_v2, 5  ;;  %v12307_v61 = vld [vmem:[#allocation3 + $0x10] sm:$0xf] }
 0x386   : > { %v5498_v16 = vrot.slane %v5496_v21, 5  ;;  %v5916_v21 = vshrl.u32 %v5863_v17, 16  ;;  %v10974_v2 = vld [vmem:[%s12784_s2 + $0x1f0] sm:$0xff]  }
 0x387   : > { %10251 = vmatmul.mubr.bf16.gmra.mrb[12].mxu1 %v9030_v48  ;;  %v5458_v48 = vrot.slane %v5457_v23, 4  ;;  %v5865_v23 = vld [vmem:[#allocation3 + $0x28] sm:$0xf] }
 0x388   : > { %10259 = vmatpush3.bf16.msra.mxu1 %v10954_v40  ;;  %10270 = vmatprep.mubr.bf16.mxu1 %v9039_v51  ;;  %v5890_v40 = vrot.slane %v5888_v10, 4  ;;  %v5879_v51 = vrot.slane %v5877_v26, 5  ;;  %v5499_v30 = vor.u32 %v5498_v16, %v5495_v58  ;;  %v5902_v26 = vshrl.u32 %v5861_v46, 16  ;;  %v6140_v46 = vld [vmem:[#allocation3 + $0x10] sm:$0xe] }
 0x389   : > { %10260 = vmatprep.subr.bf16.mxu1 %v10955_v49  ;;  %v5930_v31 = vshrl.u32 %v5865_v23, 16  ;;  %v5933_v34 = vshll.u32 %v5865_v23, 16  ;;  %v5918_v50 = vrot.slane %v5916_v21, 4  ;;  %v5907_v16 = vrot.slane %v5905_v27, 5  ;;  %v10969_v23 = vld [vmem:[%s12784_s2 + $0x1c8] sm:$0xff]  }
 0x38a   : > { %v5894_v32 = vor.u32 %v5893_v41, %v5890_v40  ;;  %v5880_v25 = vor.u32 %v5879_v51, %v5876_v57  ;;  %v5500_v1 = vrot.slane %v5499_v30, 4  ;;  %v5949_v41 = vrot.slane %v5947_v14, 5  ;;  %v5869_v57 = vld [vmem:[#allocation3 + $0x38] sm:$0xf]  ;;  %v6139_v27 = vld [vmem:[#allocation3 + $0x8] sm:$0xe] }
 0x38b   : > { %v5904_v58 = vrot.slane %v5902_v26, 4  ;;  %v5958_v30 = vshrl.u32 %v5869_v57, 16 }
 0x38c   : > { %10261 = vmatpush3.bf16.msra.mxu1 %v10955_v49  ;;  %v5476_v49 = vrot.slane %v5474_v7, 5  ;;  %v5895_v63 = vrot.slane %v5894_v32, 4  ;;  %v5505_v8 = vsel %vm11186_vm11, %v5500_v1, %v5504_v5  ;;  %v5944_v7 = vshrl.u32 %v5867_v19, 16 }
 0x38d   : > { %10262 = vmatprep.subr.bf16.mxu1 %v10956_v52  ;;  %v9042_v11 = vcombine.low %v5491_v44, %v5505_v8  ;;  %v5908_v32 = vor.u32 %v5907_v16, %v5904_v58  ;;  %v5927_v1 = vrot.slane %v5925_v53, 5  ;;  %v6449_v53 = vshrl.u32 %v12307_v61, 16 }
 0x38e   : > { %v5477_v42 = vsel %vm11186_vm11, %v5472_v38, %v5476_v49  ;;  %v5946_v40 = vrot.slane %v5944_v7, 4  ;;  %v5935_v49 = vrot.slane %v5933_v34, 5 }
 0x38f   : > { %v5909_v39 = vrot.slane %v5908_v32, 4  ;;  %v6142_v32 = vld [vmem:[#allocation3 + $0x20] sm:$0xe] }
 0x390   : > { %10263 = vmatpush3.bf16.msra.mxu1 %v10956_v52  ;;  %v12210_v52 = vld [vmem:[#allocation3 + $0x14] sm:$0x1] }
 0x391   : > { %10264 = vmatprep.subr.bf16.mxu1 %v10957_v37  ;;  %v5897_v29 = vshll.u32 %v12210_v52, 16 }
 0x393   : > { %v5899_v4 = vrot.slane %v5897_v29, 5 }
 0x394   : > { %10265 = vmatpush3.bf16.msra.mxu1 %v10957_v37  ;;  %v5463_v37 = vsel %vm11186_vm11, %v5458_v48, %v5462_v13  ;;  %v5932_v48 = vrot.slane %v5930_v31, 4  ;;  %v12254_v13 = vld [vmem:[#allocation3 + $0x1c] sm:$0x1]  ;;  %v6169_v31 = vrot.slane %v12210_v52, 5 }
 0x395   : > { %10266 = vmatprep.subr.bf16.mxu1 %v10958_v3  ;;  %v9041_v45 = vcombine.low %v5463_v37, %v5477_v42  ;;  %v5900_v6 = vsel %vm11186_vm11, %v5895_v63, %v5899_v4  ;;  %v5950_v42 = vor.u32 %v5949_v41, %v5946_v40  ;;  %v10967_v37 = vld [vmem:[%s12784_s2 + $0x1b8] sm:$0xff]   ;;  %v5911_v29 = vshll.u32 %v12254_v13, 16  ;;  %v10968_v4 = vld [vmem:[%s12784_s2 + $0x1c0] sm:$0xff]  }
 0x396   : > { %v9079_v40 = vrot.slane %v6139_v27, 9  ;;  %v6165_v41 = vrot.slane %v12217_v36, 5  ;;  %v10971_v36 = vld [vmem:[%s12784_s2 + $0x1d8] sm:$0xff]  }
 0x397   : > { %v5951_v63 = vrot.slane %v5950_v42, 4  ;;  %v12312_v42 = vld [vmem:[#allocation3 + $0x8] sm:$0xf] }
 0x398   : > { %10267 = vmatpush3.bf16.msra.mxu1 %v10958_v3  ;;  %v5881_v3 = vrot.slane %v5880_v25, 4  ;;  %v5953_v25 = vshll.u32 %v12252_v59, 16 }
 0x399   : > { %10268 = vmatprep.subr.bf16.mxu1 %v10959_v22 }
 0x39a   : > { %v5886_v24 = vsel %vm11186_vm11, %v5881_v3, %v5885_v9  ;;  %v5955_v5 = vrot.slane %v5953_v25, 5  ;;  %v12268_v9 = vld [vmem:[#allocation3 + $0x44] sm:$0x1]  ;;  %v6435_v25 = vshrl.u32 %v12312_v42, 16 }
 0x39b   : > { %v9067_v10 = vcombine.low %v5886_v24, %v5900_v6  ;;  %v5913_v6 = vrot.slane %v5911_v29, 5  ;;  %v5941_v24 = vrot.slane %v5939_v12, 5  ;;  %v6438_v29 = vshll.u32 %v12312_v42, 16 }
 0x39c   : > { %10269 = vmatpush3.bf16.msra.mxu1 %v10959_v22  ;;  %v5919_v22 = vshll.u32 %v5863_v17, 16 }
 0x39d   : > { %10278 = vmatprep.subr.bf16.mxu1 %v10960_v55  ;;  %v5914_v17 = vsel %vm11186_vm11, %v5909_v39, %v5913_v6  ;;  %v6451_v39 = vrot.slane %v6449_v53, 4  ;;  %v6437_v6 = vrot.slane %v6435_v25, 4 }
 0x39e   : > { %v5921_v38 = vrot.slane %v5919_v22, 5 }
 0x39f   : > { %10271 = vmatmul.mubr.bf16.vlgmr.msra.gmra.mrb[8].mxu1 %v9040_v33  ;;  %v5961_v33 = vshll.u32 %v5869_v57, 16  ;;  %v10972_v57 = vld [vmem:[%s12784_s2 + $0x1e0] sm:$0xff]  }
 0x3a0   : > { %10274 = vmatprep.mubr.bf16.mxu1 %v9041_v45  ;;  %10279 = vmatpush3.bf16.msra.mxu1 %v10960_v55  ;;  %v10966_v55 = vld [vmem:[%s12784_s2 + $0x1b0] sm:$0xff]   ;;  %v5922_v51 = vor.u32 %v5921_v38, %v5918_v50 }
 0x3a1   : > { %10280 = vmatprep.subr.bf16.mxu1 %v10961_v56  ;;  %v5963_v3 = vrot.slane %v5961_v33, 5  ;;  %v10970_v38 = vld [vmem:[%s12784_s2 + $0x1d0] sm:$0xff]  }
 0x3a2   : > { %v5923_v45 = vrot.slane %v5922_v51, 4  ;;  %v10973_v51 = vld [vmem:[%s12784_s2 + $0x1e8] sm:$0xff]   ;;  %v6144_v33 = vld [vmem:[#allocation3 + $0x30] sm:$0xe] }
 0x3a3   : > { %v9084_v12 = vrot.slane %v6144_v33, 9 }
 0x3a4   : > { %10281 = vmatpush3.bf16.msra.mxu1 %v10961_v56  ;;  %v5936_v56 = vor.u32 %v5935_v49, %v5932_v48  ;;  %v5928_v8 = vsel %vm11186_vm11, %v5923_v45, %v5927_v1  ;;  %v6166_v48 = vsel %vm12111_vm9, %v9079_v40, %v6165_v41  ;;  %v9082_v45 = vrot.slane %v6142_v32, 9 }
 0x3a5   : > { %10282 = vmatprep.subr.bf16.mxu1 %v10962_v43  ;;  %v9068_v21 = vcombine.low %v5914_v17, %v5928_v8  ;;  %v6426_v17 = vld [vmem:[#allocation3 + $0xc] sm:$0x1] }
 0x3a6   : > { %v5937_v44 = vrot.slane %v5936_v56, 4  ;;  %v6141_v56 = vld [vmem:[#allocation3 + $0x18] sm:$0xe] }
 0x3a7   : > { %10275 = vmatmul.mubr.bf16.gmra.mrb[12].mxu1 %v9042_v11  ;;  %v5978_v11 = vor.u32 %v5977_v62, %v5974_v47  ;;  %v6177_v47 = vrot.slane %v12247_v15, 5  ;;  %v6143_v62 = vld [vmem:[#allocation3 + $0x28] sm:$0xe]  ;;  %v6440_v15 = vrot.slane %v6438_v29, 5 }
 0x3a8   : > { %10283 = vmatpush3.bf16.msra.mxu1 %v10962_v43  ;;  %10294 = vmatprep.mubr.bf16.mxu1 %v9067_v10  ;;  %v5960_v43 = vrot.slane %v5958_v30, 4  ;;  %v12274_v10 = vld [vmem:[#allocation3 + $0x3c] sm:$0x1]  ;;  %v5942_v22 = vsel %vm11186_vm11, %v5937_v44, %v5941_v24  ;;  %v6452_v30 = vshll.u32 %v12307_v61, 16  ;;  %v9083_v44 = vrot.slane %v6143_v62, 9 }
 0x3a9   : > { %10284 = vmatprep.subr.bf16.mxu1 %v10963_v0  ;;  %v5967_v14 = vshll.u32 %v12274_v10, 16  ;;  %v5979_v26 = vrot.slane %v5978_v11, 4  ;;  %v6178_v8 = vsel %vm12111_vm9, %v9082_v45, %v6177_v47  ;;  %v6146_v24 = vld [vmem:[#allocation3 + $0x40] sm:$0xe] }
 0x3aa   : > { %v5964_v19 = vor.u32 %v5963_v3, %v5960_v43  ;;  %v6454_v1 = vrot.slane %v6452_v30, 5  ;;  %v9081_v43 = vrot.slane %v6141_v56, 9  ;;  %v6173_v3 = vrot.slane %v12254_v13, 5 }
 0x3ab   : > { %v5969_v18 = vrot.slane %v5967_v14, 5  ;;  %v6193_v14 = vrot.slane %v12268_v9, 5 }
 0x3ac   : > { %10285 = vmatpush3.bf16.msra.mxu1 %v10963_v0  ;;  %v5956_v0 = vsel %vm11186_vm11, %v5951_v63, %v5955_v5  ;;  %v5965_v34 = vrot.slane %v5964_v19, 4  ;;  %v6185_v63 = vrot.slane %v12252_v59, 5  ;;  %v6181_v5 = vrot.slane %v12257_v54, 5  ;;  %v6427_v59 = vld [vmem:[#allocation3 + $0x14] sm:$0x1] }
 0x3ad   : > { %10286 = vmatprep.subr.bf16.mxu1 %v10964_v20  ;;  %v9069_v7 = vcombine.low %v5942_v22, %v5956_v0  ;;  %v6455_v0 = vor.u32 %v6454_v1, %v6451_v39  ;;  %v6174_v13 = vsel %vm12111_vm9, %v9081_v43, %v6173_v3  ;;  %v6458_v22 = vshll.u32 %v6427_v59, 16  ;;  %v10982_v43 = vld [vmem:[%s12784_s2 + $0x270] sm:$0xff]   ;;  %v6428_v59 = vld [vmem:[#allocation3 + $0x1c] sm:$0x1] }
 0x3ae   : > { %v5970_v52 = vsel %vm11186_vm11, %v5965_v34, %v5969_v18  ;;  %v6186_v11 = vsel %vm12111_vm9, %v9084_v12, %v6185_v63  ;;  %v9104_v19 = vcombine.low %v6174_v13, %v6178_v8  ;;  %v6182_v54 = vsel %vm12111_vm9, %v9083_v44, %v6181_v5  ;;  %v10978_v34 = vld [vmem:[%s12784_s2 + $0x250] sm:$0xff]   ;;  %v12377_v12 = vld [vmem:[#allocation3 + $0x40] sm:$0xf]  ;;  %v6429_v63 = vld [vmem:[#allocation3 + $0x24] sm:$0x1] }
 0x3af   : > { %v6456_v27 = vrot.slane %v6455_v0, 4  ;;  %v12382_v44 = vld [vmem:[#allocation3 + $0x38] sm:$0xf]  ;;  %v6536_v8 = vshll.u32 %v12377_v12, 16  ;;  %v6486_v0 = vshll.u32 %v6429_v63, 16 }
 0x3b0   : > { %10287 = vmatpush3.bf16.msra.mxu1 %v10964_v20  ;;  %v5981_v20 = vshll.u32 %v12268_v9, 16  ;;  %v6430_v13 = vld [vmem:[#allocation3 + $0x2c] sm:$0x1] }
 0x3b1   : > { %10288 = vmatprep.subr.bf16.mxu1 %v10965_v28 }
 0x3b2   : > { %v5983_v50 = vrot.slane %v5981_v20, 5  ;;  %v10977_v20 = vld [vmem:[%s12784_s2 + $0x248] sm:$0xff]  }
 0x3b4   : > { %10289 = vmatpush3.bf16.msra.mxu1 %v10965_v28  ;;  %v9080_v28 = vrot.slane %v6140_v46, 9  ;;  %v5984_v58 = vsel %vm11186_vm11, %v5979_v26, %v5983_v50  ;;  %v6145_v46 = vld [vmem:[#allocation3 + $0x38] sm:$0xe]  ;;  %v6444_v26 = vshll.u32 %v6426_v17, 16  ;;  %v6519_v17 = vshrl.u32 %v12382_v44, 16 }
 0x3b5   : > { %10290 = vmatprep.subr.bf16.mxu1 %v10966_v55 }
 0x3b6   : > { %v6170_v16 = vsel %vm12111_vm9, %v9080_v28, %v6169_v31  ;;  %v9085_v28 = vrot.slane %v6145_v46, 9  ;;  %v6189_v31 = vrot.slane %v12274_v10, 5  ;;  %v6446_v41 = vrot.slane %v6444_v26, 5 }
 0x3b7   : > { %v9103_v49 = vcombine.low %v6166_v48, %v6170_v16  ;;  %v10979_v16 = vld [vmem:[%s12784_s2 + $0x258] sm:$0xff]   ;;  %v12357_v48 = vld [vmem:[#allocation3 + $0x30] sm:$0xf] }
 0x3b8   : > { %10291 = vmatpush3.bf16.msra.mxu1 %v10966_v55  ;;  %v9070_v55 = vcombine.low %v5970_v52, %v5984_v58  ;;  %v6190_v18 = vsel %vm12111_vm9, %v9085_v28, %v6189_v31  ;;  %v6505_v32 = vshrl.u32 %v12357_v48, 16  ;;  %v6508_v53 = vshll.u32 %v12357_v48, 16 }
 0x3b9   : > { %10292 = vmatprep.subr.bf16.mxu1 %v10967_v37  ;;  %v6488_v28 = vrot.slane %v6486_v0, 5  ;;  %v6521_v31 = vrot.slane %v6519_v17, 4  ;;  %v7002_v0 = vld [vmem:[#allocation3 + $0x18] sm:$0xf] }
 0x3ba   : > { %v6507_v47 = vrot.slane %v6505_v32, 4  ;;  %v6510_v62 = vrot.slane %v6508_v53, 5 }
 0x3bc   : > { %10293 = vmatpush3.bf16.msra.mxu1 %v10967_v37  ;;  %v10975_v37 = vld [vmem:[%s12784_s2 + $0x1f8] sm:$0xff]  }
 0x3bd   : > { %10302 = vmatprep.subr.bf16.mxu1 %v10968_v4 }
 0x3bf   : > { %10295 = vmatmul.mubr.bf16.vlgmr.msra.gmra.mrb[8].mxu1 %v9068_v21  ;;  %v6441_v21 = vor.u32 %v6440_v15, %v6437_v6  ;;  %v6431_v6 = vld [vmem:[#allocation3 + $0x34] sm:$0x1]  ;;  %v6533_v15 = vshrl.u32 %v12377_v12, 16 }
 0x3c0   : > { %10298 = vmatprep.mubr.bf16.mxu1 %v9069_v7  ;;  %10303 = vmatpush3.bf16.msra.mxu1 %v10968_v4  ;;  %v10976_v4 = vld [vmem:[%s12784_s2 + $0x240] sm:$0xff]   ;;  %v9086_v7 = vrot.slane %v6146_v24, 9  ;;  %v6514_v46 = vshll.u32 %v6431_v6, 16 }
 0x3c1   : > { %10304 = vmatprep.subr.bf16.mxu1 %v10969_v23  ;;  %v6442_v50 = vrot.slane %v6441_v21, 4  ;;  %v6472_v21 = vshll.u32 %v6428_v59, 16  ;;  %v10998_v59 = vld [vmem:[%s12784_s2 + $0x290] sm:$0xff]  }
 0x3c2   : > { %v6194_v40 = vsel %vm12111_vm9, %v9086_v7, %v6193_v14  ;;  %v6538_v7 = vrot.slane %v6536_v8, 5  ;;  %v6500_v14 = vshll.u32 %v6430_v13, 16 }
 0x3c3   : > { %v9106_v58 = vcombine.low %v6190_v18, %v6194_v40  ;;  %v6447_v10 = vsel %vm11186_vm11, %v6442_v50, %v6446_v41  ;;  %v10984_v50 = vld [vmem:[%s12784_s2 + $0x200] sm:$0xff]   ;;  %v6516_v40 = vrot.slane %v6514_v46, 5 }
 0x3c4   : > { %10305 = vmatpush3.bf16.msra.mxu1 %v10969_v23  ;;  %v9105_v23 = vcombine.low %v6182_v54, %v6186_v11  ;;  %v6511_v11 = vor.u32 %v6510_v62, %v6507_v47  ;;  %v10983_v54 = vld [vmem:[%s12784_s2 + $0x278] sm:$0xff]   ;;  %v6433_v41 = vld [vmem:[#allocation3 + $0x44] sm:$0x1] }
 0x3c5   : > { %10306 = vmatprep.subr.bf16.mxu1 %v10970_v38 }
 0x3c6   : > { %v6512_v26 = vrot.slane %v6511_v11, 4  ;;  %v10999_v11 = vld [vmem:[#allocation3 + $0x10] ss:$8 sps:$4 sm:$0xff]  }
 0x3c7   : > { %10299 = vmatmul.mubr.bf16.gmra.mrb[12].mxu1 %v9070_v55  ;;  %v12355_v55 = vld [vmem:[#allocation3 + $0x20] sm:$0xf] }
 0x3c8   : > { %10307 = vmatpush3.bf16.msra.mxu1 %v10970_v38  ;;  %10318 = vmatprep.mubr.bf16.mxu1 %v9103_v49  ;;  %v6460_v38 = vrot.slane %v6458_v22, 5  ;;  %v12362_v49 = vld [vmem:[#allocation3 + $0x18] sm:$0xf] }
 0x3c9   : > { %10308 = vmatprep.subr.bf16.mxu1 %v10971_v36  ;;  %v6463_v30 = vshrl.u32 %v12362_v49, 16  ;;  %v6466_v33 = vshll.u32 %v12362_v49, 16  ;;  %v9160_v6 = vcombine.low %v12362_v49, %v12355_v55  ;;  %v11000_v49 = vld [vmem:[%s12784_s2 + $0x298] sm:$0xff]  }
 0x3ca   : > { %v6461_v9 = vsel %vm11186_vm11, %v6456_v27, %v6460_v38 }
 0x3cb   : > { %v9147_v52 = vcombine.low %v6447_v10, %v6461_v9  ;;  %v6465_v39 = vrot.slane %v6463_v30, 4  ;;  %v6468_v1 = vrot.slane %v6466_v33, 5  ;;  %v6474_v9 = vrot.slane %v6472_v21, 5  ;;  %v10985_v30 = vld [vmem:[%s12784_s2 + $0x208] sm:$0xff]  }
 0x3cc   : > { %10309 = vmatpush3.bf16.msra.mxu1 %v10971_v36  ;;  %v10980_v36 = vld [vmem:[%s12784_s2 + $0x260] sm:$0xff]   ;;  %v6502_v10 = vrot.slane %v6500_v14, 5  ;;  %v7034_v14 = vshll.u32 %v7002_v0, 16 }
 0x3cd   : > { %10310 = vmatprep.subr.bf16.mxu1 %v10972_v57  ;;  %v6469_v24 = vor.u32 %v6468_v1, %v6465_v39  ;;  %v10988_v1 = vld [vmem:[%s12784_s2 + $0x218] sm:$0xff]  }
 0x3cf   : > { %v6470_v27 = vrot.slane %v6469_v24, 4 }
 0x3d0   : > { %10311 = vmatpush3.bf16.msra.mxu1 %v10972_v57  ;;  %v6477_v57 = vshrl.u32 %v12355_v55, 16 }
 0x3d1   : > { %10312 = vmatprep.subr.bf16.mxu1 %v10973_v51 }
 0x3d2   : > { %v6479_v29 = vrot.slane %v6477_v57, 4 }
 0x3d4   : > { %10313 = vmatpush3.bf16.msra.mxu1 %v10973_v51  ;;  %v6480_v51 = vshll.u32 %v12355_v55, 16  ;;  %v9162_v55 = vcombine.low %v12382_v44, %v12377_v12  ;;  %v7000_v12 = vld [vmem:[#allocation3 + $0x10] sm:$0xf] }
 0x3d5   : > { %10314 = vmatprep.subr.bf16.mxu1 %v10974_v2 }
 0x3d6   : > { %v6482_v45 = vrot.slane %v6480_v51, 5  ;;  %v6542_v51 = vshll.u32 %v6433_v41, 16 }
 0x3d8   : > { %10315 = vmatpush3.bf16.msra.mxu1 %v10974_v2  ;;  %v12366_v2 = vld [vmem:[#allocation3 + $0x28] sm:$0xf]  ;;  %v6483_v5 = vor.u32 %v6482_v45, %v6479_v29  ;;  %v6544_v29 = vrot.slane %v6542_v51, 5  ;;  %v10986_v45 = vld [vmem:[%s12784_s2 + $0x210] sm:$0xff]  }
 0x3d9   : > { %10316 = vmatprep.subr.bf16.mxu1 %v10975_v37  ;;  %v6491_v56 = vshrl.u32 %v12366_v2, 16  ;;  %v6494_v25 = vshll.u32 %v12366_v2, 16  ;;  %v9161_v8 = vcombine.low %v12366_v2, %v12357_v48  ;;  %v11001_v48 = vld [vmem:[%s12784_s2 + $0x2a0] sm:$0xff]   ;;  %v11002_v2 = vld [vmem:[%s12784_s2 + $0x2a8] sm:$0xff]  }
 0x3da   : > { %v6484_v22 = vrot.slane %v6483_v5, 4  ;;  %v10994_v5 = vld [vmem:[%s12784_s2 + $0x280] sm:$0xff]  }
 0x3db   : > { %v6493_v3 = vrot.slane %v6491_v56, 4 }
 0x3dc   : > { %10317 = vmatpush3.bf16.msra.mxu1 %v10975_v37  ;;  %v10981_v37 = vld [vmem:[%s12784_s2 + $0x268] sm:$0xff]   ;;  %v6489_v18 = vsel %vm11186_vm11, %v6484_v22, %v6488_v28 }
 0x3dd   : > { %10326 = vmatprep.subr.bf16.mxu1 %v10976_v4 }
 0x3df   : > { %10319 = vmatmul.mubr.bf16.vlgmr.msra.gmra.mrb[8].mxu1 %v9104_v19  ;;  %v6522_v19 = vshll.u32 %v12382_v44, 16  ;;  %v11003_v44 = vld [vmem:[%s12784_s2 + $0x2b0] sm:$0xff]  }
 0x3e0   : > { %10322 = vmatprep.mubr.bf16.mxu1 %v9105_v23  ;;  %10327 = vmatpush3.bf16.msra.mxu1 %v10976_v4  ;;  %v6496_v4 = vrot.slane %v6494_v25, 5  ;;  %v6535_v23 = vrot.slane %v6533_v15, 4  ;;  %v10996_v15 = vld [vmem:[%s12784_s2 + $0x288] sm:$0xff]  }
 0x3e1   : > { %10328 = vmatprep.subr.bf16.mxu1 %v10977_v20 }
 0x3e4   : > { %10329 = vmatpush3.bf16.msra.mxu1 %v10977_v20  ;;  %v6497_v20 = vor.u32 %v6496_v4, %v6493_v3  ;;  %v10989_v3 = vld [vmem:[%s12784_s2 + $0x220] sm:$0xff]   ;;  %v10990_v4 = vld [vmem:[%s12784_s2 + $0x228] sm:$0xff]  }
 0x3e5   : > { %10330 = vmatprep.subr.bf16.mxu1 %v10978_v34 }
 0x3e6   : > { %v6498_v38 = vrot.slane %v6497_v20, 4 }
 0x3e7   : > { %10323 = vmatmul.mubr.bf16.gmra.mrb[12].mxu1 %v9106_v58  ;;  %v6539_v58 = vor.u32 %v6538_v7, %v6535_v23  ;;  %v11004_v23 = vld [vmem:[%s12784_s2 + $0x2b8] sm:$0xff]   ;;  %v7031_v7 = vshrl.u32 %v7002_v0, 16 }
 0x3e8   : > { %10331 = vmatpush3.bf16.msra.mxu1 %v10978_v34  ;;  %10342 = vmatprep.mubr.bf16.mxu1 %v9147_v52  ;;  %v6524_v34 = vrot.slane %v6522_v19, 5  ;;  %v6432_v52 = vld [vmem:[#allocation3 + $0x3c] sm:$0x1]  ;;  %v6503_v53 = vsel %vm11186_vm11, %v6498_v38, %v6502_v10  ;;  %v7017_v19 = vshrl.u32 %v7000_v12, 16 }
 0x3e9   : > { %10332 = vmatprep.subr.bf16.mxu1 %v10979_v16  ;;  %v6540_v56 = vrot.slane %v6539_v58, 4  ;;  %v7036_v58 = vrot.slane %v7034_v14, 5  ;;  %v7010_v14 = vld [vmem:[#allocation3 + $0x38] sm:$0xf] }
 0x3ea   : > { %v6525_v57 = vor.u32 %v6524_v34, %v6521_v31  ;;  %v7019_v34 = vrot.slane %v7017_v19, 4  ;;  %v11011_v19 = vld [vmem:[%s12784_s2 + $0x2d8] sm:$0xff]  }
 0x3eb   : > { %v6545_v62 = vsel %vm11186_vm11, %v6540_v56, %v6544_v29  ;;  %v7003_v29 = vld [vmem:[#allocation3 + $0x1c] sm:$0x1] }
 0x3ec   : > { %10333 = vmatpush3.bf16.msra.mxu1 %v10979_v16  ;;  %v6517_v16 = vsel %vm11186_vm11, %v6512_v26, %v6516_v40  ;;  %v6526_v25 = vrot.slane %v6525_v57, 4  ;;  %v7001_v57 = vld [vmem:[#allocation3 + $0x14] sm:$0x1] }
 0x3ed   : > { %10334 = vmatprep.subr.bf16.mxu1 %v10980_v36  ;;  %v9149_v33 = vcombine.low %v6503_v53, %v6517_v16 }
 0x3f0   : > { %10335 = vmatpush3.bf16.msra.mxu1 %v10980_v36  ;;  %v6475_v36 = vsel %vm11186_vm11, %v6470_v27, %v6474_v9  ;;  %v11006_v9 = vld [vmem:[%s12784_s2 + $0x2c0] sm:$0xff]  }
 0x3f1   : > { %10336 = vmatprep.subr.bf16.mxu1 %v10981_v37  ;;  %v9148_v32 = vcombine.low %v6475_v36, %v6489_v18  ;;  %v7033_v18 = vrot.slane %v7031_v7, 4 }
 0x3f4   : > { %10337 = vmatpush3.bf16.msra.mxu1 %v10981_v37  ;;  %v6528_v37 = vshll.u32 %v6432_v52, 16 }
 0x3f5   : > { %10338 = vmatprep.subr.bf16.mxu1 %v10982_v43 }
 0x3f6   : > { %v6530_v47 = vrot.slane %v6528_v37, 5 }
 0x3f8   : > { %10339 = vmatpush3.bf16.msra.mxu1 %v10982_v43  ;;  %v6531_v63 = vsel %vm11186_vm11, %v6526_v25, %v6530_v47  ;;  %v9159_v43 = vcombine.low %v12312_v42, %v12307_v61  ;;  %v10991_v61 = vld [vmem:[%s12784_s2 + $0x230] sm:$0xff]   ;;  %v10992_v42 = vld [vmem:[%s12784_s2 + $0x238] sm:$0xff]  }
 0x3f9   : > { %10340 = vmatprep.subr.bf16.mxu1 %v10983_v54  ;;  %v9150_v39 = vcombine.low %v6531_v63, %v6545_v62  ;;  %v11005_v62 = vld [vmem:[#allocation3 + $0x20] ss:$8 sps:$4 sm:$0xff]  }
 0x3fa   : > { %v11008_v63 = vld [vmem:[%s12784_s2 + $0x2c8] sm:$0xff]  }
 0x3fc   : > { %10341 = vmatpush3.bf16.msra.mxu1 %v10983_v54  ;;  %v7020_v54 = vshll.u32 %v7000_v12, 16 }
 0x3fd   : > { %10350 = vmatprep.subr.bf16.mxu1 %v10984_v50 }
 0x3ff   : > { %10343 = vmatmul.mubr.bf16.vlgmr.msra.gmra.mrb[16].mxu1 %v9148_v32 }
 0x400   : > { %10346 = vmatprep.mubr.bf16.mxu1 %v9149_v33  ;;  %10351 = vmatpush3.bf16.msra.mxu1 %v10984_v50  ;;  %v7022_v50 = vrot.slane %v7020_v54, 5 }
 0x401   : > { %10352 = vmatprep.subr.bf16.mxu1 %v10985_v30 }
 0x402   : > { %v7023_v53 = vor.u32 %v7022_v50, %v7019_v34  ;;  %v7014_v34 = vld [vmem:[#allocation3 + $0x48] sm:$0xf] }
 0x403   : > { %v11013_v50 = vld [vmem:[%s12784_s2 + $0x2e8] sm:$0xff]  }
 0x404   : > { %10353 = vmatpush3.bf16.msra.mxu1 %v10985_v30 }
 0x405   : > { %10354 = vmatprep.subr.bf16.mxu1 %v10986_v45 }
 0x407   : > { %10347 = vmatmul.mubr.bf16.gmra.mrb[20].mxu1 %v9150_v39  ;;  %v7026_v39 = vshll.u32 %v7001_v57, 16  ;;  %v11014_v57 = vld [vmem:[%s12784_s2 + $0x2f0] sm:$0xff]  }
 0x408   : > { %10355 = vmatpush3.bf16.msra.mxu1 %v10986_v45  ;;  %10366 = vmatprep.mubr.bf16.mxu1 %v9159_v43 }
 0x409   : > { %10356 = vmatprep.subr.bf16.mxu1 %v10988_v1 }
 0x40c   : > { %10357 = vmatpush3.bf16.msra.mxu1 %v10988_v1  ;;  %v7037_v1 = vor.u32 %v7036_v58, %v7033_v18 }
 0x40d   : > { %10358 = vmatprep.subr.bf16.mxu1 %v10989_v3 }
 0x410   : > { %10359 = vmatpush3.bf16.msra.mxu1 %v10989_v3 }
 0x411   : > { %10360 = vmatprep.subr.bf16.mxu1 %v10990_v4 }
 0x414   : > { %10361 = vmatpush3.bf16.msra.mxu1 %v10990_v4 }
 0x415   : > { %10362 = vmatprep.subr.bf16.mxu1 %v10991_v61 }
 0x418   : > { %10363 = vmatpush3.bf16.msra.mxu1 %v10991_v61 }
 0x419   : > { %10364 = vmatprep.subr.bf16.mxu1 %v10992_v42 }
 0x41c   : > { %10365 = vmatpush3.bf16.msra.mxu1 %v10992_v42  ;;  %v11007_v42 = vld [vmem:[#allocation3 + $0x30] ss:$8 sps:$4 sm:$0xff]  }
 0x41d   : > { %10374 = vmatprep.subr.bf16.mxu1 %v10994_v5 }
 0x41f   : > { %10367 = vmatmul.mubr.bf16.vlgmr.msra.gmra.mrb[16].mxu1 %v9160_v6  ;;  %v7040_v6 = vshll.u32 %v7003_v29, 16 }
 0x420   : > { %10370 = vmatprep.mubr.bf16.mxu1 %v9161_v8  ;;  %10375 = vmatpush3.bf16.msra.mxu1 %v10994_v5  ;;  %v7024_v5 = vrot.slane %v7023_v53, 4 }
 0x421   : > { %10376 = vmatprep.subr.bf16.mxu1 %v10996_v15 }
 0x424   : > { %10377 = vmatpush3.bf16.msra.mxu1 %v10996_v15 }
 0x425   : > { %10378 = vmatprep.subr.bf16.mxu1 %v10998_v59 }
 0x427   : > { %10371 = vmatmul.mubr.bf16.gmra.mrb[20].mxu1 %v9162_v55  ;;  %v11010_v55 = vld [vmem:[%s12784_s2 + $0x2d0] sm:$0xff]  }
 0x428   : > { %10379 = vmatpush3.bf16.msra.mxu1 %v10998_v59  ;;  %10390 = vmatprep.mubr.bf16.mxu1 %v10999_v11  ;;  %v7038_v11 = vrot.slane %v7037_v1, 4 }
 0x429   : > { %10380 = vmatprep.subr.bf16.mxu1 %v11000_v49 }
 0x42c   : > { %10381 = vmatpush3.bf16.msra.mxu1 %v11000_v49  ;;  %v7028_v49 = vrot.slane %v7026_v39, 5  ;;  %v11015_v39 = vld [vmem:[%s12784_s2 + $0x2f8] sm:$0xff]  }
 0x42d   : > { %10382 = vmatprep.subr.bf16.mxu1 %v11001_v48 }
 0x430   : > { %10383 = vmatpush3.bf16.msra.mxu1 %v11001_v48 }
 0x431   : > { %10384 = vmatprep.subr.bf16.mxu1 %v11002_v2 }
 0x432   : > { %v10224_v24 = vpop.f32.mrb[0].mxu1 }
 0x433   : > { %v5328_v13 = vpack.c.bf16 %v10224_v24, %v10224_v24  ;;  %v5287_v17 = vpop.f32.mrb[1].mxu1  ;;  %v5358_v38 = vmul.f32 %v10224_v24, %v10224_v24 }
 0x434   : > { %v5326_v20 = vpack.c.bf16 %v5287_v17, %v5287_v17  ;;  %v10225_v46 = vpop.f32.mrb[2].mxu1  ;;  %10385 = vmatpush3.bf16.msra.mxu1 %v11002_v2  ;;  %v5356_v26 = vmul.f32 %v5287_v17, %v5287_v17 }
 0x435   : > { %5336 = vst [vmem:[%s12460_s30 + $0x20] sm:$0xf] %v5328_v13  ;;  %v5329_v21 = vpack.c.bf16 %v10225_v46, %v10225_v46  ;;  %v5290_v22 = vpop.f32.mrb[3].mxu1  ;;  %10386 = vmatprep.subr.bf16.mxu1 %v11003_v44  ;;  %v5359_v10 = vmul.f32 %v10225_v46, %v10225_v46  ;;  %v11009_v13 = vld [vmem:[#allocation3 + $0x40] ss:$8 sps:$4 sm:$0xff]  }
 0x436   : > { %5334 = vst [vmem:[%s12460_s30] sm:$0xf] %v5326_v20  ;;  %v5327_v27 = vpack.c.bf16 %v5290_v22, %v5290_v22  ;;  %v5342_v28 = vadd.f32 %v5290_v22, %v5287_v17  ;;  %v5357_v31 = vmul.f32 %v5290_v22, %v5290_v22  ;;  %v7006_v20 = vld [vmem:[#allocation3 + $0x28] sm:$0xf]  ;;  %v7004_v22 = vld [vmem:[#allocation3 + $0x20] sm:$0xf] }
 0x437   : > { %5337 = vst [vmem:[%s12460_s30 + $0x30] sm:$0xf] %v5329_v21  ;;  %v11012_v21 = vld [vmem:[%s12784_s2 + $0x2e0] sm:$0xff]   ;;  %v7062_v7 = vshll.u32 %v7006_v20, 16 }
 0x438   : > { %5335 = vst [vmem:[%s12460_s30 + $0x10] sm:$0xf] %v5327_v27  ;;  %v5343_v40 = vadd.f32 %v10224_v24, %v5342_v28  ;;  %v5364_v41 = vadd.f32 %v5357_v31, %v5356_v26  ;;  %10387 = vmatpush3.bf16.msra.mxu1 %v11003_v44  ;;  %v7029_v44 = vsel %vm11186_vm11, %v7024_v5, %v7028_v49  ;;  %v7042_v24 = vrot.slane %v7040_v6, 5 }
 0x439   : > { %10388 = vmatprep.subr.bf16.mxu1 %v11004_v23  ;;  %v7045_v28 = vshrl.u32 %v7004_v22, 16  ;;  %v7048_v31 = vshll.u32 %v7004_v22, 16 }
 0x43a   : > { %v5365_v16 = vadd.f32 %v5364_v41, %v5358_v38  ;;  %v10228_v52 = vpop.f32.mrb[4].mxu1  ;;  %v5344_v36 = vadd.f32 %v10225_v46, %v5343_v40  ;;  %v7043_v17 = vsel %vm11186_vm11, %v7038_v11, %v7042_v24  ;;  %v7008_v46 = vld [vmem:[#allocation3 + $0x30] sm:$0xf]  ;;  %v7064_v40 = vrot.slane %v7062_v7, 5  ;;  %v7013_v24 = vld [vmem:[#allocation3 + $0x44] sm:$0x1] }
 0x43b   : > { %v5332_v51 = vpack.c.bf16 %v10228_v52, %v10228_v52  ;;  %v5303_v32 = vpop.f32.mrb[5].mxu1  ;;  %v5362_v15 = vmul.f32 %v10228_v52, %v10228_v52  ;;  %v9215_v54 = vcombine.low %v7029_v44, %v7043_v17  ;;  %v7073_v26 = vshrl.u32 %v7008_v46, 16  ;;  %v7480_v7 = vld [vmem:[#allocation3 + $0x10] sm:$0xe] }
 0x43c   : > { %v5330_v30 = vpack.c.bf16 %v5303_v32, %v5303_v32  ;;  %v5345_v33 = vadd.f32 %v5344_v36, %v5303_v32  ;;  %v5360_v37 = vmul.f32 %v5303_v32, %v5303_v32  ;;  %v5366_v56 = vadd.f32 %v5365_v16, %v5359_v10  ;;  %v10229_v25 = vpop.f32.mrb[6].mxu1  ;;  %10389 = vmatpush3.bf16.msra.mxu1 %v11004_v23  ;;  %v7012_v10 = vld [vmem:[#allocation3 + $0x40] sm:$0xf] }
 0x43d   : > { %5340 = vst [vmem:[%s12460_s30 + $0x60] sm:$0xf] %v5332_v51  ;;  %v5333_v45 = vpack.c.bf16 %v10229_v25, %v10229_v25  ;;  %v5306_v47 = vpop.f32.mrb[7].mxu1  ;;  %10398 = vmatprep.subr.bf16.mxu1 %v11006_v9  ;;  %v5363_v48 = vmul.f32 %v10229_v25, %v10229_v25  ;;  %v7059_v23 = vshrl.u32 %v7006_v20, 16  ;;  %v7076_v27 = vshll.u32 %v7008_v46, 16 }
 0x43e   : > { %5338 = vst [vmem:[%s12460_s30 + $0x40] sm:$0xf] %v5330_v30  ;;  %v5367_v43 = vadd.f32 %v5366_v56, %v5360_v37  ;;  %v5331_v3 = vpack.c.bf16 %v5306_v47, %v5306_v47  ;;  %v5346_v4 = vadd.f32 %v5345_v33, %v5306_v47  ;;  %v5361_v61 = vmul.f32 %v5306_v47, %v5306_v47  ;;  %v7007_v51 = vld [vmem:[#allocation3 + $0x2c] sm:$0x1]  ;;  %v7005_v37 = vld [vmem:[#allocation3 + $0x24] sm:$0x1] }
 0x43f   : > { %5341 = vst [vmem:[%s12460_s30 + $0x70] sm:$0xf] %v5333_v45  ;;  %10391 = vmatmul.mubr.bf16.vlgmr.msra.gmra.mrb[16].mxu1 %v11005_v62  ;;  %v7061_v38 = vrot.slane %v7059_v23, 4  ;;  %v7087_v41 = vshrl.u32 %v7010_v14, 16  ;;  %v7075_v18 = vrot.slane %v7073_v26, 4  ;;  %v7078_v58 = vrot.slane %v7076_v27, 5 }
 0x440   : > { %5339 = vst [vmem:[%s12460_s30 + $0x50] sm:$0xf] %v5331_v3  ;;  %v5347_v8 = vadd.f32 %v10228_v52, %v5346_v4  ;;  %v5368_v59 = vadd.f32 %v5367_v43, %v5361_v61  ;;  %10394 = vmatprep.mubr.bf16.mxu1 %v11007_v42  ;;  %10399 = vmatpush3.bf16.msra.mxu1 %v11006_v9  ;;  %v7090_v9 = vshll.u32 %v7010_v14, 16  ;;  %v7047_v16 = vrot.slane %v7045_v28, 4  ;;  %v7009_v56 = vld [vmem:[#allocation3 + $0x34] sm:$0x1] }
 0x441   : > { %10400 = vmatprep.subr.bf16.mxu1 %v11008_v63  ;;  %v7050_v52 = vrot.slane %v7048_v31, 5  ;;  %v7115_v36 = vshrl.u32 %v7014_v34, 16  ;;  %v7065_v32 = vor.u32 %v7064_v40, %v7061_v38  ;;  %v7089_v53 = vrot.slane %v7087_v41, 4  ;;  %v12514_v23 = vld [vmem:[#allocation3 + $0x14] sm:$0x1]  ;;  %v11017_v27 = vld [vmem:[%s12784_s2 + $0x348] sm:$0xff]  }
 0x442   : > { %v12482_v2 = vadd.f32 %v10229_v25, %v5347_v8  ;;  %v5369_v12 = vadd.f32 %v5368_v59, %v5362_v15  ;;  %v7092_v30 = vrot.slane %v7090_v9, 5  ;;  %v7118_v33 = vshll.u32 %v7014_v34, 16  ;;  %v7015_v59 = vld [vmem:[#allocation3 + $0x4c] sm:$0x1]  ;;  %v7479_v40 = vld [vmem:[#allocation3 + $0x8] sm:$0xe] }
 0x443   : > { %v7101_v25 = vshrl.u32 %v7012_v10, 16  ;;  %v7104_v29 = vshll.u32 %v7012_v10, 16  ;;  %v7079_v45 = vor.u32 %v7078_v58, %v7075_v18  ;;  %v7051_v47 = vor.u32 %v7050_v52, %v7047_v16  ;;  %v12521_v28 = vld [vmem:[#allocation3 + $0xc] sm:$0x1]  ;;  %v11018_v58 = vld [vmem:[%s12784_s2 + $0x350] sm:$0xff]  }
 0x444   : > { %v12486_v0 = vadd.f32 %v5369_v12, %v5363_v48  ;;  %10401 = vmatpush3.bf16.msra.mxu1 %v11008_v63  ;;  %v7068_v62 = vshll.u32 %v7007_v51, 16  ;;  %v7011_v63 = vld [vmem:[#allocation3 + $0x3c] sm:$0x1]  ;;  %v7054_v1 = vshll.u32 %v7005_v37, 16  ;;  %v7066_v43 = vrot.slane %v7065_v32, 4  ;;  %v11016_v48 = vld [vmem:[%s12784_s2 + $0x340] sm:$0xff]  }
 0x445   : > { %10402 = vmatprep.subr.bf16.mxu1 %v11010_v55  ;;  %v7082_v3 = vshll.u32 %v7009_v56, 16  ;;  %v7093_v4 = vor.u32 %v7092_v30, %v7089_v53  ;;  %v7103_v61 = vrot.slane %v7101_v25, 4  ;;  %v7106_v42 = vrot.slane %v7104_v29, 5  ;;  %v11019_v53 = vld [vmem:[%s12784_s2 + $0x358] sm:$0xff]   ;;  %v11021_v37 = vld [vmem:[%s12784_s2 + $0x368] sm:$0xff]   ;;  %v11022_v25 = vld [vmem:[%s12784_s2 + $0x370] sm:$0xff]  }
 0x446   : > { %v7117_v5 = vrot.slane %v7115_v36, 4  ;;  %v7120_v6 = vrot.slane %v7118_v33, 5  ;;  %v7080_v15 = vrot.slane %v7079_v45, 4  ;;  %v7096_v8 = vshll.u32 %v7011_v63, 16  ;;  %v11020_v33 = vld [vmem:[%s12784_s2 + $0x360] sm:$0xff]  }
 0x447   : > { %10395 = vmatmul.mubr.bf16.gmra.mrb[20].mxu1 %v11009_v13  ;;  %v7070_v49 = vrot.slane %v7068_v62, 5  ;;  %v7056_v11 = vrot.slane %v7054_v1, 5  ;;  %v7084_v12 = vrot.slane %v7082_v3, 5  ;;  %v7094_v44 = vrot.slane %v7093_v4, 4  ;;  %v7336_v56 = vld [vmem:[#allocation3 + $0x10] sm:$0xf] }
 0x448   : > { %10403 = vmatpush3.bf16.msra.mxu1 %v11010_v55  ;;  %10414 = vmatprep.mubr.bf16.mxu1 %v9215_v54  ;;  %v7052_v55 = vrot.slane %v7051_v47, 4  ;;  %v7107_v17 = vor.u32 %v7106_v42, %v7103_v61  ;;  %v7124_v54 = vshll.u32 %v7015_v59, 16  ;;  %v7098_v46 = vrot.slane %v7096_v8, 5  ;;  %v7334_v29 = vld [vmem:[#allocation3 + $0x8] sm:$0xf]  ;;  %v11023_v3 = vld [vmem:[%s12784_s2 + $0x378] sm:$0xff]  }
 0x449   : > { %10404 = vmatprep.subr.bf16.mxu1 %v11011_v19  ;;  %v7071_v13 = vsel %vm11186_vm11, %v7066_v43, %v7070_v49  ;;  %v7085_v20 = vsel %vm11186_vm11, %v7080_v15, %v7084_v12  ;;  %v7110_v22 = vshll.u32 %v7013_v24, 16  ;;  %v9244_v41 = vrot.slane %v7480_v7, 9  ;;  %v12548_v45 = vld [vmem:[#allocation3 + $0x24] sm:$0x1]  ;;  %v7482_v47 = vld [vmem:[#allocation3 + $0x20] sm:$0xe] }
 0x44a   : > { %v7099_v26 = vsel %vm11186_vm11, %v7094_v44, %v7098_v46  ;;  %v7108_v34 = vrot.slane %v7107_v17, 4  ;;  %v7126_v38 = vrot.slane %v7124_v54, 5  ;;  %v7509_v9 = vrot.slane %v12514_v23, 5  ;;  %v12552_v1 = vld [vmem:[#allocation3 + $0x34] sm:$0x1]  ;;  %v11024_v44 = vld [vmem:[%s12784_s2 + $0x300] sm:$0xff]  }
 0x44b   : > { %v9217_v31 = vcombine.low %v7085_v20, %v7099_v26  ;;  %v7112_v18 = vrot.slane %v7110_v22, 5  ;;  %v9243_v10 = vrot.slane %v7479_v40, 9  ;;  %v7505_v16 = vrot.slane %v12521_v28, 5  ;;  %v7484_v43 = vld [vmem:[#allocation3 + $0x30] sm:$0xe] }
 0x44c   : > { %10405 = vmatpush3.bf16.msra.mxu1 %v11011_v19  ;;  %v7121_v19 = vor.u32 %v7120_v6, %v7117_v5  ;;  %v7365_v62 = vshrl.u32 %v7336_v56, 16  ;;  %v7368_v63 = vshll.u32 %v7336_v56, 16  ;;  %v7481_v4 = vld [vmem:[#allocation3 + $0x18] sm:$0xe]  ;;  %v7351_v61 = vshrl.u32 %v7334_v29, 16 }
 0x44d   : > { %10406 = vmatprep.subr.bf16.mxu1 %v11012_v21  ;;  %v7113_v52 = vsel %vm11186_vm11, %v7108_v34, %v7112_v18  ;;  %v7506_v32 = vsel %vm12111_vm9, %v9243_v10, %v7505_v16  ;;  %v7354_v42 = vshll.u32 %v7334_v29, 16  ;;  %v9246_v5 = vrot.slane %v7482_v47, 9  ;;  %v12558_v15 = vld [vmem:[#allocation3 + $0x2c] sm:$0x1]  ;;  %v7483_v8 = vld [vmem:[#allocation3 + $0x28] sm:$0xe] }
 0x44e   : > { %v7517_v6 = vrot.slane %v12548_v45, 5  ;;  %v9248_v59 = vrot.slane %v7484_v43, 9  ;;  %v7367_v49 = vrot.slane %v7365_v62, 4  ;;  %v9247_v24 = vrot.slane %v7483_v8, 9  ;;  %v12570_v46 = vld [vmem:[#allocation3 + $0x44] sm:$0x1] }
 0x44f   : > { %v7353_v17 = vrot.slane %v7351_v61, 4  ;;  %v7485_v34 = vld [vmem:[#allocation3 + $0x38] sm:$0xe]  ;;  %v7360_v18 = vshll.u32 %v12521_v28, 16  ;;  %v7340_v56 = vld [vmem:[#allocation3 + $0x20] sm:$0xf] }
 0x450   : > { %10407 = vmatpush3.bf16.msra.mxu1 %v11012_v21  ;;  %v7057_v21 = vsel %vm11186_vm11, %v7052_v55, %v7056_v11  ;;  %v7525_v55 = vrot.slane %v12552_v1, 5  ;;  %v7370_v11 = vrot.slane %v7368_v63, 5  ;;  %v7518_v54 = vsel %vm12111_vm9, %v9246_v5, %v7517_v6  ;;  %v11028_v29 = vld [vmem:[%s12784_s2 + $0x320] sm:$0xff]   ;;  %v7338_v47 = vld [vmem:[#allocation3 + $0x18] sm:$0xf]  ;;  %v11029_v5 = vld [vmem:[%s12784_s2 + $0x328] sm:$0xff]  }
 0x451   : > { %10408 = vmatprep.subr.bf16.mxu1 %v11013_v50  ;;  %v9216_v14 = vcombine.low %v7057_v21, %v7071_v13  ;;  %v7521_v13 = vrot.slane %v12558_v15, 5  ;;  %v7486_v21 = vld [vmem:[#allocation3 + $0x40] sm:$0xe]  ;;  %v9249_v10 = vrot.slane %v7485_v34, 9  ;;  %v7393_v62 = vshrl.u32 %v7340_v56, 16 }
 0x452   : > { %v7526_v20 = vsel %vm12111_vm9, %v9248_v59, %v7525_v55  ;;  %v7371_v22 = vor.u32 %v7370_v11, %v7367_v49  ;;  %v7396_v63 = vshll.u32 %v7340_v56, 16  ;;  %v7342_v43 = vld [vmem:[#allocation3 + $0x28] sm:$0xf]  ;;  %v7379_v61 = vshrl.u32 %v7338_v47, 16 }
 0x453   : > { %v7522_v26 = vsel %vm12111_vm9, %v9247_v24, %v7521_v13  ;;  %v7407_v6 = vshrl.u32 %v7342_v43, 16  ;;  %v7410_v8 = vshll.u32 %v7342_v43, 16  ;;  %v7395_v59 = vrot.slane %v7393_v62, 4  ;;  %v7810_v24 = vld [vmem:[#allocation3 + $0x10] sm:$0xf] }
 0x454   : > { %10409 = vmatpush3.bf16.msra.mxu1 %v11013_v50  ;;  %v7122_v50 = vrot.slane %v7121_v19, 4  ;;  %v7356_v19 = vrot.slane %v7354_v42, 5  ;;  %v9269_v40 = vcombine.low %v7522_v26, %v7526_v20  ;;  %v7382_v42 = vshll.u32 %v7338_v47, 16  ;;  %v11030_v13 = vld [vmem:[%s12784_s2 + $0x330] sm:$0xff]  }
 0x455   : > { %10410 = vmatprep.subr.bf16.mxu1 %v11014_v57  ;;  %v7398_v55 = vrot.slane %v7396_v63, 5  ;;  %v7827_v26 = vshrl.u32 %v7810_v24, 16  ;;  %v12620_v62 = vld [vmem:[#allocation3 + $0x14] sm:$0x1] }
 0x456   : > { %v7127_v36 = vsel %vm11186_vm11, %v7122_v50, %v7126_v38  ;;  %v7357_v50 = vor.u32 %v7356_v19, %v7353_v17  ;;  %v7374_v38 = vshll.u32 %v12514_v23, 16  ;;  %v7409_v17 = vrot.slane %v7407_v6, 4 }
 0x457   : > { %v9218_v51 = vcombine.low %v7113_v52, %v7127_v36  ;;  %v11026_v52 = vld [vmem:[%s12784_s2 + $0x310] sm:$0xff]   ;;  %v7412_v19 = vrot.slane %v7410_v8, 5  ;;  %v7399_v20 = vor.u32 %v7398_v55, %v7395_v59  ;;  %v11033_v59 = vld [vmem:[%s12784_s2 + $0x388] sm:$0xff]   ;;  %v7836_v55 = vshll.u32 %v12620_v62, 16 }
 0x458   : > { %10411 = vmatpush3.bf16.msra.mxu1 %v11014_v57  ;;  %v7510_v57 = vsel %vm12111_vm9, %v9244_v41, %v7509_v9  ;;  %v9250_v41 = vrot.slane %v7486_v21, 9  ;;  %v7533_v9 = vrot.slane %v12570_v46, 5  ;;  %v7358_v36 = vrot.slane %v7357_v50, 4 }
 0x459   : > { %10412 = vmatprep.subr.bf16.mxu1 %v11015_v39  ;;  %v9267_v30 = vcombine.low %v7506_v32, %v7510_v57  ;;  %v7376_v23 = vrot.slane %v7374_v38, 5  ;;  %v7402_v50 = vshll.u32 %v12548_v45, 16 }
 0x45a   : > { %v7534_v57 = vsel %vm12111_vm9, %v9250_v41, %v7533_v9  ;;  %v11031_v41 = vld [vmem:[%s12784_s2 + $0x338] sm:$0xff]   ;;  %v7413_v9 = vor.u32 %v7412_v19, %v7409_v17  ;;  %v7814_v17 = vld [vmem:[#allocation3 + $0x20] sm:$0xf]  ;;  %v11034_v19 = vld [vmem:[%s12784_s2 + $0x390] sm:$0xff]  }
 0x45c   : > { %10413 = vmatpush3.bf16.msra.mxu1 %v11015_v39  ;;  %v12550_v39 = vld [vmem:[#allocation3 + $0x1c] sm:$0x1] }
 0x45d   : > { %10422 = vmatprep.subr.bf16.mxu1 %v11016_v48  ;;  %v7513_v12 = vrot.slane %v12550_v39, 5 }
 0x45f   : > { %10415 = vmatmul.mubr.bf16.vlgmr.msra.gmra.mrb[16].mxu1 %v9216_v14 }
 0x460   : > { %10418 = vmatprep.mubr.bf16.mxu1 %v9217_v31  ;;  %10423 = vmatpush3.bf16.msra.mxu1 %v11016_v48  ;;  %v9245_v48 = vrot.slane %v7481_v4, 9  ;;  %v12579_v31 = vld [vmem:[#allocation3 + $0x3c] sm:$0x1] }
 0x461   : > { %10424 = vmatprep.subr.bf16.mxu1 %v11017_v27  ;;  %v7529_v16 = vrot.slane %v12579_v31, 5 }
 0x462   : > { %v7514_v7 = vsel %vm12111_vm9, %v9245_v48, %v7513_v12  ;;  %v7348_v48 = vld [vmem:[#allocation3 + $0x40] sm:$0xf]  ;;  %v7381_v12 = vrot.slane %v7379_v61, 4 }
 0x463   : > { %v9268_v14 = vcombine.low %v7514_v7, %v7518_v54  ;;  %v7530_v32 = vsel %vm12111_vm9, %v9249_v10, %v7529_v16  ;;  %v7346_v54 = vld [vmem:[#allocation3 + $0x38] sm:$0xf]  ;;  %v7449_v21 = vshrl.u32 %v7348_v48, 16  ;;  %v7388_v16 = vshll.u32 %v12550_v39, 16 }
 0x464   : > { %10425 = vmatpush3.bf16.msra.mxu1 %v11017_v27  ;;  %v11025_v27 = vld [vmem:[%s12784_s2 + $0x308] sm:$0xff]   ;;  %v7812_v7 = vld [vmem:[#allocation3 + $0x18] sm:$0xf]  ;;  %v7435_v38 = vshrl.u32 %v7346_v54, 16 }
 0x465   : > { %10426 = vmatprep.subr.bf16.mxu1 %v11018_v58  ;;  %v7844_v10 = vshll.u32 %v7812_v7, 16 }
 0x467   : > { %10419 = vmatmul.mubr.bf16.gmra.mrb[20].mxu1 %v9218_v51  ;;  %v7362_v51 = vrot.slane %v7360_v18, 5  ;;  %v7430_v18 = vshll.u32 %v12552_v1, 16  ;;  %v11032_v1 = vld [vmem:[%s12784_s2 + $0x380] sm:$0xff]  }
 0x468   : > { %10427 = vmatpush3.bf16.msra.mxu1 %v11018_v58  ;;  %10438 = vmatprep.mubr.bf16.mxu1 %v9267_v30  ;;  %v7372_v58 = vrot.slane %v7371_v22, 4  ;;  %v7452_v22 = vshll.u32 %v7348_v48, 16  ;;  %v7444_v48 = vshll.u32 %v12579_v31, 16 }
 0x469   : > { %10428 = vmatprep.subr.bf16.mxu1 %v11019_v53  ;;  %v7363_v30 = vsel %vm11186_vm11, %v7358_v36, %v7362_v51  ;;  %v7451_v36 = vrot.slane %v7449_v21, 4  ;;  %v7829_v51 = vrot.slane %v7827_v26, 4  ;;  %v7432_v39 = vrot.slane %v7430_v18, 5  ;;  %v7816_v21 = vld [vmem:[#allocation3 + $0x28] sm:$0xf] }
 0x46a   : > { %v7377_v28 = vsel %vm11186_vm11, %v7372_v58, %v7376_v23  ;;  %v7841_v58 = vshrl.u32 %v7812_v7, 16  ;;  %v7454_v23 = vrot.slane %v7452_v22, 5  ;;  %v7446_v22 = vrot.slane %v7444_v48, 5  ;;  %v7818_v18 = vld [vmem:[#allocation3 + $0x30] sm:$0xf] }
 0x46b   : > { %v7855_v26 = vshrl.u32 %v7814_v17, 16 }
 0x46c   : > { %10429 = vmatpush3.bf16.msra.mxu1 %v11019_v53  ;;  %v9270_v53 = vcombine.low %v7530_v32, %v7534_v57  ;;  %v7416_v57 = vshll.u32 %v12558_v15, 16  ;;  %v7843_v56 = vrot.slane %v7841_v58, 4  ;;  %v7455_v47 = vor.u32 %v7454_v23, %v7451_v36 }
 0x46d   : > { %10430 = vmatprep.subr.bf16.mxu1 %v11020_v33 }
 0x46e   : > { %v7418_v63 = vrot.slane %v7416_v57, 5  ;;  %v7883_v57 = vshrl.u32 %v7818_v18, 16 }
 0x470   : > { %10431 = vmatpush3.bf16.msra.mxu1 %v11020_v33  ;;  %v11027_v33 = vld [vmem:[%s12784_s2 + $0x318] sm:$0xff]  }
 0x471   : > { %10432 = vmatprep.subr.bf16.mxu1 %v11021_v37 }
 0x474   : > { %10433 = vmatpush3.bf16.msra.mxu1 %v11021_v37  ;;  %v9279_v37 = vcombine.low %v7363_v30, %v7377_v28  ;;  %v7437_v30 = vrot.slane %v7435_v38, 4  ;;  %v7872_v38 = vshll.u32 %v7816_v21, 16 }
 0x475   : > { %10434 = vmatprep.subr.bf16.mxu1 %v11022_v25 }
 0x476   : > { %v7874_v23 = vrot.slane %v7872_v38, 5 }
 0x478   : > { %10435 = vmatpush3.bf16.msra.mxu1 %v11022_v25  ;;  %v7344_v25 = vld [vmem:[#allocation3 + $0x30] sm:$0xf] }
 0x479   : > { %10436 = vmatprep.subr.bf16.mxu1 %v11023_v3  ;;  %v7424_v4 = vshll.u32 %v7344_v25, 16 }
 0x47b   : > { %v7426_v11 = vrot.slane %v7424_v4, 5 }
 0x47c   : > { %10437 = vmatpush3.bf16.msra.mxu1 %v11023_v3  ;;  %v7421_v3 = vshrl.u32 %v7344_v25, 16  ;;  %v7846_v25 = vrot.slane %v7844_v10, 5  ;;  %v7820_v10 = vld [vmem:[#allocation3 + $0x38] sm:$0xf] }
 0x47d   : > { %10446 = vmatprep.subr.bf16.mxu1 %v11024_v44 }
 0x47e   : > { %v7423_v49 = vrot.slane %v7421_v3, 4 }
 0x47f   : > { %10439 = vmatmul.mubr.bf16.vlgmr.msra.gmra.mrb[24].mxu1 %v9268_v14 }
 0x480   : > { %10442 = vmatprep.mubr.bf16.mxu1 %v9269_v40  ;;  %10447 = vmatpush3.bf16.msra.mxu1 %v11024_v44  ;;  %v7384_v44 = vrot.slane %v7382_v42, 5  ;;  %v7427_v14 = vor.u32 %v7426_v11, %v7423_v49  ;;  %v7438_v40 = vshll.u32 %v7346_v54, 16  ;;  %v7458_v42 = vshll.u32 %v12570_v46, 16 }
 0x481   : > { %10448 = vmatprep.subr.bf16.mxu1 %v11025_v27  ;;  %v7847_v49 = vor.u32 %v7846_v25, %v7843_v56  ;;  %v7838_v54 = vrot.slane %v7836_v55, 5  ;;  %v7822_v56 = vld [vmem:[#allocation3 + $0x40] sm:$0xf]  ;;  %v11037_v25 = vld [vmem:[%s12784_s2 + $0x3a8] sm:$0xff]  }
 0x482   : > { %v7385_v34 = vor.u32 %v7384_v44, %v7381_v12  ;;  %v7428_v45 = vrot.slane %v7427_v14, 4  ;;  %v7456_v12 = vrot.slane %v7455_v47, 4 }
 0x484   : > { %10449 = vmatpush3.bf16.msra.mxu1 %v11025_v27  ;;  %v7830_v27 = vshll.u32 %v7810_v24, 16  ;;  %v7386_v32 = vrot.slane %v7385_v34, 4  ;;  %v7433_v43 = vsel %vm11186_vm11, %v7428_v45, %v7432_v39  ;;  %v7886_v45 = vshll.u32 %v7818_v18, 16 }
 0x485   : > { %10450 = vmatprep.subr.bf16.mxu1 %v11026_v52 }
 0x486   : > { %v7832_v28 = vrot.slane %v7830_v27, 5  ;;  %v7858_v27 = vshll.u32 %v7814_v17, 16  ;;  %v7888_v39 = vrot.slane %v7886_v45, 5 }
 0x487   : > { %10443 = vmatmul.mubr.bf16.gmra.mrb[28].mxu1 %v9270_v53  ;;  %v7404_v53 = vrot.slane %v7402_v50, 5  ;;  %v7869_v50 = vshrl.u32 %v7816_v21, 16 }
 0x488   : > { %10451 = vmatpush3.bf16.msra.mxu1 %v11026_v52  ;;  %10462 = vmatprep.mubr.bf16.mxu1 %v9279_v37  ;;  %v7400_v52 = vrot.slane %v7399_v20, 4  ;;  %v7414_v37 = vrot.slane %v7413_v9, 4  ;;  %v7833_v3 = vor.u32 %v7832_v28, %v7829_v51  ;;  %v7848_v20 = vrot.slane %v7847_v49, 4  ;;  %v11035_v9 = vld [vmem:[%s12784_s2 + $0x398] sm:$0xff]   ;;  %v11036_v51 = vld [vmem:[%s12784_s2 + $0x3a0] sm:$0xff]  }
 0x489   : > { %10452 = vmatprep.subr.bf16.mxu1 %v11027_v33  ;;  %v7871_v36 = vrot.slane %v7869_v50, 4  ;;  %v7897_v28 = vshrl.u32 %v7820_v10, 16  ;;  %v12668_v49 = vld [vmem:[#allocation3 + $0x3c] sm:$0x1] }
 0x48a   : > { %v7405_v15 = vsel %vm11186_vm11, %v7400_v52, %v7404_v53  ;;  %v7419_v8 = vsel %vm11186_vm11, %v7414_v37, %v7418_v63  ;;  %v7834_v46 = vrot.slane %v7833_v3, 4  ;;  %v7860_v52 = vrot.slane %v7858_v27, 5  ;;  %v12654_v53 = vld [vmem:[#allocation3 + $0x24] sm:$0x1]  ;;  %v11039_v50 = vld [vmem:[%s12784_s2 + $0x3b8] sm:$0xff]  }
 0x48b   : > { %v9281_v11 = vcombine.low %v7419_v8, %v7433_v43  ;;  %v7885_v37 = vrot.slane %v7883_v57, 4  ;;  %v7824_v43 = vld [vmem:[#allocation3 + $0x48] sm:$0xf] }
 0x48c   : > { %10453 = vmatpush3.bf16.msra.mxu1 %v11027_v33  ;;  %v7440_v33 = vrot.slane %v7438_v40, 5  ;;  %v7839_v7 = vsel %vm11186_vm11, %v7834_v46, %v7838_v54  ;;  %v7925_v48 = vshrl.u32 %v7824_v43, 16 }
 0x48d   : > { %10454 = vmatprep.subr.bf16.mxu1 %v11028_v29  ;;  %v7889_v8 = vor.u32 %v7888_v39, %v7885_v37  ;;  %v11040_v37 = vld [vmem:[%s12784_s2 + $0x3c0] sm:$0xff]  }
 0x48e   : > { %v7441_v61 = vor.u32 %v7440_v33, %v7437_v30  ;;  %v12656_v30 = vld [vmem:[#allocation3 + $0x2c] sm:$0x1] }
 0x48f   : > { %v7878_v63 = vshll.u32 %v12656_v30, 16 }
 0x490   : > { %10455 = vmatpush3.bf16.msra.mxu1 %v11028_v29  ;;  %v7390_v29 = vrot.slane %v7388_v16, 5  ;;  %v7442_v24 = vrot.slane %v7441_v61, 4  ;;  %v7857_v16 = vrot.slane %v7855_v26, 4  ;;  %v7911_v61 = vshrl.u32 %v7822_v56, 16  ;;  %v12676_v26 = vld [vmem:[#allocation3 + $0x44] sm:$0x1] }
 0x491   : > { %10456 = vmatprep.subr.bf16.mxu1 %v11029_v5 }
 0x492   : > { %v7391_v4 = vsel %vm11186_vm11, %v7386_v32, %v7390_v29  ;;  %v7447_v34 = vsel %vm11186_vm11, %v7442_v24, %v7446_v22  ;;  %v7900_v32 = vshll.u32 %v7820_v10, 16  ;;  %v7861_v33 = vor.u32 %v7860_v52, %v7857_v16  ;;  %v12683_v16 = vld [vmem:[#allocation3 + $0x4c] sm:$0x1] }
 0x493   : > { %v9280_v6 = vcombine.low %v7391_v4, %v7405_v15  ;;  %v7864_v29 = vshll.u32 %v12654_v53, 16  ;;  %v7899_v15 = vrot.slane %v7897_v28, 4  ;;  %v12663_v4 = vld [vmem:[#allocation3 + $0x34] sm:$0x1]  ;;  %v7913_v54 = vrot.slane %v7911_v61, 4 }
 0x494   : > { %10457 = vmatpush3.bf16.msra.mxu1 %v11029_v5  ;;  %v12627_v5 = vld [vmem:[#allocation3 + $0x1c] sm:$0x1]  ;;  %v7902_v47 = vrot.slane %v7900_v32, 5  ;;  %v7862_v3 = vrot.slane %v7861_v33, 4  ;;  %v7892_v24 = vshll.u32 %v12663_v4, 16  ;;  %v7934_v57 = vshll.u32 %v12683_v16, 16 }
 0x495   : > { %10458 = vmatprep.subr.bf16.mxu1 %v11030_v13  ;;  %v7850_v44 = vshll.u32 %v12627_v5, 16  ;;  %v7866_v55 = vrot.slane %v7864_v29, 5  ;;  %v5349_v33 = vrot.slane %v12482_v2, 4 }
 0x496   : > { %v7894_v52 = vrot.slane %v7892_v24, 5 }
 0x497   : > { %v7852_v14 = vrot.slane %v7850_v44, 5  ;;  %v7880_v44 = vrot.slane %v7878_v63, 5 }
 0x498   : > { %10459 = vmatpush3.bf16.msra.mxu1 %v11030_v13  ;;  %v7460_v13 = vrot.slane %v7458_v42, 5  ;;  %v7914_v42 = vshll.u32 %v7822_v56, 16 }
 0x499   : > { %10460 = vmatprep.subr.bf16.mxu1 %v11031_v41 }
 0x49a   : > { %v7461_v31 = vsel %vm11186_vm11, %v7456_v12, %v7460_v13  ;;  %v7928_v12 = vshll.u32 %v7824_v43, 16  ;;  %v5371_v43 = vrot.slane %v12486_v0, 4 }
 0x49b   : > { %v9282_v40 = vcombine.low %v7447_v34, %v7461_v31 }
 0x49c   : > { %10461 = vmatpush3.bf16.msra.mxu1 %v11031_v41  ;;  %v7853_v41 = vsel %vm11186_vm11, %v7848_v20, %v7852_v14  ;;  %v7916_v20 = vrot.slane %v7914_v42, 5  ;;  %v7906_v14 = vshll.u32 %v12668_v49, 16 }
 0x49d   : > { %10470 = vmatprep.subr.bf16.mxu1 %v11032_v1  ;;  %v9307_v58 = vcombine.low %v7839_v7, %v7853_v41  ;;  %v7890_v7 = vrot.slane %v7889_v8, 4  ;;  %v7930_v41 = vrot.slane %v7928_v12, 5  ;;  %v8092_v12 = vld [vmem:[#allocation3 + $0x10] sm:$0xe] }
 0x49e   : > { %v7908_v32 = vrot.slane %v7906_v14, 5  ;;  %v9319_v14 = vrot.slane %v8092_v12, 9 }
 0x49f   : > { %10463 = vmatmul.mubr.bf16.vlgmr.msra.gmra.mrb[24].mxu1 %v9280_v6  ;;  %v7895_v39 = vsel %vm11186_vm11, %v7890_v7, %v7894_v52  ;;  %v5372_v7 = vadd.f32 %v5371_v43, %v12486_v0  ;;  %v11042_v0 = vld [vmem:[%s12784_s2 + $0x3d0] sm:$0xff]  }
 0x4a0   : > { %10466 = vmatprep.mubr.bf16.mxu1 %v9281_v11  ;;  %10471 = vmatpush3.bf16.msra.mxu1 %v11032_v1  ;;  %v7875_v1 = vor.u32 %v7874_v23, %v7871_v36  ;;  %v7903_v11 = vor.u32 %v7902_v47, %v7899_v15  ;;  %v7917_v36 = vor.u32 %v7916_v20, %v7913_v54  ;;  %v7920_v23 = vshll.u32 %v12676_v26, 16 }
 0x4a1   : > { %10472 = vmatprep.subr.bf16.mxu1 %v11033_v59 }
 0x4a2   : > { %v7876_v6 = vrot.slane %v7875_v1, 4  ;;  %v7904_v38 = vrot.slane %v7903_v11, 4  ;;  %v7918_v42 = vrot.slane %v7917_v36, 4 }
 0x4a4   : > { %10473 = vmatpush3.bf16.msra.mxu1 %v11033_v59  ;;  %v11038_v59 = vld [vmem:[%s12784_s2 + $0x3b0] sm:$0xff]   ;;  %v7881_v31 = vsel %vm11186_vm11, %v7876_v6, %v7880_v44  ;;  %v7909_v63 = vsel %vm11186_vm11, %v7904_v38, %v7908_v32  ;;  %v7936_v6 = vrot.slane %v7934_v57, 5 }
 0x4a5   : > { %10474 = vmatprep.subr.bf16.mxu1 %v11034_v19 }
 0x4a7   : > { %10467 = vmatmul.mubr.bf16.gmra.mrb[28].mxu1 %v9282_v40  ;;  %v7927_v40 = vrot.slane %v7925_v48, 4 }
 0x4a8   : > { %10475 = vmatpush3.bf16.msra.mxu1 %v11034_v19  ;;  %10486 = vmatprep.mubr.bf16.mxu1 %v9307_v58  ;;  %v7867_v19 = vsel %vm11186_vm11, %v7862_v3, %v7866_v55 }
 0x4a9   : > { %10476 = vmatprep.subr.bf16.mxu1 %v11035_v9  ;;  %v9308_v1 = vcombine.low %v7867_v19, %v7881_v31  ;;  %v7931_v56 = vor.u32 %v7930_v41, %v7927_v40  ;;  %v8093_v31 = vld [vmem:[#allocation3 + $0x18] sm:$0xe] }
 0x4ab   : > { %v7932_v19 = vrot.slane %v7931_v56, 4 }
 0x4ac   : > { %10477 = vmatpush3.bf16.msra.mxu1 %v11035_v9 }
 0x4ad   : > { %10478 = vmatprep.subr.bf16.mxu1 %v11036_v51  ;;  %v7937_v41 = vsel %vm11186_vm11, %v7932_v19, %v7936_v6  ;;  %v8130_v19 = vrot.slane %v12656_v30, 5  ;;  %v8099_v30 = vld [vmem:[#allocation3 + $0x48] sm:$0xe] }
 0x4b0   : > { %10479 = vmatpush3.bf16.msra.mxu1 %v11036_v51 }
 0x4b1   : > { %10480 = vmatprep.subr.bf16.mxu1 %v11037_v25 }
 0x4b2   : > { %v10320_v46 = vpop.f32.mrb[8].mxu1 }
 0x4b3   : > { %v6351_v13 = vpack.c.bf16 %v10320_v46, %v10320_v46  ;;  %v6310_v17 = vpop.f32.mrb[9].mxu1  ;;  %v6381_v45 = vmul.f32 %v10320_v46, %v10320_v46 }
 0x4b4   : > { %v6349_v21 = vpack.c.bf16 %v6310_v17, %v6310_v17  ;;  %v10321_v22 = vpop.f32.mrb[10].mxu1  ;;  %10481 = vmatpush3.bf16.msra.mxu1 %v11037_v25  ;;  %v6379_v9 = vmul.f32 %v6310_v17, %v6310_v17 }
 0x4b5   : > { %6359 = vst [vmem:[%s12460_s30 + $0x24] sm:$0xf] %v6351_v13  ;;  %v6352_v27 = vpack.c.bf16 %v10321_v22, %v10321_v22  ;;  %v6313_v34 = vpop.f32.mrb[11].mxu1  ;;  %10482 = vmatprep.subr.bf16.mxu1 %v11038_v59  ;;  %v6382_v25 = vmul.f32 %v10321_v22, %v10321_v22  ;;  %v9309_v13 = vcombine.low %v7895_v39, %v7909_v63 }
 0x4b6   : > { %6357 = vst [vmem:[%s12460_s30 + $0x4] sm:$0xf] %v6349_v21  ;;  %v6350_v18 = vpack.c.bf16 %v6313_v34, %v6313_v34  ;;  %v6365_v58 = vadd.f32 %v6313_v34, %v6310_v17  ;;  %v6380_v10 = vmul.f32 %v6313_v34, %v6313_v34  ;;  %v11041_v17 = vld [vmem:[%s12784_s2 + $0x3c8] sm:$0xff]  }
 0x4b7   : > { %6360 = vst [vmem:[%s12460_s30 + $0x34] sm:$0xf] %v6352_v27  ;;  %v8118_v27 = vrot.slane %v12620_v62, 5  ;;  %v8122_v62 = vrot.slane %v12627_v5, 5  ;;  %v11043_v5 = vld [vmem:[%s12784_s2 + $0x3d8] sm:$0xff]  }
 0x4b8   : > { %6358 = vst [vmem:[%s12460_s30 + $0x14] sm:$0xf] %v6350_v18  ;;  %v6366_v51 = vadd.f32 %v10320_v46, %v6365_v58  ;;  %v6387_v28 = vadd.f32 %v6380_v10, %v6379_v9  ;;  %10483 = vmatpush3.bf16.msra.mxu1 %v11038_v59  ;;  %v5350_v46 = vadd.f32 %v5349_v33, %v12482_v2  ;;  %v7922_v2 = vrot.slane %v7920_v23, 5 }
 0x4b9   : > { %10484 = vmatprep.subr.bf16.mxu1 %v11039_v50  ;;  %v9320_v9 = vrot.slane %v8093_v31, 9  ;;  %v8119_v36 = vsel %vm12111_vm9, %v9319_v14, %v8118_v27  ;;  %v5373_v23 = vrot.slane %v5372_v7, 2  ;;  %v8126_v31 = vrot.slane %v12654_v53, 5  ;;  %v8098_v27 = vld [vmem:[#allocation3 + $0x40] sm:$0xe] }
 0x4ba   : > { %v6388_v29 = vadd.f32 %v6387_v28, %v6381_v45  ;;  %v10324_v15 = vpop.f32.mrb[12].mxu1  ;;  %v6367_v47 = vadd.f32 %v10321_v22, %v6366_v51  ;;  %v7923_v40 = vsel %vm11186_vm11, %v7918_v42, %v7922_v2  ;;  %v5351_v18 = vrot.slane %v5350_v46, 2 }
 0x4bb   : > { %v6355_v3 = vpack.c.bf16 %v10324_v15, %v10324_v15  ;;  %v6326_v61 = vpop.f32.mrb[13].mxu1  ;;  %v6385_v34 = vmul.f32 %v10324_v15, %v10324_v15  ;;  %v9310_v60 = vcombine.low %v7923_v40, %v7937_v41  ;;  %v8123_v51 = vsel %vm12111_vm9, %v9320_v9, %v8122_v62 }
 0x4bc   : > { %v6353_v8 = vpack.c.bf16 %v6326_v61, %v6326_v61  ;;  %v6368_v59 = vadd.f32 %v6367_v47, %v6326_v61  ;;  %v6383_v55 = vmul.f32 %v6326_v61, %v6326_v61  ;;  %v6389_v11 = vadd.f32 %v6388_v29, %v6382_v25  ;;  %v10325_v48 = vpop.f32.mrb[14].mxu1  ;;  %10485 = vmatpush3.bf16.msra.mxu1 %v11039_v50  ;;  %v11044_v25 = vld [vmem:[%s12784_s2 + $0x3e0] sm:$0xff]   ;;  %v11045_v61 = vld [vmem:[%s12784_s2 + $0x3e8] sm:$0xff]  }
 0x4bd   : > { %6363 = vst [vmem:[%s12460_s30 + $0x64] sm:$0xf] %v6355_v3  ;;  %v6356_v44 = vpack.c.bf16 %v10325_v48, %v10325_v48  ;;  %v6329_v24 = vpop.f32.mrb[15].mxu1  ;;  %10494 = vmatprep.subr.bf16.mxu1 %v11040_v37  ;;  %v6386_v58 = vmul.f32 %v10325_v48, %v10325_v48  ;;  %v5352_v28 = vadd.f32 %v5351_v18, %v5350_v46  ;;  %v8095_v46 = vld [vmem:[#allocation3 + $0x28] sm:$0xe]  ;;  %v8138_v2 = vrot.slane %v12668_v49, 5 }
 0x4be   : > { %6361 = vst [vmem:[%s12460_s30 + $0x44] sm:$0xf] %v6353_v8  ;;  %v6390_v54 = vadd.f32 %v6389_v11, %v6383_v55  ;;  %v6354_v20 = vpack.c.bf16 %v6329_v24, %v6329_v24  ;;  %v6369_v21 = vadd.f32 %v6368_v59, %v6329_v24  ;;  %v6384_v22 = vmul.f32 %v6329_v24, %v6329_v24  ;;  %v11047_v24 = vld [vmem:[%s12784_s2 + $0x3f8] sm:$0xff]  }
 0x4bf   : > { %6364 = vst [vmem:[%s12460_s30 + $0x74] sm:$0xf] %v6356_v44  ;;  %10487 = vmatmul.mubr.bf16.vlgmr.msra.gmra.mrb[24].mxu1 %v9308_v1  ;;  %v9343_v1 = vcombine.low %v8119_v36, %v8123_v51  ;;  %v5353_v29 = vrot.slane %v5352_v28, 1  ;;  %v8096_v44 = vld [vmem:[#allocation3 + $0x30] sm:$0xe]  ;;  %v8142_v49 = vrot.slane %v12676_v26, 5 }
 0x4c0   : > { %6362 = vst [vmem:[%s12460_s30 + $0x54] sm:$0xf] %v6354_v20  ;;  %v6370_v50 = vadd.f32 %v10324_v15, %v6369_v21  ;;  %v6391_v38 = vadd.f32 %v6390_v54, %v6384_v22  ;;  %10490 = vmatprep.mubr.bf16.mxu1 %v9309_v13  ;;  %10495 = vmatpush3.bf16.msra.mxu1 %v11040_v37  ;;  %v8094_v13 = vld [vmem:[#allocation3 + $0x20] sm:$0xe]  ;;  %v8097_v54 = vld [vmem:[#allocation3 + $0x38] sm:$0xe] }
 0x4c1   : > { %10496 = vmatprep.subr.bf16.mxu1 %v11041_v17  ;;  %v5374_v37 = vadd.f32 %v5373_v23, %v5372_v7  ;;  %v5354_v42 = vadd.f32 %v5353_v29, %v5352_v28  ;;  %v9323_v20 = vrot.slane %v8096_v44, 9  ;;  %v8134_v21 = vrot.slane %v12663_v4, 5 }
 0x4c2   : > { %v6371_v10 = vadd.f32 %v10325_v48, %v6370_v50  ;;  %v6392_v52 = vadd.f32 %v6391_v38, %v6385_v34  ;;  %v11046_v48 = vld [vmem:[%s12784_s2 + $0x3f0] sm:$0xff]   ;;  %v9321_v22 = vrot.slane %v8094_v13, 9  ;;  %v9324_v7 = vrot.slane %v8097_v54, 9 }
 0x4c3   : > { %v5375_v63 = vrot.slane %v5374_v37, 1  ;;  %v8135_v34 = vsel %vm12111_vm9, %v9323_v20, %v8134_v21  ;;  %v9325_v38 = vrot.slane %v8098_v27, 9  ;;  %v9326_v41 = vrot.slane %v8099_v30, 9 }
 0x4c4   : > { %v6372_v57 = vrot.slane %v6371_v10, 4  ;;  %v6393_v45 = vadd.f32 %v6392_v52, %v6386_v58  ;;  %10497 = vmatpush3.bf16.msra.mxu1 %v11041_v17  ;;  %v9322_v17 = vrot.slane %v8095_v46, 9  ;;  %v8127_v4 = vsel %vm12111_vm9, %v9321_v22, %v8126_v31 }
 0x4c5   : > { %10498 = vmatprep.subr.bf16.mxu1 %v11042_v0  ;;  %v5376_v59 = vadd.f32 %v5375_v63, %v5374_v37  ;;  %v8139_v53 = vsel %vm12111_vm9, %v9324_v7, %v8138_v2  ;;  %v8143_v9 = vsel %vm12111_vm9, %v9325_v38, %v8142_v49 }
 0x4c6   : > { %v6373_v32 = vadd.f32 %v6372_v57, %v6371_v10  ;;  %v6394_v33 = vrot.slane %v6393_v45, 4  ;;  %v8131_v14 = vsel %vm12111_vm9, %v9322_v17, %v8130_v19  ;;  %v9345_v40 = vcombine.low %v8135_v34, %v8139_v53 }
 0x4c7   : > { %10491 = vmatmul.mubr.bf16.gmra.mrb[28].mxu1 %v9310_v60  ;;  %v9344_v50 = vcombine.low %v8127_v4, %v8131_v14 }
 0x4c8   : > { %v6374_v39 = vrot.slane %v6373_v32, 2  ;;  %v6395_v56 = vadd.f32 %v6394_v33, %v6393_v45  ;;  %10499 = vmatpush3.bf16.msra.mxu1 %v11042_v0  ;;  %10510 = vmatprep.mubr.bf16.mxu1 %v9343_v1  ;;  %v8146_v0 = vrot.slane %v12683_v16, 5 }
 0x4c9   : > { %10500 = vmatprep.subr.bf16.mxu1 %v11043_v5 }
 0x4ca   : > { %v6375_v15 = vadd.f32 %v6374_v39, %v6373_v32  ;;  %v6396_v47 = vrot.slane %v6395_v56, 2  ;;  %v8147_v62 = vsel %vm12111_vm9, %v9326_v41, %v8146_v0 }
 0x4cb   : > { %v9346_v18 = vcombine.low %v8143_v9, %v8147_v62 }
 0x4cc   : > { %v6376_v43 = vrot.slane %v6375_v15, 1  ;;  %v6397_v3 = vadd.f32 %v6396_v47, %v6395_v56  ;;  %10501 = vmatpush3.bf16.msra.mxu1 %v11043_v5 }
 0x4cd   : > { %10502 = vmatprep.subr.bf16.mxu1 %v11044_v25 }
 0x4ce   : > { %v6377_v6 = vadd.f32 %v6376_v43, %v6375_v15  ;;  %v6398_v8 = vrot.slane %v6397_v3, 1 }
 0x4d0   : > { %v12729_v55 = vadd.f32 %v6377_v6, %v5354_v42  ;;  %v6399_v11 = vadd.f32 %v6398_v8, %v6397_v3  ;;  %10503 = vmatpush3.bf16.msra.mxu1 %v11044_v25 }
 0x4d1   : > { %10504 = vmatprep.subr.bf16.mxu1 %v11045_v61 }
 0x4d2   : > { %v12734_v12 = vadd.f32 %v6399_v11, %v5376_v59 }
 0x4d4   : > { %10505 = vmatpush3.bf16.msra.mxu1 %v11045_v61 }
 0x4d5   : > { %10506 = vmatprep.subr.bf16.mxu1 %v11046_v48 }
 0x4d8   : > { %10507 = vmatpush3.bf16.msra.mxu1 %v11046_v48 }
 0x4d9   : > { %10508 = vmatprep.subr.bf16.mxu1 %v11047_v24 }
 0x4dc   : > { %10509 = vmatpush3.bf16.msra.mxu1 %v11047_v24 }
 0x4df   : > { %10511 = vmatmul.mubr.bf16.vlgmr.msra.gmra.mrb[24].mxu1 %v9344_v50 }
 0x4e0   : > { %10514 = vmatprep.mubr.bf16.mxu1 %v9345_v40 }
 0x4e7   : > { %10515 = vmatmul.mubr.bf16.gmra.mrb[28].mxu1 %v9346_v18 }
 0x532   : > { %v10416_v58 = vpop.f32.mrb[16].mxu1 }
 0x533   : > { %v7284_v10 = vpack.c.bf16 %v10416_v58, %v10416_v58  ;;  %v7243_v52 = vpop.f32.mrb[17].mxu1  ;;  %v7314_v35 = vmul.f32 %v10416_v58, %v10416_v58 }
 0x534   : > { %v7282_v26 = vpack.c.bf16 %v7243_v52, %v7243_v52  ;;  %v10417_v36 = vpop.f32.mrb[18].mxu1  ;;  %v7312_v57 = vmul.f32 %v7243_v52, %v7243_v52 }
 0x535   : > { %7292 = vst [vmem:[%s12460_s30 + $0x28] sm:$0xf] %v7284_v10  ;;  %v7285_v23 = vpack.c.bf16 %v10417_v36, %v10417_v36  ;;  %v7246_v16 = vpop.f32.mrb[19].mxu1  ;;  %v7315_v32 = vmul.f32 %v10417_v36, %v10417_v36 }
 0x536   : > { %7290 = vst [vmem:[%s12460_s30 + $0x8] sm:$0xf] %v7282_v26  ;;  %v7283_v45 = vpack.c.bf16 %v7246_v16, %v7246_v16  ;;  %v7298_v60 = vadd.f32 %v7246_v16, %v7243_v52  ;;  %v7313_v51 = vmul.f32 %v7246_v16, %v7246_v16 }
 0x537   : > { %7293 = vst [vmem:[%s12460_s30 + $0x38] sm:$0xf] %v7285_v23 }
 0x538   : > { %7291 = vst [vmem:[%s12460_s30 + $0x18] sm:$0xf] %v7283_v45  ;;  %v7299_v5 = vadd.f32 %v10416_v58, %v7298_v60  ;;  %v7320_v28 = vadd.f32 %v7313_v51, %v7312_v57 }
 0x53a   : > { %v7321_v33 = vadd.f32 %v7320_v28, %v7314_v35  ;;  %v10420_v1 = vpop.f32.mrb[20].mxu1  ;;  %v7300_v37 = vadd.f32 %v10417_v36, %v7299_v5 }
 0x53b   : > { %v7288_v39 = vpack.c.bf16 %v10420_v1, %v10420_v1  ;;  %v7259_v56 = vpop.f32.mrb[21].mxu1  ;;  %v7318_v59 = vmul.f32 %v10420_v1, %v10420_v1 }
 0x53c   : > { %v7286_v25 = vpack.c.bf16 %v7259_v56, %v7259_v56  ;;  %v7301_v29 = vadd.f32 %v7300_v37, %v7259_v56  ;;  %v7316_v15 = vmul.f32 %v7259_v56, %v7259_v56  ;;  %v7322_v47 = vadd.f32 %v7321_v33, %v7315_v32  ;;  %v10421_v63 = vpop.f32.mrb[22].mxu1 }
 0x53d   : > { %7296 = vst [vmem:[%s12460_s30 + $0x68] sm:$0xf] %v7288_v39  ;;  %v7289_v43 = vpack.c.bf16 %v10421_v63, %v10421_v63  ;;  %v7262_v3 = vpop.f32.mrb[23].mxu1  ;;  %v7319_v46 = vmul.f32 %v10421_v63, %v10421_v63 }
 0x53e   : > { %7294 = vst [vmem:[%s12460_s30 + $0x48] sm:$0xf] %v7286_v25  ;;  %v7323_v61 = vadd.f32 %v7322_v47, %v7316_v15  ;;  %v7287_v42 = vpack.c.bf16 %v7262_v3, %v7262_v3  ;;  %v7302_v6 = vadd.f32 %v7301_v29, %v7262_v3  ;;  %v7317_v8 = vmul.f32 %v7262_v3, %v7262_v3 }
 0x53f   : > { %7297 = vst [vmem:[%s12460_s30 + $0x78] sm:$0xf] %v7289_v43 }
 0x540   : > { %7295 = vst [vmem:[%s12460_s30 + $0x58] sm:$0xf] %v7287_v42  ;;  %v7303_v11 = vadd.f32 %v10420_v1, %v7302_v6  ;;  %v7324_v48 = vadd.f32 %v7323_v61, %v7317_v8 }
 0x542   : > { %v7304_v44 = vadd.f32 %v10421_v63, %v7303_v11  ;;  %v7325_v24 = vadd.f32 %v7324_v48, %v7318_v59 }
 0x544   : > { %v7305_v13 = vrot.slane %v7304_v44, 4  ;;  %v7326_v17 = vadd.f32 %v7325_v24, %v7319_v46 }
 0x546   : > { %v7306_v19 = vadd.f32 %v7305_v13, %v7304_v44  ;;  %v7327_v54 = vrot.slane %v7326_v17, 4 }
 0x548   : > { %v7307_v20 = vrot.slane %v7306_v19, 2  ;;  %v7328_v21 = vadd.f32 %v7327_v54, %v7326_v17 }
 0x54a   : > { %v7308_v22 = vadd.f32 %v7307_v20, %v7306_v19  ;;  %v7329_v31 = vrot.slane %v7328_v21, 2 }
 0x54c   : > { %v7309_v7 = vrot.slane %v7308_v22, 1  ;;  %v7330_v2 = vadd.f32 %v7329_v31, %v7328_v21 }
 0x54e   : > { %v7310_v14 = vadd.f32 %v7309_v7, %v7308_v22  ;;  %v7331_v27 = vrot.slane %v7330_v2, 1 }
 0x550   : > { %v7311_v34 = vadd.f32 %v7310_v14, %v12729_v55  ;;  %v7332_v30 = vadd.f32 %v7331_v27, %v7330_v2 }
 0x552   : > { %v7333_v4 = vadd.f32 %v7332_v30, %v12734_v12 }
 0x5b2   : > { %v10512_v50 = vpop.f32.mrb[24].mxu1 }
 0x5b3   : > { %v8304_v53 = vpack.c.bf16 %v10512_v50, %v10512_v50  ;;  %v8263_v38 = vpop.f32.mrb[25].mxu1  ;;  %v8334_v55 = vmul.f32 %v10512_v50, %v10512_v50 }
 0x5b4   : > { %v8302_v40 = vpack.c.bf16 %v8263_v38, %v8263_v38  ;;  %v10513_v49 = vpop.f32.mrb[26].mxu1  ;;  %v8332_v9 = vmul.f32 %v8263_v38, %v8263_v38 }
 0x5b5   : > { %8312 = vst [vmem:[%s12460_s30 + $0x2c] sm:$0xf] %v8304_v53  ;;  %v8305_v41 = vpack.c.bf16 %v10513_v49, %v10513_v49  ;;  %v8266_v0 = vpop.f32.mrb[27].mxu1  ;;  %v8335_v52 = vmul.f32 %v10513_v49, %v10513_v49 }
 0x5b6   : > { %8310 = vst [vmem:[%s12460_s30 + $0xc] sm:$0xf] %v8302_v40  ;;  %v8303_v62 = vpack.c.bf16 %v8266_v0, %v8266_v0  ;;  %v8318_v18 = vadd.f32 %v8266_v0, %v8263_v38  ;;  %v8333_v58 = vmul.f32 %v8266_v0, %v8266_v0 }
 0x5b7   : > { %8313 = vst [vmem:[%s12460_s30 + $0x3c] sm:$0xf] %v8305_v41 }
 0x5b8   : > { %8311 = vst [vmem:[%s12460_s30 + $0x1c] sm:$0xf] %v8303_v62  ;;  %v8319_v10 = vadd.f32 %v10512_v50, %v8318_v18  ;;  %v8340_v12 = vadd.f32 %v8333_v58, %v8332_v9 }
 0x5ba   : > { %v8341_v26 = vadd.f32 %v8340_v12, %v8334_v55  ;;  %v10516_v36 = vpop.f32.mrb[28].mxu1  ;;  %v8320_v23 = vadd.f32 %v10513_v49, %v8319_v10 }
 0x5bb   : > { %v8308_v16 = vpack.c.bf16 %v10516_v36, %v10516_v36  ;;  %v8279_v57 = vpop.f32.mrb[29].mxu1  ;;  %v8338_v56 = vmul.f32 %v10516_v36, %v10516_v36 }
 0x5bc   : > { %v8306_v45 = vpack.c.bf16 %v8279_v57, %v8279_v57  ;;  %v8321_v60 = vadd.f32 %v8320_v23, %v8279_v57  ;;  %v8336_v51 = vmul.f32 %v8279_v57, %v8279_v57  ;;  %v8342_v35 = vadd.f32 %v8341_v26, %v8335_v52  ;;  %v10517_v5 = vpop.f32.mrb[30].mxu1 }
 0x5bd   : > { %8316 = vst [vmem:[%s12460_s30 + $0x6c] sm:$0xf] %v8308_v16  ;;  %v8309_v28 = vpack.c.bf16 %v10517_v5, %v10517_v5  ;;  %v8282_v32 = vpop.f32.mrb[31].mxu1  ;;  %v8339_v15 = vmul.f32 %v10517_v5, %v10517_v5 }
 0x5be   : > { %8314 = vst [vmem:[%s12460_s30 + $0x4c] sm:$0xf] %v8306_v45  ;;  %v8343_v33 = vadd.f32 %v8342_v35, %v8336_v51  ;;  %v8307_v1 = vpack.c.bf16 %v8282_v32, %v8282_v32  ;;  %v8322_v37 = vadd.f32 %v8321_v60, %v8282_v32  ;;  %v8337_v39 = vmul.f32 %v8282_v32, %v8282_v32 }
 0x5bf   : > { %8317 = vst [vmem:[%s12460_s30 + $0x7c] sm:$0xf] %v8309_v28 }
 0x5c0   : > { %8315 = vst [vmem:[%s12460_s30 + $0x5c] sm:$0xf] %v8307_v1  ;;  %v8323_v25 = vadd.f32 %v10516_v36, %v8322_v37  ;;  %v8344_v29 = vadd.f32 %v8343_v33, %v8337_v39 }
 0x5c2   : > { %v8324_v47 = vadd.f32 %v10517_v5, %v8323_v25  ;;  %v8345_v63 = vadd.f32 %v8344_v29, %v8338_v56 }
 0x5c4   : > { %v8325_v43 = vrot.slane %v8324_v47, 4  ;;  %v8346_v3 = vadd.f32 %v8345_v63, %v8339_v15 }
 0x5c6   : > { %v8326_v61 = vadd.f32 %v8325_v43, %v8324_v47  ;;  %v8347_v42 = vrot.slane %v8346_v3, 4 }
 0x5c8   : > { %v8327_v6 = vrot.slane %v8326_v61, 2  ;;  %v8348_v8 = vadd.f32 %v8347_v42, %v8346_v3 }
 0x5ca   : > { %v8328_v59 = vadd.f32 %v8327_v6, %v8326_v61  ;;  %v8349_v11 = vrot.slane %v8348_v8, 2 }
 0x5cc   : > { %v8329_v48 = vrot.slane %v8328_v59, 1  ;;  %v8350_v46 = vadd.f32 %v8349_v11, %v8348_v8 }
 0x5ce   : > { %v8330_v44 = vadd.f32 %v8329_v48, %v8328_v59  ;;  %v8351_v24 = vrot.slane %v8350_v46, 1 }
 0x5d0   : > { %v8331_v13 = vadd.f32 %v8330_v44, %v7311_v34  ;;  %v8352_v17 = vadd.f32 %v8351_v24, %v8350_v46 }
 0x5d2   : > { %v8353_v19 = vadd.f32 %v8352_v17, %v7333_v4  ;;  %8354 = vst [vmem:[%s208_s21] sm:$0x1] %v8331_v13 }
 0x5d4   : > { %8355 = vst [vmem:[%s208_s21 + $0x1] sm:$0x1] %v8353_v19 }
 0x5d5 PF: > { %s15_s15 = sadd.s32 1, %s11054_s15  }
 0x5d6   : > { %p12_p4 = scmp.ge.s32.totalorder %s15_s15, 4  }
 0x5d8   :  { %14 = sbr.rel (!%p12_p4) target bundleno = 1 (0x1), region = 113 }

</bundles_post_ra>
